<compile_context>
chip_gen: v7x
topology: tpu7x:2x2x1
jax: 0.10.0
libtpu: 0.0.40
codegen_flags: <defaults>
</compile_context>

<pallas_src>
import jax
import jax.numpy as jnp
from jax import lax
from jax.experimental import pallas as pl
from jax.experimental.pallas import tpu as pltpu

_SUBLANE = 8      # f32 sublane tile
_LANE = 128       # lane tile


# ----------------------------------------------------------------------------
# Small shape / padding helpers.
# ----------------------------------------------------------------------------
def _round_up(x, m):
    return (x + m - 1) // m * m


def _pad_axis(a, axis, new_size):
    pad = new_size - a.shape[axis]
    if pad <= 0:
        return a
    widths = [(0, 0)] * a.ndim
    widths[axis] = (0, pad)
    return jnp.pad(a, widths)


def _pad_last(a, new_size):
    return _pad_axis(a, a.ndim - 1, new_size)


def _pad_time(a, pad, front):
    if pad <= 0:
        return a
    widths = [(pad, 0) if front else (0, pad)] + [(0, 0)] * (a.ndim - 1)
    return jnp.pad(a, widths)


def _pad_gate_cols(w, H, Hp):
    """(..., 3H) -> (..., 3Hp): each gate's H columns land at offset g*Hp."""
    if Hp == H:
        return w
    return jnp.concatenate(
        [_pad_last(w[..., g * H:(g + 1) * H], Hp) for g in range(3)], axis=-1)


# ----------------------------------------------------------------------------
# Chip-aware sizing.
# ----------------------------------------------------------------------------
def _device_kind():
    try:
        return jax.devices()[0].device_kind.lower()
    except Exception:
        return ""


def _is_v7x():
    kind = _device_kind()
    return ("v7" in kind) or ("tpu7" in kind)


def _vmem_capacity():
    try:
        return int(pltpu.get_tpu_info().vmem_capacity_bytes)
    except Exception:
        pass
    return (64 if _is_v7x() else 128) * 1024 * 1024


def _choose_chunk(T, Bp, Hp):
    """Pick timesteps-per-grid-step C and padded sequence length T_pad so the
    double-buffered bf16 gi blocks and (worst-case f32) y blocks of BOTH
    directions fit comfortably in this chip's VMEM (64 MiB v7x, 128 MiB
    v5e/v6e).  Returns (C, T_pad, vmem_limit_bytes)."""
    cap = _vmem_capacity()
    vmem_limit = int(min(cap * 3 // 4, 96 * 1024 * 1024))
    budget = vmem_limit // 3
    per_t = 2 * (2 * Bp * 3 * Hp * 2 + 2 * Bp * Hp * 4)   # 2 dirs, 2-buffered
    cmax = int(max(1, min(128, budget // max(per_t, 1), T)))
    # Prefer the largest divisor of T <= cmax (no time padding needed).
    div = 1
    for c in range(cmax, 0, -1):
        if T % c == 0:
            div = c
            break
    if div >= max(cmax // 2, min(T, 8)):
        c = div
    else:
        c = cmax                      # pad T instead of degenerating to tiny C
    return c, _round_up(T, c), vmem_limit


# ----------------------------------------------------------------------------
# GRU cell math shared by kernels and references.
#   gi already contains x@W_ih + b_ih + [b_hr | b_hz | 0];
#   only b_hn stays inside the r*(...) term (torch.nn.GRU semantics).
# ----------------------------------------------------------------------------
def _gru_cell(gi, h, whh_bf16, bhn, Hp):
    gh = jnp.dot(h.astype(jnp.bfloat16), whh_bf16,
                 preferred_element_type=jnp.float32)          # (Bp, 3Hp) f32
    r = jax.nn.sigmoid(gi[:, :Hp] + gh[:, :Hp])
    z = jax.nn.sigmoid(gi[:, Hp:2 * Hp] + gh[:, Hp:2 * Hp])
    n = jnp.tanh(gi[:, 2 * Hp:] + r * (gh[:, 2 * Hp:] + bhn))
    return (1.0 - z) * n + z * h


# ----------------------------------------------------------------------------
# Kernel A: single-TC (v5e/v6e) — both directions interleaved per grid step.
# ----------------------------------------------------------------------------
def _make_interleaved_kernel(C, Hp, unroll):
    def kernel(gi_f_ref, gi_b_ref, whh_ref, bhn_ref, h0_ref,
               yf_ref, yb_ref, hf_scr, hb_scr):
        c = pl.program_id(0)

        @pl.when(c == 0)
        def _():
            hf_scr[...] = h0_ref[0]
            hb_scr[...] = h0_ref[1]

        whh_f = whh_ref[0]          # (Hp, 3Hp) bf16, loaded once per chunk
        whh_b = whh_ref[1]
        bhn_f = bhn_ref[0]          # (1, Hp) f32
        bhn_b = bhn_ref[1]

        def step(s, carry):
            tb = C - 1 - s
            # Load both directions' gate inputs (bf16 stream -> f32), then
            # issue both recurrent matmuls back-to-back: the two independent
            # dependency chains hide each other's latency on a single TC.
            gif = gi_f_ref[s].astype(jnp.float32)        # (Bp, 3Hp)
            gib = gi_b_ref[tb].astype(jnp.float32)
            hf = hf_scr[...]
            hb = hb_scr[...]
            hf_new = _gru_cell(gif, hf, whh_f, bhn_f, Hp)
            hb_new = _gru_cell(gib, hb, whh_b, bhn_b, Hp)
            hf_scr[...] = hf_new
            hb_scr[...] = hb_new
            yf_ref[s] = hf_new.astype(yf_ref.dtype)
            yb_ref[tb] = hb_new.astype(yb_ref.dtype)
            return carry

        lax.fori_loop(0, C, step, 0, unroll=unroll)

    return kernel


# ----------------------------------------------------------------------------
# Kernel B: v7x (2 TensorCores) — one direction per grid step, direction axis
# is megacore-"parallel".  pl.when-gated loops keep the time index free of
# program_id(0) arithmetic.
# ----------------------------------------------------------------------------
def _make_per_direction_kernel(C, Hp, unroll):
    def kernel(gi_ref, whh_ref, bhn_ref, h0_ref, y_ref, h_scr):
        d = pl.program_id(0)
        c = pl.program_id(1)

        @pl.when(c == 0)
        def _():
            h_scr[...] = h0_ref[...]

        whh = whh_ref[...]          # (Hp, 3Hp) bf16
        bhn = bhn_ref[...]          # (1, Hp) f32

        def make_step(reverse):
            def step(s, carry):
                t = (C - 1 - s) if reverse else s
                gi = gi_ref[t].astype(jnp.float32)
                h_new = _gru_cell(gi, h_scr[...], whh, bhn, Hp)
                h_scr[...] = h_new
                y_ref[t] = h_new.astype(y_ref.dtype)
                return carry
            return step

        @pl.when(d == 0)
        def _():
            lax.fori_loop(0, C, make_step(False), 0, unroll=unroll)

        @pl.when(d == 1)
        def _():
            lax.fori_loop(0, C, make_step(True), 0, unroll=unroll)

    return kernel


# ----------------------------------------------------------------------------
# One bidirectional GRU layer via pallas_call.
#   gi:  (2, T_pad, Bp, 3Hp) bf16   (dir 0 end-padded, dir 1 front-padded)
#   whh: (2, Hp, 3Hp) bf16, bhn: (2, 1, Hp) f32, h0: (2, Bp, Hp) f32
# Returns (y_f, y_b), each (T_pad, Bp, Hp) in natural (padded) time order.
# ----------------------------------------------------------------------------
def gru_layer(gi, whh_bf16, bhn, h0, *, C, out_dtype, use_megacore, vmem_limit):
    _, T_pad, Bp, K3 = gi.shape
    Hp = h0.shape[-1]
    assert K3 == 3 * Hp and T_pad % C == 0
    NC = T_pad // C
    unroll = int(min(C, 8))
    cparams = dict(vmem_limit_bytes=int(vmem_limit))

    if use_megacore:
        # v7x: shard fwd/bwd across the two TensorCores ("parallel" dir axis).
        def io_idx(d, c):
            return (d, c * (1 - 2 * d) + d * (NC - 1), 0, 0)

        def dir_idx(d, c):
            return (d, 0, 0)

        y = pl.pallas_call(
            _make_per_direction_kernel(C, Hp, unroll),
            out_shape=jax.ShapeDtypeStruct((2, T_pad, Bp, Hp), out_dtype),
            grid_spec=pltpu.PrefetchScalarGridSpec(
                num_scalar_prefetch=0,
                grid=(2, NC),
                in_specs=[
                    pl.BlockSpec((pl.Squeezed(), C, Bp, 3 * Hp), io_idx),
                    pl.BlockSpec((pl.Squeezed(), Hp, 3 * Hp), dir_idx),
                    pl.BlockSpec((pl.Squeezed(), 1, Hp), dir_idx),
                    pl.BlockSpec((pl.Squeezed(), Bp, Hp), dir_idx),
                ],
                out_specs=pl.BlockSpec((pl.Squeezed(), C, Bp, Hp), io_idx),
                scratch_shapes=[pltpu.VMEM((Bp, Hp), jnp.float32)],
            ),
            compiler_params=pltpu.CompilerParams(
                dimension_semantics=("parallel", "arbitrary"), **cparams),
        )(gi, whh_bf16, bhn, h0)
        return y[0], y[1]

    # Single-TC (v5e/v6e): interleave both directions inside one grid step.
    yf, yb = pl.pallas_call(
        _make_interleaved_kernel(C, Hp, unroll),
        out_shape=(jax.ShapeDtypeStruct((T_pad, Bp, Hp), out_dtype),
                   jax.ShapeDtypeStruct((T_pad, Bp, Hp), out_dtype)),
        grid_spec=pltpu.PrefetchScalarGridSpec(
            num_scalar_prefetch=0,
            grid=(NC,),
            in_specs=[
                pl.BlockSpec((pl.Squeezed(), C, Bp, 3 * Hp),
                             lambda c: (0, c, 0, 0)),                 # gi fwd
                pl.BlockSpec((pl.Squeezed(), C, Bp, 3 * Hp),
                             lambda c: (1, NC - 1 - c, 0, 0)),        # gi bwd
                pl.BlockSpec((2, Hp, 3 * Hp), lambda c: (0, 0, 0)),   # W_hh
                pl.BlockSpec((2, 1, Hp), lambda c: (0, 0, 0)),        # b_hn
                pl.BlockSpec((2, Bp, Hp), lambda c: (0, 0, 0)),       # h0
            ],
            out_specs=(
                pl.BlockSpec((C, Bp, Hp), lambda c: (c, 0, 0)),
                pl.BlockSpec((C, Bp, Hp), lambda c: (NC - 1 - c, 0, 0)),
            ),
            scratch_shapes=[pltpu.VMEM((Bp, Hp), jnp.float32),
                            pltpu.VMEM((Bp, Hp), jnp.float32)],
        ),
        compiler_params=pltpu.CompilerParams(
            dimension_semantics=("arbitrary",), **cparams),
    )(gi, gi, whh_bf16, bhn, h0)
    return yf, yb


# ----------------------------------------------------------------------------
# Hoisted, padded input projection (sequence-parallel XLA matmul, bf16 out).
# ----------------------------------------------------------------------------
def _input_proj(parts, wih_parts, bih):
    """parts: list of (T, Bp, Dk); wih_parts: list of (2, Dk, 3Hp);
    bih: (2, 1, 3Hp).  Returns gi: (2, T, Bp, 3Hp) bf16.  Per-part sums avoid
    materializing the layer-1 feature concat."""
    acc = None
    for part, w in zip(parts, wih_parts):
        contrib = jnp.einsum('tbd,zdk->ztbk', part.astype(jnp.bfloat16),
                             w.astype(jnp.bfloat16),
                             preferred_element_type=jnp.float32)
        acc = contrib if acc is None else acc + contrib
    return (acc + bih[:, None]).astype(jnp.bfloat16)


# ----------------------------------------------------------------------------
# Per-layer parameter prep: gate-slot padding + bias folding.
# ----------------------------------------------------------------------------
def _prep_layer(p, H, Hp):
    wih, whh, bih, bhh = p["wih"], p["whh"], p["bih"], p["bhh"]
    d_in = wih.shape[1]

    # Fold b_hr / b_hz into the input bias; keep only b_hn for the kernel.
    bih_fold = bih + jnp.concatenate(
        [bhh[..., :2 * H], jnp.zeros_like(bhh[..., 2 * H:])], axis=-1)
    bih_p = _pad_gate_cols(bih_fold, H, Hp)                    # (2, 1, 3Hp)
    bhn_p = _pad_last(bhh[..., 2 * H:], Hp)                    # (2, 1, Hp)

    whh_p = _pad_gate_cols(whh, H, Hp)                         # (2, H, 3Hp)
    whh_p = _pad_axis(whh_p, 1, Hp).astype(jnp.bfloat16)       # (2, Hp, 3Hp)

    wih_p = _pad_gate_cols(wih, H, Hp)                         # (2, d_in, 3Hp)
    if d_in == 2 * H:
        # layer-1 input = concat(y_fwd, y_bwd); split per part and pad each
        # part's rows to the padded Hp width of y.
        parts = [_pad_axis(wih_p[:, :H, :], 1, Hp),
                 _pad_axis(wih_p[:, H:, :], 1, Hp)]
    else:
        parts = [wih_p]
    return {"wih_parts": parts, "bih": bih_p, "whh": whh_p, "bhn": bhn_p}


# ----------------------------------------------------------------------------
# Full EncoderBiGRU forward (eval mode), parameterized by the layer impl so the
# matched-precision reference reuses the exact same gi / padding pipeline.
# ----------------------------------------------------------------------------
def _forward_impl(params, tokens, hidden, layer_fn):
    B, T = tokens.shape
    H = hidden.shape[-1]
    Hp = _round_up(H, _LANE)
    Bp = _round_up(B, _SUBLANE)
    C, T_pad, vmem_limit = _choose_chunk(T, Bp, Hp)
    P = T_pad - T
    use_megacore = _is_v7x()

    emb = params["embedding"][tokens]              # (B, T, E) frozen lookup
    x = jnp.transpose(emb, (1, 0, 2))              # (T, B, E)
    x = _pad_axis(x, 1, Bp)                        # (T, Bp, E)

    h_n = []
    parts = [x]
    for layer in range(2):
        kp = _prep_layer(params[f"l{layer}"], H, Hp)
        # layer-0 y feeds layer 1 -> stream it bf16; final layer stays f32.
        out_dtype = jnp.bfloat16 if layer == 0 else jnp.float32
        gi_nat = _input_proj(parts, kp["wih_parts"], kp["bih"])  # (2,T,Bp,3Hp)
        # Forward scans real steps first (end-pad); backward scans from t=T-1,
        # so front-padding keeps its padded zero steps after all real steps.
        gi = jnp.stack([_pad_time(gi_nat[0], P, front=False),
                        _pad_time(gi_nat[1], P, front=True)], axis=0)
        h0 = hidden[2 * layer:2 * layer + 2]                     # (2, B, H)
        h0p = _pad_axis(_pad_last(h0, Hp), 1, Bp)                # (2, Bp, Hp)
        y_f, y_b = layer_fn(gi, kp["whh"], kp["bhn"], h0p, C=C,
                            out_dtype=out_dtype, use_megacore=use_megacore,
                            vmem_limit=vmem_limit)
        yf_nat = y_f[:T] if P else y_f               # real times 0..T-1
        yb_nat = y_b[P:] if P else y_b
        h_n.append(yf_nat[T - 1, :B, :H].astype(jnp.float32))
        h_n.append(yb_nat[0, :B, :H].astype(jnp.float32))
        parts = [yf_nat, yb_nat]
        # TODO(synk): nn.GRU applies dropout(p=0.1) between layers only in
        # training mode; eval-mode (no dropout) semantics are implemented.

    out = jnp.concatenate([parts[0][:, :B, :H], parts[1][:, :B, :H]], axis=-1)
    out = jnp.transpose(out, (1, 0, 2)).astype(jnp.float32)      # (B, T, 2H)
    return out, jnp.stack(h_n, axis=0)                           # (4, B, H)


def encoder_bigru_forward(params, tokens, hidden):
    return _forward_impl(params, tokens, hidden, gru_layer)


# ----------------------------------------------------------------------------
# Parameter construction (mimics nn.GRU init + identity W_hh, frozen emb).
# ----------------------------------------------------------------------------
def init_params(key, vocab_size, emb_dim, hidden_size):
    H = hidden_size
    scale = 1.0 / (H ** 0.5)
    keys = jax.random.split(key, 8)
    ki = iter(keys)

    def uni(k, shape):
        return jax.random.uniform(k, shape, jnp.float32, -scale, scale)

    params = {"embedding": jax.random.normal(next(ki), (vocab_size, emb_dim),
                                             jnp.float32) * 0.1}
    eye3 = jnp.concatenate([jnp.eye(H, dtype=jnp.float32)] * 3, axis=1)
    whh = jnp.broadcast_to(eye3, (2, H, 3 * H))

    d_in = emb_dim
    for layer in range(2):
        params[f"l{layer}"] = {
            "wih": uni(next(ki), (2, d_in, 3 * H)),
            "whh": whh,
            "bih": uni(next(ki), (2, 1, 3 * H)),
            "bhh": uni(next(ki), (2, 1, 3 * H)),
        }
        d_in = 2 * H
    return params


# ----------------------------------------------------------------------------
# References.
# ----------------------------------------------------------------------------
def _scan_gru_layer(gi, whh_bf16, bhn, h0, *, C, out_dtype, use_megacore,
                    vmem_limit):
    """Matched-precision lax.scan replacement for gru_layer."""
    del C, use_megacore, vmem_limit
    Hp = h0.shape[-1]

    def run(gi_d, whh_d, bhn_d, h0_d, reverse):
        def cell(h, gi_t):
            h_new = _gru_cell(gi_t.astype(jnp.float32), h, whh_d, bhn_d, Hp)
            return h_new, h_new.astype(out_dtype)
        xs = gi_d[::-1] if reverse else gi_d
        _, ys = lax.scan(cell, h0_d, xs)
        return ys[::-1] if reverse else ys

    return (run(gi[0], whh_bf16[0], bhn[0], h0[0], False),
            run(gi[1], whh_bf16[1], bhn[1], h0[1], True))


def _ref_forward(params, tokens, hidden):
    return _forward_impl(params, tokens, hidden, _scan_gru_layer)


def _ref_f32_forward(params, tokens, hidden):
    """Pure-f32 torch-semantics reference (no bf16, explicit concat, no pad)."""
    emb = params["embedding"][tokens]
    x = jnp.transpose(emb, (1, 0, 2))
    H = hidden.shape[-1]
    h_n = []
    for layer in range(2):
        p = params[f"l{layer}"]
        ys = []
        for d in range(2):
            wih, whh = p["wih"][d], p["whh"][d]
            bih, bhh = p["bih"][d], p["bhh"][d]

            def cell(h, x_t, wih=wih, whh=whh, bih=bih, bhh=bhh):
                gi = x_t @ wih + bih
                gh = h @ whh + bhh
                r = jax.nn.sigmoid(gi[:, :H] + gh[:, :H])
                z = jax.nn.sigmoid(gi[:, H:2 * H] + gh[:, H:2 * H])
                n = jnp.tanh(gi[:, 2 * H:] + r * gh[:, 2 * H:])
                return (1.0 - z) * n + z * h, (1.0 - z) * n + z * h

            xs = x[::-1] if d == 1 else x
            _, y = lax.scan(cell, hidden[2 * layer + d], xs)
            ys.append(y[::-1] if d == 1 else y)
        h_n.append(ys[0][-1])
        h_n.append(ys[1][0])
        x = jnp.concatenate(ys, axis=-1)
    return jnp.transpose(x, (1, 0, 2)), jnp.stack(h_n, axis=0)


if __name__ == "__main__":
    vocab_size, emb_dim, hidden_size = 50, 16, 32
    batch, seq = 2, 8

    key = jax.random.PRNGKey(0)
    k_param, k_tok = jax.random.split(key)

    params = init_params(k_param, vocab_size, emb_dim, hidden_size)
    tokens = jax.random.randint(k_tok, (batch, seq), 0, vocab_size,
                                dtype=jnp.int32)
    # initHidden: zeros of shape (num_layers * num_directions, B, H)
    hidden0 = jnp.zeros((2 * 2, batch, hidden_size), jnp.float32)

    fwd = jax.jit(encoder_bigru_forward)
    output, h_n = fwd(params, tokens, hidden0)
    output = jax.block_until_ready(output)
    h_n = jax.block_until_ready(h_n)

    assert output.shape == (batch, seq, 2 * hidden_size)
    assert h_n.shape == (4, batch, hidden_size)

    # Strict check vs matched-precision lax.scan reference (same gi/padding).
    ref_out, ref_hn = jax.jit(_ref_forward)(params, tokens, hidden0)
    assert jnp.allclose(output, ref_out, atol=5e-3, rtol=5e-3), \
        float(jnp.max(jnp.abs(output - ref_out)))
    assert jnp.allclose(h_n, ref_hn, atol=5e-3, rtol=5e-3)

    # Loose check vs pure-f32 torch-semantics reference (bf16 rounding only).
    f32_out, f32_hn = _ref_f32_forward(params, tokens, hidden0)
    assert jnp.allclose(output, f32_out, atol=3e-2, rtol=3e-2), \
        float(jnp.max(jnp.abs(output - f32_out)))
    assert jnp.allclose(h_n, f32_hn, atol=3e-2, rtol=3e-2)

    print("KERNEL_OK")
</pallas_src>

<mosaic_0001>
module attributes {stable_mosaic.version = 11 : i64} {
  func.func @kernel(%arg0: i32, %arg1: memref<1x8x8x384xbf16, #tpu.memory_space<vmem>>, %arg2: memref<1x8x8x384xbf16, #tpu.memory_space<vmem>>, %arg3: memref<2x128x384xbf16, #tpu.memory_space<vmem>>, %arg4: memref<2x1x128xf32, #tpu.memory_space<vmem>>, %arg5: memref<2x8x128xf32, #tpu.memory_space<vmem>>, %arg6: memref<8x8x128xbf16, #tpu.memory_space<vmem>>, %arg7: memref<8x8x128xbf16, #tpu.memory_space<vmem>>, %arg8: memref<8x128xf32, #tpu.memory_space<vmem>>, %arg9: memref<8x128xf32, #tpu.memory_space<vmem>>) attributes {dimension_semantics = [#tpu.dimension_semantics<arbitrary>], iteration_bounds = array<i64: 1>, scalar_prefetch = 0 : i64, scratch_operands = 2 : i64, tpu.core_type = #tpu.core_type<tc>, window_params = [{transform_indices = @transform_0, window_bounds = array<i64: 1, 8, 8, 384>}, {transform_indices = @transform_1, window_bounds = array<i64: 1, 8, 8, 384>}, {pipeline_mode = #tpu.pipeline_mode<synchronous>, transform_indices = @transform_2, window_bounds = array<i64: 2, 128, 384>}, {pipeline_mode = #tpu.pipeline_mode<synchronous>, transform_indices = @transform_3, window_bounds = array<i64: 2, 1, 128>}, {pipeline_mode = #tpu.pipeline_mode<synchronous>, transform_indices = @transform_4, window_bounds = array<i64: 2, 8, 128>}, {transform_indices = @transform_5, window_bounds = array<i64: 8, 8, 128>}, {transform_indices = @transform_6, window_bounds = array<i64: 8, 8, 128>}]} {
    %c0_i32 = arith.constant 0 : i32
    %0 = arith.cmpi eq, %arg0, %c0_i32 : i32
    %1 = arith.extui %0 : i1 to i32
    %c0_i32_0 = arith.constant 0 : i32
    %2 = arith.cmpi ne, %1, %c0_i32_0 : i32
    scf.if %2 {
      %c0_227 = arith.constant 0 : index
      %c0_228 = arith.constant 0 : index
      %c0_229 = arith.constant 0 : index
      %675 = vector.load %arg5[%c0_227, %c0_228, %c0_229] : memref<2x8x128xf32, #tpu.memory_space<vmem>>, vector<1x8x128xf32>
      %676 = vector.shape_cast %675 : vector<1x8x128xf32> to vector<8x128xf32>
      %c0_230 = arith.constant 0 : index
      %c0_231 = arith.constant 0 : index
      %677 = vector.load %arg8[%c0_230, %c0_231] : memref<8x128xf32, #tpu.memory_space<vmem>>, vector<8x128xf32>
      tpu.vector_store %arg8[%c0_230, %c0_231], %676 {strides = array<i32>} : memref<8x128xf32, #tpu.memory_space<vmem>>, vector<8x128xf32>,
      %c1_232 = arith.constant 1 : index
      %c0_233 = arith.constant 0 : index
      %c0_234 = arith.constant 0 : index
      %678 = vector.load %arg5[%c1_232, %c0_233, %c0_234] : memref<2x8x128xf32, #tpu.memory_space<vmem>>, vector<1x8x128xf32>
      %679 = vector.shape_cast %678 : vector<1x8x128xf32> to vector<8x128xf32>
      %c0_235 = arith.constant 0 : index
      %c0_236 = arith.constant 0 : index
      %680 = vector.load %arg9[%c0_235, %c0_236] : memref<8x128xf32, #tpu.memory_space<vmem>>, vector<8x128xf32>
      tpu.vector_store %arg9[%c0_235, %c0_236], %679 {strides = array<i32>} : memref<8x128xf32, #tpu.memory_space<vmem>>, vector<8x128xf32>,
    } else {
    }
    %c0 = arith.constant 0 : index
    %c0_1 = arith.constant 0 : index
    %c0_2 = arith.constant 0 : index
    %3 = vector.load %arg3[%c0, %c0_1, %c0_2] : memref<2x128x384xbf16, #tpu.memory_space<vmem>>, vector<1x128x384xbf16>
    %4 = vector.shape_cast %3 : vector<1x128x384xbf16> to vector<128x384xbf16>
    %c1 = arith.constant 1 : index
    %c0_3 = arith.constant 0 : index
    %c0_4 = arith.constant 0 : index
    %5 = vector.load %arg3[%c1, %c0_3, %c0_4] : memref<2x128x384xbf16, #tpu.memory_space<vmem>>, vector<1x128x384xbf16>
    %6 = vector.shape_cast %5 : vector<1x128x384xbf16> to vector<128x384xbf16>
    %c0_5 = arith.constant 0 : index
    %c0_6 = arith.constant 0 : index
    %c0_7 = arith.constant 0 : index
    %7 = vector.load %arg4[%c0_5, %c0_6, %c0_7] : memref<2x1x128xf32, #tpu.memory_space<vmem>>, vector<1x1x128xf32>
    %8 = vector.shape_cast %7 : vector<1x1x128xf32> to vector<1x128xf32>
    %c1_8 = arith.constant 1 : index
    %c0_9 = arith.constant 0 : index
    %c0_10 = arith.constant 0 : index
    %9 = vector.load %arg4[%c1_8, %c0_9, %c0_10] : memref<2x1x128xf32, #tpu.memory_space<vmem>>, vector<1x1x128xf32>
    %10 = vector.shape_cast %9 : vector<1x1x128xf32> to vector<1x128xf32>
    %c0_i32_11 = arith.constant 0 : i32
    %c7_i32 = arith.constant 7 : i32
    %11 = arith.subi %c7_i32, %c0_i32_11 : i32
    %c0_12 = arith.constant 0 : index
    %12 = arith.index_cast %c0_i32_11 : i32 to index
    %c0_13 = arith.constant 0 : index
    %c0_14 = arith.constant 0 : index
    %13 = vector.load %arg1[%c0_12, %12, %c0_13, %c0_14] : memref<1x8x8x384xbf16, #tpu.memory_space<vmem>>, vector<1x1x8x384xbf16>
    %14 = vector.shape_cast %13 : vector<1x1x8x384xbf16> to vector<8x384xbf16>
    %15 = arith.extf %14 : vector<8x384xbf16> to vector<8x384xf32>
    %c0_15 = arith.constant 0 : index
    %16 = arith.index_cast %11 : i32 to index
    %c0_16 = arith.constant 0 : index
    %c0_17 = arith.constant 0 : index
    %17 = vector.load %arg2[%c0_15, %16, %c0_16, %c0_17] : memref<1x8x8x384xbf16, #tpu.memory_space<vmem>>, vector<1x1x8x384xbf16>
    %18 = vector.shape_cast %17 : vector<1x1x8x384xbf16> to vector<8x384xbf16>
    %19 = arith.extf %18 : vector<8x384xbf16> to vector<8x384xf32>
    %c0_18 = arith.constant 0 : index
    %c0_19 = arith.constant 0 : index
    %20 = vector.load %arg8[%c0_18, %c0_19] : memref<8x128xf32, #tpu.memory_space<vmem>>, vector<8x128xf32>
    %c0_20 = arith.constant 0 : index
    %c0_21 = arith.constant 0 : index
    %21 = vector.load %arg9[%c0_20, %c0_21] : memref<8x128xf32, #tpu.memory_space<vmem>>, vector<8x128xf32>
    %22 = arith.truncf %20 : vector<8x128xf32> to vector<8x128xbf16>
    %cst = arith.constant dense<0.000000e+00> : vector<8x384xf32>
    %23 = tpu.matmul %22, %4, %cst {dimension_numbers = #tpu.dot_dimension_numbers<[1], [0], [0], [1], [0, 0, 1, 1], [], []>} : vector<8x128xbf16>, vector<128x384xbf16>, vector<8x384xf32> -> vector<8x384xf32>
    %24 = vector.extract_strided_slice %15 {offsets = [0, 0], sizes = [8, 128], strides = [1, 1]} : vector<8x384xf32> to vector<8x128xf32>
    %25 = vector.extract_strided_slice %23 {offsets = [0, 0], sizes = [8, 128], strides = [1, 1]} : vector<8x384xf32> to vector<8x128xf32>
    %26 = arith.addf %24, %25 : vector<8x128xf32>
    %27 = arith.negf %26 : vector<8x128xf32>
    %28 = math.exp %27 : vector<8x128xf32>
    %cst_22 = arith.constant 1.000000e+00 : f32
    %29 = vector.broadcast %cst_22 : f32 to vector<8x128xf32>
    %30 = arith.addf %29, %28 : vector<8x128xf32>
    %31 = arith.divf %29, %30 : vector<8x128xf32>
    %32 = vector.extract_strided_slice %15 {offsets = [0, 128], sizes = [8, 128], strides = [1, 1]} : vector<8x384xf32> to vector<8x128xf32>
    %33 = vector.extract_strided_slice %23 {offsets = [0, 128], sizes = [8, 128], strides = [1, 1]} : vector<8x384xf32> to vector<8x128xf32>
    %34 = arith.addf %32, %33 : vector<8x128xf32>
    %35 = arith.negf %34 : vector<8x128xf32>
    %36 = math.exp %35 : vector<8x128xf32>
    %cst_23 = arith.constant 1.000000e+00 : f32
    %37 = vector.broadcast %cst_23 : f32 to vector<8x128xf32>
    %38 = arith.addf %37, %36 : vector<8x128xf32>
    %39 = arith.divf %37, %38 : vector<8x128xf32>
    %40 = vector.extract_strided_slice %15 {offsets = [0, 256], sizes = [8, 128], strides = [1, 1]} : vector<8x384xf32> to vector<8x128xf32>
    %41 = vector.extract_strided_slice %23 {offsets = [0, 256], sizes = [8, 128], strides = [1, 1]} : vector<8x384xf32> to vector<8x128xf32>
    %42 = vector.broadcast %8 : vector<1x128xf32> to vector<8x128xf32>
    %43 = arith.addf %41, %42 : vector<8x128xf32>
    %44 = arith.mulf %31, %43 : vector<8x128xf32>
    %45 = arith.addf %40, %44 : vector<8x128xf32>
    %46 = math.tanh %45 : vector<8x128xf32>
    %cst_24 = arith.constant 1.000000e+00 : f32
    %47 = vector.broadcast %cst_24 : f32 to vector<8x128xf32>
    %48 = arith.subf %47, %39 : vector<8x128xf32>
    %49 = arith.mulf %48, %46 : vector<8x128xf32>
    %50 = arith.mulf %39, %20 : vector<8x128xf32>
    %51 = arith.addf %49, %50 : vector<8x128xf32>
    %52 = arith.truncf %21 : vector<8x128xf32> to vector<8x128xbf16>
    %cst_25 = arith.constant dense<0.000000e+00> : vector<8x384xf32>
    %53 = tpu.matmul %52, %6, %cst_25 {dimension_numbers = #tpu.dot_dimension_numbers<[1], [0], [0], [1], [0, 0, 1, 1], [], []>} : vector<8x128xbf16>, vector<128x384xbf16>, vector<8x384xf32> -> vector<8x384xf32>
    %54 = vector.extract_strided_slice %19 {offsets = [0, 0], sizes = [8, 128], strides = [1, 1]} : vector<8x384xf32> to vector<8x128xf32>
    %55 = vector.extract_strided_slice %53 {offsets = [0, 0], sizes = [8, 128], strides = [1, 1]} : vector<8x384xf32> to vector<8x128xf32>
    %56 = arith.addf %54, %55 : vector<8x128xf32>
    %57 = arith.negf %56 : vector<8x128xf32>
    %58 = math.exp %57 : vector<8x128xf32>
    %cst_26 = arith.constant 1.000000e+00 : f32
    %59 = vector.broadcast %cst_26 : f32 to vector<8x128xf32>
    %60 = arith.addf %59, %58 : vector<8x128xf32>
    %61 = arith.divf %59, %60 : vector<8x128xf32>
    %62 = vector.extract_strided_slice %19 {offsets = [0, 128], sizes = [8, 128], strides = [1, 1]} : vector<8x384xf32> to vector<8x128xf32>
    %63 = vector.extract_strided_slice %53 {offsets = [0, 128], sizes = [8, 128], strides = [1, 1]} : vector<8x384xf32> to vector<8x128xf32>
    %64 = arith.addf %62, %63 : vector<8x128xf32>
    %65 = arith.negf %64 : vector<8x128xf32>
    %66 = math.exp %65 : vector<8x128xf32>
    %cst_27 = arith.constant 1.000000e+00 : f32
    %67 = vector.broadcast %cst_27 : f32 to vector<8x128xf32>
    %68 = arith.addf %67, %66 : vector<8x128xf32>
    %69 = arith.divf %67, %68 : vector<8x128xf32>
    %70 = vector.extract_strided_slice %19 {offsets = [0, 256], sizes = [8, 128], strides = [1, 1]} : vector<8x384xf32> to vector<8x128xf32>
    %71 = vector.extract_strided_slice %53 {offsets = [0, 256], sizes = [8, 128], strides = [1, 1]} : vector<8x384xf32> to vector<8x128xf32>
    %72 = vector.broadcast %10 : vector<1x128xf32> to vector<8x128xf32>
    %73 = arith.addf %71, %72 : vector<8x128xf32>
    %74 = arith.mulf %61, %73 : vector<8x128xf32>
    %75 = arith.addf %70, %74 : vector<8x128xf32>
    %76 = math.tanh %75 : vector<8x128xf32>
    %cst_28 = arith.constant 1.000000e+00 : f32
    %77 = vector.broadcast %cst_28 : f32 to vector<8x128xf32>
    %78 = arith.subf %77, %69 : vector<8x128xf32>
    %79 = arith.mulf %78, %76 : vector<8x128xf32>
    %80 = arith.mulf %69, %21 : vector<8x128xf32>
    %81 = arith.addf %79, %80 : vector<8x128xf32>
    %c0_29 = arith.constant 0 : index
    %c0_30 = arith.constant 0 : index
    %82 = vector.load %arg8[%c0_29, %c0_30] : memref<8x128xf32, #tpu.memory_space<vmem>>, vector<8x128xf32>
    tpu.vector_store %arg8[%c0_29, %c0_30], %51 {strides = array<i32>} : memref<8x128xf32, #tpu.memory_space<vmem>>, vector<8x128xf32>,
    %c0_31 = arith.constant 0 : index
    %c0_32 = arith.constant 0 : index
    %83 = vector.load %arg9[%c0_31, %c0_32] : memref<8x128xf32, #tpu.memory_space<vmem>>, vector<8x128xf32>
    tpu.vector_store %arg9[%c0_31, %c0_32], %81 {strides = array<i32>} : memref<8x128xf32, #tpu.memory_space<vmem>>, vector<8x128xf32>,
    %84 = arith.truncf %51 : vector<8x128xf32> to vector<8x128xbf16>
    %85 = arith.index_cast %c0_i32_11 : i32 to index
    %c0_33 = arith.constant 0 : index
    %c0_34 = arith.constant 0 : index
    %86 = vector.load %arg6[%85, %c0_33, %c0_34] : memref<8x8x128xbf16, #tpu.memory_space<vmem>>, vector<1x8x128xbf16>
    %87 = vector.shape_cast %86 : vector<1x8x128xbf16> to vector<8x128xbf16>
    %88 = vector.shape_cast %84 : vector<8x128xbf16> to vector<1x8x128xbf16>
    tpu.vector_store %arg6[%85, %c0_33, %c0_34], %88 {strides = array<i32>} : memref<8x8x128xbf16, #tpu.memory_space<vmem>>, vector<1x8x128xbf16>,
    %89 = arith.truncf %81 : vector<8x128xf32> to vector<8x128xbf16>
    %90 = arith.index_cast %11 : i32 to index
    %c0_35 = arith.constant 0 : index
    %c0_36 = arith.constant 0 : index
    %91 = vector.load %arg7[%90, %c0_35, %c0_36] : memref<8x8x128xbf16, #tpu.memory_space<vmem>>, vector<1x8x128xbf16>
    %92 = vector.shape_cast %91 : vector<1x8x128xbf16> to vector<8x128xbf16>
    %93 = vector.shape_cast %89 : vector<8x128xbf16> to vector<1x8x128xbf16>
    tpu.vector_store %arg7[%90, %c0_35, %c0_36], %93 {strides = array<i32>} : memref<8x8x128xbf16, #tpu.memory_space<vmem>>, vector<1x8x128xbf16>,
    %c1_i32 = arith.constant 1 : i32
    %c7_i32_37 = arith.constant 7 : i32
    %94 = arith.subi %c7_i32_37, %c1_i32 : i32
    %c0_38 = arith.constant 0 : index
    %95 = arith.index_cast %c1_i32 : i32 to index
    %c0_39 = arith.constant 0 : index
    %c0_40 = arith.constant 0 : index
    %96 = vector.load %arg1[%c0_38, %95, %c0_39, %c0_40] : memref<1x8x8x384xbf16, #tpu.memory_space<vmem>>, vector<1x1x8x384xbf16>
    %97 = vector.shape_cast %96 : vector<1x1x8x384xbf16> to vector<8x384xbf16>
    %98 = arith.extf %97 : vector<8x384xbf16> to vector<8x384xf32>
    %c0_41 = arith.constant 0 : index
    %99 = arith.index_cast %94 : i32 to index
    %c0_42 = arith.constant 0 : index
    %c0_43 = arith.constant 0 : index
    %100 = vector.load %arg2[%c0_41, %99, %c0_42, %c0_43] : memref<1x8x8x384xbf16, #tpu.memory_space<vmem>>, vector<1x1x8x384xbf16>
    %101 = vector.shape_cast %100 : vector<1x1x8x384xbf16> to vector<8x384xbf16>
    %102 = arith.extf %101 : vector<8x384xbf16> to vector<8x384xf32>
    %c0_44 = arith.constant 0 : index
    %c0_45 = arith.constant 0 : index
    %103 = vector.load %arg8[%c0_44, %c0_45] : memref<8x128xf32, #tpu.memory_space<vmem>>, vector<8x128xf32>
    %c0_46 = arith.constant 0 : index
    %c0_47 = arith.constant 0 : index
    %104 = vector.load %arg9[%c0_46, %c0_47] : memref<8x128xf32, #tpu.memory_space<vmem>>, vector<8x128xf32>
    %105 = arith.truncf %103 : vector<8x128xf32> to vector<8x128xbf16>
    %cst_48 = arith.constant dense<0.000000e+00> : vector<8x384xf32>
    %106 = tpu.matmul %105, %4, %cst_48 {dimension_numbers = #tpu.dot_dimension_numbers<[1], [0], [0], [1], [0, 0, 1, 1], [], []>} : vector<8x128xbf16>, vector<128x384xbf16>, vector<8x384xf32> -> vector<8x384xf32>
    %107 = vector.extract_strided_slice %98 {offsets = [0, 0], sizes = [8, 128], strides = [1, 1]} : vector<8x384xf32> to vector<8x128xf32>
    %108 = vector.extract_strided_slice %106 {offsets = [0, 0], sizes = [8, 128], strides = [1, 1]} : vector<8x384xf32> to vector<8x128xf32>
    %109 = arith.addf %107, %108 : vector<8x128xf32>
    %110 = arith.negf %109 : vector<8x128xf32>
    %111 = math.exp %110 : vector<8x128xf32>
    %cst_49 = arith.constant 1.000000e+00 : f32
    %112 = vector.broadcast %cst_49 : f32 to vector<8x128xf32>
    %113 = arith.addf %112, %111 : vector<8x128xf32>
    %114 = arith.divf %112, %113 : vector<8x128xf32>
    %115 = vector.extract_strided_slice %98 {offsets = [0, 128], sizes = [8, 128], strides = [1, 1]} : vector<8x384xf32> to vector<8x128xf32>
    %116 = vector.extract_strided_slice %106 {offsets = [0, 128], sizes = [8, 128], strides = [1, 1]} : vector<8x384xf32> to vector<8x128xf32>
    %117 = arith.addf %115, %116 : vector<8x128xf32>
    %118 = arith.negf %117 : vector<8x128xf32>
    %119 = math.exp %118 : vector<8x128xf32>
    %cst_50 = arith.constant 1.000000e+00 : f32
    %120 = vector.broadcast %cst_50 : f32 to vector<8x128xf32>
    %121 = arith.addf %120, %119 : vector<8x128xf32>
    %122 = arith.divf %120, %121 : vector<8x128xf32>
    %123 = vector.extract_strided_slice %98 {offsets = [0, 256], sizes = [8, 128], strides = [1, 1]} : vector<8x384xf32> to vector<8x128xf32>
    %124 = vector.extract_strided_slice %106 {offsets = [0, 256], sizes = [8, 128], strides = [1, 1]} : vector<8x384xf32> to vector<8x128xf32>
    %125 = vector.broadcast %8 : vector<1x128xf32> to vector<8x128xf32>
    %126 = arith.addf %124, %125 : vector<8x128xf32>
    %127 = arith.mulf %114, %126 : vector<8x128xf32>
    %128 = arith.addf %123, %127 : vector<8x128xf32>
    %129 = math.tanh %128 : vector<8x128xf32>
    %cst_51 = arith.constant 1.000000e+00 : f32
    %130 = vector.broadcast %cst_51 : f32 to vector<8x128xf32>
    %131 = arith.subf %130, %122 : vector<8x128xf32>
    %132 = arith.mulf %131, %129 : vector<8x128xf32>
    %133 = arith.mulf %122, %103 : vector<8x128xf32>
    %134 = arith.addf %132, %133 : vector<8x128xf32>
    %135 = arith.truncf %104 : vector<8x128xf32> to vector<8x128xbf16>
    %cst_52 = arith.constant dense<0.000000e+00> : vector<8x384xf32>
    %136 = tpu.matmul %135, %6, %cst_52 {dimension_numbers = #tpu.dot_dimension_numbers<[1], [0], [0], [1], [0, 0, 1, 1], [], []>} : vector<8x128xbf16>, vector<128x384xbf16>, vector<8x384xf32> -> vector<8x384xf32>
    %137 = vector.extract_strided_slice %102 {offsets = [0, 0], sizes = [8, 128], strides = [1, 1]} : vector<8x384xf32> to vector<8x128xf32>
    %138 = vector.extract_strided_slice %136 {offsets = [0, 0], sizes = [8, 128], strides = [1, 1]} : vector<8x384xf32> to vector<8x128xf32>
    %139 = arith.addf %137, %138 : vector<8x128xf32>
    %140 = arith.negf %139 : vector<8x128xf32>
    %141 = math.exp %140 : vector<8x128xf32>
    %cst_53 = arith.constant 1.000000e+00 : f32
    %142 = vector.broadcast %cst_53 : f32 to vector<8x128xf32>
    %143 = arith.addf %142, %141 : vector<8x128xf32>
    %144 = arith.divf %142, %143 : vector<8x128xf32>
    %145 = vector.extract_strided_slice %102 {offsets = [0, 128], sizes = [8, 128], strides = [1, 1]} : vector<8x384xf32> to vector<8x128xf32>
    %146 = vector.extract_strided_slice %136 {offsets = [0, 128], sizes = [8, 128], strides = [1, 1]} : vector<8x384xf32> to vector<8x128xf32>
    %147 = arith.addf %145, %146 : vector<8x128xf32>
    %148 = arith.negf %147 : vector<8x128xf32>
    %149 = math.exp %148 : vector<8x128xf32>
    %cst_54 = arith.constant 1.000000e+00 : f32
    %150 = vector.broadcast %cst_54 : f32 to vector<8x128xf32>
    %151 = arith.addf %150, %149 : vector<8x128xf32>
    %152 = arith.divf %150, %151 : vector<8x128xf32>
    %153 = vector.extract_strided_slice %102 {offsets = [0, 256], sizes = [8, 128], strides = [1, 1]} : vector<8x384xf32> to vector<8x128xf32>
    %154 = vector.extract_strided_slice %136 {offsets = [0, 256], sizes = [8, 128], strides = [1, 1]} : vector<8x384xf32> to vector<8x128xf32>
    %155 = vector.broadcast %10 : vector<1x128xf32> to vector<8x128xf32>
    %156 = arith.addf %154, %155 : vector<8x128xf32>
    %157 = arith.mulf %144, %156 : vector<8x128xf32>
    %158 = arith.addf %153, %157 : vector<8x128xf32>
    %159 = math.tanh %158 : vector<8x128xf32>
    %cst_55 = arith.constant 1.000000e+00 : f32
    %160 = vector.broadcast %cst_55 : f32 to vector<8x128xf32>
    %161 = arith.subf %160, %152 : vector<8x128xf32>
    %162 = arith.mulf %161, %159 : vector<8x128xf32>
    %163 = arith.mulf %152, %104 : vector<8x128xf32>
    %164 = arith.addf %162, %163 : vector<8x128xf32>
    %c0_56 = arith.constant 0 : index
    %c0_57 = arith.constant 0 : index
    %165 = vector.load %arg8[%c0_56, %c0_57] : memref<8x128xf32, #tpu.memory_space<vmem>>, vector<8x128xf32>
    tpu.vector_store %arg8[%c0_56, %c0_57], %134 {strides = array<i32>} : memref<8x128xf32, #tpu.memory_space<vmem>>, vector<8x128xf32>,
    %c0_58 = arith.constant 0 : index
    %c0_59 = arith.constant 0 : index
    %166 = vector.load %arg9[%c0_58, %c0_59] : memref<8x128xf32, #tpu.memory_space<vmem>>, vector<8x128xf32>
    tpu.vector_store %arg9[%c0_58, %c0_59], %164 {strides = array<i32>} : memref<8x128xf32, #tpu.memory_space<vmem>>, vector<8x128xf32>,
    %167 = arith.truncf %134 : vector<8x128xf32> to vector<8x128xbf16>
    %168 = arith.index_cast %c1_i32 : i32 to index
    %c0_60 = arith.constant 0 : index
    %c0_61 = arith.constant 0 : index
    %169 = vector.load %arg6[%168, %c0_60, %c0_61] : memref<8x8x128xbf16, #tpu.memory_space<vmem>>, vector<1x8x128xbf16>
    %170 = vector.shape_cast %169 : vector<1x8x128xbf16> to vector<8x128xbf16>
    %171 = vector.shape_cast %167 : vector<8x128xbf16> to vector<1x8x128xbf16>
    tpu.vector_store %arg6[%168, %c0_60, %c0_61], %171 {strides = array<i32>} : memref<8x8x128xbf16, #tpu.memory_space<vmem>>, vector<1x8x128xbf16>,
    %172 = arith.truncf %164 : vector<8x128xf32> to vector<8x128xbf16>
    %173 = arith.index_cast %94 : i32 to index
    %c0_62 = arith.constant 0 : index
    %c0_63 = arith.constant 0 : index
    %174 = vector.load %arg7[%173, %c0_62, %c0_63] : memref<8x8x128xbf16, #tpu.memory_space<vmem>>, vector<1x8x128xbf16>
    %175 = vector.shape_cast %174 : vector<1x8x128xbf16> to vector<8x128xbf16>
    %176 = vector.shape_cast %172 : vector<8x128xbf16> to vector<1x8x128xbf16>
    tpu.vector_store %arg7[%173, %c0_62, %c0_63], %176 {strides = array<i32>} : memref<8x8x128xbf16, #tpu.memory_space<vmem>>, vector<1x8x128xbf16>,
    %c2_i32 = arith.constant 2 : i32
    %c7_i32_64 = arith.constant 7 : i32
    %177 = arith.subi %c7_i32_64, %c2_i32 : i32
    %c0_65 = arith.constant 0 : index
    %178 = arith.index_cast %c2_i32 : i32 to index
    %c0_66 = arith.constant 0 : index
    %c0_67 = arith.constant 0 : index
    %179 = vector.load %arg1[%c0_65, %178, %c0_66, %c0_67] : memref<1x8x8x384xbf16, #tpu.memory_space<vmem>>, vector<1x1x8x384xbf16>
    %180 = vector.shape_cast %179 : vector<1x1x8x384xbf16> to vector<8x384xbf16>
    %181 = arith.extf %180 : vector<8x384xbf16> to vector<8x384xf32>
    %c0_68 = arith.constant 0 : index
    %182 = arith.index_cast %177 : i32 to index
    %c0_69 = arith.constant 0 : index
    %c0_70 = arith.constant 0 : index
    %183 = vector.load %arg2[%c0_68, %182, %c0_69, %c0_70] : memref<1x8x8x384xbf16, #tpu.memory_space<vmem>>, vector<1x1x8x384xbf16>
    %184 = vector.shape_cast %183 : vector<1x1x8x384xbf16> to vector<8x384xbf16>
    %185 = arith.extf %184 : vector<8x384xbf16> to vector<8x384xf32>
    %c0_71 = arith.constant 0 : index
    %c0_72 = arith.constant 0 : index
    %186 = vector.load %arg8[%c0_71, %c0_72] : memref<8x128xf32, #tpu.memory_space<vmem>>, vector<8x128xf32>
    %c0_73 = arith.constant 0 : index
    %c0_74 = arith.constant 0 : index
    %187 = vector.load %arg9[%c0_73, %c0_74] : memref<8x128xf32, #tpu.memory_space<vmem>>, vector<8x128xf32>
    %188 = arith.truncf %186 : vector<8x128xf32> to vector<8x128xbf16>
    %cst_75 = arith.constant dense<0.000000e+00> : vector<8x384xf32>
    %189 = tpu.matmul %188, %4, %cst_75 {dimension_numbers = #tpu.dot_dimension_numbers<[1], [0], [0], [1], [0, 0, 1, 1], [], []>} : vector<8x128xbf16>, vector<128x384xbf16>, vector<8x384xf32> -> vector<8x384xf32>
    %190 = vector.extract_strided_slice %181 {offsets = [0, 0], sizes = [8, 128], strides = [1, 1]} : vector<8x384xf32> to vector<8x128xf32>
    %191 = vector.extract_strided_slice %189 {offsets = [0, 0], sizes = [8, 128], strides = [1, 1]} : vector<8x384xf32> to vector<8x128xf32>
    %192 = arith.addf %190, %191 : vector<8x128xf32>
    %193 = arith.negf %192 : vector<8x128xf32>
    %194 = math.exp %193 : vector<8x128xf32>
    %cst_76 = arith.constant 1.000000e+00 : f32
    %195 = vector.broadcast %cst_76 : f32 to vector<8x128xf32>
    %196 = arith.addf %195, %194 : vector<8x128xf32>
    %197 = arith.divf %195, %196 : vector<8x128xf32>
    %198 = vector.extract_strided_slice %181 {offsets = [0, 128], sizes = [8, 128], strides = [1, 1]} : vector<8x384xf32> to vector<8x128xf32>
    %199 = vector.extract_strided_slice %189 {offsets = [0, 128], sizes = [8, 128], strides = [1, 1]} : vector<8x384xf32> to vector<8x128xf32>
    %200 = arith.addf %198, %199 : vector<8x128xf32>
    %201 = arith.negf %200 : vector<8x128xf32>
    %202 = math.exp %201 : vector<8x128xf32>
    %cst_77 = arith.constant 1.000000e+00 : f32
    %203 = vector.broadcast %cst_77 : f32 to vector<8x128xf32>
    %204 = arith.addf %203, %202 : vector<8x128xf32>
    %205 = arith.divf %203, %204 : vector<8x128xf32>
    %206 = vector.extract_strided_slice %181 {offsets = [0, 256], sizes = [8, 128], strides = [1, 1]} : vector<8x384xf32> to vector<8x128xf32>
    %207 = vector.extract_strided_slice %189 {offsets = [0, 256], sizes = [8, 128], strides = [1, 1]} : vector<8x384xf32> to vector<8x128xf32>
    %208 = vector.broadcast %8 : vector<1x128xf32> to vector<8x128xf32>
    %209 = arith.addf %207, %208 : vector<8x128xf32>
    %210 = arith.mulf %197, %209 : vector<8x128xf32>
    %211 = arith.addf %206, %210 : vector<8x128xf32>
    %212 = math.tanh %211 : vector<8x128xf32>
    %cst_78 = arith.constant 1.000000e+00 : f32
    %213 = vector.broadcast %cst_78 : f32 to vector<8x128xf32>
    %214 = arith.subf %213, %205 : vector<8x128xf32>
    %215 = arith.mulf %214, %212 : vector<8x128xf32>
    %216 = arith.mulf %205, %186 : vector<8x128xf32>
    %217 = arith.addf %215, %216 : vector<8x128xf32>
    %218 = arith.truncf %187 : vector<8x128xf32> to vector<8x128xbf16>
    %cst_79 = arith.constant dense<0.000000e+00> : vector<8x384xf32>
    %219 = tpu.matmul %218, %6, %cst_79 {dimension_numbers = #tpu.dot_dimension_numbers<[1], [0], [0], [1], [0, 0, 1, 1], [], []>} : vector<8x128xbf16>, vector<128x384xbf16>, vector<8x384xf32> -> vector<8x384xf32>
    %220 = vector.extract_strided_slice %185 {offsets = [0, 0], sizes = [8, 128], strides = [1, 1]} : vector<8x384xf32> to vector<8x128xf32>
    %221 = vector.extract_strided_slice %219 {offsets = [0, 0], sizes = [8, 128], strides = [1, 1]} : vector<8x384xf32> to vector<8x128xf32>
    %222 = arith.addf %220, %221 : vector<8x128xf32>
    %223 = arith.negf %222 : vector<8x128xf32>
    %224 = math.exp %223 : vector<8x128xf32>
    %cst_80 = arith.constant 1.000000e+00 : f32
    %225 = vector.broadcast %cst_80 : f32 to vector<8x128xf32>
    %226 = arith.addf %225, %224 : vector<8x128xf32>
    %227 = arith.divf %225, %226 : vector<8x128xf32>
    %228 = vector.extract_strided_slice %185 {offsets = [0, 128], sizes = [8, 128], strides = [1, 1]} : vector<8x384xf32> to vector<8x128xf32>
    %229 = vector.extract_strided_slice %219 {offsets = [0, 128], sizes = [8, 128], strides = [1, 1]} : vector<8x384xf32> to vector<8x128xf32>
    %230 = arith.addf %228, %229 : vector<8x128xf32>
    %231 = arith.negf %230 : vector<8x128xf32>
    %232 = math.exp %231 : vector<8x128xf32>
    %cst_81 = arith.constant 1.000000e+00 : f32
    %233 = vector.broadcast %cst_81 : f32 to vector<8x128xf32>
    %234 = arith.addf %233, %232 : vector<8x128xf32>
    %235 = arith.divf %233, %234 : vector<8x128xf32>
    %236 = vector.extract_strided_slice %185 {offsets = [0, 256], sizes = [8, 128], strides = [1, 1]} : vector<8x384xf32> to vector<8x128xf32>
    %237 = vector.extract_strided_slice %219 {offsets = [0, 256], sizes = [8, 128], strides = [1, 1]} : vector<8x384xf32> to vector<8x128xf32>
    %238 = vector.broadcast %10 : vector<1x128xf32> to vector<8x128xf32>
    %239 = arith.addf %237, %238 : vector<8x128xf32>
    %240 = arith.mulf %227, %239 : vector<8x128xf32>
    %241 = arith.addf %236, %240 : vector<8x128xf32>
    %242 = math.tanh %241 : vector<8x128xf32>
    %cst_82 = arith.constant 1.000000e+00 : f32
    %243 = vector.broadcast %cst_82 : f32 to vector<8x128xf32>
    %244 = arith.subf %243, %235 : vector<8x128xf32>
    %245 = arith.mulf %244, %242 : vector<8x128xf32>
    %246 = arith.mulf %235, %187 : vector<8x128xf32>
    %247 = arith.addf %245, %246 : vector<8x128xf32>
    %c0_83 = arith.constant 0 : index
    %c0_84 = arith.constant 0 : index
    %248 = vector.load %arg8[%c0_83, %c0_84] : memref<8x128xf32, #tpu.memory_space<vmem>>, vector<8x128xf32>
    tpu.vector_store %arg8[%c0_83, %c0_84], %217 {strides = array<i32>} : memref<8x128xf32, #tpu.memory_space<vmem>>, vector<8x128xf32>,
    %c0_85 = arith.constant 0 : index
    %c0_86 = arith.constant 0 : index
    %249 = vector.load %arg9[%c0_85, %c0_86] : memref<8x128xf32, #tpu.memory_space<vmem>>, vector<8x128xf32>
    tpu.vector_store %arg9[%c0_85, %c0_86], %247 {strides = array<i32>} : memref<8x128xf32, #tpu.memory_space<vmem>>, vector<8x128xf32>,
    %250 = arith.truncf %217 : vector<8x128xf32> to vector<8x128xbf16>
    %251 = arith.index_cast %c2_i32 : i32 to index
    %c0_87 = arith.constant 0 : index
    %c0_88 = arith.constant 0 : index
    %252 = vector.load %arg6[%251, %c0_87, %c0_88] : memref<8x8x128xbf16, #tpu.memory_space<vmem>>, vector<1x8x128xbf16>
    %253 = vector.shape_cast %252 : vector<1x8x128xbf16> to vector<8x128xbf16>
    %254 = vector.shape_cast %250 : vector<8x128xbf16> to vector<1x8x128xbf16>
    tpu.vector_store %arg6[%251, %c0_87, %c0_88], %254 {strides = array<i32>} : memref<8x8x128xbf16, #tpu.memory_space<vmem>>, vector<1x8x128xbf16>,
    %255 = arith.truncf %247 : vector<8x128xf32> to vector<8x128xbf16>
    %256 = arith.index_cast %177 : i32 to index
    %c0_89 = arith.constant 0 : index
    %c0_90 = arith.constant 0 : index
    %257 = vector.load %arg7[%256, %c0_89, %c0_90] : memref<8x8x128xbf16, #tpu.memory_space<vmem>>, vector<1x8x128xbf16>
    %258 = vector.shape_cast %257 : vector<1x8x128xbf16> to vector<8x128xbf16>
    %259 = vector.shape_cast %255 : vector<8x128xbf16> to vector<1x8x128xbf16>
    tpu.vector_store %arg7[%256, %c0_89, %c0_90], %259 {strides = array<i32>} : memref<8x8x128xbf16, #tpu.memory_space<vmem>>, vector<1x8x128xbf16>,
    %c3_i32 = arith.constant 3 : i32
    %c7_i32_91 = arith.constant 7 : i32
    %260 = arith.subi %c7_i32_91, %c3_i32 : i32
    %c0_92 = arith.constant 0 : index
    %261 = arith.index_cast %c3_i32 : i32 to index
    %c0_93 = arith.constant 0 : index
    %c0_94 = arith.constant 0 : index
    %262 = vector.load %arg1[%c0_92, %261, %c0_93, %c0_94] : memref<1x8x8x384xbf16, #tpu.memory_space<vmem>>, vector<1x1x8x384xbf16>
    %263 = vector.shape_cast %262 : vector<1x1x8x384xbf16> to vector<8x384xbf16>
    %264 = arith.extf %263 : vector<8x384xbf16> to vector<8x384xf32>
    %c0_95 = arith.constant 0 : index
    %265 = arith.index_cast %260 : i32 to index
    %c0_96 = arith.constant 0 : index
    %c0_97 = arith.constant 0 : index
    %266 = vector.load %arg2[%c0_95, %265, %c0_96, %c0_97] : memref<1x8x8x384xbf16, #tpu.memory_space<vmem>>, vector<1x1x8x384xbf16>
    %267 = vector.shape_cast %266 : vector<1x1x8x384xbf16> to vector<8x384xbf16>
    %268 = arith.extf %267 : vector<8x384xbf16> to vector<8x384xf32>
    %c0_98 = arith.constant 0 : index
    %c0_99 = arith.constant 0 : index
    %269 = vector.load %arg8[%c0_98, %c0_99] : memref<8x128xf32, #tpu.memory_space<vmem>>, vector<8x128xf32>
    %c0_100 = arith.constant 0 : index
    %c0_101 = arith.constant 0 : index
    %270 = vector.load %arg9[%c0_100, %c0_101] : memref<8x128xf32, #tpu.memory_space<vmem>>, vector<8x128xf32>
    %271 = arith.truncf %269 : vector<8x128xf32> to vector<8x128xbf16>
    %cst_102 = arith.constant dense<0.000000e+00> : vector<8x384xf32>
    %272 = tpu.matmul %271, %4, %cst_102 {dimension_numbers = #tpu.dot_dimension_numbers<[1], [0], [0], [1], [0, 0, 1, 1], [], []>} : vector<8x128xbf16>, vector<128x384xbf16>, vector<8x384xf32> -> vector<8x384xf32>
    %273 = vector.extract_strided_slice %264 {offsets = [0, 0], sizes = [8, 128], strides = [1, 1]} : vector<8x384xf32> to vector<8x128xf32>
    %274 = vector.extract_strided_slice %272 {offsets = [0, 0], sizes = [8, 128], strides = [1, 1]} : vector<8x384xf32> to vector<8x128xf32>
    %275 = arith.addf %273, %274 : vector<8x128xf32>
    %276 = arith.negf %275 : vector<8x128xf32>
    %277 = math.exp %276 : vector<8x128xf32>
    %cst_103 = arith.constant 1.000000e+00 : f32
    %278 = vector.broadcast %cst_103 : f32 to vector<8x128xf32>
    %279 = arith.addf %278, %277 : vector<8x128xf32>
    %280 = arith.divf %278, %279 : vector<8x128xf32>
    %281 = vector.extract_strided_slice %264 {offsets = [0, 128], sizes = [8, 128], strides = [1, 1]} : vector<8x384xf32> to vector<8x128xf32>
    %282 = vector.extract_strided_slice %272 {offsets = [0, 128], sizes = [8, 128], strides = [1, 1]} : vector<8x384xf32> to vector<8x128xf32>
    %283 = arith.addf %281, %282 : vector<8x128xf32>
    %284 = arith.negf %283 : vector<8x128xf32>
    %285 = math.exp %284 : vector<8x128xf32>
    %cst_104 = arith.constant 1.000000e+00 : f32
    %286 = vector.broadcast %cst_104 : f32 to vector<8x128xf32>
    %287 = arith.addf %286, %285 : vector<8x128xf32>
    %288 = arith.divf %286, %287 : vector<8x128xf32>
    %289 = vector.extract_strided_slice %264 {offsets = [0, 256], sizes = [8, 128], strides = [1, 1]} : vector<8x384xf32> to vector<8x128xf32>
    %290 = vector.extract_strided_slice %272 {offsets = [0, 256], sizes = [8, 128], strides = [1, 1]} : vector<8x384xf32> to vector<8x128xf32>
    %291 = vector.broadcast %8 : vector<1x128xf32> to vector<8x128xf32>
    %292 = arith.addf %290, %291 : vector<8x128xf32>
    %293 = arith.mulf %280, %292 : vector<8x128xf32>
    %294 = arith.addf %289, %293 : vector<8x128xf32>
    %295 = math.tanh %294 : vector<8x128xf32>
    %cst_105 = arith.constant 1.000000e+00 : f32
    %296 = vector.broadcast %cst_105 : f32 to vector<8x128xf32>
    %297 = arith.subf %296, %288 : vector<8x128xf32>
    %298 = arith.mulf %297, %295 : vector<8x128xf32>
    %299 = arith.mulf %288, %269 : vector<8x128xf32>
    %300 = arith.addf %298, %299 : vector<8x128xf32>
    %301 = arith.truncf %270 : vector<8x128xf32> to vector<8x128xbf16>
    %cst_106 = arith.constant dense<0.000000e+00> : vector<8x384xf32>
    %302 = tpu.matmul %301, %6, %cst_106 {dimension_numbers = #tpu.dot_dimension_numbers<[1], [0], [0], [1], [0, 0, 1, 1], [], []>} : vector<8x128xbf16>, vector<128x384xbf16>, vector<8x384xf32> -> vector<8x384xf32>
    %303 = vector.extract_strided_slice %268 {offsets = [0, 0], sizes = [8, 128], strides = [1, 1]} : vector<8x384xf32> to vector<8x128xf32>
    %304 = vector.extract_strided_slice %302 {offsets = [0, 0], sizes = [8, 128], strides = [1, 1]} : vector<8x384xf32> to vector<8x128xf32>
    %305 = arith.addf %303, %304 : vector<8x128xf32>
    %306 = arith.negf %305 : vector<8x128xf32>
    %307 = math.exp %306 : vector<8x128xf32>
    %cst_107 = arith.constant 1.000000e+00 : f32
    %308 = vector.broadcast %cst_107 : f32 to vector<8x128xf32>
    %309 = arith.addf %308, %307 : vector<8x128xf32>
    %310 = arith.divf %308, %309 : vector<8x128xf32>
    %311 = vector.extract_strided_slice %268 {offsets = [0, 128], sizes = [8, 128], strides = [1, 1]} : vector<8x384xf32> to vector<8x128xf32>
    %312 = vector.extract_strided_slice %302 {offsets = [0, 128], sizes = [8, 128], strides = [1, 1]} : vector<8x384xf32> to vector<8x128xf32>
    %313 = arith.addf %311, %312 : vector<8x128xf32>
    %314 = arith.negf %313 : vector<8x128xf32>
    %315 = math.exp %314 : vector<8x128xf32>
    %cst_108 = arith.constant 1.000000e+00 : f32
    %316 = vector.broadcast %cst_108 : f32 to vector<8x128xf32>
    %317 = arith.addf %316, %315 : vector<8x128xf32>
    %318 = arith.divf %316, %317 : vector<8x128xf32>
    %319 = vector.extract_strided_slice %268 {offsets = [0, 256], sizes = [8, 128], strides = [1, 1]} : vector<8x384xf32> to vector<8x128xf32>
    %320 = vector.extract_strided_slice %302 {offsets = [0, 256], sizes = [8, 128], strides = [1, 1]} : vector<8x384xf32> to vector<8x128xf32>
    %321 = vector.broadcast %10 : vector<1x128xf32> to vector<8x128xf32>
    %322 = arith.addf %320, %321 : vector<8x128xf32>
    %323 = arith.mulf %310, %322 : vector<8x128xf32>
    %324 = arith.addf %319, %323 : vector<8x128xf32>
    %325 = math.tanh %324 : vector<8x128xf32>
    %cst_109 = arith.constant 1.000000e+00 : f32
    %326 = vector.broadcast %cst_109 : f32 to vector<8x128xf32>
    %327 = arith.subf %326, %318 : vector<8x128xf32>
    %328 = arith.mulf %327, %325 : vector<8x128xf32>
    %329 = arith.mulf %318, %270 : vector<8x128xf32>
    %330 = arith.addf %328, %329 : vector<8x128xf32>
    %c0_110 = arith.constant 0 : index
    %c0_111 = arith.constant 0 : index
    %331 = vector.load %arg8[%c0_110, %c0_111] : memref<8x128xf32, #tpu.memory_space<vmem>>, vector<8x128xf32>
    tpu.vector_store %arg8[%c0_110, %c0_111], %300 {strides = array<i32>} : memref<8x128xf32, #tpu.memory_space<vmem>>, vector<8x128xf32>,
    %c0_112 = arith.constant 0 : index
    %c0_113 = arith.constant 0 : index
    %332 = vector.load %arg9[%c0_112, %c0_113] : memref<8x128xf32, #tpu.memory_space<vmem>>, vector<8x128xf32>
    tpu.vector_store %arg9[%c0_112, %c0_113], %330 {strides = array<i32>} : memref<8x128xf32, #tpu.memory_space<vmem>>, vector<8x128xf32>,
    %333 = arith.truncf %300 : vector<8x128xf32> to vector<8x128xbf16>
    %334 = arith.index_cast %c3_i32 : i32 to index
    %c0_114 = arith.constant 0 : index
    %c0_115 = arith.constant 0 : index
    %335 = vector.load %arg6[%334, %c0_114, %c0_115] : memref<8x8x128xbf16, #tpu.memory_space<vmem>>, vector<1x8x128xbf16>
    %336 = vector.shape_cast %335 : vector<1x8x128xbf16> to vector<8x128xbf16>
    %337 = vector.shape_cast %333 : vector<8x128xbf16> to vector<1x8x128xbf16>
    tpu.vector_store %arg6[%334, %c0_114, %c0_115], %337 {strides = array<i32>} : memref<8x8x128xbf16, #tpu.memory_space<vmem>>, vector<1x8x128xbf16>,
    %338 = arith.truncf %330 : vector<8x128xf32> to vector<8x128xbf16>
    %339 = arith.index_cast %260 : i32 to index
    %c0_116 = arith.constant 0 : index
    %c0_117 = arith.constant 0 : index
    %340 = vector.load %arg7[%339, %c0_116, %c0_117] : memref<8x8x128xbf16, #tpu.memory_space<vmem>>, vector<1x8x128xbf16>
    %341 = vector.shape_cast %340 : vector<1x8x128xbf16> to vector<8x128xbf16>
    %342 = vector.shape_cast %338 : vector<8x128xbf16> to vector<1x8x128xbf16>
    tpu.vector_store %arg7[%339, %c0_116, %c0_117], %342 {strides = array<i32>} : memref<8x8x128xbf16, #tpu.memory_space<vmem>>, vector<1x8x128xbf16>,
    %c4_i32 = arith.constant 4 : i32
    %c7_i32_118 = arith.constant 7 : i32
    %343 = arith.subi %c7_i32_118, %c4_i32 : i32
    %c0_119 = arith.constant 0 : index
    %344 = arith.index_cast %c4_i32 : i32 to index
    %c0_120 = arith.constant 0 : index
    %c0_121 = arith.constant 0 : index
    %345 = vector.load %arg1[%c0_119, %344, %c0_120, %c0_121] : memref<1x8x8x384xbf16, #tpu.memory_space<vmem>>, vector<1x1x8x384xbf16>
    %346 = vector.shape_cast %345 : vector<1x1x8x384xbf16> to vector<8x384xbf16>
    %347 = arith.extf %346 : vector<8x384xbf16> to vector<8x384xf32>
    %c0_122 = arith.constant 0 : index
    %348 = arith.index_cast %343 : i32 to index
    %c0_123 = arith.constant 0 : index
    %c0_124 = arith.constant 0 : index
    %349 = vector.load %arg2[%c0_122, %348, %c0_123, %c0_124] : memref<1x8x8x384xbf16, #tpu.memory_space<vmem>>, vector<1x1x8x384xbf16>
    %350 = vector.shape_cast %349 : vector<1x1x8x384xbf16> to vector<8x384xbf16>
    %351 = arith.extf %350 : vector<8x384xbf16> to vector<8x384xf32>
    %c0_125 = arith.constant 0 : index
    %c0_126 = arith.constant 0 : index
    %352 = vector.load %arg8[%c0_125, %c0_126] : memref<8x128xf32, #tpu.memory_space<vmem>>, vector<8x128xf32>
    %c0_127 = arith.constant 0 : index
    %c0_128 = arith.constant 0 : index
    %353 = vector.load %arg9[%c0_127, %c0_128] : memref<8x128xf32, #tpu.memory_space<vmem>>, vector<8x128xf32>
    %354 = arith.truncf %352 : vector<8x128xf32> to vector<8x128xbf16>
    %cst_129 = arith.constant dense<0.000000e+00> : vector<8x384xf32>
    %355 = tpu.matmul %354, %4, %cst_129 {dimension_numbers = #tpu.dot_dimension_numbers<[1], [0], [0], [1], [0, 0, 1, 1], [], []>} : vector<8x128xbf16>, vector<128x384xbf16>, vector<8x384xf32> -> vector<8x384xf32>
    %356 = vector.extract_strided_slice %347 {offsets = [0, 0], sizes = [8, 128], strides = [1, 1]} : vector<8x384xf32> to vector<8x128xf32>
    %357 = vector.extract_strided_slice %355 {offsets = [0, 0], sizes = [8, 128], strides = [1, 1]} : vector<8x384xf32> to vector<8x128xf32>
    %358 = arith.addf %356, %357 : vector<8x128xf32>
    %359 = arith.negf %358 : vector<8x128xf32>
    %360 = math.exp %359 : vector<8x128xf32>
    %cst_130 = arith.constant 1.000000e+00 : f32
    %361 = vector.broadcast %cst_130 : f32 to vector<8x128xf32>
    %362 = arith.addf %361, %360 : vector<8x128xf32>
    %363 = arith.divf %361, %362 : vector<8x128xf32>
    %364 = vector.extract_strided_slice %347 {offsets = [0, 128], sizes = [8, 128], strides = [1, 1]} : vector<8x384xf32> to vector<8x128xf32>
    %365 = vector.extract_strided_slice %355 {offsets = [0, 128], sizes = [8, 128], strides = [1, 1]} : vector<8x384xf32> to vector<8x128xf32>
    %366 = arith.addf %364, %365 : vector<8x128xf32>
    %367 = arith.negf %366 : vector<8x128xf32>
    %368 = math.exp %367 : vector<8x128xf32>
    %cst_131 = arith.constant 1.000000e+00 : f32
    %369 = vector.broadcast %cst_131 : f32 to vector<8x128xf32>
    %370 = arith.addf %369, %368 : vector<8x128xf32>
    %371 = arith.divf %369, %370 : vector<8x128xf32>
    %372 = vector.extract_strided_slice %347 {offsets = [0, 256], sizes = [8, 128], strides = [1, 1]} : vector<8x384xf32> to vector<8x128xf32>
    %373 = vector.extract_strided_slice %355 {offsets = [0, 256], sizes = [8, 128], strides = [1, 1]} : vector<8x384xf32> to vector<8x128xf32>
    %374 = vector.broadcast %8 : vector<1x128xf32> to vector<8x128xf32>
    %375 = arith.addf %373, %374 : vector<8x128xf32>
    %376 = arith.mulf %363, %375 : vector<8x128xf32>
    %377 = arith.addf %372, %376 : vector<8x128xf32>
    %378 = math.tanh %377 : vector<8x128xf32>
    %cst_132 = arith.constant 1.000000e+00 : f32
    %379 = vector.broadcast %cst_132 : f32 to vector<8x128xf32>
    %380 = arith.subf %379, %371 : vector<8x128xf32>
    %381 = arith.mulf %380, %378 : vector<8x128xf32>
    %382 = arith.mulf %371, %352 : vector<8x128xf32>
    %383 = arith.addf %381, %382 : vector<8x128xf32>
    %384 = arith.truncf %353 : vector<8x128xf32> to vector<8x128xbf16>
    %cst_133 = arith.constant dense<0.000000e+00> : vector<8x384xf32>
    %385 = tpu.matmul %384, %6, %cst_133 {dimension_numbers = #tpu.dot_dimension_numbers<[1], [0], [0], [1], [0, 0, 1, 1], [], []>} : vector<8x128xbf16>, vector<128x384xbf16>, vector<8x384xf32> -> vector<8x384xf32>
    %386 = vector.extract_strided_slice %351 {offsets = [0, 0], sizes = [8, 128], strides = [1, 1]} : vector<8x384xf32> to vector<8x128xf32>
    %387 = vector.extract_strided_slice %385 {offsets = [0, 0], sizes = [8, 128], strides = [1, 1]} : vector<8x384xf32> to vector<8x128xf32>
    %388 = arith.addf %386, %387 : vector<8x128xf32>
    %389 = arith.negf %388 : vector<8x128xf32>
    %390 = math.exp %389 : vector<8x128xf32>
    %cst_134 = arith.constant 1.000000e+00 : f32
    %391 = vector.broadcast %cst_134 : f32 to vector<8x128xf32>
    %392 = arith.addf %391, %390 : vector<8x128xf32>
    %393 = arith.divf %391, %392 : vector<8x128xf32>
    %394 = vector.extract_strided_slice %351 {offsets = [0, 128], sizes = [8, 128], strides = [1, 1]} : vector<8x384xf32> to vector<8x128xf32>
    %395 = vector.extract_strided_slice %385 {offsets = [0, 128], sizes = [8, 128], strides = [1, 1]} : vector<8x384xf32> to vector<8x128xf32>
    %396 = arith.addf %394, %395 : vector<8x128xf32>
    %397 = arith.negf %396 : vector<8x128xf32>
    %398 = math.exp %397 : vector<8x128xf32>
    %cst_135 = arith.constant 1.000000e+00 : f32
    %399 = vector.broadcast %cst_135 : f32 to vector<8x128xf32>
    %400 = arith.addf %399, %398 : vector<8x128xf32>
    %401 = arith.divf %399, %400 : vector<8x128xf32>
    %402 = vector.extract_strided_slice %351 {offsets = [0, 256], sizes = [8, 128], strides = [1, 1]} : vector<8x384xf32> to vector<8x128xf32>
    %403 = vector.extract_strided_slice %385 {offsets = [0, 256], sizes = [8, 128], strides = [1, 1]} : vector<8x384xf32> to vector<8x128xf32>
    %404 = vector.broadcast %10 : vector<1x128xf32> to vector<8x128xf32>
    %405 = arith.addf %403, %404 : vector<8x128xf32>
    %406 = arith.mulf %393, %405 : vector<8x128xf32>
    %407 = arith.addf %402, %406 : vector<8x128xf32>
    %408 = math.tanh %407 : vector<8x128xf32>
    %cst_136 = arith.constant 1.000000e+00 : f32
    %409 = vector.broadcast %cst_136 : f32 to vector<8x128xf32>
    %410 = arith.subf %409, %401 : vector<8x128xf32>
    %411 = arith.mulf %410, %408 : vector<8x128xf32>
    %412 = arith.mulf %401, %353 : vector<8x128xf32>
    %413 = arith.addf %411, %412 : vector<8x128xf32>
    %c0_137 = arith.constant 0 : index
    %c0_138 = arith.constant 0 : index
    %414 = vector.load %arg8[%c0_137, %c0_138] : memref<8x128xf32, #tpu.memory_space<vmem>>, vector<8x128xf32>
    tpu.vector_store %arg8[%c0_137, %c0_138], %383 {strides = array<i32>} : memref<8x128xf32, #tpu.memory_space<vmem>>, vector<8x128xf32>,
    %c0_139 = arith.constant 0 : index
    %c0_140 = arith.constant 0 : index
    %415 = vector.load %arg9[%c0_139, %c0_140] : memref<8x128xf32, #tpu.memory_space<vmem>>, vector<8x128xf32>
    tpu.vector_store %arg9[%c0_139, %c0_140], %413 {strides = array<i32>} : memref<8x128xf32, #tpu.memory_space<vmem>>, vector<8x128xf32>,
    %416 = arith.truncf %383 : vector<8x128xf32> to vector<8x128xbf16>
    %417 = arith.index_cast %c4_i32 : i32 to index
    %c0_141 = arith.constant 0 : index
    %c0_142 = arith.constant 0 : index
    %418 = vector.load %arg6[%417, %c0_141, %c0_142] : memref<8x8x128xbf16, #tpu.memory_space<vmem>>, vector<1x8x128xbf16>
    %419 = vector.shape_cast %418 : vector<1x8x128xbf16> to vector<8x128xbf16>
    %420 = vector.shape_cast %416 : vector<8x128xbf16> to vector<1x8x128xbf16>
    tpu.vector_store %arg6[%417, %c0_141, %c0_142], %420 {strides = array<i32>} : memref<8x8x128xbf16, #tpu.memory_space<vmem>>, vector<1x8x128xbf16>,
    %421 = arith.truncf %413 : vector<8x128xf32> to vector<8x128xbf16>
    %422 = arith.index_cast %343 : i32 to index
    %c0_143 = arith.constant 0 : index
    %c0_144 = arith.constant 0 : index
    %423 = vector.load %arg7[%422, %c0_143, %c0_144] : memref<8x8x128xbf16, #tpu.memory_space<vmem>>, vector<1x8x128xbf16>
    %424 = vector.shape_cast %423 : vector<1x8x128xbf16> to vector<8x128xbf16>
    %425 = vector.shape_cast %421 : vector<8x128xbf16> to vector<1x8x128xbf16>
    tpu.vector_store %arg7[%422, %c0_143, %c0_144], %425 {strides = array<i32>} : memref<8x8x128xbf16, #tpu.memory_space<vmem>>, vector<1x8x128xbf16>,
    %c5_i32 = arith.constant 5 : i32
    %c7_i32_145 = arith.constant 7 : i32
    %426 = arith.subi %c7_i32_145, %c5_i32 : i32
    %c0_146 = arith.constant 0 : index
    %427 = arith.index_cast %c5_i32 : i32 to index
    %c0_147 = arith.constant 0 : index
    %c0_148 = arith.constant 0 : index
    %428 = vector.load %arg1[%c0_146, %427, %c0_147, %c0_148] : memref<1x8x8x384xbf16, #tpu.memory_space<vmem>>, vector<1x1x8x384xbf16>
    %429 = vector.shape_cast %428 : vector<1x1x8x384xbf16> to vector<8x384xbf16>
    %430 = arith.extf %429 : vector<8x384xbf16> to vector<8x384xf32>
    %c0_149 = arith.constant 0 : index
    %431 = arith.index_cast %426 : i32 to index
    %c0_150 = arith.constant 0 : index
    %c0_151 = arith.constant 0 : index
    %432 = vector.load %arg2[%c0_149, %431, %c0_150, %c0_151] : memref<1x8x8x384xbf16, #tpu.memory_space<vmem>>, vector<1x1x8x384xbf16>
    %433 = vector.shape_cast %432 : vector<1x1x8x384xbf16> to vector<8x384xbf16>
    %434 = arith.extf %433 : vector<8x384xbf16> to vector<8x384xf32>
    %c0_152 = arith.constant 0 : index
    %c0_153 = arith.constant 0 : index
    %435 = vector.load %arg8[%c0_152, %c0_153] : memref<8x128xf32, #tpu.memory_space<vmem>>, vector<8x128xf32>
    %c0_154 = arith.constant 0 : index
    %c0_155 = arith.constant 0 : index
    %436 = vector.load %arg9[%c0_154, %c0_155] : memref<8x128xf32, #tpu.memory_space<vmem>>, vector<8x128xf32>
    %437 = arith.truncf %435 : vector<8x128xf32> to vector<8x128xbf16>
    %cst_156 = arith.constant dense<0.000000e+00> : vector<8x384xf32>
    %438 = tpu.matmul %437, %4, %cst_156 {dimension_numbers = #tpu.dot_dimension_numbers<[1], [0], [0], [1], [0, 0, 1, 1], [], []>} : vector<8x128xbf16>, vector<128x384xbf16>, vector<8x384xf32> -> vector<8x384xf32>
    %439 = vector.extract_strided_slice %430 {offsets = [0, 0], sizes = [8, 128], strides = [1, 1]} : vector<8x384xf32> to vector<8x128xf32>
    %440 = vector.extract_strided_slice %438 {offsets = [0, 0], sizes = [8, 128], strides = [1, 1]} : vector<8x384xf32> to vector<8x128xf32>
    %441 = arith.addf %439, %440 : vector<8x128xf32>
    %442 = arith.negf %441 : vector<8x128xf32>
    %443 = math.exp %442 : vector<8x128xf32>
    %cst_157 = arith.constant 1.000000e+00 : f32
    %444 = vector.broadcast %cst_157 : f32 to vector<8x128xf32>
    %445 = arith.addf %444, %443 : vector<8x128xf32>
    %446 = arith.divf %444, %445 : vector<8x128xf32>
    %447 = vector.extract_strided_slice %430 {offsets = [0, 128], sizes = [8, 128], strides = [1, 1]} : vector<8x384xf32> to vector<8x128xf32>
    %448 = vector.extract_strided_slice %438 {offsets = [0, 128], sizes = [8, 128], strides = [1, 1]} : vector<8x384xf32> to vector<8x128xf32>
    %449 = arith.addf %447, %448 : vector<8x128xf32>
    %450 = arith.negf %449 : vector<8x128xf32>
    %451 = math.exp %450 : vector<8x128xf32>
    %cst_158 = arith.constant 1.000000e+00 : f32
    %452 = vector.broadcast %cst_158 : f32 to vector<8x128xf32>
    %453 = arith.addf %452, %451 : vector<8x128xf32>
    %454 = arith.divf %452, %453 : vector<8x128xf32>
    %455 = vector.extract_strided_slice %430 {offsets = [0, 256], sizes = [8, 128], strides = [1, 1]} : vector<8x384xf32> to vector<8x128xf32>
    %456 = vector.extract_strided_slice %438 {offsets = [0, 256], sizes = [8, 128], strides = [1, 1]} : vector<8x384xf32> to vector<8x128xf32>
    %457 = vector.broadcast %8 : vector<1x128xf32> to vector<8x128xf32>
    %458 = arith.addf %456, %457 : vector<8x128xf32>
    %459 = arith.mulf %446, %458 : vector<8x128xf32>
    %460 = arith.addf %455, %459 : vector<8x128xf32>
    %461 = math.tanh %460 : vector<8x128xf32>
    %cst_159 = arith.constant 1.000000e+00 : f32
    %462 = vector.broadcast %cst_159 : f32 to vector<8x128xf32>
    %463 = arith.subf %462, %454 : vector<8x128xf32>
    %464 = arith.mulf %463, %461 : vector<8x128xf32>
    %465 = arith.mulf %454, %435 : vector<8x128xf32>
    %466 = arith.addf %464, %465 : vector<8x128xf32>
    %467 = arith.truncf %436 : vector<8x128xf32> to vector<8x128xbf16>
    %cst_160 = arith.constant dense<0.000000e+00> : vector<8x384xf32>
    %468 = tpu.matmul %467, %6, %cst_160 {dimension_numbers = #tpu.dot_dimension_numbers<[1], [0], [0], [1], [0, 0, 1, 1], [], []>} : vector<8x128xbf16>, vector<128x384xbf16>, vector<8x384xf32> -> vector<8x384xf32>
    %469 = vector.extract_strided_slice %434 {offsets = [0, 0], sizes = [8, 128], strides = [1, 1]} : vector<8x384xf32> to vector<8x128xf32>
    %470 = vector.extract_strided_slice %468 {offsets = [0, 0], sizes = [8, 128], strides = [1, 1]} : vector<8x384xf32> to vector<8x128xf32>
    %471 = arith.addf %469, %470 : vector<8x128xf32>
    %472 = arith.negf %471 : vector<8x128xf32>
    %473 = math.exp %472 : vector<8x128xf32>
    %cst_161 = arith.constant 1.000000e+00 : f32
    %474 = vector.broadcast %cst_161 : f32 to vector<8x128xf32>
    %475 = arith.addf %474, %473 : vector<8x128xf32>
    %476 = arith.divf %474, %475 : vector<8x128xf32>
    %477 = vector.extract_strided_slice %434 {offsets = [0, 128], sizes = [8, 128], strides = [1, 1]} : vector<8x384xf32> to vector<8x128xf32>
    %478 = vector.extract_strided_slice %468 {offsets = [0, 128], sizes = [8, 128], strides = [1, 1]} : vector<8x384xf32> to vector<8x128xf32>
    %479 = arith.addf %477, %478 : vector<8x128xf32>
    %480 = arith.negf %479 : vector<8x128xf32>
    %481 = math.exp %480 : vector<8x128xf32>
    %cst_162 = arith.constant 1.000000e+00 : f32
    %482 = vector.broadcast %cst_162 : f32 to vector<8x128xf32>
    %483 = arith.addf %482, %481 : vector<8x128xf32>
    %484 = arith.divf %482, %483 : vector<8x128xf32>
    %485 = vector.extract_strided_slice %434 {offsets = [0, 256], sizes = [8, 128], strides = [1, 1]} : vector<8x384xf32> to vector<8x128xf32>
    %486 = vector.extract_strided_slice %468 {offsets = [0, 256], sizes = [8, 128], strides = [1, 1]} : vector<8x384xf32> to vector<8x128xf32>
    %487 = vector.broadcast %10 : vector<1x128xf32> to vector<8x128xf32>
    %488 = arith.addf %486, %487 : vector<8x128xf32>
    %489 = arith.mulf %476, %488 : vector<8x128xf32>
    %490 = arith.addf %485, %489 : vector<8x128xf32>
    %491 = math.tanh %490 : vector<8x128xf32>
    %cst_163 = arith.constant 1.000000e+00 : f32
    %492 = vector.broadcast %cst_163 : f32 to vector<8x128xf32>
    %493 = arith.subf %492, %484 : vector<8x128xf32>
    %494 = arith.mulf %493, %491 : vector<8x128xf32>
    %495 = arith.mulf %484, %436 : vector<8x128xf32>
    %496 = arith.addf %494, %495 : vector<8x128xf32>
    %c0_164 = arith.constant 0 : index
    %c0_165 = arith.constant 0 : index
    %497 = vector.load %arg8[%c0_164, %c0_165] : memref<8x128xf32, #tpu.memory_space<vmem>>, vector<8x128xf32>
    tpu.vector_store %arg8[%c0_164, %c0_165], %466 {strides = array<i32>} : memref<8x128xf32, #tpu.memory_space<vmem>>, vector<8x128xf32>,
    %c0_166 = arith.constant 0 : index
    %c0_167 = arith.constant 0 : index
    %498 = vector.load %arg9[%c0_166, %c0_167] : memref<8x128xf32, #tpu.memory_space<vmem>>, vector<8x128xf32>
    tpu.vector_store %arg9[%c0_166, %c0_167], %496 {strides = array<i32>} : memref<8x128xf32, #tpu.memory_space<vmem>>, vector<8x128xf32>,
    %499 = arith.truncf %466 : vector<8x128xf32> to vector<8x128xbf16>
    %500 = arith.index_cast %c5_i32 : i32 to index
    %c0_168 = arith.constant 0 : index
    %c0_169 = arith.constant 0 : index
    %501 = vector.load %arg6[%500, %c0_168, %c0_169] : memref<8x8x128xbf16, #tpu.memory_space<vmem>>, vector<1x8x128xbf16>
    %502 = vector.shape_cast %501 : vector<1x8x128xbf16> to vector<8x128xbf16>
    %503 = vector.shape_cast %499 : vector<8x128xbf16> to vector<1x8x128xbf16>
    tpu.vector_store %arg6[%500, %c0_168, %c0_169], %503 {strides = array<i32>} : memref<8x8x128xbf16, #tpu.memory_space<vmem>>, vector<1x8x128xbf16>,
    %504 = arith.truncf %496 : vector<8x128xf32> to vector<8x128xbf16>
    %505 = arith.index_cast %426 : i32 to index
    %c0_170 = arith.constant 0 : index
    %c0_171 = arith.constant 0 : index
    %506 = vector.load %arg7[%505, %c0_170, %c0_171] : memref<8x8x128xbf16, #tpu.memory_space<vmem>>, vector<1x8x128xbf16>
    %507 = vector.shape_cast %506 : vector<1x8x128xbf16> to vector<8x128xbf16>
    %508 = vector.shape_cast %504 : vector<8x128xbf16> to vector<1x8x128xbf16>
    tpu.vector_store %arg7[%505, %c0_170, %c0_171], %508 {strides = array<i32>} : memref<8x8x128xbf16, #tpu.memory_space<vmem>>, vector<1x8x128xbf16>,
    %c6_i32 = arith.constant 6 : i32
    %c7_i32_172 = arith.constant 7 : i32
    %509 = arith.subi %c7_i32_172, %c6_i32 : i32
    %c0_173 = arith.constant 0 : index
    %510 = arith.index_cast %c6_i32 : i32 to index
    %c0_174 = arith.constant 0 : index
    %c0_175 = arith.constant 0 : index
    %511 = vector.load %arg1[%c0_173, %510, %c0_174, %c0_175] : memref<1x8x8x384xbf16, #tpu.memory_space<vmem>>, vector<1x1x8x384xbf16>
    %512 = vector.shape_cast %511 : vector<1x1x8x384xbf16> to vector<8x384xbf16>
    %513 = arith.extf %512 : vector<8x384xbf16> to vector<8x384xf32>
    %c0_176 = arith.constant 0 : index
    %514 = arith.index_cast %509 : i32 to index
    %c0_177 = arith.constant 0 : index
    %c0_178 = arith.constant 0 : index
    %515 = vector.load %arg2[%c0_176, %514, %c0_177, %c0_178] : memref<1x8x8x384xbf16, #tpu.memory_space<vmem>>, vector<1x1x8x384xbf16>
    %516 = vector.shape_cast %515 : vector<1x1x8x384xbf16> to vector<8x384xbf16>
    %517 = arith.extf %516 : vector<8x384xbf16> to vector<8x384xf32>
    %c0_179 = arith.constant 0 : index
    %c0_180 = arith.constant 0 : index
    %518 = vector.load %arg8[%c0_179, %c0_180] : memref<8x128xf32, #tpu.memory_space<vmem>>, vector<8x128xf32>
    %c0_181 = arith.constant 0 : index
    %c0_182 = arith.constant 0 : index
    %519 = vector.load %arg9[%c0_181, %c0_182] : memref<8x128xf32, #tpu.memory_space<vmem>>, vector<8x128xf32>
    %520 = arith.truncf %518 : vector<8x128xf32> to vector<8x128xbf16>
    %cst_183 = arith.constant dense<0.000000e+00> : vector<8x384xf32>
    %521 = tpu.matmul %520, %4, %cst_183 {dimension_numbers = #tpu.dot_dimension_numbers<[1], [0], [0], [1], [0, 0, 1, 1], [], []>} : vector<8x128xbf16>, vector<128x384xbf16>, vector<8x384xf32> -> vector<8x384xf32>
    %522 = vector.extract_strided_slice %513 {offsets = [0, 0], sizes = [8, 128], strides = [1, 1]} : vector<8x384xf32> to vector<8x128xf32>
    %523 = vector.extract_strided_slice %521 {offsets = [0, 0], sizes = [8, 128], strides = [1, 1]} : vector<8x384xf32> to vector<8x128xf32>
    %524 = arith.addf %522, %523 : vector<8x128xf32>
    %525 = arith.negf %524 : vector<8x128xf32>
    %526 = math.exp %525 : vector<8x128xf32>
    %cst_184 = arith.constant 1.000000e+00 : f32
    %527 = vector.broadcast %cst_184 : f32 to vector<8x128xf32>
    %528 = arith.addf %527, %526 : vector<8x128xf32>
    %529 = arith.divf %527, %528 : vector<8x128xf32>
    %530 = vector.extract_strided_slice %513 {offsets = [0, 128], sizes = [8, 128], strides = [1, 1]} : vector<8x384xf32> to vector<8x128xf32>
    %531 = vector.extract_strided_slice %521 {offsets = [0, 128], sizes = [8, 128], strides = [1, 1]} : vector<8x384xf32> to vector<8x128xf32>
    %532 = arith.addf %530, %531 : vector<8x128xf32>
    %533 = arith.negf %532 : vector<8x128xf32>
    %534 = math.exp %533 : vector<8x128xf32>
    %cst_185 = arith.constant 1.000000e+00 : f32
    %535 = vector.broadcast %cst_185 : f32 to vector<8x128xf32>
    %536 = arith.addf %535, %534 : vector<8x128xf32>
    %537 = arith.divf %535, %536 : vector<8x128xf32>
    %538 = vector.extract_strided_slice %513 {offsets = [0, 256], sizes = [8, 128], strides = [1, 1]} : vector<8x384xf32> to vector<8x128xf32>
    %539 = vector.extract_strided_slice %521 {offsets = [0, 256], sizes = [8, 128], strides = [1, 1]} : vector<8x384xf32> to vector<8x128xf32>
    %540 = vector.broadcast %8 : vector<1x128xf32> to vector<8x128xf32>
    %541 = arith.addf %539, %540 : vector<8x128xf32>
    %542 = arith.mulf %529, %541 : vector<8x128xf32>
    %543 = arith.addf %538, %542 : vector<8x128xf32>
    %544 = math.tanh %543 : vector<8x128xf32>
    %cst_186 = arith.constant 1.000000e+00 : f32
    %545 = vector.broadcast %cst_186 : f32 to vector<8x128xf32>
    %546 = arith.subf %545, %537 : vector<8x128xf32>
    %547 = arith.mulf %546, %544 : vector<8x128xf32>
    %548 = arith.mulf %537, %518 : vector<8x128xf32>
    %549 = arith.addf %547, %548 : vector<8x128xf32>
    %550 = arith.truncf %519 : vector<8x128xf32> to vector<8x128xbf16>
    %cst_187 = arith.constant dense<0.000000e+00> : vector<8x384xf32>
    %551 = tpu.matmul %550, %6, %cst_187 {dimension_numbers = #tpu.dot_dimension_numbers<[1], [0], [0], [1], [0, 0, 1, 1], [], []>} : vector<8x128xbf16>, vector<128x384xbf16>, vector<8x384xf32> -> vector<8x384xf32>
    %552 = vector.extract_strided_slice %517 {offsets = [0, 0], sizes = [8, 128], strides = [1, 1]} : vector<8x384xf32> to vector<8x128xf32>
    %553 = vector.extract_strided_slice %551 {offsets = [0, 0], sizes = [8, 128], strides = [1, 1]} : vector<8x384xf32> to vector<8x128xf32>
    %554 = arith.addf %552, %553 : vector<8x128xf32>
    %555 = arith.negf %554 : vector<8x128xf32>
    %556 = math.exp %555 : vector<8x128xf32>
    %cst_188 = arith.constant 1.000000e+00 : f32
    %557 = vector.broadcast %cst_188 : f32 to vector<8x128xf32>
    %558 = arith.addf %557, %556 : vector<8x128xf32>
    %559 = arith.divf %557, %558 : vector<8x128xf32>
    %560 = vector.extract_strided_slice %517 {offsets = [0, 128], sizes = [8, 128], strides = [1, 1]} : vector<8x384xf32> to vector<8x128xf32>
    %561 = vector.extract_strided_slice %551 {offsets = [0, 128], sizes = [8, 128], strides = [1, 1]} : vector<8x384xf32> to vector<8x128xf32>
    %562 = arith.addf %560, %561 : vector<8x128xf32>
    %563 = arith.negf %562 : vector<8x128xf32>
    %564 = math.exp %563 : vector<8x128xf32>
    %cst_189 = arith.constant 1.000000e+00 : f32
    %565 = vector.broadcast %cst_189 : f32 to vector<8x128xf32>
    %566 = arith.addf %565, %564 : vector<8x128xf32>
    %567 = arith.divf %565, %566 : vector<8x128xf32>
    %568 = vector.extract_strided_slice %517 {offsets = [0, 256], sizes = [8, 128], strides = [1, 1]} : vector<8x384xf32> to vector<8x128xf32>
    %569 = vector.extract_strided_slice %551 {offsets = [0, 256], sizes = [8, 128], strides = [1, 1]} : vector<8x384xf32> to vector<8x128xf32>
    %570 = vector.broadcast %10 : vector<1x128xf32> to vector<8x128xf32>
    %571 = arith.addf %569, %570 : vector<8x128xf32>
    %572 = arith.mulf %559, %571 : vector<8x128xf32>
    %573 = arith.addf %568, %572 : vector<8x128xf32>
    %574 = math.tanh %573 : vector<8x128xf32>
    %cst_190 = arith.constant 1.000000e+00 : f32
    %575 = vector.broadcast %cst_190 : f32 to vector<8x128xf32>
    %576 = arith.subf %575, %567 : vector<8x128xf32>
    %577 = arith.mulf %576, %574 : vector<8x128xf32>
    %578 = arith.mulf %567, %519 : vector<8x128xf32>
    %579 = arith.addf %577, %578 : vector<8x128xf32>
    %c0_191 = arith.constant 0 : index
    %c0_192 = arith.constant 0 : index
    %580 = vector.load %arg8[%c0_191, %c0_192] : memref<8x128xf32, #tpu.memory_space<vmem>>, vector<8x128xf32>
    tpu.vector_store %arg8[%c0_191, %c0_192], %549 {strides = array<i32>} : memref<8x128xf32, #tpu.memory_space<vmem>>, vector<8x128xf32>,
    %c0_193 = arith.constant 0 : index
    %c0_194 = arith.constant 0 : index
    %581 = vector.load %arg9[%c0_193, %c0_194] : memref<8x128xf32, #tpu.memory_space<vmem>>, vector<8x128xf32>
    tpu.vector_store %arg9[%c0_193, %c0_194], %579 {strides = array<i32>} : memref<8x128xf32, #tpu.memory_space<vmem>>, vector<8x128xf32>,
    %582 = arith.truncf %549 : vector<8x128xf32> to vector<8x128xbf16>
    %583 = arith.index_cast %c6_i32 : i32 to index
    %c0_195 = arith.constant 0 : index
    %c0_196 = arith.constant 0 : index
    %584 = vector.load %arg6[%583, %c0_195, %c0_196] : memref<8x8x128xbf16, #tpu.memory_space<vmem>>, vector<1x8x128xbf16>
    %585 = vector.shape_cast %584 : vector<1x8x128xbf16> to vector<8x128xbf16>
    %586 = vector.shape_cast %582 : vector<8x128xbf16> to vector<1x8x128xbf16>
    tpu.vector_store %arg6[%583, %c0_195, %c0_196], %586 {strides = array<i32>} : memref<8x8x128xbf16, #tpu.memory_space<vmem>>, vector<1x8x128xbf16>,
    %587 = arith.truncf %579 : vector<8x128xf32> to vector<8x128xbf16>
    %588 = arith.index_cast %509 : i32 to index
    %c0_197 = arith.constant 0 : index
    %c0_198 = arith.constant 0 : index
    %589 = vector.load %arg7[%588, %c0_197, %c0_198] : memref<8x8x128xbf16, #tpu.memory_space<vmem>>, vector<1x8x128xbf16>
    %590 = vector.shape_cast %589 : vector<1x8x128xbf16> to vector<8x128xbf16>
    %591 = vector.shape_cast %587 : vector<8x128xbf16> to vector<1x8x128xbf16>
    tpu.vector_store %arg7[%588, %c0_197, %c0_198], %591 {strides = array<i32>} : memref<8x8x128xbf16, #tpu.memory_space<vmem>>, vector<1x8x128xbf16>,
    %c7_i32_199 = arith.constant 7 : i32
    %c7_i32_200 = arith.constant 7 : i32
    %592 = arith.subi %c7_i32_200, %c7_i32_199 : i32
    %c0_201 = arith.constant 0 : index
    %593 = arith.index_cast %c7_i32_199 : i32 to index
    %c0_202 = arith.constant 0 : index
    %c0_203 = arith.constant 0 : index
    %594 = vector.load %arg1[%c0_201, %593, %c0_202, %c0_203] : memref<1x8x8x384xbf16, #tpu.memory_space<vmem>>, vector<1x1x8x384xbf16>
    %595 = vector.shape_cast %594 : vector<1x1x8x384xbf16> to vector<8x384xbf16>
    %596 = arith.extf %595 : vector<8x384xbf16> to vector<8x384xf32>
    %c0_204 = arith.constant 0 : index
    %597 = arith.index_cast %592 : i32 to index
    %c0_205 = arith.constant 0 : index
    %c0_206 = arith.constant 0 : index
    %598 = vector.load %arg2[%c0_204, %597, %c0_205, %c0_206] : memref<1x8x8x384xbf16, #tpu.memory_space<vmem>>, vector<1x1x8x384xbf16>
    %599 = vector.shape_cast %598 : vector<1x1x8x384xbf16> to vector<8x384xbf16>
    %600 = arith.extf %599 : vector<8x384xbf16> to vector<8x384xf32>
    %c0_207 = arith.constant 0 : index
    %c0_208 = arith.constant 0 : index
    %601 = vector.load %arg8[%c0_207, %c0_208] : memref<8x128xf32, #tpu.memory_space<vmem>>, vector<8x128xf32>
    %c0_209 = arith.constant 0 : index
    %c0_210 = arith.constant 0 : index
    %602 = vector.load %arg9[%c0_209, %c0_210] : memref<8x128xf32, #tpu.memory_space<vmem>>, vector<8x128xf32>
    %603 = arith.truncf %601 : vector<8x128xf32> to vector<8x128xbf16>
    %cst_211 = arith.constant dense<0.000000e+00> : vector<8x384xf32>
    %604 = tpu.matmul %603, %4, %cst_211 {dimension_numbers = #tpu.dot_dimension_numbers<[1], [0], [0], [1], [0, 0, 1, 1], [], []>} : vector<8x128xbf16>, vector<128x384xbf16>, vector<8x384xf32> -> vector<8x384xf32>
    %605 = vector.extract_strided_slice %596 {offsets = [0, 0], sizes = [8, 128], strides = [1, 1]} : vector<8x384xf32> to vector<8x128xf32>
    %606 = vector.extract_strided_slice %604 {offsets = [0, 0], sizes = [8, 128], strides = [1, 1]} : vector<8x384xf32> to vector<8x128xf32>
    %607 = arith.addf %605, %606 : vector<8x128xf32>
    %608 = arith.negf %607 : vector<8x128xf32>
    %609 = math.exp %608 : vector<8x128xf32>
    %cst_212 = arith.constant 1.000000e+00 : f32
    %610 = vector.broadcast %cst_212 : f32 to vector<8x128xf32>
    %611 = arith.addf %610, %609 : vector<8x128xf32>
    %612 = arith.divf %610, %611 : vector<8x128xf32>
    %613 = vector.extract_strided_slice %596 {offsets = [0, 128], sizes = [8, 128], strides = [1, 1]} : vector<8x384xf32> to vector<8x128xf32>
    %614 = vector.extract_strided_slice %604 {offsets = [0, 128], sizes = [8, 128], strides = [1, 1]} : vector<8x384xf32> to vector<8x128xf32>
    %615 = arith.addf %613, %614 : vector<8x128xf32>
    %616 = arith.negf %615 : vector<8x128xf32>
    %617 = math.exp %616 : vector<8x128xf32>
    %cst_213 = arith.constant 1.000000e+00 : f32
    %618 = vector.broadcast %cst_213 : f32 to vector<8x128xf32>
    %619 = arith.addf %618, %617 : vector<8x128xf32>
    %620 = arith.divf %618, %619 : vector<8x128xf32>
    %621 = vector.extract_strided_slice %596 {offsets = [0, 256], sizes = [8, 128], strides = [1, 1]} : vector<8x384xf32> to vector<8x128xf32>
    %622 = vector.extract_strided_slice %604 {offsets = [0, 256], sizes = [8, 128], strides = [1, 1]} : vector<8x384xf32> to vector<8x128xf32>
    %623 = vector.broadcast %8 : vector<1x128xf32> to vector<8x128xf32>
    %624 = arith.addf %622, %623 : vector<8x128xf32>
    %625 = arith.mulf %612, %624 : vector<8x128xf32>
    %626 = arith.addf %621, %625 : vector<8x128xf32>
    %627 = math.tanh %626 : vector<8x128xf32>
    %cst_214 = arith.constant 1.000000e+00 : f32
    %628 = vector.broadcast %cst_214 : f32 to vector<8x128xf32>
    %629 = arith.subf %628, %620 : vector<8x128xf32>
    %630 = arith.mulf %629, %627 : vector<8x128xf32>
    %631 = arith.mulf %620, %601 : vector<8x128xf32>
    %632 = arith.addf %630, %631 : vector<8x128xf32>
    %633 = arith.truncf %602 : vector<8x128xf32> to vector<8x128xbf16>
    %cst_215 = arith.constant dense<0.000000e+00> : vector<8x384xf32>
    %634 = tpu.matmul %633, %6, %cst_215 {dimension_numbers = #tpu.dot_dimension_numbers<[1], [0], [0], [1], [0, 0, 1, 1], [], []>} : vector<8x128xbf16>, vector<128x384xbf16>, vector<8x384xf32> -> vector<8x384xf32>
    %635 = vector.extract_strided_slice %600 {offsets = [0, 0], sizes = [8, 128], strides = [1, 1]} : vector<8x384xf32> to vector<8x128xf32>
    %636 = vector.extract_strided_slice %634 {offsets = [0, 0], sizes = [8, 128], strides = [1, 1]} : vector<8x384xf32> to vector<8x128xf32>
    %637 = arith.addf %635, %636 : vector<8x128xf32>
    %638 = arith.negf %637 : vector<8x128xf32>
    %639 = math.exp %638 : vector<8x128xf32>
    %cst_216 = arith.constant 1.000000e+00 : f32
    %640 = vector.broadcast %cst_216 : f32 to vector<8x128xf32>
    %641 = arith.addf %640, %639 : vector<8x128xf32>
    %642 = arith.divf %640, %641 : vector<8x128xf32>
    %643 = vector.extract_strided_slice %600 {offsets = [0, 128], sizes = [8, 128], strides = [1, 1]} : vector<8x384xf32> to vector<8x128xf32>
    %644 = vector.extract_strided_slice %634 {offsets = [0, 128], sizes = [8, 128], strides = [1, 1]} : vector<8x384xf32> to vector<8x128xf32>
    %645 = arith.addf %643, %644 : vector<8x128xf32>
    %646 = arith.negf %645 : vector<8x128xf32>
    %647 = math.exp %646 : vector<8x128xf32>
    %cst_217 = arith.constant 1.000000e+00 : f32
    %648 = vector.broadcast %cst_217 : f32 to vector<8x128xf32>
    %649 = arith.addf %648, %647 : vector<8x128xf32>
    %650 = arith.divf %648, %649 : vector<8x128xf32>
    %651 = vector.extract_strided_slice %600 {offsets = [0, 256], sizes = [8, 128], strides = [1, 1]} : vector<8x384xf32> to vector<8x128xf32>
    %652 = vector.extract_strided_slice %634 {offsets = [0, 256], sizes = [8, 128], strides = [1, 1]} : vector<8x384xf32> to vector<8x128xf32>
    %653 = vector.broadcast %10 : vector<1x128xf32> to vector<8x128xf32>
    %654 = arith.addf %652, %653 : vector<8x128xf32>
    %655 = arith.mulf %642, %654 : vector<8x128xf32>
    %656 = arith.addf %651, %655 : vector<8x128xf32>
    %657 = math.tanh %656 : vector<8x128xf32>
    %cst_218 = arith.constant 1.000000e+00 : f32
    %658 = vector.broadcast %cst_218 : f32 to vector<8x128xf32>
    %659 = arith.subf %658, %650 : vector<8x128xf32>
    %660 = arith.mulf %659, %657 : vector<8x128xf32>
    %661 = arith.mulf %650, %602 : vector<8x128xf32>
    %662 = arith.addf %660, %661 : vector<8x128xf32>
    %c0_219 = arith.constant 0 : index
    %c0_220 = arith.constant 0 : index
    %663 = vector.load %arg8[%c0_219, %c0_220] : memref<8x128xf32, #tpu.memory_space<vmem>>, vector<8x128xf32>
    tpu.vector_store %arg8[%c0_219, %c0_220], %632 {strides = array<i32>} : memref<8x128xf32, #tpu.memory_space<vmem>>, vector<8x128xf32>,
    %c0_221 = arith.constant 0 : index
    %c0_222 = arith.constant 0 : index
    %664 = vector.load %arg9[%c0_221, %c0_222] : memref<8x128xf32, #tpu.memory_space<vmem>>, vector<8x128xf32>
    tpu.vector_store %arg9[%c0_221, %c0_222], %662 {strides = array<i32>} : memref<8x128xf32, #tpu.memory_space<vmem>>, vector<8x128xf32>,
    %665 = arith.truncf %632 : vector<8x128xf32> to vector<8x128xbf16>
    %666 = arith.index_cast %c7_i32_199 : i32 to index
    %c0_223 = arith.constant 0 : index
    %c0_224 = arith.constant 0 : index
    %667 = vector.load %arg6[%666, %c0_223, %c0_224] : memref<8x8x128xbf16, #tpu.memory_space<vmem>>, vector<1x8x128xbf16>
    %668 = vector.shape_cast %667 : vector<1x8x128xbf16> to vector<8x128xbf16>
    %669 = vector.shape_cast %665 : vector<8x128xbf16> to vector<1x8x128xbf16>
    tpu.vector_store %arg6[%666, %c0_223, %c0_224], %669 {strides = array<i32>} : memref<8x8x128xbf16, #tpu.memory_space<vmem>>, vector<1x8x128xbf16>,
    %670 = arith.truncf %662 : vector<8x128xf32> to vector<8x128xbf16>
    %671 = arith.index_cast %592 : i32 to index
    %c0_225 = arith.constant 0 : index
    %c0_226 = arith.constant 0 : index
    %672 = vector.load %arg7[%671, %c0_225, %c0_226] : memref<8x8x128xbf16, #tpu.memory_space<vmem>>, vector<1x8x128xbf16>
    %673 = vector.shape_cast %672 : vector<1x8x128xbf16> to vector<8x128xbf16>
    %674 = vector.shape_cast %670 : vector<8x128xbf16> to vector<1x8x128xbf16>
    tpu.vector_store %arg7[%671, %c0_225, %c0_226], %674 {strides = array<i32>} : memref<8x8x128xbf16, #tpu.memory_space<vmem>>, vector<1x8x128xbf16>,
    %c8_i32 = arith.constant 8 : i32
    return
  }
  func.func @transform_0(%arg0: i32) -> (i32, i32, i32, i32) {
    %c0_i32 = arith.constant 0 : i32
    %c0_i32_0 = arith.constant 0 : i32
    %c0_i32_1 = arith.constant 0 : i32
    %c0_i32_2 = arith.constant 0 : i32
    return %c0_i32, %arg0, %c0_i32_0, %c0_i32_1 : i32, i32, i32, i32
  }
  func.func @transform_1(%arg0: i32) -> (i32, i32, i32, i32) {
    %c0_i32 = arith.constant 0 : i32
    %0 = arith.subi %c0_i32, %arg0 : i32
    %c1_i32 = arith.constant 1 : i32
    %c0_i32_0 = arith.constant 0 : i32
    %c0_i32_1 = arith.constant 0 : i32
    %c0_i32_2 = arith.constant 0 : i32
    return %c1_i32, %0, %c0_i32_0, %c0_i32_1 : i32, i32, i32, i32
  }
  func.func @transform_2(%arg0: i32) -> (i32, i32, i32) {
    %c0_i32 = arith.constant 0 : i32
    %c0_i32_0 = arith.constant 0 : i32
    %c0_i32_1 = arith.constant 0 : i32
    %c0_i32_2 = arith.constant 0 : i32
    return %c0_i32, %c0_i32_0, %c0_i32_1 : i32, i32, i32
  }
  func.func @transform_3(%arg0: i32) -> (i32, i32, i32) {
    %c0_i32 = arith.constant 0 : i32
    %c0_i32_0 = arith.constant 0 : i32
    %c0_i32_1 = arith.constant 0 : i32
    %c0_i32_2 = arith.constant 0 : i32
    return %c0_i32, %c0_i32_0, %c0_i32_1 : i32, i32, i32
  }
  func.func @transform_4(%arg0: i32) -> (i32, i32, i32) {
    %c0_i32 = arith.constant 0 : i32
    %c0_i32_0 = arith.constant 0 : i32
    %c0_i32_1 = arith.constant 0 : i32
    %c0_i32_2 = arith.constant 0 : i32
    return %c0_i32, %c0_i32_0, %c0_i32_1 : i32, i32, i32
  }
  func.func @transform_5(%arg0: i32) -> (i32, i32, i32) {
    %c0_i32 = arith.constant 0 : i32
    %c0_i32_0 = arith.constant 0 : i32
    %c0_i32_1 = arith.constant 0 : i32
    return %arg0, %c0_i32, %c0_i32_0 : i32, i32, i32
  }
  func.func @transform_6(%arg0: i32) -> (i32, i32, i32) {
    %c0_i32 = arith.constant 0 : i32
    %0 = arith.subi %c0_i32, %arg0 : i32
    %c0_i32_0 = arith.constant 0 : i32
    %c0_i32_1 = arith.constant 0 : i32
    %c0_i32_2 = arith.constant 0 : i32
    return %0, %c0_i32_0, %c0_i32_1 : i32, i32, i32
  }
}

module attributes {stable_mosaic.version = 11 : i64} {
  func.func @kernel(%arg0: i32, %arg1: memref<1x8x8x384xbf16, #tpu.memory_space<vmem>>, %arg2: memref<1x8x8x384xbf16, #tpu.memory_space<vmem>>, %arg3: memref<2x128x384xbf16, #tpu.memory_space<vmem>>, %arg4: memref<2x1x128xf32, #tpu.memory_space<vmem>>, %arg5: memref<2x8x128xf32, #tpu.memory_space<vmem>>, %arg6: memref<8x8x128xf32, #tpu.memory_space<vmem>>, %arg7: memref<8x8x128xf32, #tpu.memory_space<vmem>>, %arg8: memref<8x128xf32, #tpu.memory_space<vmem>>, %arg9: memref<8x128xf32, #tpu.memory_space<vmem>>) attributes {dimension_semantics = [#tpu.dimension_semantics<arbitrary>], iteration_bounds = array<i64: 1>, scalar_prefetch = 0 : i64, scratch_operands = 2 : i64, tpu.core_type = #tpu.core_type<tc>, window_params = [{transform_indices = @transform_0, window_bounds = array<i64: 1, 8, 8, 384>}, {transform_indices = @transform_1, window_bounds = array<i64: 1, 8, 8, 384>}, {pipeline_mode = #tpu.pipeline_mode<synchronous>, transform_indices = @transform_2, window_bounds = array<i64: 2, 128, 384>}, {pipeline_mode = #tpu.pipeline_mode<synchronous>, transform_indices = @transform_3, window_bounds = array<i64: 2, 1, 128>}, {pipeline_mode = #tpu.pipeline_mode<synchronous>, transform_indices = @transform_4, window_bounds = array<i64: 2, 8, 128>}, {transform_indices = @transform_5, window_bounds = array<i64: 8, 8, 128>}, {transform_indices = @transform_6, window_bounds = array<i64: 8, 8, 128>}]} {
    %c0_i32 = arith.constant 0 : i32
    %0 = arith.cmpi eq, %arg0, %c0_i32 : i32
    %1 = arith.extui %0 : i1 to i32
    %c0_i32_0 = arith.constant 0 : i32
    %2 = arith.cmpi ne, %1, %c0_i32_0 : i32
    scf.if %2 {
      %c0_227 = arith.constant 0 : index
      %c0_228 = arith.constant 0 : index
      %c0_229 = arith.constant 0 : index
      %659 = vector.load %arg5[%c0_227, %c0_228, %c0_229] : memref<2x8x128xf32, #tpu.memory_space<vmem>>, vector<1x8x128xf32>
      %660 = vector.shape_cast %659 : vector<1x8x128xf32> to vector<8x128xf32>
      %c0_230 = arith.constant 0 : index
      %c0_231 = arith.constant 0 : index
      %661 = vector.load %arg8[%c0_230, %c0_231] : memref<8x128xf32, #tpu.memory_space<vmem>>, vector<8x128xf32>
      tpu.vector_store %arg8[%c0_230, %c0_231], %660 {strides = array<i32>} : memref<8x128xf32, #tpu.memory_space<vmem>>, vector<8x128xf32>,
      %c1_232 = arith.constant 1 : index
      %c0_233 = arith.constant 0 : index
      %c0_234 = arith.constant 0 : index
      %662 = vector.load %arg5[%c1_232, %c0_233, %c0_234] : memref<2x8x128xf32, #tpu.memory_space<vmem>>, vector<1x8x128xf32>
      %663 = vector.shape_cast %662 : vector<1x8x128xf32> to vector<8x128xf32>
      %c0_235 = arith.constant 0 : index
      %c0_236 = arith.constant 0 : index
      %664 = vector.load %arg9[%c0_235, %c0_236] : memref<8x128xf32, #tpu.memory_space<vmem>>, vector<8x128xf32>
      tpu.vector_store %arg9[%c0_235, %c0_236], %663 {strides = array<i32>} : memref<8x128xf32, #tpu.memory_space<vmem>>, vector<8x128xf32>,
    } else {
    }
    %c0 = arith.constant 0 : index
    %c0_1 = arith.constant 0 : index
    %c0_2 = arith.constant 0 : index
    %3 = vector.load %arg3[%c0, %c0_1, %c0_2] : memref<2x128x384xbf16, #tpu.memory_space<vmem>>, vector<1x128x384xbf16>
    %4 = vector.shape_cast %3 : vector<1x128x384xbf16> to vector<128x384xbf16>
    %c1 = arith.constant 1 : index
    %c0_3 = arith.constant 0 : index
    %c0_4 = arith.constant 0 : index
    %5 = vector.load %arg3[%c1, %c0_3, %c0_4] : memref<2x128x384xbf16, #tpu.memory_space<vmem>>, vector<1x128x384xbf16>
    %6 = vector.shape_cast %5 : vector<1x128x384xbf16> to vector<128x384xbf16>
    %c0_5 = arith.constant 0 : index
    %c0_6 = arith.constant 0 : index
    %c0_7 = arith.constant 0 : index
    %7 = vector.load %arg4[%c0_5, %c0_6, %c0_7] : memref<2x1x128xf32, #tpu.memory_space<vmem>>, vector<1x1x128xf32>
    %8 = vector.shape_cast %7 : vector<1x1x128xf32> to vector<1x128xf32>
    %c1_8 = arith.constant 1 : index
    %c0_9 = arith.constant 0 : index
    %c0_10 = arith.constant 0 : index
    %9 = vector.load %arg4[%c1_8, %c0_9, %c0_10] : memref<2x1x128xf32, #tpu.memory_space<vmem>>, vector<1x1x128xf32>
    %10 = vector.shape_cast %9 : vector<1x1x128xf32> to vector<1x128xf32>
    %c0_i32_11 = arith.constant 0 : i32
    %c7_i32 = arith.constant 7 : i32
    %11 = arith.subi %c7_i32, %c0_i32_11 : i32
    %c0_12 = arith.constant 0 : index
    %12 = arith.index_cast %c0_i32_11 : i32 to index
    %c0_13 = arith.constant 0 : index
    %c0_14 = arith.constant 0 : index
    %13 = vector.load %arg1[%c0_12, %12, %c0_13, %c0_14] : memref<1x8x8x384xbf16, #tpu.memory_space<vmem>>, vector<1x1x8x384xbf16>
    %14 = vector.shape_cast %13 : vector<1x1x8x384xbf16> to vector<8x384xbf16>
    %15 = arith.extf %14 : vector<8x384xbf16> to vector<8x384xf32>
    %c0_15 = arith.constant 0 : index
    %16 = arith.index_cast %11 : i32 to index
    %c0_16 = arith.constant 0 : index
    %c0_17 = arith.constant 0 : index
    %17 = vector.load %arg2[%c0_15, %16, %c0_16, %c0_17] : memref<1x8x8x384xbf16, #tpu.memory_space<vmem>>, vector<1x1x8x384xbf16>
    %18 = vector.shape_cast %17 : vector<1x1x8x384xbf16> to vector<8x384xbf16>
    %19 = arith.extf %18 : vector<8x384xbf16> to vector<8x384xf32>
    %c0_18 = arith.constant 0 : index
    %c0_19 = arith.constant 0 : index
    %20 = vector.load %arg8[%c0_18, %c0_19] : memref<8x128xf32, #tpu.memory_space<vmem>>, vector<8x128xf32>
    %c0_20 = arith.constant 0 : index
    %c0_21 = arith.constant 0 : index
    %21 = vector.load %arg9[%c0_20, %c0_21] : memref<8x128xf32, #tpu.memory_space<vmem>>, vector<8x128xf32>
    %22 = arith.truncf %20 : vector<8x128xf32> to vector<8x128xbf16>
    %cst = arith.constant dense<0.000000e+00> : vector<8x384xf32>
    %23 = tpu.matmul %22, %4, %cst {dimension_numbers = #tpu.dot_dimension_numbers<[1], [0], [0], [1], [0, 0, 1, 1], [], []>} : vector<8x128xbf16>, vector<128x384xbf16>, vector<8x384xf32> -> vector<8x384xf32>
    %24 = vector.extract_strided_slice %15 {offsets = [0, 0], sizes = [8, 128], strides = [1, 1]} : vector<8x384xf32> to vector<8x128xf32>
    %25 = vector.extract_strided_slice %23 {offsets = [0, 0], sizes = [8, 128], strides = [1, 1]} : vector<8x384xf32> to vector<8x128xf32>
    %26 = arith.addf %24, %25 : vector<8x128xf32>
    %27 = arith.negf %26 : vector<8x128xf32>
    %28 = math.exp %27 : vector<8x128xf32>
    %cst_22 = arith.constant 1.000000e+00 : f32
    %29 = vector.broadcast %cst_22 : f32 to vector<8x128xf32>
    %30 = arith.addf %29, %28 : vector<8x128xf32>
    %31 = arith.divf %29, %30 : vector<8x128xf32>
    %32 = vector.extract_strided_slice %15 {offsets = [0, 128], sizes = [8, 128], strides = [1, 1]} : vector<8x384xf32> to vector<8x128xf32>
    %33 = vector.extract_strided_slice %23 {offsets = [0, 128], sizes = [8, 128], strides = [1, 1]} : vector<8x384xf32> to vector<8x128xf32>
    %34 = arith.addf %32, %33 : vector<8x128xf32>
    %35 = arith.negf %34 : vector<8x128xf32>
    %36 = math.exp %35 : vector<8x128xf32>
    %cst_23 = arith.constant 1.000000e+00 : f32
    %37 = vector.broadcast %cst_23 : f32 to vector<8x128xf32>
    %38 = arith.addf %37, %36 : vector<8x128xf32>
    %39 = arith.divf %37, %38 : vector<8x128xf32>
    %40 = vector.extract_strided_slice %15 {offsets = [0, 256], sizes = [8, 128], strides = [1, 1]} : vector<8x384xf32> to vector<8x128xf32>
    %41 = vector.extract_strided_slice %23 {offsets = [0, 256], sizes = [8, 128], strides = [1, 1]} : vector<8x384xf32> to vector<8x128xf32>
    %42 = vector.broadcast %8 : vector<1x128xf32> to vector<8x128xf32>
    %43 = arith.addf %41, %42 : vector<8x128xf32>
    %44 = arith.mulf %31, %43 : vector<8x128xf32>
    %45 = arith.addf %40, %44 : vector<8x128xf32>
    %46 = math.tanh %45 : vector<8x128xf32>
    %cst_24 = arith.constant 1.000000e+00 : f32
    %47 = vector.broadcast %cst_24 : f32 to vector<8x128xf32>
    %48 = arith.subf %47, %39 : vector<8x128xf32>
    %49 = arith.mulf %48, %46 : vector<8x128xf32>
    %50 = arith.mulf %39, %20 : vector<8x128xf32>
    %51 = arith.addf %49, %50 : vector<8x128xf32>
    %52 = arith.truncf %21 : vector<8x128xf32> to vector<8x128xbf16>
    %cst_25 = arith.constant dense<0.000000e+00> : vector<8x384xf32>
    %53 = tpu.matmul %52, %6, %cst_25 {dimension_numbers = #tpu.dot_dimension_numbers<[1], [0], [0], [1], [0, 0, 1, 1], [], []>} : vector<8x128xbf16>, vector<128x384xbf16>, vector<8x384xf32> -> vector<8x384xf32>
    %54 = vector.extract_strided_slice %19 {offsets = [0, 0], sizes = [8, 128], strides = [1, 1]} : vector<8x384xf32> to vector<8x128xf32>
    %55 = vector.extract_strided_slice %53 {offsets = [0, 0], sizes = [8, 128], strides = [1, 1]} : vector<8x384xf32> to vector<8x128xf32>
    %56 = arith.addf %54, %55 : vector<8x128xf32>
    %57 = arith.negf %56 : vector<8x128xf32>
    %58 = math.exp %57 : vector<8x128xf32>
    %cst_26 = arith.constant 1.000000e+00 : f32
    %59 = vector.broadcast %cst_26 : f32 to vector<8x128xf32>
    %60 = arith.addf %59, %58 : vector<8x128xf32>
    %61 = arith.divf %59, %60 : vector<8x128xf32>
    %62 = vector.extract_strided_slice %19 {offsets = [0, 128], sizes = [8, 128], strides = [1, 1]} : vector<8x384xf32> to vector<8x128xf32>
    %63 = vector.extract_strided_slice %53 {offsets = [0, 128], sizes = [8, 128], strides = [1, 1]} : vector<8x384xf32> to vector<8x128xf32>
    %64 = arith.addf %62, %63 : vector<8x128xf32>
    %65 = arith.negf %64 : vector<8x128xf32>
    %66 = math.exp %65 : vector<8x128xf32>
    %cst_27 = arith.constant 1.000000e+00 : f32
    %67 = vector.broadcast %cst_27 : f32 to vector<8x128xf32>
    %68 = arith.addf %67, %66 : vector<8x128xf32>
    %69 = arith.divf %67, %68 : vector<8x128xf32>
    %70 = vector.extract_strided_slice %19 {offsets = [0, 256], sizes = [8, 128], strides = [1, 1]} : vector<8x384xf32> to vector<8x128xf32>
    %71 = vector.extract_strided_slice %53 {offsets = [0, 256], sizes = [8, 128], strides = [1, 1]} : vector<8x384xf32> to vector<8x128xf32>
    %72 = vector.broadcast %10 : vector<1x128xf32> to vector<8x128xf32>
    %73 = arith.addf %71, %72 : vector<8x128xf32>
    %74 = arith.mulf %61, %73 : vector<8x128xf32>
    %75 = arith.addf %70, %74 : vector<8x128xf32>
    %76 = math.tanh %75 : vector<8x128xf32>
    %cst_28 = arith.constant 1.000000e+00 : f32
    %77 = vector.broadcast %cst_28 : f32 to vector<8x128xf32>
    %78 = arith.subf %77, %69 : vector<8x128xf32>
    %79 = arith.mulf %78, %76 : vector<8x128xf32>
    %80 = arith.mulf %69, %21 : vector<8x128xf32>
    %81 = arith.addf %79, %80 : vector<8x128xf32>
    %c0_29 = arith.constant 0 : index
    %c0_30 = arith.constant 0 : index
    %82 = vector.load %arg8[%c0_29, %c0_30] : memref<8x128xf32, #tpu.memory_space<vmem>>, vector<8x128xf32>
    tpu.vector_store %arg8[%c0_29, %c0_30], %51 {strides = array<i32>} : memref<8x128xf32, #tpu.memory_space<vmem>>, vector<8x128xf32>,
    %c0_31 = arith.constant 0 : index
    %c0_32 = arith.constant 0 : index
    %83 = vector.load %arg9[%c0_31, %c0_32] : memref<8x128xf32, #tpu.memory_space<vmem>>, vector<8x128xf32>
    tpu.vector_store %arg9[%c0_31, %c0_32], %81 {strides = array<i32>} : memref<8x128xf32, #tpu.memory_space<vmem>>, vector<8x128xf32>,
    %84 = arith.index_cast %c0_i32_11 : i32 to index
    %c0_33 = arith.constant 0 : index
    %c0_34 = arith.constant 0 : index
    %85 = vector.load %arg6[%84, %c0_33, %c0_34] : memref<8x8x128xf32, #tpu.memory_space<vmem>>, vector<1x8x128xf32>
    %86 = vector.shape_cast %85 : vector<1x8x128xf32> to vector<8x128xf32>
    %87 = vector.shape_cast %51 : vector<8x128xf32> to vector<1x8x128xf32>
    tpu.vector_store %arg6[%84, %c0_33, %c0_34], %87 {strides = array<i32>} : memref<8x8x128xf32, #tpu.memory_space<vmem>>, vector<1x8x128xf32>,
    %88 = arith.index_cast %11 : i32 to index
    %c0_35 = arith.constant 0 : index
    %c0_36 = arith.constant 0 : index
    %89 = vector.load %arg7[%88, %c0_35, %c0_36] : memref<8x8x128xf32, #tpu.memory_space<vmem>>, vector<1x8x128xf32>
    %90 = vector.shape_cast %89 : vector<1x8x128xf32> to vector<8x128xf32>
    %91 = vector.shape_cast %81 : vector<8x128xf32> to vector<1x8x128xf32>
    tpu.vector_store %arg7[%88, %c0_35, %c0_36], %91 {strides = array<i32>} : memref<8x8x128xf32, #tpu.memory_space<vmem>>, vector<1x8x128xf32>,
    %c1_i32 = arith.constant 1 : i32
    %c7_i32_37 = arith.constant 7 : i32
    %92 = arith.subi %c7_i32_37, %c1_i32 : i32
    %c0_38 = arith.constant 0 : index
    %93 = arith.index_cast %c1_i32 : i32 to index
    %c0_39 = arith.constant 0 : index
    %c0_40 = arith.constant 0 : index
    %94 = vector.load %arg1[%c0_38, %93, %c0_39, %c0_40] : memref<1x8x8x384xbf16, #tpu.memory_space<vmem>>, vector<1x1x8x384xbf16>
    %95 = vector.shape_cast %94 : vector<1x1x8x384xbf16> to vector<8x384xbf16>
    %96 = arith.extf %95 : vector<8x384xbf16> to vector<8x384xf32>
    %c0_41 = arith.constant 0 : index
    %97 = arith.index_cast %92 : i32 to index
    %c0_42 = arith.constant 0 : index
    %c0_43 = arith.constant 0 : index
    %98 = vector.load %arg2[%c0_41, %97, %c0_42, %c0_43] : memref<1x8x8x384xbf16, #tpu.memory_space<vmem>>, vector<1x1x8x384xbf16>
    %99 = vector.shape_cast %98 : vector<1x1x8x384xbf16> to vector<8x384xbf16>
    %100 = arith.extf %99 : vector<8x384xbf16> to vector<8x384xf32>
    %c0_44 = arith.constant 0 : index
    %c0_45 = arith.constant 0 : index
    %101 = vector.load %arg8[%c0_44, %c0_45] : memref<8x128xf32, #tpu.memory_space<vmem>>, vector<8x128xf32>
    %c0_46 = arith.constant 0 : index
    %c0_47 = arith.constant 0 : index
    %102 = vector.load %arg9[%c0_46, %c0_47] : memref<8x128xf32, #tpu.memory_space<vmem>>, vector<8x128xf32>
    %103 = arith.truncf %101 : vector<8x128xf32> to vector<8x128xbf16>
    %cst_48 = arith.constant dense<0.000000e+00> : vector<8x384xf32>
    %104 = tpu.matmul %103, %4, %cst_48 {dimension_numbers = #tpu.dot_dimension_numbers<[1], [0], [0], [1], [0, 0, 1, 1], [], []>} : vector<8x128xbf16>, vector<128x384xbf16>, vector<8x384xf32> -> vector<8x384xf32>
    %105 = vector.extract_strided_slice %96 {offsets = [0, 0], sizes = [8, 128], strides = [1, 1]} : vector<8x384xf32> to vector<8x128xf32>
    %106 = vector.extract_strided_slice %104 {offsets = [0, 0], sizes = [8, 128], strides = [1, 1]} : vector<8x384xf32> to vector<8x128xf32>
    %107 = arith.addf %105, %106 : vector<8x128xf32>
    %108 = arith.negf %107 : vector<8x128xf32>
    %109 = math.exp %108 : vector<8x128xf32>
    %cst_49 = arith.constant 1.000000e+00 : f32
    %110 = vector.broadcast %cst_49 : f32 to vector<8x128xf32>
    %111 = arith.addf %110, %109 : vector<8x128xf32>
    %112 = arith.divf %110, %111 : vector<8x128xf32>
    %113 = vector.extract_strided_slice %96 {offsets = [0, 128], sizes = [8, 128], strides = [1, 1]} : vector<8x384xf32> to vector<8x128xf32>
    %114 = vector.extract_strided_slice %104 {offsets = [0, 128], sizes = [8, 128], strides = [1, 1]} : vector<8x384xf32> to vector<8x128xf32>
    %115 = arith.addf %113, %114 : vector<8x128xf32>
    %116 = arith.negf %115 : vector<8x128xf32>
    %117 = math.exp %116 : vector<8x128xf32>
    %cst_50 = arith.constant 1.000000e+00 : f32
    %118 = vector.broadcast %cst_50 : f32 to vector<8x128xf32>
    %119 = arith.addf %118, %117 : vector<8x128xf32>
    %120 = arith.divf %118, %119 : vector<8x128xf32>
    %121 = vector.extract_strided_slice %96 {offsets = [0, 256], sizes = [8, 128], strides = [1, 1]} : vector<8x384xf32> to vector<8x128xf32>
    %122 = vector.extract_strided_slice %104 {offsets = [0, 256], sizes = [8, 128], strides = [1, 1]} : vector<8x384xf32> to vector<8x128xf32>
    %123 = vector.broadcast %8 : vector<1x128xf32> to vector<8x128xf32>
    %124 = arith.addf %122, %123 : vector<8x128xf32>
    %125 = arith.mulf %112, %124 : vector<8x128xf32>
    %126 = arith.addf %121, %125 : vector<8x128xf32>
    %127 = math.tanh %126 : vector<8x128xf32>
    %cst_51 = arith.constant 1.000000e+00 : f32
    %128 = vector.broadcast %cst_51 : f32 to vector<8x128xf32>
    %129 = arith.subf %128, %120 : vector<8x128xf32>
    %130 = arith.mulf %129, %127 : vector<8x128xf32>
    %131 = arith.mulf %120, %101 : vector<8x128xf32>
    %132 = arith.addf %130, %131 : vector<8x128xf32>
    %133 = arith.truncf %102 : vector<8x128xf32> to vector<8x128xbf16>
    %cst_52 = arith.constant dense<0.000000e+00> : vector<8x384xf32>
    %134 = tpu.matmul %133, %6, %cst_52 {dimension_numbers = #tpu.dot_dimension_numbers<[1], [0], [0], [1], [0, 0, 1, 1], [], []>} : vector<8x128xbf16>, vector<128x384xbf16>, vector<8x384xf32> -> vector<8x384xf32>
    %135 = vector.extract_strided_slice %100 {offsets = [0, 0], sizes = [8, 128], strides = [1, 1]} : vector<8x384xf32> to vector<8x128xf32>
    %136 = vector.extract_strided_slice %134 {offsets = [0, 0], sizes = [8, 128], strides = [1, 1]} : vector<8x384xf32> to vector<8x128xf32>
    %137 = arith.addf %135, %136 : vector<8x128xf32>
    %138 = arith.negf %137 : vector<8x128xf32>
    %139 = math.exp %138 : vector<8x128xf32>
    %cst_53 = arith.constant 1.000000e+00 : f32
    %140 = vector.broadcast %cst_53 : f32 to vector<8x128xf32>
    %141 = arith.addf %140, %139 : vector<8x128xf32>
    %142 = arith.divf %140, %141 : vector<8x128xf32>
    %143 = vector.extract_strided_slice %100 {offsets = [0, 128], sizes = [8, 128], strides = [1, 1]} : vector<8x384xf32> to vector<8x128xf32>
    %144 = vector.extract_strided_slice %134 {offsets = [0, 128], sizes = [8, 128], strides = [1, 1]} : vector<8x384xf32> to vector<8x128xf32>
    %145 = arith.addf %143, %144 : vector<8x128xf32>
    %146 = arith.negf %145 : vector<8x128xf32>
    %147 = math.exp %146 : vector<8x128xf32>
    %cst_54 = arith.constant 1.000000e+00 : f32
    %148 = vector.broadcast %cst_54 : f32 to vector<8x128xf32>
    %149 = arith.addf %148, %147 : vector<8x128xf32>
    %150 = arith.divf %148, %149 : vector<8x128xf32>
    %151 = vector.extract_strided_slice %100 {offsets = [0, 256], sizes = [8, 128], strides = [1, 1]} : vector<8x384xf32> to vector<8x128xf32>
    %152 = vector.extract_strided_slice %134 {offsets = [0, 256], sizes = [8, 128], strides = [1, 1]} : vector<8x384xf32> to vector<8x128xf32>
    %153 = vector.broadcast %10 : vector<1x128xf32> to vector<8x128xf32>
    %154 = arith.addf %152, %153 : vector<8x128xf32>
    %155 = arith.mulf %142, %154 : vector<8x128xf32>
    %156 = arith.addf %151, %155 : vector<8x128xf32>
    %157 = math.tanh %156 : vector<8x128xf32>
    %cst_55 = arith.constant 1.000000e+00 : f32
    %158 = vector.broadcast %cst_55 : f32 to vector<8x128xf32>
    %159 = arith.subf %158, %150 : vector<8x128xf32>
    %160 = arith.mulf %159, %157 : vector<8x128xf32>
    %161 = arith.mulf %150, %102 : vector<8x128xf32>
    %162 = arith.addf %160, %161 : vector<8x128xf32>
    %c0_56 = arith.constant 0 : index
    %c0_57 = arith.constant 0 : index
    %163 = vector.load %arg8[%c0_56, %c0_57] : memref<8x128xf32, #tpu.memory_space<vmem>>, vector<8x128xf32>
    tpu.vector_store %arg8[%c0_56, %c0_57], %132 {strides = array<i32>} : memref<8x128xf32, #tpu.memory_space<vmem>>, vector<8x128xf32>,
    %c0_58 = arith.constant 0 : index
    %c0_59 = arith.constant 0 : index
    %164 = vector.load %arg9[%c0_58, %c0_59] : memref<8x128xf32, #tpu.memory_space<vmem>>, vector<8x128xf32>
    tpu.vector_store %arg9[%c0_58, %c0_59], %162 {strides = array<i32>} : memref<8x128xf32, #tpu.memory_space<vmem>>, vector<8x128xf32>,
    %165 = arith.index_cast %c1_i32 : i32 to index
    %c0_60 = arith.constant 0 : index
    %c0_61 = arith.constant 0 : index
    %166 = vector.load %arg6[%165, %c0_60, %c0_61] : memref<8x8x128xf32, #tpu.memory_space<vmem>>, vector<1x8x128xf32>
    %167 = vector.shape_cast %166 : vector<1x8x128xf32> to vector<8x128xf32>
    %168 = vector.shape_cast %132 : vector<8x128xf32> to vector<1x8x128xf32>
    tpu.vector_store %arg6[%165, %c0_60, %c0_61], %168 {strides = array<i32>} : memref<8x8x128xf32, #tpu.memory_space<vmem>>, vector<1x8x128xf32>,
    %169 = arith.index_cast %92 : i32 to index
    %c0_62 = arith.constant 0 : index
    %c0_63 = arith.constant 0 : index
    %170 = vector.load %arg7[%169, %c0_62, %c0_63] : memref<8x8x128xf32, #tpu.memory_space<vmem>>, vector<1x8x128xf32>
    %171 = vector.shape_cast %170 : vector<1x8x128xf32> to vector<8x128xf32>
    %172 = vector.shape_cast %162 : vector<8x128xf32> to vector<1x8x128xf32>
    tpu.vector_store %arg7[%169, %c0_62, %c0_63], %172 {strides = array<i32>} : memref<8x8x128xf32, #tpu.memory_space<vmem>>, vector<1x8x128xf32>,
    %c2_i32 = arith.constant 2 : i32
    %c7_i32_64 = arith.constant 7 : i32
    %173 = arith.subi %c7_i32_64, %c2_i32 : i32
    %c0_65 = arith.constant 0 : index
    %174 = arith.index_cast %c2_i32 : i32 to index
    %c0_66 = arith.constant 0 : index
    %c0_67 = arith.constant 0 : index
    %175 = vector.load %arg1[%c0_65, %174, %c0_66, %c0_67] : memref<1x8x8x384xbf16, #tpu.memory_space<vmem>>, vector<1x1x8x384xbf16>
    %176 = vector.shape_cast %175 : vector<1x1x8x384xbf16> to vector<8x384xbf16>
    %177 = arith.extf %176 : vector<8x384xbf16> to vector<8x384xf32>
    %c0_68 = arith.constant 0 : index
    %178 = arith.index_cast %173 : i32 to index
    %c0_69 = arith.constant 0 : index
    %c0_70 = arith.constant 0 : index
    %179 = vector.load %arg2[%c0_68, %178, %c0_69, %c0_70] : memref<1x8x8x384xbf16, #tpu.memory_space<vmem>>, vector<1x1x8x384xbf16>
    %180 = vector.shape_cast %179 : vector<1x1x8x384xbf16> to vector<8x384xbf16>
    %181 = arith.extf %180 : vector<8x384xbf16> to vector<8x384xf32>
    %c0_71 = arith.constant 0 : index
    %c0_72 = arith.constant 0 : index
    %182 = vector.load %arg8[%c0_71, %c0_72] : memref<8x128xf32, #tpu.memory_space<vmem>>, vector<8x128xf32>
    %c0_73 = arith.constant 0 : index
    %c0_74 = arith.constant 0 : index
    %183 = vector.load %arg9[%c0_73, %c0_74] : memref<8x128xf32, #tpu.memory_space<vmem>>, vector<8x128xf32>
    %184 = arith.truncf %182 : vector<8x128xf32> to vector<8x128xbf16>
    %cst_75 = arith.constant dense<0.000000e+00> : vector<8x384xf32>
    %185 = tpu.matmul %184, %4, %cst_75 {dimension_numbers = #tpu.dot_dimension_numbers<[1], [0], [0], [1], [0, 0, 1, 1], [], []>} : vector<8x128xbf16>, vector<128x384xbf16>, vector<8x384xf32> -> vector<8x384xf32>
    %186 = vector.extract_strided_slice %177 {offsets = [0, 0], sizes = [8, 128], strides = [1, 1]} : vector<8x384xf32> to vector<8x128xf32>
    %187 = vector.extract_strided_slice %185 {offsets = [0, 0], sizes = [8, 128], strides = [1, 1]} : vector<8x384xf32> to vector<8x128xf32>
    %188 = arith.addf %186, %187 : vector<8x128xf32>
    %189 = arith.negf %188 : vector<8x128xf32>
    %190 = math.exp %189 : vector<8x128xf32>
    %cst_76 = arith.constant 1.000000e+00 : f32
    %191 = vector.broadcast %cst_76 : f32 to vector<8x128xf32>
    %192 = arith.addf %191, %190 : vector<8x128xf32>
    %193 = arith.divf %191, %192 : vector<8x128xf32>
    %194 = vector.extract_strided_slice %177 {offsets = [0, 128], sizes = [8, 128], strides = [1, 1]} : vector<8x384xf32> to vector<8x128xf32>
    %195 = vector.extract_strided_slice %185 {offsets = [0, 128], sizes = [8, 128], strides = [1, 1]} : vector<8x384xf32> to vector<8x128xf32>
    %196 = arith.addf %194, %195 : vector<8x128xf32>
    %197 = arith.negf %196 : vector<8x128xf32>
    %198 = math.exp %197 : vector<8x128xf32>
    %cst_77 = arith.constant 1.000000e+00 : f32
    %199 = vector.broadcast %cst_77 : f32 to vector<8x128xf32>
    %200 = arith.addf %199, %198 : vector<8x128xf32>
    %201 = arith.divf %199, %200 : vector<8x128xf32>
    %202 = vector.extract_strided_slice %177 {offsets = [0, 256], sizes = [8, 128], strides = [1, 1]} : vector<8x384xf32> to vector<8x128xf32>
    %203 = vector.extract_strided_slice %185 {offsets = [0, 256], sizes = [8, 128], strides = [1, 1]} : vector<8x384xf32> to vector<8x128xf32>
    %204 = vector.broadcast %8 : vector<1x128xf32> to vector<8x128xf32>
    %205 = arith.addf %203, %204 : vector<8x128xf32>
    %206 = arith.mulf %193, %205 : vector<8x128xf32>
    %207 = arith.addf %202, %206 : vector<8x128xf32>
    %208 = math.tanh %207 : vector<8x128xf32>
    %cst_78 = arith.constant 1.000000e+00 : f32
    %209 = vector.broadcast %cst_78 : f32 to vector<8x128xf32>
    %210 = arith.subf %209, %201 : vector<8x128xf32>
    %211 = arith.mulf %210, %208 : vector<8x128xf32>
    %212 = arith.mulf %201, %182 : vector<8x128xf32>
    %213 = arith.addf %211, %212 : vector<8x128xf32>
    %214 = arith.truncf %183 : vector<8x128xf32> to vector<8x128xbf16>
    %cst_79 = arith.constant dense<0.000000e+00> : vector<8x384xf32>
    %215 = tpu.matmul %214, %6, %cst_79 {dimension_numbers = #tpu.dot_dimension_numbers<[1], [0], [0], [1], [0, 0, 1, 1], [], []>} : vector<8x128xbf16>, vector<128x384xbf16>, vector<8x384xf32> -> vector<8x384xf32>
    %216 = vector.extract_strided_slice %181 {offsets = [0, 0], sizes = [8, 128], strides = [1, 1]} : vector<8x384xf32> to vector<8x128xf32>
    %217 = vector.extract_strided_slice %215 {offsets = [0, 0], sizes = [8, 128], strides = [1, 1]} : vector<8x384xf32> to vector<8x128xf32>
    %218 = arith.addf %216, %217 : vector<8x128xf32>
    %219 = arith.negf %218 : vector<8x128xf32>
    %220 = math.exp %219 : vector<8x128xf32>
    %cst_80 = arith.constant 1.000000e+00 : f32
    %221 = vector.broadcast %cst_80 : f32 to vector<8x128xf32>
    %222 = arith.addf %221, %220 : vector<8x128xf32>
    %223 = arith.divf %221, %222 : vector<8x128xf32>
    %224 = vector.extract_strided_slice %181 {offsets = [0, 128], sizes = [8, 128], strides = [1, 1]} : vector<8x384xf32> to vector<8x128xf32>
    %225 = vector.extract_strided_slice %215 {offsets = [0, 128], sizes = [8, 128], strides = [1, 1]} : vector<8x384xf32> to vector<8x128xf32>
    %226 = arith.addf %224, %225 : vector<8x128xf32>
    %227 = arith.negf %226 : vector<8x128xf32>
    %228 = math.exp %227 : vector<8x128xf32>
    %cst_81 = arith.constant 1.000000e+00 : f32
    %229 = vector.broadcast %cst_81 : f32 to vector<8x128xf32>
    %230 = arith.addf %229, %228 : vector<8x128xf32>
    %231 = arith.divf %229, %230 : vector<8x128xf32>
    %232 = vector.extract_strided_slice %181 {offsets = [0, 256], sizes = [8, 128], strides = [1, 1]} : vector<8x384xf32> to vector<8x128xf32>
    %233 = vector.extract_strided_slice %215 {offsets = [0, 256], sizes = [8, 128], strides = [1, 1]} : vector<8x384xf32> to vector<8x128xf32>
    %234 = vector.broadcast %10 : vector<1x128xf32> to vector<8x128xf32>
    %235 = arith.addf %233, %234 : vector<8x128xf32>
    %236 = arith.mulf %223, %235 : vector<8x128xf32>
    %237 = arith.addf %232, %236 : vector<8x128xf32>
    %238 = math.tanh %237 : vector<8x128xf32>
    %cst_82 = arith.constant 1.000000e+00 : f32
    %239 = vector.broadcast %cst_82 : f32 to vector<8x128xf32>
    %240 = arith.subf %239, %231 : vector<8x128xf32>
    %241 = arith.mulf %240, %238 : vector<8x128xf32>
    %242 = arith.mulf %231, %183 : vector<8x128xf32>
    %243 = arith.addf %241, %242 : vector<8x128xf32>
    %c0_83 = arith.constant 0 : index
    %c0_84 = arith.constant 0 : index
    %244 = vector.load %arg8[%c0_83, %c0_84] : memref<8x128xf32, #tpu.memory_space<vmem>>, vector<8x128xf32>
    tpu.vector_store %arg8[%c0_83, %c0_84], %213 {strides = array<i32>} : memref<8x128xf32, #tpu.memory_space<vmem>>, vector<8x128xf32>,
    %c0_85 = arith.constant 0 : index
    %c0_86 = arith.constant 0 : index
    %245 = vector.load %arg9[%c0_85, %c0_86] : memref<8x128xf32, #tpu.memory_space<vmem>>, vector<8x128xf32>
    tpu.vector_store %arg9[%c0_85, %c0_86], %243 {strides = array<i32>} : memref<8x128xf32, #tpu.memory_space<vmem>>, vector<8x128xf32>,
    %246 = arith.index_cast %c2_i32 : i32 to index
    %c0_87 = arith.constant 0 : index
    %c0_88 = arith.constant 0 : index
    %247 = vector.load %arg6[%246, %c0_87, %c0_88] : memref<8x8x128xf32, #tpu.memory_space<vmem>>, vector<1x8x128xf32>
    %248 = vector.shape_cast %247 : vector<1x8x128xf32> to vector<8x128xf32>
    %249 = vector.shape_cast %213 : vector<8x128xf32> to vector<1x8x128xf32>
    tpu.vector_store %arg6[%246, %c0_87, %c0_88], %249 {strides = array<i32>} : memref<8x8x128xf32, #tpu.memory_space<vmem>>, vector<1x8x128xf32>,
    %250 = arith.index_cast %173 : i32 to index
    %c0_89 = arith.constant 0 : index
    %c0_90 = arith.constant 0 : index
    %251 = vector.load %arg7[%250, %c0_89, %c0_90] : memref<8x8x128xf32, #tpu.memory_space<vmem>>, vector<1x8x128xf32>
    %252 = vector.shape_cast %251 : vector<1x8x128xf32> to vector<8x128xf32>
    %253 = vector.shape_cast %243 : vector<8x128xf32> to vector<1x8x128xf32>
    tpu.vector_store %arg7[%250, %c0_89, %c0_90], %253 {strides = array<i32>} : memref<8x8x128xf32, #tpu.memory_space<vmem>>, vector<1x8x128xf32>,
    %c3_i32 = arith.constant 3 : i32
    %c7_i32_91 = arith.constant 7 : i32
    %254 = arith.subi %c7_i32_91, %c3_i32 : i32
    %c0_92 = arith.constant 0 : index
    %255 = arith.index_cast %c3_i32 : i32 to index
    %c0_93 = arith.constant 0 : index
    %c0_94 = arith.constant 0 : index
    %256 = vector.load %arg1[%c0_92, %255, %c0_93, %c0_94] : memref<1x8x8x384xbf16, #tpu.memory_space<vmem>>, vector<1x1x8x384xbf16>
    %257 = vector.shape_cast %256 : vector<1x1x8x384xbf16> to vector<8x384xbf16>
    %258 = arith.extf %257 : vector<8x384xbf16> to vector<8x384xf32>
    %c0_95 = arith.constant 0 : index
    %259 = arith.index_cast %254 : i32 to index
    %c0_96 = arith.constant 0 : index
    %c0_97 = arith.constant 0 : index
    %260 = vector.load %arg2[%c0_95, %259, %c0_96, %c0_97] : memref<1x8x8x384xbf16, #tpu.memory_space<vmem>>, vector<1x1x8x384xbf16>
    %261 = vector.shape_cast %260 : vector<1x1x8x384xbf16> to vector<8x384xbf16>
    %262 = arith.extf %261 : vector<8x384xbf16> to vector<8x384xf32>
    %c0_98 = arith.constant 0 : index
    %c0_99 = arith.constant 0 : index
    %263 = vector.load %arg8[%c0_98, %c0_99] : memref<8x128xf32, #tpu.memory_space<vmem>>, vector<8x128xf32>
    %c0_100 = arith.constant 0 : index
    %c0_101 = arith.constant 0 : index
    %264 = vector.load %arg9[%c0_100, %c0_101] : memref<8x128xf32, #tpu.memory_space<vmem>>, vector<8x128xf32>
    %265 = arith.truncf %263 : vector<8x128xf32> to vector<8x128xbf16>
    %cst_102 = arith.constant dense<0.000000e+00> : vector<8x384xf32>
    %266 = tpu.matmul %265, %4, %cst_102 {dimension_numbers = #tpu.dot_dimension_numbers<[1], [0], [0], [1], [0, 0, 1, 1], [], []>} : vector<8x128xbf16>, vector<128x384xbf16>, vector<8x384xf32> -> vector<8x384xf32>
    %267 = vector.extract_strided_slice %258 {offsets = [0, 0], sizes = [8, 128], strides = [1, 1]} : vector<8x384xf32> to vector<8x128xf32>
    %268 = vector.extract_strided_slice %266 {offsets = [0, 0], sizes = [8, 128], strides = [1, 1]} : vector<8x384xf32> to vector<8x128xf32>
    %269 = arith.addf %267, %268 : vector<8x128xf32>
    %270 = arith.negf %269 : vector<8x128xf32>
    %271 = math.exp %270 : vector<8x128xf32>
    %cst_103 = arith.constant 1.000000e+00 : f32
    %272 = vector.broadcast %cst_103 : f32 to vector<8x128xf32>
    %273 = arith.addf %272, %271 : vector<8x128xf32>
    %274 = arith.divf %272, %273 : vector<8x128xf32>
    %275 = vector.extract_strided_slice %258 {offsets = [0, 128], sizes = [8, 128], strides = [1, 1]} : vector<8x384xf32> to vector<8x128xf32>
    %276 = vector.extract_strided_slice %266 {offsets = [0, 128], sizes = [8, 128], strides = [1, 1]} : vector<8x384xf32> to vector<8x128xf32>
    %277 = arith.addf %275, %276 : vector<8x128xf32>
    %278 = arith.negf %277 : vector<8x128xf32>
    %279 = math.exp %278 : vector<8x128xf32>
    %cst_104 = arith.constant 1.000000e+00 : f32
    %280 = vector.broadcast %cst_104 : f32 to vector<8x128xf32>
    %281 = arith.addf %280, %279 : vector<8x128xf32>
    %282 = arith.divf %280, %281 : vector<8x128xf32>
    %283 = vector.extract_strided_slice %258 {offsets = [0, 256], sizes = [8, 128], strides = [1, 1]} : vector<8x384xf32> to vector<8x128xf32>
    %284 = vector.extract_strided_slice %266 {offsets = [0, 256], sizes = [8, 128], strides = [1, 1]} : vector<8x384xf32> to vector<8x128xf32>
    %285 = vector.broadcast %8 : vector<1x128xf32> to vector<8x128xf32>
    %286 = arith.addf %284, %285 : vector<8x128xf32>
    %287 = arith.mulf %274, %286 : vector<8x128xf32>
    %288 = arith.addf %283, %287 : vector<8x128xf32>
    %289 = math.tanh %288 : vector<8x128xf32>
    %cst_105 = arith.constant 1.000000e+00 : f32
    %290 = vector.broadcast %cst_105 : f32 to vector<8x128xf32>
    %291 = arith.subf %290, %282 : vector<8x128xf32>
    %292 = arith.mulf %291, %289 : vector<8x128xf32>
    %293 = arith.mulf %282, %263 : vector<8x128xf32>
    %294 = arith.addf %292, %293 : vector<8x128xf32>
    %295 = arith.truncf %264 : vector<8x128xf32> to vector<8x128xbf16>
    %cst_106 = arith.constant dense<0.000000e+00> : vector<8x384xf32>
    %296 = tpu.matmul %295, %6, %cst_106 {dimension_numbers = #tpu.dot_dimension_numbers<[1], [0], [0], [1], [0, 0, 1, 1], [], []>} : vector<8x128xbf16>, vector<128x384xbf16>, vector<8x384xf32> -> vector<8x384xf32>
    %297 = vector.extract_strided_slice %262 {offsets = [0, 0], sizes = [8, 128], strides = [1, 1]} : vector<8x384xf32> to vector<8x128xf32>
    %298 = vector.extract_strided_slice %296 {offsets = [0, 0], sizes = [8, 128], strides = [1, 1]} : vector<8x384xf32> to vector<8x128xf32>
    %299 = arith.addf %297, %298 : vector<8x128xf32>
    %300 = arith.negf %299 : vector<8x128xf32>
    %301 = math.exp %300 : vector<8x128xf32>
    %cst_107 = arith.constant 1.000000e+00 : f32
    %302 = vector.broadcast %cst_107 : f32 to vector<8x128xf32>
    %303 = arith.addf %302, %301 : vector<8x128xf32>
    %304 = arith.divf %302, %303 : vector<8x128xf32>
    %305 = vector.extract_strided_slice %262 {offsets = [0, 128], sizes = [8, 128], strides = [1, 1]} : vector<8x384xf32> to vector<8x128xf32>
    %306 = vector.extract_strided_slice %296 {offsets = [0, 128], sizes = [8, 128], strides = [1, 1]} : vector<8x384xf32> to vector<8x128xf32>
    %307 = arith.addf %305, %306 : vector<8x128xf32>
    %308 = arith.negf %307 : vector<8x128xf32>
    %309 = math.exp %308 : vector<8x128xf32>
    %cst_108 = arith.constant 1.000000e+00 : f32
    %310 = vector.broadcast %cst_108 : f32 to vector<8x128xf32>
    %311 = arith.addf %310, %309 : vector<8x128xf32>
    %312 = arith.divf %310, %311 : vector<8x128xf32>
    %313 = vector.extract_strided_slice %262 {offsets = [0, 256], sizes = [8, 128], strides = [1, 1]} : vector<8x384xf32> to vector<8x128xf32>
    %314 = vector.extract_strided_slice %296 {offsets = [0, 256], sizes = [8, 128], strides = [1, 1]} : vector<8x384xf32> to vector<8x128xf32>
    %315 = vector.broadcast %10 : vector<1x128xf32> to vector<8x128xf32>
    %316 = arith.addf %314, %315 : vector<8x128xf32>
    %317 = arith.mulf %304, %316 : vector<8x128xf32>
    %318 = arith.addf %313, %317 : vector<8x128xf32>
    %319 = math.tanh %318 : vector<8x128xf32>
    %cst_109 = arith.constant 1.000000e+00 : f32
    %320 = vector.broadcast %cst_109 : f32 to vector<8x128xf32>
    %321 = arith.subf %320, %312 : vector<8x128xf32>
    %322 = arith.mulf %321, %319 : vector<8x128xf32>
    %323 = arith.mulf %312, %264 : vector<8x128xf32>
    %324 = arith.addf %322, %323 : vector<8x128xf32>
    %c0_110 = arith.constant 0 : index
    %c0_111 = arith.constant 0 : index
    %325 = vector.load %arg8[%c0_110, %c0_111] : memref<8x128xf32, #tpu.memory_space<vmem>>, vector<8x128xf32>
    tpu.vector_store %arg8[%c0_110, %c0_111], %294 {strides = array<i32>} : memref<8x128xf32, #tpu.memory_space<vmem>>, vector<8x128xf32>,
    %c0_112 = arith.constant 0 : index
    %c0_113 = arith.constant 0 : index
    %326 = vector.load %arg9[%c0_112, %c0_113] : memref<8x128xf32, #tpu.memory_space<vmem>>, vector<8x128xf32>
    tpu.vector_store %arg9[%c0_112, %c0_113], %324 {strides = array<i32>} : memref<8x128xf32, #tpu.memory_space<vmem>>, vector<8x128xf32>,
    %327 = arith.index_cast %c3_i32 : i32 to index
    %c0_114 = arith.constant 0 : index
    %c0_115 = arith.constant 0 : index
    %328 = vector.load %arg6[%327, %c0_114, %c0_115] : memref<8x8x128xf32, #tpu.memory_space<vmem>>, vector<1x8x128xf32>
    %329 = vector.shape_cast %328 : vector<1x8x128xf32> to vector<8x128xf32>
    %330 = vector.shape_cast %294 : vector<8x128xf32> to vector<1x8x128xf32>
    tpu.vector_store %arg6[%327, %c0_114, %c0_115], %330 {strides = array<i32>} : memref<8x8x128xf32, #tpu.memory_space<vmem>>, vector<1x8x128xf32>,
    %331 = arith.index_cast %254 : i32 to index
    %c0_116 = arith.constant 0 : index
    %c0_117 = arith.constant 0 : index
    %332 = vector.load %arg7[%331, %c0_116, %c0_117] : memref<8x8x128xf32, #tpu.memory_space<vmem>>, vector<1x8x128xf32>
    %333 = vector.shape_cast %332 : vector<1x8x128xf32> to vector<8x128xf32>
    %334 = vector.shape_cast %324 : vector<8x128xf32> to vector<1x8x128xf32>
    tpu.vector_store %arg7[%331, %c0_116, %c0_117], %334 {strides = array<i32>} : memref<8x8x128xf32, #tpu.memory_space<vmem>>, vector<1x8x128xf32>,
    %c4_i32 = arith.constant 4 : i32
    %c7_i32_118 = arith.constant 7 : i32
    %335 = arith.subi %c7_i32_118, %c4_i32 : i32
    %c0_119 = arith.constant 0 : index
    %336 = arith.index_cast %c4_i32 : i32 to index
    %c0_120 = arith.constant 0 : index
    %c0_121 = arith.constant 0 : index
    %337 = vector.load %arg1[%c0_119, %336, %c0_120, %c0_121] : memref<1x8x8x384xbf16, #tpu.memory_space<vmem>>, vector<1x1x8x384xbf16>
    %338 = vector.shape_cast %337 : vector<1x1x8x384xbf16> to vector<8x384xbf16>
    %339 = arith.extf %338 : vector<8x384xbf16> to vector<8x384xf32>
    %c0_122 = arith.constant 0 : index
    %340 = arith.index_cast %335 : i32 to index
    %c0_123 = arith.constant 0 : index
    %c0_124 = arith.constant 0 : index
    %341 = vector.load %arg2[%c0_122, %340, %c0_123, %c0_124] : memref<1x8x8x384xbf16, #tpu.memory_space<vmem>>, vector<1x1x8x384xbf16>
    %342 = vector.shape_cast %341 : vector<1x1x8x384xbf16> to vector<8x384xbf16>
    %343 = arith.extf %342 : vector<8x384xbf16> to vector<8x384xf32>
    %c0_125 = arith.constant 0 : index
    %c0_126 = arith.constant 0 : index
    %344 = vector.load %arg8[%c0_125, %c0_126] : memref<8x128xf32, #tpu.memory_space<vmem>>, vector<8x128xf32>
    %c0_127 = arith.constant 0 : index
    %c0_128 = arith.constant 0 : index
    %345 = vector.load %arg9[%c0_127, %c0_128] : memref<8x128xf32, #tpu.memory_space<vmem>>, vector<8x128xf32>
    %346 = arith.truncf %344 : vector<8x128xf32> to vector<8x128xbf16>
    %cst_129 = arith.constant dense<0.000000e+00> : vector<8x384xf32>
    %347 = tpu.matmul %346, %4, %cst_129 {dimension_numbers = #tpu.dot_dimension_numbers<[1], [0], [0], [1], [0, 0, 1, 1], [], []>} : vector<8x128xbf16>, vector<128x384xbf16>, vector<8x384xf32> -> vector<8x384xf32>
    %348 = vector.extract_strided_slice %339 {offsets = [0, 0], sizes = [8, 128], strides = [1, 1]} : vector<8x384xf32> to vector<8x128xf32>
    %349 = vector.extract_strided_slice %347 {offsets = [0, 0], sizes = [8, 128], strides = [1, 1]} : vector<8x384xf32> to vector<8x128xf32>
    %350 = arith.addf %348, %349 : vector<8x128xf32>
    %351 = arith.negf %350 : vector<8x128xf32>
    %352 = math.exp %351 : vector<8x128xf32>
    %cst_130 = arith.constant 1.000000e+00 : f32
    %353 = vector.broadcast %cst_130 : f32 to vector<8x128xf32>
    %354 = arith.addf %353, %352 : vector<8x128xf32>
    %355 = arith.divf %353, %354 : vector<8x128xf32>
    %356 = vector.extract_strided_slice %339 {offsets = [0, 128], sizes = [8, 128], strides = [1, 1]} : vector<8x384xf32> to vector<8x128xf32>
    %357 = vector.extract_strided_slice %347 {offsets = [0, 128], sizes = [8, 128], strides = [1, 1]} : vector<8x384xf32> to vector<8x128xf32>
    %358 = arith.addf %356, %357 : vector<8x128xf32>
    %359 = arith.negf %358 : vector<8x128xf32>
    %360 = math.exp %359 : vector<8x128xf32>
    %cst_131 = arith.constant 1.000000e+00 : f32
    %361 = vector.broadcast %cst_131 : f32 to vector<8x128xf32>
    %362 = arith.addf %361, %360 : vector<8x128xf32>
    %363 = arith.divf %361, %362 : vector<8x128xf32>
    %364 = vector.extract_strided_slice %339 {offsets = [0, 256], sizes = [8, 128], strides = [1, 1]} : vector<8x384xf32> to vector<8x128xf32>
    %365 = vector.extract_strided_slice %347 {offsets = [0, 256], sizes = [8, 128], strides = [1, 1]} : vector<8x384xf32> to vector<8x128xf32>
    %366 = vector.broadcast %8 : vector<1x128xf32> to vector<8x128xf32>
    %367 = arith.addf %365, %366 : vector<8x128xf32>
    %368 = arith.mulf %355, %367 : vector<8x128xf32>
    %369 = arith.addf %364, %368 : vector<8x128xf32>
    %370 = math.tanh %369 : vector<8x128xf32>
    %cst_132 = arith.constant 1.000000e+00 : f32
    %371 = vector.broadcast %cst_132 : f32 to vector<8x128xf32>
    %372 = arith.subf %371, %363 : vector<8x128xf32>
    %373 = arith.mulf %372, %370 : vector<8x128xf32>
    %374 = arith.mulf %363, %344 : vector<8x128xf32>
    %375 = arith.addf %373, %374 : vector<8x128xf32>
    %376 = arith.truncf %345 : vector<8x128xf32> to vector<8x128xbf16>
    %cst_133 = arith.constant dense<0.000000e+00> : vector<8x384xf32>
    %377 = tpu.matmul %376, %6, %cst_133 {dimension_numbers = #tpu.dot_dimension_numbers<[1], [0], [0], [1], [0, 0, 1, 1], [], []>} : vector<8x128xbf16>, vector<128x384xbf16>, vector<8x384xf32> -> vector<8x384xf32>
    %378 = vector.extract_strided_slice %343 {offsets = [0, 0], sizes = [8, 128], strides = [1, 1]} : vector<8x384xf32> to vector<8x128xf32>
    %379 = vector.extract_strided_slice %377 {offsets = [0, 0], sizes = [8, 128], strides = [1, 1]} : vector<8x384xf32> to vector<8x128xf32>
    %380 = arith.addf %378, %379 : vector<8x128xf32>
    %381 = arith.negf %380 : vector<8x128xf32>
    %382 = math.exp %381 : vector<8x128xf32>
    %cst_134 = arith.constant 1.000000e+00 : f32
    %383 = vector.broadcast %cst_134 : f32 to vector<8x128xf32>
    %384 = arith.addf %383, %382 : vector<8x128xf32>
    %385 = arith.divf %383, %384 : vector<8x128xf32>
    %386 = vector.extract_strided_slice %343 {offsets = [0, 128], sizes = [8, 128], strides = [1, 1]} : vector<8x384xf32> to vector<8x128xf32>
    %387 = vector.extract_strided_slice %377 {offsets = [0, 128], sizes = [8, 128], strides = [1, 1]} : vector<8x384xf32> to vector<8x128xf32>
    %388 = arith.addf %386, %387 : vector<8x128xf32>
    %389 = arith.negf %388 : vector<8x128xf32>
    %390 = math.exp %389 : vector<8x128xf32>
    %cst_135 = arith.constant 1.000000e+00 : f32
    %391 = vector.broadcast %cst_135 : f32 to vector<8x128xf32>
    %392 = arith.addf %391, %390 : vector<8x128xf32>
    %393 = arith.divf %391, %392 : vector<8x128xf32>
    %394 = vector.extract_strided_slice %343 {offsets = [0, 256], sizes = [8, 128], strides = [1, 1]} : vector<8x384xf32> to vector<8x128xf32>
    %395 = vector.extract_strided_slice %377 {offsets = [0, 256], sizes = [8, 128], strides = [1, 1]} : vector<8x384xf32> to vector<8x128xf32>
    %396 = vector.broadcast %10 : vector<1x128xf32> to vector<8x128xf32>
    %397 = arith.addf %395, %396 : vector<8x128xf32>
    %398 = arith.mulf %385, %397 : vector<8x128xf32>
    %399 = arith.addf %394, %398 : vector<8x128xf32>
    %400 = math.tanh %399 : vector<8x128xf32>
    %cst_136 = arith.constant 1.000000e+00 : f32
    %401 = vector.broadcast %cst_136 : f32 to vector<8x128xf32>
    %402 = arith.subf %401, %393 : vector<8x128xf32>
    %403 = arith.mulf %402, %400 : vector<8x128xf32>
    %404 = arith.mulf %393, %345 : vector<8x128xf32>
    %405 = arith.addf %403, %404 : vector<8x128xf32>
    %c0_137 = arith.constant 0 : index
    %c0_138 = arith.constant 0 : index
    %406 = vector.load %arg8[%c0_137, %c0_138] : memref<8x128xf32, #tpu.memory_space<vmem>>, vector<8x128xf32>
    tpu.vector_store %arg8[%c0_137, %c0_138], %375 {strides = array<i32>} : memref<8x128xf32, #tpu.memory_space<vmem>>, vector<8x128xf32>,
    %c0_139 = arith.constant 0 : index
    %c0_140 = arith.constant 0 : index
    %407 = vector.load %arg9[%c0_139, %c0_140] : memref<8x128xf32, #tpu.memory_space<vmem>>, vector<8x128xf32>
    tpu.vector_store %arg9[%c0_139, %c0_140], %405 {strides = array<i32>} : memref<8x128xf32, #tpu.memory_space<vmem>>, vector<8x128xf32>,
    %408 = arith.index_cast %c4_i32 : i32 to index
    %c0_141 = arith.constant 0 : index
    %c0_142 = arith.constant 0 : index
    %409 = vector.load %arg6[%408, %c0_141, %c0_142] : memref<8x8x128xf32, #tpu.memory_space<vmem>>, vector<1x8x128xf32>
    %410 = vector.shape_cast %409 : vector<1x8x128xf32> to vector<8x128xf32>
    %411 = vector.shape_cast %375 : vector<8x128xf32> to vector<1x8x128xf32>
    tpu.vector_store %arg6[%408, %c0_141, %c0_142], %411 {strides = array<i32>} : memref<8x8x128xf32, #tpu.memory_space<vmem>>, vector<1x8x128xf32>,
    %412 = arith.index_cast %335 : i32 to index
    %c0_143 = arith.constant 0 : index
    %c0_144 = arith.constant 0 : index
    %413 = vector.load %arg7[%412, %c0_143, %c0_144] : memref<8x8x128xf32, #tpu.memory_space<vmem>>, vector<1x8x128xf32>
    %414 = vector.shape_cast %413 : vector<1x8x128xf32> to vector<8x128xf32>
    %415 = vector.shape_cast %405 : vector<8x128xf32> to vector<1x8x128xf32>
    tpu.vector_store %arg7[%412, %c0_143, %c0_144], %415 {strides = array<i32>} : memref<8x8x128xf32, #tpu.memory_space<vmem>>, vector<1x8x128xf32>,
    %c5_i32 = arith.constant 5 : i32
    %c7_i32_145 = arith.constant 7 : i32
    %416 = arith.subi %c7_i32_145, %c5_i32 : i32
    %c0_146 = arith.constant 0 : index
    %417 = arith.index_cast %c5_i32 : i32 to index
    %c0_147 = arith.constant 0 : index
    %c0_148 = arith.constant 0 : index
    %418 = vector.load %arg1[%c0_146, %417, %c0_147, %c0_148] : memref<1x8x8x384xbf16, #tpu.memory_space<vmem>>, vector<1x1x8x384xbf16>
    %419 = vector.shape_cast %418 : vector<1x1x8x384xbf16> to vector<8x384xbf16>
    %420 = arith.extf %419 : vector<8x384xbf16> to vector<8x384xf32>
    %c0_149 = arith.constant 0 : index
    %421 = arith.index_cast %416 : i32 to index
    %c0_150 = arith.constant 0 : index
    %c0_151 = arith.constant 0 : index
    %422 = vector.load %arg2[%c0_149, %421, %c0_150, %c0_151] : memref<1x8x8x384xbf16, #tpu.memory_space<vmem>>, vector<1x1x8x384xbf16>
    %423 = vector.shape_cast %422 : vector<1x1x8x384xbf16> to vector<8x384xbf16>
    %424 = arith.extf %423 : vector<8x384xbf16> to vector<8x384xf32>
    %c0_152 = arith.constant 0 : index
    %c0_153 = arith.constant 0 : index
    %425 = vector.load %arg8[%c0_152, %c0_153] : memref<8x128xf32, #tpu.memory_space<vmem>>, vector<8x128xf32>
    %c0_154 = arith.constant 0 : index
    %c0_155 = arith.constant 0 : index
    %426 = vector.load %arg9[%c0_154, %c0_155] : memref<8x128xf32, #tpu.memory_space<vmem>>, vector<8x128xf32>
    %427 = arith.truncf %425 : vector<8x128xf32> to vector<8x128xbf16>
    %cst_156 = arith.constant dense<0.000000e+00> : vector<8x384xf32>
    %428 = tpu.matmul %427, %4, %cst_156 {dimension_numbers = #tpu.dot_dimension_numbers<[1], [0], [0], [1], [0, 0, 1, 1], [], []>} : vector<8x128xbf16>, vector<128x384xbf16>, vector<8x384xf32> -> vector<8x384xf32>
    %429 = vector.extract_strided_slice %420 {offsets = [0, 0], sizes = [8, 128], strides = [1, 1]} : vector<8x384xf32> to vector<8x128xf32>
    %430 = vector.extract_strided_slice %428 {offsets = [0, 0], sizes = [8, 128], strides = [1, 1]} : vector<8x384xf32> to vector<8x128xf32>
    %431 = arith.addf %429, %430 : vector<8x128xf32>
    %432 = arith.negf %431 : vector<8x128xf32>
    %433 = math.exp %432 : vector<8x128xf32>
    %cst_157 = arith.constant 1.000000e+00 : f32
    %434 = vector.broadcast %cst_157 : f32 to vector<8x128xf32>
    %435 = arith.addf %434, %433 : vector<8x128xf32>
    %436 = arith.divf %434, %435 : vector<8x128xf32>
    %437 = vector.extract_strided_slice %420 {offsets = [0, 128], sizes = [8, 128], strides = [1, 1]} : vector<8x384xf32> to vector<8x128xf32>
    %438 = vector.extract_strided_slice %428 {offsets = [0, 128], sizes = [8, 128], strides = [1, 1]} : vector<8x384xf32> to vector<8x128xf32>
    %439 = arith.addf %437, %438 : vector<8x128xf32>
    %440 = arith.negf %439 : vector<8x128xf32>
    %441 = math.exp %440 : vector<8x128xf32>
    %cst_158 = arith.constant 1.000000e+00 : f32
    %442 = vector.broadcast %cst_158 : f32 to vector<8x128xf32>
    %443 = arith.addf %442, %441 : vector<8x128xf32>
    %444 = arith.divf %442, %443 : vector<8x128xf32>
    %445 = vector.extract_strided_slice %420 {offsets = [0, 256], sizes = [8, 128], strides = [1, 1]} : vector<8x384xf32> to vector<8x128xf32>
    %446 = vector.extract_strided_slice %428 {offsets = [0, 256], sizes = [8, 128], strides = [1, 1]} : vector<8x384xf32> to vector<8x128xf32>
    %447 = vector.broadcast %8 : vector<1x128xf32> to vector<8x128xf32>
    %448 = arith.addf %446, %447 : vector<8x128xf32>
    %449 = arith.mulf %436, %448 : vector<8x128xf32>
    %450 = arith.addf %445, %449 : vector<8x128xf32>
    %451 = math.tanh %450 : vector<8x128xf32>
    %cst_159 = arith.constant 1.000000e+00 : f32
    %452 = vector.broadcast %cst_159 : f32 to vector<8x128xf32>
    %453 = arith.subf %452, %444 : vector<8x128xf32>
    %454 = arith.mulf %453, %451 : vector<8x128xf32>
    %455 = arith.mulf %444, %425 : vector<8x128xf32>
    %456 = arith.addf %454, %455 : vector<8x128xf32>
    %457 = arith.truncf %426 : vector<8x128xf32> to vector<8x128xbf16>
    %cst_160 = arith.constant dense<0.000000e+00> : vector<8x384xf32>
    %458 = tpu.matmul %457, %6, %cst_160 {dimension_numbers = #tpu.dot_dimension_numbers<[1], [0], [0], [1], [0, 0, 1, 1], [], []>} : vector<8x128xbf16>, vector<128x384xbf16>, vector<8x384xf32> -> vector<8x384xf32>
    %459 = vector.extract_strided_slice %424 {offsets = [0, 0], sizes = [8, 128], strides = [1, 1]} : vector<8x384xf32> to vector<8x128xf32>
    %460 = vector.extract_strided_slice %458 {offsets = [0, 0], sizes = [8, 128], strides = [1, 1]} : vector<8x384xf32> to vector<8x128xf32>
    %461 = arith.addf %459, %460 : vector<8x128xf32>
    %462 = arith.negf %461 : vector<8x128xf32>
    %463 = math.exp %462 : vector<8x128xf32>
    %cst_161 = arith.constant 1.000000e+00 : f32
    %464 = vector.broadcast %cst_161 : f32 to vector<8x128xf32>
    %465 = arith.addf %464, %463 : vector<8x128xf32>
    %466 = arith.divf %464, %465 : vector<8x128xf32>
    %467 = vector.extract_strided_slice %424 {offsets = [0, 128], sizes = [8, 128], strides = [1, 1]} : vector<8x384xf32> to vector<8x128xf32>
    %468 = vector.extract_strided_slice %458 {offsets = [0, 128], sizes = [8, 128], strides = [1, 1]} : vector<8x384xf32> to vector<8x128xf32>
    %469 = arith.addf %467, %468 : vector<8x128xf32>
    %470 = arith.negf %469 : vector<8x128xf32>
    %471 = math.exp %470 : vector<8x128xf32>
    %cst_162 = arith.constant 1.000000e+00 : f32
    %472 = vector.broadcast %cst_162 : f32 to vector<8x128xf32>
    %473 = arith.addf %472, %471 : vector<8x128xf32>
    %474 = arith.divf %472, %473 : vector<8x128xf32>
    %475 = vector.extract_strided_slice %424 {offsets = [0, 256], sizes = [8, 128], strides = [1, 1]} : vector<8x384xf32> to vector<8x128xf32>
    %476 = vector.extract_strided_slice %458 {offsets = [0, 256], sizes = [8, 128], strides = [1, 1]} : vector<8x384xf32> to vector<8x128xf32>
    %477 = vector.broadcast %10 : vector<1x128xf32> to vector<8x128xf32>
    %478 = arith.addf %476, %477 : vector<8x128xf32>
    %479 = arith.mulf %466, %478 : vector<8x128xf32>
    %480 = arith.addf %475, %479 : vector<8x128xf32>
    %481 = math.tanh %480 : vector<8x128xf32>
    %cst_163 = arith.constant 1.000000e+00 : f32
    %482 = vector.broadcast %cst_163 : f32 to vector<8x128xf32>
    %483 = arith.subf %482, %474 : vector<8x128xf32>
    %484 = arith.mulf %483, %481 : vector<8x128xf32>
    %485 = arith.mulf %474, %426 : vector<8x128xf32>
    %486 = arith.addf %484, %485 : vector<8x128xf32>
    %c0_164 = arith.constant 0 : index
    %c0_165 = arith.constant 0 : index
    %487 = vector.load %arg8[%c0_164, %c0_165] : memref<8x128xf32, #tpu.memory_space<vmem>>, vector<8x128xf32>
    tpu.vector_store %arg8[%c0_164, %c0_165], %456 {strides = array<i32>} : memref<8x128xf32, #tpu.memory_space<vmem>>, vector<8x128xf32>,
    %c0_166 = arith.constant 0 : index
    %c0_167 = arith.constant 0 : index
    %488 = vector.load %arg9[%c0_166, %c0_167] : memref<8x128xf32, #tpu.memory_space<vmem>>, vector<8x128xf32>
    tpu.vector_store %arg9[%c0_166, %c0_167], %486 {strides = array<i32>} : memref<8x128xf32, #tpu.memory_space<vmem>>, vector<8x128xf32>,
    %489 = arith.index_cast %c5_i32 : i32 to index
    %c0_168 = arith.constant 0 : index
    %c0_169 = arith.constant 0 : index
    %490 = vector.load %arg6[%489, %c0_168, %c0_169] : memref<8x8x128xf32, #tpu.memory_space<vmem>>, vector<1x8x128xf32>
    %491 = vector.shape_cast %490 : vector<1x8x128xf32> to vector<8x128xf32>
    %492 = vector.shape_cast %456 : vector<8x128xf32> to vector<1x8x128xf32>
    tpu.vector_store %arg6[%489, %c0_168, %c0_169], %492 {strides = array<i32>} : memref<8x8x128xf32, #tpu.memory_space<vmem>>, vector<1x8x128xf32>,
    %493 = arith.index_cast %416 : i32 to index
    %c0_170 = arith.constant 0 : index
    %c0_171 = arith.constant 0 : index
    %494 = vector.load %arg7[%493, %c0_170, %c0_171] : memref<8x8x128xf32, #tpu.memory_space<vmem>>, vector<1x8x128xf32>
    %495 = vector.shape_cast %494 : vector<1x8x128xf32> to vector<8x128xf32>
    %496 = vector.shape_cast %486 : vector<8x128xf32> to vector<1x8x128xf32>
    tpu.vector_store %arg7[%493, %c0_170, %c0_171], %496 {strides = array<i32>} : memref<8x8x128xf32, #tpu.memory_space<vmem>>, vector<1x8x128xf32>,
    %c6_i32 = arith.constant 6 : i32
    %c7_i32_172 = arith.constant 7 : i32
    %497 = arith.subi %c7_i32_172, %c6_i32 : i32
    %c0_173 = arith.constant 0 : index
    %498 = arith.index_cast %c6_i32 : i32 to index
    %c0_174 = arith.constant 0 : index
    %c0_175 = arith.constant 0 : index
    %499 = vector.load %arg1[%c0_173, %498, %c0_174, %c0_175] : memref<1x8x8x384xbf16, #tpu.memory_space<vmem>>, vector<1x1x8x384xbf16>
    %500 = vector.shape_cast %499 : vector<1x1x8x384xbf16> to vector<8x384xbf16>
    %501 = arith.extf %500 : vector<8x384xbf16> to vector<8x384xf32>
    %c0_176 = arith.constant 0 : index
    %502 = arith.index_cast %497 : i32 to index
    %c0_177 = arith.constant 0 : index
    %c0_178 = arith.constant 0 : index
    %503 = vector.load %arg2[%c0_176, %502, %c0_177, %c0_178] : memref<1x8x8x384xbf16, #tpu.memory_space<vmem>>, vector<1x1x8x384xbf16>
    %504 = vector.shape_cast %503 : vector<1x1x8x384xbf16> to vector<8x384xbf16>
    %505 = arith.extf %504 : vector<8x384xbf16> to vector<8x384xf32>
    %c0_179 = arith.constant 0 : index
    %c0_180 = arith.constant 0 : index
    %506 = vector.load %arg8[%c0_179, %c0_180] : memref<8x128xf32, #tpu.memory_space<vmem>>, vector<8x128xf32>
    %c0_181 = arith.constant 0 : index
    %c0_182 = arith.constant 0 : index
    %507 = vector.load %arg9[%c0_181, %c0_182] : memref<8x128xf32, #tpu.memory_space<vmem>>, vector<8x128xf32>
    %508 = arith.truncf %506 : vector<8x128xf32> to vector<8x128xbf16>
    %cst_183 = arith.constant dense<0.000000e+00> : vector<8x384xf32>
    %509 = tpu.matmul %508, %4, %cst_183 {dimension_numbers = #tpu.dot_dimension_numbers<[1], [0], [0], [1], [0, 0, 1, 1], [], []>} : vector<8x128xbf16>, vector<128x384xbf16>, vector<8x384xf32> -> vector<8x384xf32>
    %510 = vector.extract_strided_slice %501 {offsets = [0, 0], sizes = [8, 128], strides = [1, 1]} : vector<8x384xf32> to vector<8x128xf32>
    %511 = vector.extract_strided_slice %509 {offsets = [0, 0], sizes = [8, 128], strides = [1, 1]} : vector<8x384xf32> to vector<8x128xf32>
    %512 = arith.addf %510, %511 : vector<8x128xf32>
    %513 = arith.negf %512 : vector<8x128xf32>
    %514 = math.exp %513 : vector<8x128xf32>
    %cst_184 = arith.constant 1.000000e+00 : f32
    %515 = vector.broadcast %cst_184 : f32 to vector<8x128xf32>
    %516 = arith.addf %515, %514 : vector<8x128xf32>
    %517 = arith.divf %515, %516 : vector<8x128xf32>
    %518 = vector.extract_strided_slice %501 {offsets = [0, 128], sizes = [8, 128], strides = [1, 1]} : vector<8x384xf32> to vector<8x128xf32>
    %519 = vector.extract_strided_slice %509 {offsets = [0, 128], sizes = [8, 128], strides = [1, 1]} : vector<8x384xf32> to vector<8x128xf32>
    %520 = arith.addf %518, %519 : vector<8x128xf32>
    %521 = arith.negf %520 : vector<8x128xf32>
    %522 = math.exp %521 : vector<8x128xf32>
    %cst_185 = arith.constant 1.000000e+00 : f32
    %523 = vector.broadcast %cst_185 : f32 to vector<8x128xf32>
    %524 = arith.addf %523, %522 : vector<8x128xf32>
    %525 = arith.divf %523, %524 : vector<8x128xf32>
    %526 = vector.extract_strided_slice %501 {offsets = [0, 256], sizes = [8, 128], strides = [1, 1]} : vector<8x384xf32> to vector<8x128xf32>
    %527 = vector.extract_strided_slice %509 {offsets = [0, 256], sizes = [8, 128], strides = [1, 1]} : vector<8x384xf32> to vector<8x128xf32>
    %528 = vector.broadcast %8 : vector<1x128xf32> to vector<8x128xf32>
    %529 = arith.addf %527, %528 : vector<8x128xf32>
    %530 = arith.mulf %517, %529 : vector<8x128xf32>
    %531 = arith.addf %526, %530 : vector<8x128xf32>
    %532 = math.tanh %531 : vector<8x128xf32>
    %cst_186 = arith.constant 1.000000e+00 : f32
    %533 = vector.broadcast %cst_186 : f32 to vector<8x128xf32>
    %534 = arith.subf %533, %525 : vector<8x128xf32>
    %535 = arith.mulf %534, %532 : vector<8x128xf32>
    %536 = arith.mulf %525, %506 : vector<8x128xf32>
    %537 = arith.addf %535, %536 : vector<8x128xf32>
    %538 = arith.truncf %507 : vector<8x128xf32> to vector<8x128xbf16>
    %cst_187 = arith.constant dense<0.000000e+00> : vector<8x384xf32>
    %539 = tpu.matmul %538, %6, %cst_187 {dimension_numbers = #tpu.dot_dimension_numbers<[1], [0], [0], [1], [0, 0, 1, 1], [], []>} : vector<8x128xbf16>, vector<128x384xbf16>, vector<8x384xf32> -> vector<8x384xf32>
    %540 = vector.extract_strided_slice %505 {offsets = [0, 0], sizes = [8, 128], strides = [1, 1]} : vector<8x384xf32> to vector<8x128xf32>
    %541 = vector.extract_strided_slice %539 {offsets = [0, 0], sizes = [8, 128], strides = [1, 1]} : vector<8x384xf32> to vector<8x128xf32>
    %542 = arith.addf %540, %541 : vector<8x128xf32>
    %543 = arith.negf %542 : vector<8x128xf32>
    %544 = math.exp %543 : vector<8x128xf32>
    %cst_188 = arith.constant 1.000000e+00 : f32
    %545 = vector.broadcast %cst_188 : f32 to vector<8x128xf32>
    %546 = arith.addf %545, %544 : vector<8x128xf32>
    %547 = arith.divf %545, %546 : vector<8x128xf32>
    %548 = vector.extract_strided_slice %505 {offsets = [0, 128], sizes = [8, 128], strides = [1, 1]} : vector<8x384xf32> to vector<8x128xf32>
    %549 = vector.extract_strided_slice %539 {offsets = [0, 128], sizes = [8, 128], strides = [1, 1]} : vector<8x384xf32> to vector<8x128xf32>
    %550 = arith.addf %548, %549 : vector<8x128xf32>
    %551 = arith.negf %550 : vector<8x128xf32>
    %552 = math.exp %551 : vector<8x128xf32>
    %cst_189 = arith.constant 1.000000e+00 : f32
    %553 = vector.broadcast %cst_189 : f32 to vector<8x128xf32>
    %554 = arith.addf %553, %552 : vector<8x128xf32>
    %555 = arith.divf %553, %554 : vector<8x128xf32>
    %556 = vector.extract_strided_slice %505 {offsets = [0, 256], sizes = [8, 128], strides = [1, 1]} : vector<8x384xf32> to vector<8x128xf32>
    %557 = vector.extract_strided_slice %539 {offsets = [0, 256], sizes = [8, 128], strides = [1, 1]} : vector<8x384xf32> to vector<8x128xf32>
    %558 = vector.broadcast %10 : vector<1x128xf32> to vector<8x128xf32>
    %559 = arith.addf %557, %558 : vector<8x128xf32>
    %560 = arith.mulf %547, %559 : vector<8x128xf32>
    %561 = arith.addf %556, %560 : vector<8x128xf32>
    %562 = math.tanh %561 : vector<8x128xf32>
    %cst_190 = arith.constant 1.000000e+00 : f32
    %563 = vector.broadcast %cst_190 : f32 to vector<8x128xf32>
    %564 = arith.subf %563, %555 : vector<8x128xf32>
    %565 = arith.mulf %564, %562 : vector<8x128xf32>
    %566 = arith.mulf %555, %507 : vector<8x128xf32>
    %567 = arith.addf %565, %566 : vector<8x128xf32>
    %c0_191 = arith.constant 0 : index
    %c0_192 = arith.constant 0 : index
    %568 = vector.load %arg8[%c0_191, %c0_192] : memref<8x128xf32, #tpu.memory_space<vmem>>, vector<8x128xf32>
    tpu.vector_store %arg8[%c0_191, %c0_192], %537 {strides = array<i32>} : memref<8x128xf32, #tpu.memory_space<vmem>>, vector<8x128xf32>,
    %c0_193 = arith.constant 0 : index
    %c0_194 = arith.constant 0 : index
    %569 = vector.load %arg9[%c0_193, %c0_194] : memref<8x128xf32, #tpu.memory_space<vmem>>, vector<8x128xf32>
    tpu.vector_store %arg9[%c0_193, %c0_194], %567 {strides = array<i32>} : memref<8x128xf32, #tpu.memory_space<vmem>>, vector<8x128xf32>,
    %570 = arith.index_cast %c6_i32 : i32 to index
    %c0_195 = arith.constant 0 : index
    %c0_196 = arith.constant 0 : index
    %571 = vector.load %arg6[%570, %c0_195, %c0_196] : memref<8x8x128xf32, #tpu.memory_space<vmem>>, vector<1x8x128xf32>
    %572 = vector.shape_cast %571 : vector<1x8x128xf32> to vector<8x128xf32>
    %573 = vector.shape_cast %537 : vector<8x128xf32> to vector<1x8x128xf32>
    tpu.vector_store %arg6[%570, %c0_195, %c0_196], %573 {strides = array<i32>} : memref<8x8x128xf32, #tpu.memory_space<vmem>>, vector<1x8x128xf32>,
    %574 = arith.index_cast %497 : i32 to index
    %c0_197 = arith.constant 0 : index
    %c0_198 = arith.constant 0 : index
    %575 = vector.load %arg7[%574, %c0_197, %c0_198] : memref<8x8x128xf32, #tpu.memory_space<vmem>>, vector<1x8x128xf32>
    %576 = vector.shape_cast %575 : vector<1x8x128xf32> to vector<8x128xf32>
    %577 = vector.shape_cast %567 : vector<8x128xf32> to vector<1x8x128xf32>
    tpu.vector_store %arg7[%574, %c0_197, %c0_198], %577 {strides = array<i32>} : memref<8x8x128xf32, #tpu.memory_space<vmem>>, vector<1x8x128xf32>,
    %c7_i32_199 = arith.constant 7 : i32
    %c7_i32_200 = arith.constant 7 : i32
    %578 = arith.subi %c7_i32_200, %c7_i32_199 : i32
    %c0_201 = arith.constant 0 : index
    %579 = arith.index_cast %c7_i32_199 : i32 to index
    %c0_202 = arith.constant 0 : index
    %c0_203 = arith.constant 0 : index
    %580 = vector.load %arg1[%c0_201, %579, %c0_202, %c0_203] : memref<1x8x8x384xbf16, #tpu.memory_space<vmem>>, vector<1x1x8x384xbf16>
    %581 = vector.shape_cast %580 : vector<1x1x8x384xbf16> to vector<8x384xbf16>
    %582 = arith.extf %581 : vector<8x384xbf16> to vector<8x384xf32>
    %c0_204 = arith.constant 0 : index
    %583 = arith.index_cast %578 : i32 to index
    %c0_205 = arith.constant 0 : index
    %c0_206 = arith.constant 0 : index
    %584 = vector.load %arg2[%c0_204, %583, %c0_205, %c0_206] : memref<1x8x8x384xbf16, #tpu.memory_space<vmem>>, vector<1x1x8x384xbf16>
    %585 = vector.shape_cast %584 : vector<1x1x8x384xbf16> to vector<8x384xbf16>
    %586 = arith.extf %585 : vector<8x384xbf16> to vector<8x384xf32>
    %c0_207 = arith.constant 0 : index
    %c0_208 = arith.constant 0 : index
    %587 = vector.load %arg8[%c0_207, %c0_208] : memref<8x128xf32, #tpu.memory_space<vmem>>, vector<8x128xf32>
    %c0_209 = arith.constant 0 : index
    %c0_210 = arith.constant 0 : index
    %588 = vector.load %arg9[%c0_209, %c0_210] : memref<8x128xf32, #tpu.memory_space<vmem>>, vector<8x128xf32>
    %589 = arith.truncf %587 : vector<8x128xf32> to vector<8x128xbf16>
    %cst_211 = arith.constant dense<0.000000e+00> : vector<8x384xf32>
    %590 = tpu.matmul %589, %4, %cst_211 {dimension_numbers = #tpu.dot_dimension_numbers<[1], [0], [0], [1], [0, 0, 1, 1], [], []>} : vector<8x128xbf16>, vector<128x384xbf16>, vector<8x384xf32> -> vector<8x384xf32>
    %591 = vector.extract_strided_slice %582 {offsets = [0, 0], sizes = [8, 128], strides = [1, 1]} : vector<8x384xf32> to vector<8x128xf32>
    %592 = vector.extract_strided_slice %590 {offsets = [0, 0], sizes = [8, 128], strides = [1, 1]} : vector<8x384xf32> to vector<8x128xf32>
    %593 = arith.addf %591, %592 : vector<8x128xf32>
    %594 = arith.negf %593 : vector<8x128xf32>
    %595 = math.exp %594 : vector<8x128xf32>
    %cst_212 = arith.constant 1.000000e+00 : f32
    %596 = vector.broadcast %cst_212 : f32 to vector<8x128xf32>
    %597 = arith.addf %596, %595 : vector<8x128xf32>
    %598 = arith.divf %596, %597 : vector<8x128xf32>
    %599 = vector.extract_strided_slice %582 {offsets = [0, 128], sizes = [8, 128], strides = [1, 1]} : vector<8x384xf32> to vector<8x128xf32>
    %600 = vector.extract_strided_slice %590 {offsets = [0, 128], sizes = [8, 128], strides = [1, 1]} : vector<8x384xf32> to vector<8x128xf32>
    %601 = arith.addf %599, %600 : vector<8x128xf32>
    %602 = arith.negf %601 : vector<8x128xf32>
    %603 = math.exp %602 : vector<8x128xf32>
    %cst_213 = arith.constant 1.000000e+00 : f32
    %604 = vector.broadcast %cst_213 : f32 to vector<8x128xf32>
    %605 = arith.addf %604, %603 : vector<8x128xf32>
    %606 = arith.divf %604, %605 : vector<8x128xf32>
    %607 = vector.extract_strided_slice %582 {offsets = [0, 256], sizes = [8, 128], strides = [1, 1]} : vector<8x384xf32> to vector<8x128xf32>
    %608 = vector.extract_strided_slice %590 {offsets = [0, 256], sizes = [8, 128], strides = [1, 1]} : vector<8x384xf32> to vector<8x128xf32>
    %609 = vector.broadcast %8 : vector<1x128xf32> to vector<8x128xf32>
    %610 = arith.addf %608, %609 : vector<8x128xf32>
    %611 = arith.mulf %598, %610 : vector<8x128xf32>
    %612 = arith.addf %607, %611 : vector<8x128xf32>
    %613 = math.tanh %612 : vector<8x128xf32>
    %cst_214 = arith.constant 1.000000e+00 : f32
    %614 = vector.broadcast %cst_214 : f32 to vector<8x128xf32>
    %615 = arith.subf %614, %606 : vector<8x128xf32>
    %616 = arith.mulf %615, %613 : vector<8x128xf32>
    %617 = arith.mulf %606, %587 : vector<8x128xf32>
    %618 = arith.addf %616, %617 : vector<8x128xf32>
    %619 = arith.truncf %588 : vector<8x128xf32> to vector<8x128xbf16>
    %cst_215 = arith.constant dense<0.000000e+00> : vector<8x384xf32>
    %620 = tpu.matmul %619, %6, %cst_215 {dimension_numbers = #tpu.dot_dimension_numbers<[1], [0], [0], [1], [0, 0, 1, 1], [], []>} : vector<8x128xbf16>, vector<128x384xbf16>, vector<8x384xf32> -> vector<8x384xf32>
    %621 = vector.extract_strided_slice %586 {offsets = [0, 0], sizes = [8, 128], strides = [1, 1]} : vector<8x384xf32> to vector<8x128xf32>
    %622 = vector.extract_strided_slice %620 {offsets = [0, 0], sizes = [8, 128], strides = [1, 1]} : vector<8x384xf32> to vector<8x128xf32>
    %623 = arith.addf %621, %622 : vector<8x128xf32>
    %624 = arith.negf %623 : vector<8x128xf32>
    %625 = math.exp %624 : vector<8x128xf32>
    %cst_216 = arith.constant 1.000000e+00 : f32
    %626 = vector.broadcast %cst_216 : f32 to vector<8x128xf32>
    %627 = arith.addf %626, %625 : vector<8x128xf32>
    %628 = arith.divf %626, %627 : vector<8x128xf32>
    %629 = vector.extract_strided_slice %586 {offsets = [0, 128], sizes = [8, 128], strides = [1, 1]} : vector<8x384xf32> to vector<8x128xf32>
    %630 = vector.extract_strided_slice %620 {offsets = [0, 128], sizes = [8, 128], strides = [1, 1]} : vector<8x384xf32> to vector<8x128xf32>
    %631 = arith.addf %629, %630 : vector<8x128xf32>
    %632 = arith.negf %631 : vector<8x128xf32>
    %633 = math.exp %632 : vector<8x128xf32>
    %cst_217 = arith.constant 1.000000e+00 : f32
    %634 = vector.broadcast %cst_217 : f32 to vector<8x128xf32>
    %635 = arith.addf %634, %633 : vector<8x128xf32>
    %636 = arith.divf %634, %635 : vector<8x128xf32>
    %637 = vector.extract_strided_slice %586 {offsets = [0, 256], sizes = [8, 128], strides = [1, 1]} : vector<8x384xf32> to vector<8x128xf32>
    %638 = vector.extract_strided_slice %620 {offsets = [0, 256], sizes = [8, 128], strides = [1, 1]} : vector<8x384xf32> to vector<8x128xf32>
    %639 = vector.broadcast %10 : vector<1x128xf32> to vector<8x128xf32>
    %640 = arith.addf %638, %639 : vector<8x128xf32>
    %641 = arith.mulf %628, %640 : vector<8x128xf32>
    %642 = arith.addf %637, %641 : vector<8x128xf32>
    %643 = math.tanh %642 : vector<8x128xf32>
    %cst_218 = arith.constant 1.000000e+00 : f32
    %644 = vector.broadcast %cst_218 : f32 to vector<8x128xf32>
    %645 = arith.subf %644, %636 : vector<8x128xf32>
    %646 = arith.mulf %645, %643 : vector<8x128xf32>
    %647 = arith.mulf %636, %588 : vector<8x128xf32>
    %648 = arith.addf %646, %647 : vector<8x128xf32>
    %c0_219 = arith.constant 0 : index
    %c0_220 = arith.constant 0 : index
    %649 = vector.load %arg8[%c0_219, %c0_220] : memref<8x128xf32, #tpu.memory_space<vmem>>, vector<8x128xf32>
    tpu.vector_store %arg8[%c0_219, %c0_220], %618 {strides = array<i32>} : memref<8x128xf32, #tpu.memory_space<vmem>>, vector<8x128xf32>,
    %c0_221 = arith.constant 0 : index
    %c0_222 = arith.constant 0 : index
    %650 = vector.load %arg9[%c0_221, %c0_222] : memref<8x128xf32, #tpu.memory_space<vmem>>, vector<8x128xf32>
    tpu.vector_store %arg9[%c0_221, %c0_222], %648 {strides = array<i32>} : memref<8x128xf32, #tpu.memory_space<vmem>>, vector<8x128xf32>,
    %651 = arith.index_cast %c7_i32_199 : i32 to index
    %c0_223 = arith.constant 0 : index
    %c0_224 = arith.constant 0 : index
    %652 = vector.load %arg6[%651, %c0_223, %c0_224] : memref<8x8x128xf32, #tpu.memory_space<vmem>>, vector<1x8x128xf32>
    %653 = vector.shape_cast %652 : vector<1x8x128xf32> to vector<8x128xf32>
    %654 = vector.shape_cast %618 : vector<8x128xf32> to vector<1x8x128xf32>
    tpu.vector_store %arg6[%651, %c0_223, %c0_224], %654 {strides = array<i32>} : memref<8x8x128xf32, #tpu.memory_space<vmem>>, vector<1x8x128xf32>,
    %655 = arith.index_cast %578 : i32 to index
    %c0_225 = arith.constant 0 : index
    %c0_226 = arith.constant 0 : index
    %656 = vector.load %arg7[%655, %c0_225, %c0_226] : memref<8x8x128xf32, #tpu.memory_space<vmem>>, vector<1x8x128xf32>
    %657 = vector.shape_cast %656 : vector<1x8x128xf32> to vector<8x128xf32>
    %658 = vector.shape_cast %648 : vector<8x128xf32> to vector<1x8x128xf32>
    tpu.vector_store %arg7[%655, %c0_225, %c0_226], %658 {strides = array<i32>} : memref<8x8x128xf32, #tpu.memory_space<vmem>>, vector<1x8x128xf32>,
    %c8_i32 = arith.constant 8 : i32
    return
  }
  func.func @transform_0(%arg0: i32) -> (i32, i32, i32, i32) {
    %c0_i32 = arith.constant 0 : i32
    %c0_i32_0 = arith.constant 0 : i32
    %c0_i32_1 = arith.constant 0 : i32
    %c0_i32_2 = arith.constant 0 : i32
    return %c0_i32, %arg0, %c0_i32_0, %c0_i32_1 : i32, i32, i32, i32
  }
  func.func @transform_1(%arg0: i32) -> (i32, i32, i32, i32) {
    %c0_i32 = arith.constant 0 : i32
    %0 = arith.subi %c0_i32, %arg0 : i32
    %c1_i32 = arith.constant 1 : i32
    %c0_i32_0 = arith.constant 0 : i32
    %c0_i32_1 = arith.constant 0 : i32
    %c0_i32_2 = arith.constant 0 : i32
    return %c1_i32, %0, %c0_i32_0, %c0_i32_1 : i32, i32, i32, i32
  }
  func.func @transform_2(%arg0: i32) -> (i32, i32, i32) {
    %c0_i32 = arith.constant 0 : i32
    %c0_i32_0 = arith.constant 0 : i32
    %c0_i32_1 = arith.constant 0 : i32
    %c0_i32_2 = arith.constant 0 : i32
    return %c0_i32, %c0_i32_0, %c0_i32_1 : i32, i32, i32
  }
  func.func @transform_3(%arg0: i32) -> (i32, i32, i32) {
    %c0_i32 = arith.constant 0 : i32
    %c0_i32_0 = arith.constant 0 : i32
    %c0_i32_1 = arith.constant 0 : i32
    %c0_i32_2 = arith.constant 0 : i32
    return %c0_i32, %c0_i32_0, %c0_i32_1 : i32, i32, i32
  }
  func.func @transform_4(%arg0: i32) -> (i32, i32, i32) {
    %c0_i32 = arith.constant 0 : i32
    %c0_i32_0 = arith.constant 0 : i32
    %c0_i32_1 = arith.constant 0 : i32
    %c0_i32_2 = arith.constant 0 : i32
    return %c0_i32, %c0_i32_0, %c0_i32_1 : i32, i32, i32
  }
  func.func @transform_5(%arg0: i32) -> (i32, i32, i32) {
    %c0_i32 = arith.constant 0 : i32
    %c0_i32_0 = arith.constant 0 : i32
    %c0_i32_1 = arith.constant 0 : i32
    return %arg0, %c0_i32, %c0_i32_0 : i32, i32, i32
  }
  func.func @transform_6(%arg0: i32) -> (i32, i32, i32) {
    %c0_i32 = arith.constant 0 : i32
    %0 = arith.subi %c0_i32, %arg0 : i32
    %c0_i32_0 = arith.constant 0 : i32
    %c0_i32_1 = arith.constant 0 : i32
    %c0_i32_2 = arith.constant 0 : i32
    return %0, %c0_i32_0, %c0_i32_1 : i32, i32, i32
  }
}

</mosaic_0001>

<bundles_post_ra>
// kernel: encoder_bigru_forward.2
= control target key start
LH: loop header
LB: loop body
LE: loop exit
PB: predicated region body
PF: predicated region fallthrough
CT: control target
= control target key end

     0   :  { %12 = vsyncpa [#allocation5], 0  ;;  %s4374_s0 = inlined_call_operand.hbm [shape: bf16[2,8,8,384], index: 0, kind: input, shape index: {}, may-alias: {0,1}]   ;;  %s4375_s1 = inlined_call_operand.hbm [shape: bf16[2,8,8,384], index: 1, kind: input, shape index: {}, may-alias: {0,1}]   ;;  %s4376_s2 = inlined_call_operand.hbm [shape: bf16[2,128,384], index: 2, kind: input, shape index: {}]   ;;  %s4377_s3 = inlined_call_operand.hbm [shape: f32[2,1,128], index: 3, kind: input, shape index: {}]   ;;  %s4378_s4 = inlined_call_operand.hbm [shape: f32[2,8,128], index: 4, kind: input, shape index: {}]   ;;  %s4379_s5 = inlined_call_operand.hbm [shape: bf16[8,8,128], index: 5, kind: output, shape index: {0}]   ;;  %s4380_s6 = inlined_call_operand.hbm [shape: bf16[8,8,128], index: 6, kind: output, shape index: {1}]  }
   0x1   :  { %13 = vsyncpa [#allocation8], 0 }
   0x2   :  { %14 = vsyncpa [#allocation11], 0 }
   0x3   :  { %15 = vsyncpa [#allocation6], 0 }
   0x4   :  { %16 = vsyncpa [#allocation15], 0  ;;  %s2326_s23 = scalar_lea.hbm %s4375_s1, 1536  ;;  %s3334_s24 = smov [#allocation7]  }
   0x5   :  { %s40_s25 = sshll.u32 %s3334_s24, 4  ;;  %s3335_s26 = smov [#allocation10]   ;;  %s41_s25 = int_to_ptr.vmem [resolvable:$true] %s40_s25 }
   0x6   :  { %s64_s27 = sshll.u32 %s3335_s26, 4  ;;  %s3191_s30 = scalar_lea.hbm %s4375_s1, 3072  ;;  %s65_s27 = int_to_ptr.vmem [resolvable:$true] %s64_s27 }
   0x7   :  { %p3168_p0 = scmp.ne.s32.totalorder %s2326_s23, %s3191_s30  ;;  %p3170_p1 = scmp.lt.u32.totalorder %s2326_s23, %s4375_s1 }
   0x8   :  { %p3171_p2 = scmp.lt.u32.totalorder %s3191_s30, %s3191_s30  ;;  %p3173_p4 = scmp.lt.u32.totalorder %s3191_s30, %s2326_s23 }
   0xa   :  { %p3172_p3 = por %p3171_p2, %p3170_p1 }
   0xc   :  { %p3174_p5 = por %p3173_p4, %p3172_p3 }
   0xe   :  { %p3175_p6 = pnand %p3174_p5, %p3168_p0 }
  0x10   :  { %3178 = shalt.err (!%p3175_p6)
}
  0x11   :  { %s3179_s9 = scalar_lea.vmem %s41_s25, 1536  ;;  %p3184_p8 = scmp.lt.s32.totalorder %s41_s25, %s41_s25 }
  0x12   :  { %p3180_p7 = scmp.ne.s32.totalorder %s41_s25, %s3179_s9  ;;  %p3185_p9 = scmp.lt.s32.totalorder %s3179_s9, %s3179_s9 }
  0x14   :  { %p3186_p10 = por %p3185_p9, %p3184_p8 }
  0x16   :  { %p3187_p11 = pnand %p3186_p10, %p3180_p7 }
  0x18   :  { %3190 = shalt.err (!%p3187_p11)
}
  0x19   :  { %s3336_s10 = smov 192   ;;  %s3337_s11 = smov 12  }
  0x1a   :  { %46 = dma.hbm_to_vmem [thread:$0]  %s2326_s23, 1536, %s41_s25, [#allocation8], %s3336_s10, %s3336_s10, %s3337_s11  }
  0x1b   :  { %s3192_s13 = scalar_lea.hbm %s4377_s3, 32 }
  0x1c   :  { %p3193_p12 = scmp.ne.s32.totalorder %s4377_s3, %s3192_s13  ;;  %p3196_p13 = scmp.lt.u32.totalorder %s3192_s13, %s4377_s3 }
  0x1e   :  { %p3198_p0 = pnand %p3196_p13, %p3193_p12 }
  0x20   :  { %3201 = shalt.err (!%p3198_p0)
}
  0x21   :  { %s3202_s18 = scalar_lea.vmem %s65_s27, 32  ;;  %p3207_p2 = scmp.lt.s32.totalorder %s65_s27, %s65_s27 }
  0x22   :  { %p3203_p1 = scmp.ne.s32.totalorder %s65_s27, %s3202_s18  ;;  %p3208_p3 = scmp.lt.s32.totalorder %s3202_s18, %s3202_s18 }
  0x24   :  { %p3209_p4 = por %p3208_p3, %p3207_p2 }
  0x26   :  { %p3210_p5 = pnand %p3209_p4, %p3203_p1 }
  0x28   :  { %3213 = shalt.err (!%p3210_p5)
}
  0x29   :  { %s3338_s19 = smov 16   ;;  %s3339_s20 = smov 1  }
  0x2a   :  { %70 = dma.hbm_to_vmem [thread:$0]  %s4377_s3, 32, %s65_s27, [#allocation11], %s3338_s19, %s3338_s19, %s3339_s20  }
  0x2b   :  { %s3340_s23 = smov [#allocation4]   ;;  %s3341_s25 = smov [#allocation9]  }
  0x2c   :  { %s22_s24 = sshll.u32 %s3340_s23, 4  ;;  %s52_s26 = sshll.u32 %s3341_s25, 4  ;;  %s23_s24 = int_to_ptr.vmem [resolvable:$true] %s22_s24  ;;  %s53_s26 = int_to_ptr.vmem [resolvable:$true] %s52_s26 }
  0x2d   :  { %s3214_s30 = scalar_lea.hbm %s4374_s0, 1536  ;;  %s3216_s12 = scalar_lea.hbm %s4374_s0, 3072 }
  0x2e   :  { %p3215_p6 = scmp.ne.s32.totalorder %s4374_s0, %s3214_s30  ;;  %p3217_p7 = scmp.lt.u32.totalorder %s3216_s12, %s3214_s30 }
  0x2f   :  { %p3218_p8 = scmp.lt.u32.totalorder %s3214_s30, %s4374_s0 }
  0x31   :  { %p3219_p9 = por %p3218_p8, %p3217_p7 }
  0x33   :  { %p3220_p10 = pnand %p3219_p9, %p3215_p6 }
  0x35   :  { %3223 = shalt.err (!%p3220_p10)
}
  0x36   :  { %s3224_s27 = scalar_lea.vmem %s23_s24, 1536  ;;  %p3229_p12 = scmp.lt.s32.totalorder %s23_s24, %s23_s24 }
  0x37   :  { %p3225_p11 = scmp.ne.s32.totalorder %s23_s24, %s3224_s27  ;;  %p3230_p13 = scmp.lt.s32.totalorder %s3224_s27, %s3224_s27 }
  0x39   :  { %p3231_p0 = por %p3230_p13, %p3229_p12 }
  0x3b   :  { %p3232_p1 = pnand %p3231_p0, %p3225_p11 }
  0x3d   :  { %3235 = shalt.err (!%p3232_p1)
}
  0x3e   :  { %28 = dma.hbm_to_vmem [thread:$0]  %s4374_s0, 1536, %s23_s24, [#allocation5], %s3336_s10, %s3336_s10, %s3337_s11  }
  0x3f   :  { %s3236_s18 = scalar_lea.hbm %s4376_s2, 6144 }
  0x40   :  { %p3237_p2 = scmp.ne.s32.totalorder %s4376_s2, %s3236_s18  ;;  %p3240_p3 = scmp.lt.u32.totalorder %s3236_s18, %s4376_s2 }
  0x42   :  { %p3242_p4 = pnand %p3240_p3, %p3237_p2 }
  0x44   :  { %3245 = shalt.err (!%p3242_p4)
}
  0x45   :  { %s3246_s23 = scalar_lea.vmem %s53_s26, 6144  ;;  %p3251_p6 = scmp.lt.s32.totalorder %s53_s26, %s53_s26 }
  0x46   :  { %p3247_p5 = scmp.ne.s32.totalorder %s53_s26, %s3246_s23  ;;  %p3252_p7 = scmp.lt.s32.totalorder %s3246_s23, %s3246_s23 }
  0x48   :  { %p3253_p8 = por %p3252_p7, %p3251_p6 }
  0x4a   :  { %p3254_p9 = pnand %p3253_p8, %p3247_p5 }
  0x4c   :  { %3257 = shalt.err (!%p3254_p9)
}
  0x4d   :  { %58 = dma.hbm_to_vmem [thread:$0]  %s4376_s2, 6144, %s53_s26, [#allocation8], %s3336_s10, %s3336_s10, %s3337_s11  }
  0x4e   :  { %s3342_s25 = smov [#allocation12]   ;;  %s3258_s7 = scalar_lea.hbm %s4378_s4, 256 }
  0x4f   :  { %s76_s28 = sshll.u32 %s3342_s25, 4  ;;  %p3259_p10 = scmp.ne.s32.totalorder %s4378_s4, %s3258_s7  ;;  %s77_s28 = int_to_ptr.vmem [resolvable:$true] %s76_s28 }
  0x50   :  { %p3262_p11 = scmp.lt.u32.totalorder %s3258_s7, %s4378_s4 }
  0x52   :  { %p3264_p12 = pnand %p3262_p11, %p3259_p10 }
  0x54   :  { %3267 = shalt.err (!%p3264_p12)
}
  0x55   :  { %s3268_s13 = scalar_lea.vmem %s77_s28, 256  ;;  %p3273_p0 = scmp.lt.s32.totalorder %s77_s28, %s77_s28 }
  0x56   :  { %p3269_p13 = scmp.ne.s32.totalorder %s77_s28, %s3268_s13  ;;  %p3274_p1 = scmp.lt.s32.totalorder %s3268_s13, %s3268_s13 }
  0x58   :  { %p3275_p2 = por %p3274_p1, %p3273_p0 }
  0x5a   :  { %p3276_p3 = pnand %p3275_p2, %p3269_p13 }
  0x5c   :  { %3279 = shalt.err (!%p3276_p3)
}
  0x5d   :  { %s3343_s2 = smov 128   ;;  %s3344_s10 = smov 8  }
  0x5e   :  { %82 = dma.hbm_to_vmem [thread:$0]  %s4378_s4, 256, %s77_s28, [#allocation11], %s3343_s2, %s3343_s2, %s3344_s10  }
  0x5f   :  { %3324 = dma.done.wait [#allocation5], 1536  }
  0x60   :  { %3325 = vsyncadd [#allocation5], 4294965760 }
  0x61   :  { %3326 = dma.done.wait [#allocation8], 7680  }
  0x62   :  { %3327 = vsyncadd [#allocation8], 4294959616 }
  0x63   :  { %3328 = dma.done.wait [#allocation11], 288  }
  0x64   :  { %3329 = vsyncadd [#allocation11], 4294967008  ;;  %v4391_v0 = vmov 0.0   ;;  %v4381_v1 = vmov 0   ;;  %vm3347_vm0 = vmmov 0   ;;  %v3523_v23 = vld [vmem:[#allocation12] sm:$0xff] }
  0x65   :  { %2555 = vmatprep.subr.bf16.mxu1 %v4391_v0  ;;  %354 = vmatprep.mubr.bf16.mxu0 %v4381_v1  ;;  %v3460_v2 = vld [vmem:[#allocation9 + $0x4] ss:$12 sps:$4 sm:$0xff]   ;;  %v3462_v3 = vld [vmem:[#allocation9] ss:$12 sps:$4 sm:$0xff]   ;;  %v3465_v4 = vld [vmem:[#allocation9 + $0x1c] ss:$12 sps:$4 sm:$0xff]   ;;  %v193_v26 = vpack.c.bf16 %v3523_v23, %v3523_v23 }
  0x66   :  { %2571 = vmatprep.mubr.msk.bf16.mxu1 %vm3347_vm0, %v4391_v0  ;;  %322 = vmatprep.subr.bf16.mxu0 %v3460_v2  ;;  %v3468_v5 = vld [vmem:[#allocation9 + $0x18] ss:$12 sps:$4 sm:$0xff]   ;;  %v3471_v6 = vld [vmem:[#allocation9 + $0x34] ss:$12 sps:$4 sm:$0xff]   ;;  %v3474_v7 = vld [vmem:[#allocation9 + $0x30] ss:$12 sps:$4 sm:$0xff]  }
  0x67   :  { %323 = vmatpush1.bf16.msra.mxu0 %v3462_v3  ;;  %v3477_v8 = vld [vmem:[#allocation9 + $0x4c] ss:$12 sps:$4 sm:$0xff]   ;;  %v3479_v9 = vld [vmem:[#allocation9 + $0x8] ss:$12 sps:$4 sm:$0xff]   ;;  %v3486_v11 = vld [vmem:[#allocation9 + $0x64] ss:$12 sps:$4 sm:$0xff]  }
  0x68   :  { %324 = vmatprep.subr.bf16.mxu0 %v3465_v4  ;;  %v3482_v10 = vld [vmem:[#allocation9 + $0x48] ss:$12 sps:$4 sm:$0xff]   ;;  %2556 = vmatpush3.bf16.msra.mxu1 %v3479_v9  ;;  %v3489_v12 = vld [vmem:[#allocation9 + $0x20] ss:$12 sps:$4 sm:$0xff]   ;;  %v3495_v14 = vld [vmem:[#allocation9 + $0x38] ss:$12 sps:$4 sm:$0xff]  }
  0x69   :  { %2557 = vmatprep.subr.bf16.mxu1 %v4391_v0  ;;  %v3491_v13 = vld [vmem:[#allocation9 + $0x60] ss:$12 sps:$4 sm:$0xff]   ;;  %v3498_v15 = vld [vmem:[#allocation9 + $0x7c] ss:$12 sps:$4 sm:$0xff]   ;;  %v3502_v16 = vld [vmem:[#allocation9 + $0x78] ss:$12 sps:$4 sm:$0xff]  }
  0x6a   :  { %4433 = vst [vmem:[#allocation21_spill] sm:$0xff] %v3491_v13  ;;  %4434 = vst [vmem:[#allocation22_spill] sm:$0xff] %v3498_v15  ;;  %v3505_v17 = vld [vmem:[#allocation9 + $0x50] ss:$12 sps:$4 sm:$0xff]   ;;  %v3508_v18 = vld [vmem:[#allocation9 + $0x94] ss:$12 sps:$4 sm:$0xff]  }
  0x6b   :  { %325 = vmatpush1.bf16.msra.mxu0 %v3468_v5  ;;  %4435 = vst [vmem:[#allocation23_spill] sm:$0xff] %v3502_v16  ;;  %4436 = vst [vmem:[#allocation24_spill] sm:$0xff] %v3508_v18  ;;  %v3511_v19 = vld [vmem:[#allocation9 + $0x90] ss:$12 sps:$4 sm:$0xff]   ;;  %v3515_v20 = vld [vmem:[#allocation9 + $0x68] ss:$12 sps:$4 sm:$0xff]  }
  0x6c   :  { %326 = vmatprep.subr.bf16.mxu0 %v3471_v6  ;;  %2558 = vmatpush3.bf16.msra.mxu1 %v3489_v12  ;;  %4437 = vst [vmem:[#allocation25_spill] sm:$0xff] %v3511_v19  ;;  %4438 = vst [vmem:[#allocation26_spill] sm:$0xff] %v3515_v20  ;;  %v3518_v21 = vld [vmem:[#allocation9 + $0xac] ss:$12 sps:$4 sm:$0xff]   ;;  %v3521_v22 = vld [vmem:[#allocation9 + $0xa8] ss:$12 sps:$4 sm:$0xff]  }
  0x6d   :  { %2559 = vmatprep.subr.bf16.mxu1 %v4391_v0  ;;  %4439 = vst [vmem:[#allocation27_spill] sm:$0xff] %v3518_v21  ;;  %4440 = vst [vmem:[#allocation28_spill] sm:$0xff] %v3521_v22  ;;  %v3527_v24 = vld [vmem:[#allocation9 + $0x80] ss:$12 sps:$4 sm:$0xff]   ;;  %v3530_v25 = vld [vmem:[#allocation9 + $0xc4] ss:$12 sps:$4 sm:$0xff]  }
  0x6e   :  { %4441 = vst [vmem:[#allocation29_spill] sm:$0xff] %v3527_v24  ;;  %4442 = vst [vmem:[#allocation30_spill] sm:$0xff] %v3530_v25  ;;  %v3536_v27 = vld [vmem:[#allocation9 + $0xc0] ss:$12 sps:$4 sm:$0xff]   ;;  %v3539_v28 = vld [vmem:[#allocation9 + $0x98] ss:$12 sps:$4 sm:$0xff]  }
  0x6f   :  { %327 = vmatpush1.bf16.msra.mxu0 %v3474_v7  ;;  %4443 = vst [vmem:[#allocation31_spill] sm:$0xff] %v3539_v28  ;;  %v3542_v29 = vld [vmem:[#allocation9 + $0xdc] ss:$12 sps:$4 sm:$0xff]   ;;  %v3545_v30 = vld [vmem:[#allocation9 + $0xd8] ss:$12 sps:$4 sm:$0xff]   ;;  %s3348_s4 = smov [#allocation13]  }
  0x70   :  { %328 = vmatprep.subr.bf16.mxu0 %v3477_v8  ;;  %2560 = vmatpush3.bf16.msra.mxu1 %v3495_v14  ;;  %v3549_v31 = vld [vmem:[#allocation9 + $0xb0] ss:$12 sps:$4 sm:$0xff]   ;;  %v3552_v32 = vld [vmem:[#allocation9 + $0xf4] ss:$12 sps:$4 sm:$0xff]   ;;  %v3563_v35 = vld [vmem:[#allocation9 + $0x10c] ss:$12 sps:$4 sm:$0xff]  }
  0x71   :  { %2561 = vmatprep.subr.bf16.mxu1 %v4391_v0  ;;  %4444 = vst [vmem:[#allocation32_spill] sm:$0xff] %v3549_v31  ;;  %v3557_v33 = vld [vmem:[#allocation9 + $0xf0] ss:$12 sps:$4 sm:$0xff]   ;;  %v3560_v34 = vld [vmem:[#allocation9 + $0xc8] ss:$12 sps:$4 sm:$0xff]   ;;  %v180_v54 = vld [vmem:[#allocation4] sm:$0xff] }
  0x72   :  { %v3567_v36 = vld [vmem:[#allocation9 + $0x108] ss:$12 sps:$4 sm:$0xff]   ;;  %v3570_v37 = vld [vmem:[#allocation9 + $0xe0] ss:$12 sps:$4 sm:$0xff]   ;;  %v3573_v38 = vld [vmem:[#allocation9 + $0x124] ss:$12 sps:$4 sm:$0xff]   ;;  %v182_v55 = vunpack.c.l.bf16 %v180_v54  ;;  %v183_v57 = vunpack.c.h.bf16 %v180_v54 }
  0x73   :  { %329 = vmatpush1.bf16.msra.mxu0 %v3482_v10  ;;  %v3579_v39 = vld [vmem:[#allocation9 + $0x120] ss:$12 sps:$4 sm:$0xff]   ;;  %v3582_v40 = vld [vmem:[#allocation9 + $0xf8] ss:$12 sps:$4 sm:$0xff]   ;;  %v3585_v41 = vld [vmem:[#allocation9 + $0x13c] ss:$12 sps:$4 sm:$0xff]  }
  0x74   :  { %330 = vmatprep.subr.bf16.mxu0 %v3486_v11  ;;  %2562 = vmatpush3.bf16.msra.mxu1 %v3505_v17  ;;  %v3589_v42 = vld [vmem:[#allocation9 + $0x138] ss:$12 sps:$4 sm:$0xff]   ;;  %v3592_v43 = vld [vmem:[#allocation9 + $0x110] ss:$12 sps:$4 sm:$0xff]   ;;  %v3595_v44 = vld [vmem:[#allocation9 + $0x154] ss:$12 sps:$4 sm:$0xff]  }
  0x75   :  { %2563 = vmatprep.subr.bf16.mxu1 %v4391_v0  ;;  %v3599_v45 = vld [vmem:[#allocation9 + $0x150] ss:$12 sps:$4 sm:$0xff]   ;;  %v3602_v46 = vld [vmem:[#allocation9 + $0x128] ss:$12 sps:$4 sm:$0xff]   ;;  %v3605_v47 = vld [vmem:[#allocation9 + $0x16c] ss:$12 sps:$4 sm:$0xff]  }
  0x76   :  { %v3609_v48 = vld [vmem:[#allocation9 + $0x168] ss:$12 sps:$4 sm:$0xff]   ;;  %v3614_v50 = vld [vmem:[#allocation9 + $0x140] ss:$12 sps:$4 sm:$0xff]   ;;  %v3622_v52 = vld [vmem:[#allocation9 + $0x158] ss:$12 sps:$4 sm:$0xff]  }
  0x77   :  { %331 = vmatpush1.bf16.msra.mxu0 %v3491_v13  ;;  %v3611_v49 = vld [vmem:[#allocation12 + $0x8] sm:$0xff]  ;;  %s2289_s3 = sshll.u32 %s3348_s4, 4  ;;  %s2290_s3 = int_to_ptr.vmem [resolvable:$true] %s2289_s3 }
  0x78   :  { %332 = vmatprep.subr.bf16.mxu0 %v3498_v15  ;;  %2564 = vmatpush3.bf16.msra.mxu1 %v3515_v20  ;;  %v431_v51 = vpack.c.bf16 %v3611_v49, %v3611_v49  ;;  %v3627_v53 = vld [vmem:[#allocation9 + $0x170] ss:$12 sps:$4 sm:$0xff]   ;;  %v3669_v54 = vld [vmem:[#allocation4 + $0x8] ss:$12 sps:$4 sm:$0xff]   ;;  %s3280_s27 = scalar_lea.vmem %s2290_s3, 512  ;;  %p3285_p5 = scmp.lt.s32.totalorder %s2290_s3, %s2290_s3 }
  0x79   :  { %2565 = vmatprep.subr.bf16.mxu1 %v4391_v0  ;;  %4446 = vst [vmem:[#allocation34_spill] sm:$0xff] %v3669_v54  ;;  %p3281_p4 = scmp.ne.s32.totalorder %s2290_s3, %s3280_s27  ;;  %p3286_p6 = scmp.lt.s32.totalorder %s3280_s27, %s3280_s27 }
  0x7b   :  { %333 = vmatpush1.bf16.msra.mxu0 %v3502_v16  ;;  %p3287_p7 = por %p3286_p6, %p3285_p5 }
  0x7c   :  { %334 = vmatprep.subr.bf16.mxu0 %v3508_v18  ;;  %2566 = vmatpush3.bf16.msra.mxu1 %v3527_v24 }
  0x7d   :  { %2567 = vmatprep.subr.bf16.mxu1 %v4391_v0  ;;  %p3288_p8 = pnand %p3287_p7, %p3281_p4 }
  0x7f   :  { %335 = vmatpush1.bf16.msra.mxu0 %v3511_v19 }
  0x80   :  { %336 = vmatprep.subr.bf16.mxu0 %v3518_v21  ;;  %2568 = vmatpush3.bf16.msra.mxu1 %v3539_v28 }
  0x81   :  { %2569 = vmatprep.subr.bf16.mxu1 %v4391_v0 }
  0x83   :  { %337 = vmatpush1.bf16.msra.mxu0 %v3521_v22 }
  0x84   :  { %560 = vmatprep.subr.bf16.mxu0 %v3530_v25  ;;  %2570 = vmatpush3.bf16.msra.mxu1 %v3549_v31 }
  0x85   :  { %2575 = vmatprep.subr.bf16.mxu1 %v4391_v0 }
  0x86   :  { %355 = vmatmul.mubr.bf16.vlgmr.msra.gmra.mrb[0].mxu0 %v193_v26 }
  0x87   :  { %561 = vmatpush1.bf16.msra.mxu0 %v3536_v27  ;;  %592 = vmatprep.mubr.bf16.mxu0 %v4381_v1 }
  0x88   :  { %562 = vmatprep.subr.bf16.mxu0 %v3542_v29  ;;  %2572 = vmatmul.mubr.bf16.vlgmr.msra.gmra.mrb[0].mxu1 %v193_v26 }
  0x89   :  { %2576 = vmatpush3.bf16.msra.mxu1 %v3560_v34  ;;  %2591 = vmatprep.mubr.msk.bf16.mxu1 %vm3347_vm0, %v4391_v0 }
  0x8a   :  { %2577 = vmatprep.subr.bf16.mxu1 %v4391_v0 }
  0x8b   :  { %563 = vmatpush1.bf16.msra.mxu0 %v3545_v30 }
  0x8c   :  { %564 = vmatprep.subr.bf16.mxu0 %v3552_v32 }
  0x8d   :  { %2578 = vmatpush3.bf16.msra.mxu1 %v3570_v37 }
  0x8e   :  { %2579 = vmatprep.subr.bf16.mxu1 %v4391_v0 }
  0x8f   :  { %565 = vmatpush1.bf16.msra.mxu0 %v3557_v33 }
  0x90   :  { %566 = vmatprep.subr.bf16.mxu0 %v3563_v35 }
  0x91   :  { %2580 = vmatpush3.bf16.msra.mxu1 %v3582_v40 }
  0x92   :  { %2581 = vmatprep.subr.bf16.mxu1 %v4391_v0 }
  0x93   :  { %567 = vmatpush1.bf16.msra.mxu0 %v3567_v36 }
  0x94   :  { %568 = vmatprep.subr.bf16.mxu0 %v3573_v38 }
  0x95   :  { %2582 = vmatpush3.bf16.msra.mxu1 %v3592_v43 }
  0x96   :  { %2583 = vmatprep.subr.bf16.mxu1 %v4391_v0 }
  0x97   :  { %569 = vmatpush1.bf16.msra.mxu0 %v3579_v39 }
  0x98   :  { %570 = vmatprep.subr.bf16.mxu0 %v3585_v41 }
  0x99   :  { %2584 = vmatpush3.bf16.msra.mxu1 %v3602_v46 }
  0x9a   :  { %2585 = vmatprep.subr.bf16.mxu1 %v4391_v0 }
  0x9b   :  { %571 = vmatpush1.bf16.msra.mxu0 %v3589_v42 }
  0x9c   :  { %572 = vmatprep.subr.bf16.mxu0 %v3595_v44 }
  0x9d   :  { %2586 = vmatpush3.bf16.msra.mxu1 %v3614_v50 }
  0x9e   :  { %2587 = vmatprep.subr.bf16.mxu1 %v4391_v0 }
  0x9f   :  { %573 = vmatpush1.bf16.msra.mxu0 %v3599_v45 }
  0xa0   :  { %574 = vmatprep.subr.bf16.mxu0 %v3605_v47 }
  0xa1   :  { %2588 = vmatpush3.bf16.msra.mxu1 %v3622_v52 }
  0xa2   :  { %2589 = vmatprep.subr.bf16.mxu1 %v4391_v0 }
  0xa3   :  { %575 = vmatpush1.bf16.msra.mxu0 %v3609_v48 }
  0xa4   :  { %691 = vmatprep.subr.bf16.mxu0 %v3460_v2 }
  0xa5   :  { %2590 = vmatpush3.bf16.msra.mxu1 %v3627_v53 }
  0xa6   :  { %593 = vmatmul.mubr.bf16.vlgmr.msra.gmra.mrb[4].mxu0 %v431_v51  ;;  %2595 = vmatprep.subr.bf16.mxu1 %v4391_v0 }
  0xa7   :  { %692 = vmatpush1.bf16.msra.mxu0 %v3462_v3  ;;  %723 = vmatprep.mubr.bf16.mxu0 %v4381_v1 }
  0xa8   :  { %693 = vmatprep.subr.bf16.mxu0 %v3465_v4  ;;  %2592 = vmatmul.mubr.bf16.vlgmr.msra.gmra.mrb[4].mxu1 %v431_v51 }
  0xa9   :  { %2596 = vmatpush3.bf16.msra.mxu1 %v3479_v9  ;;  %2611 = vmatprep.mubr.msk.bf16.mxu1 %vm3347_vm0, %v4391_v0 }
  0xaa   :  { %2597 = vmatprep.subr.bf16.mxu1 %v4391_v0 }
  0xab   :  { %694 = vmatpush1.bf16.msra.mxu0 %v3468_v5 }
  0xac   :  { %695 = vmatprep.subr.bf16.mxu0 %v3471_v6 }
  0xad   :  { %2598 = vmatpush3.bf16.msra.mxu1 %v3489_v12 }
  0xae   :  { %2599 = vmatprep.subr.bf16.mxu1 %v4391_v0 }
  0xaf   :  { %696 = vmatpush1.bf16.msra.mxu0 %v3474_v7 }
  0xb0   :  { %697 = vmatprep.subr.bf16.mxu0 %v3477_v8 }
  0xb1   :  { %2600 = vmatpush3.bf16.msra.mxu1 %v3495_v14 }
  0xb2   :  { %2601 = vmatprep.subr.bf16.mxu1 %v4391_v0 }
  0xb3   :  { %698 = vmatpush1.bf16.msra.mxu0 %v3482_v10 }
  0xb4   :  { %699 = vmatprep.subr.bf16.mxu0 %v3486_v11 }
  0xb5   :  { %2602 = vmatpush3.bf16.msra.mxu1 %v3505_v17 }
  0xb6   :  { %2603 = vmatprep.subr.bf16.mxu1 %v4391_v0 }
  0xb7   :  { %700 = vmatpush1.bf16.msra.mxu0 %v3491_v13 }
  0xb8   :  { %701 = vmatprep.subr.bf16.mxu0 %v3498_v15 }
  0xb9   :  { %2604 = vmatpush3.bf16.msra.mxu1 %v3515_v20 }
  0xba   :  { %2605 = vmatprep.subr.bf16.mxu1 %v4391_v0 }
  0xbb   :  { %702 = vmatpush1.bf16.msra.mxu0 %v3502_v16 }
  0xbc   :  { %703 = vmatprep.subr.bf16.mxu0 %v3508_v18 }
  0xbd   :  { %2606 = vmatpush3.bf16.msra.mxu1 %v3527_v24 }
  0xbe   :  { %2607 = vmatprep.subr.bf16.mxu1 %v4391_v0 }
  0xbf   :  { %704 = vmatpush1.bf16.msra.mxu0 %v3511_v19 }
  0xc0   :  { %705 = vmatprep.subr.bf16.mxu0 %v3518_v21 }
  0xc1   :  { %2608 = vmatpush3.bf16.msra.mxu1 %v3539_v28  ;;  %v3667_v28 = vld [vmem:[#allocation10] ss:$0 sm:$0xff] }
  0xc2   :  { %2609 = vmatprep.subr.bf16.mxu1 %v4391_v0  ;;  %4445 = vst [vmem:[#allocation33_spill] sm:$0xff] %v3667_v28 }
  0xc3   :  { %706 = vmatpush1.bf16.msra.mxu0 %v3521_v22 }
  0xc4   :  { %795 = vmatprep.subr.bf16.mxu0 %v3530_v25 }
  0xc5   :  { %2610 = vmatpush3.bf16.msra.mxu1 %v3549_v31 }
  0xc6   :  { %2615 = vmatprep.subr.bf16.mxu1 %v4391_v0 }
 0x159   :  { %v356_v56 = vpop.f32.mrb[0].mxu0 }
 0x15a   :  { %v403_v58 = vadd.f32 %v356_v56, %v182_v55  ;;  %v358_v59 = vpop.f32.mrb[1].mxu0 }
 0x15b   :  { %v360_v60 = vpop.f32.mrb[2].mxu0  ;;  %v410_v63 = vadd.f32 %v358_v59, %v183_v57  ;;  %v397_v51 = vpop.f32.mrb[0].mxu1  ;;  %v184_v57 = vunpack.c.l.bf16 %v3669_v54 }
 0x15c   :  { %v2353_v61 = vmul.f32 -1.442695, %v403_v58  ;;  %v361_v62 = vpop.f32.mrb[3].mxu0  ;;  %v2573_v1 = vpop.f32.mrb[1].mxu1  ;;  %v423_v56 = vadd.f32 %v3667_v28, %v397_v51  ;;  %v186_v58 = vld [vmem:[#allocation7 + $0x54] sm:$0xff] }
 0x15d   :  { %v2354_v26 = vmul.f32 -1.442695, %v410_v63  ;;  %v400_v25 = vpop.f32.mrb[2].mxu1 }
 0x15e   :  { %2957 = vpow2.f32 %v2353_v61  ;;  %v2574_v22 = vpop.f32.mrb[3].mxu1  ;;  %v188_v25 = vunpack.c.l.bf16 %v186_v58  ;;  %v189_v61 = vunpack.c.h.bf16 %v186_v58 }
 0x15f   :  { %2959 = vpow2.f32 %v2354_v26 }
 0x168   :  { %v2958_v31 = vpop.eup %2957 }
 0x169   :  { %v407_v21 = vadd.f32 1.0, %v2958_v31  ;;  %v2960_v0 = vpop.eup %2959 }
 0x16a   :  { %v414_v55 = vadd.f32 1.0, %v2960_v0 }
 0x16b   :  { %2961 = vrcp.f32 %v407_v21 }
 0x16c   :  { %2963 = vrcp.f32 %v414_v55 }
 0x175   :  { %v2962_v59 = vpop.eup %2961 }
 0x176   :  { %v424_v1 = vmul.f32 %v2962_v59, %v423_v56  ;;  %v2964_v0 = vpop.eup %2963 }
 0x177   :  { %v427_v54 = vsub.f32 1.0, %v2964_v0  ;;  %v429_v58 = vmul.f32 %v2964_v0, %v3523_v23 }
 0x178   :  { %v425_v22 = vadd.f32 %v424_v1, %v184_v57 }
 0x179   :  { %v594_v60 = vpop.f32.mrb[4].mxu0 }
 0x17a   :  { %2965 = vtanh.f32 %v425_v22  ;;  %v641_v21 = vadd.f32 %v594_v60, %v188_v25  ;;  %v596_v31 = vpop.f32.mrb[5].mxu0 }
 0x17b   :  { %v598_v62 = vpop.f32.mrb[6].mxu0  ;;  %v648_v19 = vadd.f32 %v596_v31, %v189_v61  ;;  %v635_v28 = vpop.f32.mrb[4].mxu1 }
 0x17c   :  { %v2380_v63 = vmul.f32 -1.442695, %v641_v21  ;;  %v599_v26 = vpop.f32.mrb[7].mxu0  ;;  %v2593_v18 = vpop.f32.mrb[5].mxu1 }
 0x17d   :  { %v2381_v51 = vmul.f32 -1.442695, %v648_v19  ;;  %v638_v24 = vpop.f32.mrb[6].mxu1  ;;  %v4447_v18 = vmov 0.0   ;;  %v4448_v19 = vmov 0  }
 0x17e   :  { %2967 = vpow2.f32 %v2380_v63  ;;  %v2594_v56 = vpop.f32.mrb[7].mxu1  ;;  %v3685_v24 = vld [vmem:[#allocation10 + $0x1] ss:$0 sm:$0xff] }
 0x17f   :  { %2969 = vpow2.f32 %v2381_v51  ;;  %v661_v61 = vadd.f32 %v3685_v24, %v635_v28 }
 0x184   :  { %v2966_v55 = vpop.eup %2965 }
 0x185   :  { %v428_v57 = vmul.f32 %v2966_v55, %v427_v54  ;;  %v3689_v54 = vld [vmem:[#allocation7 + $0x50] ss:$12 sps:$4 sm:$0xff]  }
 0x186   :  { %v190_v21 = vunpack.c.h.bf16 %v3689_v54 }
 0x187   :  { %v3674_v59 = vadd.f32 %v429_v58, %v428_v57  ;;  %v4450_v58 = vld [vmem:[#allocation24_spill] sm:$0xff] }
 0x188   :  { %v2968_v1 = vpop.eup %2967 }
 0x189   :  { %v645_v25 = vadd.f32 1.0, %v2968_v1  ;;  %v671_v22 = vpack.c.bf16 %v3674_v59, %v3674_v59  ;;  %v2970_v23 = vpop.eup %2969  ;;  %v4451_v1 = vld [vmem:[#allocation25_spill] sm:$0xff] }
 0x18a   :  { %v652_v60 = vadd.f32 1.0, %v2970_v23  ;;  %v4454_v23 = vld [vmem:[#allocation28_spill] sm:$0xff] }
 0x18b   :  { %2971 = vrcp.f32 %v645_v25  ;;  %672 = vst [vmem:[#allocation13] sm:$0xf] %v671_v22  ;;  %724 = vmatmul.mubr.bf16.vlgmr.msra.gmra.mrb[8].mxu0 %v671_v22  ;;  %2612 = vmatmul.mubr.bf16.vlgmr.msra.gmra.mrb[8].mxu1 %v671_v22  ;;  %v4452_v25 = vld [vmem:[#allocation31_spill] sm:$0xff] }
 0x18c   :  { %796 = vmatpush1.bf16.msra.mxu0 %v3536_v27  ;;  %2616 = vmatpush3.bf16.msra.mxu1 %v3560_v34  ;;  %2973 = vrcp.f32 %v652_v60  ;;  %v4453_v22 = vld [vmem:[#allocation27_spill] sm:$0xff]  ;;  %v4455_v60 = vld [vmem:[#allocation32_spill] sm:$0xff] }
 0x18d   :  { %797 = vmatprep.subr.bf16.mxu0 %v3542_v29  ;;  %2617 = vmatprep.subr.bf16.mxu1 %v4447_v18 }
 0x18e   :  { %827 = vmatprep.mubr.bf16.mxu0 %v4448_v19  ;;  %2631 = vmatprep.mubr.msk.bf16.mxu1 %vm3347_vm0, %v4447_v18 }
 0x190   :  { %798 = vmatpush1.bf16.msra.mxu0 %v3545_v30  ;;  %2618 = vmatpush3.bf16.msra.mxu1 %v3570_v37 }
 0x191   :  { %799 = vmatprep.subr.bf16.mxu0 %v3552_v32  ;;  %2619 = vmatprep.subr.bf16.mxu1 %v4447_v18 }
 0x194   :  { %800 = vmatpush1.bf16.msra.mxu0 %v3557_v33  ;;  %2620 = vmatpush3.bf16.msra.mxu1 %v3582_v40 }
 0x195   :  { %v2972_v31 = vpop.eup %2971  ;;  %801 = vmatprep.subr.bf16.mxu0 %v3563_v35  ;;  %2621 = vmatprep.subr.bf16.mxu1 %v4447_v18 }
 0x196   :  { %v662_v62 = vmul.f32 %v2972_v31, %v661_v61  ;;  %v2974_v28 = vpop.eup %2973  ;;  %v4456_v61 = vld [vmem:[#allocation30_spill] sm:$0xff] }
 0x197   :  { %v665_v26 = vsub.f32 1.0, %v2974_v28  ;;  %v667_v55 = vmul.f32 %v2974_v28, %v3611_v49  ;;  %v4449_v49 = vld [vmem:[#allocation29_spill] sm:$0xff] }
 0x198   :  { %v663_v63 = vadd.f32 %v662_v62, %v190_v21  ;;  %802 = vmatpush1.bf16.msra.mxu0 %v3567_v36  ;;  %2622 = vmatpush3.bf16.msra.mxu1 %v3592_v43  ;;  %v677_v21 = vld [vmem:[#allocation4 + $0xc] sm:$0xff] }
 0x199   :  { %803 = vmatprep.subr.bf16.mxu0 %v3573_v38  ;;  %2623 = vmatprep.subr.bf16.mxu1 %v4447_v18  ;;  %v679_v31 = vunpack.c.l.bf16 %v677_v21  ;;  %v680_v28 = vunpack.c.h.bf16 %v677_v21 }
 0x19a   :  { %2975 = vtanh.f32 %v663_v63 }
 0x19c   :  { %804 = vmatpush1.bf16.msra.mxu0 %v3579_v39  ;;  %2624 = vmatpush3.bf16.msra.mxu1 %v3602_v46 }
 0x19d   :  { %805 = vmatprep.subr.bf16.mxu0 %v3585_v41  ;;  %2625 = vmatprep.subr.bf16.mxu1 %v4447_v18 }
 0x1a0   :  { %806 = vmatpush1.bf16.msra.mxu0 %v3589_v42  ;;  %2626 = vmatpush3.bf16.msra.mxu1 %v3614_v50 }
 0x1a1   :  { %807 = vmatprep.subr.bf16.mxu0 %v3595_v44  ;;  %2627 = vmatprep.subr.bf16.mxu1 %v4447_v18 }
 0x1a4   :  { %v2976_v0 = vpop.eup %2975  ;;  %808 = vmatpush1.bf16.msra.mxu0 %v3599_v45  ;;  %2628 = vmatpush3.bf16.msra.mxu1 %v3622_v52 }
 0x1a5   :  { %809 = vmatprep.subr.bf16.mxu0 %v3605_v47  ;;  %2629 = vmatprep.subr.bf16.mxu1 %v4447_v18  ;;  %v666_v51 = vmul.f32 %v2976_v0, %v665_v26 }
 0x1a7   :  { %v3716_v56 = vadd.f32 %v667_v55, %v666_v51 }
 0x1a8   :  { %810 = vmatpush1.bf16.msra.mxu0 %v3609_v48  ;;  %2630 = vmatpush3.bf16.msra.mxu1 %v3627_v53 }
 0x1a9   :  { %v673_v57 = vpack.c.bf16 %v3716_v56, %v3716_v56  ;;  %921 = vmatprep.subr.bf16.mxu0 %v3460_v2  ;;  %2635 = vmatprep.subr.bf16.mxu1 %v4447_v18 }
 0x1ab   :  { %675 = vst [vmem:[#allocation14 + $0x1c] sm:$0xf] %v673_v57  ;;  %828 = vmatmul.mubr.bf16.vlgmr.msra.gmra.mrb[12].mxu0 %v673_v57  ;;  %2632 = vmatmul.mubr.bf16.vlgmr.msra.gmra.mrb[12].mxu1 %v673_v57 }
 0x1ac   :  { %922 = vmatpush1.bf16.msra.mxu0 %v3462_v3  ;;  %2636 = vmatpush3.bf16.msra.mxu1 %v3479_v9 }
 0x1ad   :  { %923 = vmatprep.subr.bf16.mxu0 %v3465_v4  ;;  %2637 = vmatprep.subr.bf16.mxu1 %v4447_v18 }
 0x1ae   :  { %953 = vmatprep.mubr.bf16.mxu0 %v4448_v19  ;;  %2651 = vmatprep.mubr.msk.bf16.mxu1 %vm3347_vm0, %v4447_v18 }
 0x1b0   :  { %924 = vmatpush1.bf16.msra.mxu0 %v3468_v5  ;;  %2638 = vmatpush3.bf16.msra.mxu1 %v3489_v12 }
 0x1b1   :  { %925 = vmatprep.subr.bf16.mxu0 %v3471_v6  ;;  %2639 = vmatprep.subr.bf16.mxu1 %v4447_v18 }
 0x1b4   :  { %926 = vmatpush1.bf16.msra.mxu0 %v3474_v7  ;;  %2640 = vmatpush3.bf16.msra.mxu1 %v3495_v14 }
 0x1b5   :  { %927 = vmatprep.subr.bf16.mxu0 %v3477_v8  ;;  %2641 = vmatprep.subr.bf16.mxu1 %v4447_v18 }
 0x1b8   :  { %928 = vmatpush1.bf16.msra.mxu0 %v3482_v10  ;;  %2642 = vmatpush3.bf16.msra.mxu1 %v3505_v17 }
 0x1b9   :  { %929 = vmatprep.subr.bf16.mxu0 %v3486_v11  ;;  %2643 = vmatprep.subr.bf16.mxu1 %v4447_v18 }
 0x1bc   :  { %930 = vmatpush1.bf16.msra.mxu0 %v3491_v13  ;;  %2644 = vmatpush3.bf16.msra.mxu1 %v3515_v20  ;;  %v4457_v20 = vld [vmem:[#allocation34_spill] sm:$0xff] }
 0x1bd   :  { %931 = vmatprep.subr.bf16.mxu0 %v3498_v15  ;;  %2645 = vmatprep.subr.bf16.mxu1 %v4447_v18  ;;  %v683_v15 = vld [vmem:[#allocation7 + $0x48] sm:$0xff]  ;;  %v681_v21 = vunpack.c.h.bf16 %v4457_v20 }
 0x1c0   :  { %932 = vmatpush1.bf16.msra.mxu0 %v3502_v16  ;;  %2646 = vmatpush3.bf16.msra.mxu1 %v4449_v49 }
 0x1c1   :  { %933 = vmatprep.subr.bf16.mxu0 %v4450_v58  ;;  %2647 = vmatprep.subr.bf16.mxu1 %v4447_v18 }
 0x1c4   :  { %934 = vmatpush1.bf16.msra.mxu0 %v4451_v1  ;;  %2648 = vmatpush3.bf16.msra.mxu1 %v4452_v25 }
 0x1c5   :  { %935 = vmatprep.subr.bf16.mxu0 %v4453_v22  ;;  %2649 = vmatprep.subr.bf16.mxu1 %v4447_v18 }
 0x1c8   :  { %936 = vmatpush1.bf16.msra.mxu0 %v4454_v23  ;;  %2650 = vmatpush3.bf16.msra.mxu1 %v4455_v60 }
 0x1c9   :  { %1025 = vmatprep.subr.bf16.mxu0 %v4456_v61  ;;  %2655 = vmatprep.subr.bf16.mxu1 %v4447_v18 }
 0x25e   :  { %v725_v62 = vpop.f32.mrb[8].mxu0  ;;  %v766_v63 = vpop.f32.mrb[8].mxu1 }
 0x25f   :  { %v772_v26 = vadd.f32 %v725_v62, %v679_v31  ;;  %v727_v0 = vpop.f32.mrb[9].mxu0  ;;  %v2613_v51 = vpop.f32.mrb[9].mxu1  ;;  %v4458_v31 = vld [vmem:[#allocation33_spill] sm:$0xff] }
 0x260   :  { %v729_v55 = vpop.f32.mrb[10].mxu0  ;;  %v769_v57 = vpop.f32.mrb[10].mxu1  ;;  %v779_v23 = vadd.f32 %v727_v0, %v680_v28  ;;  %v786_v62 = vadd.f32 %v4458_v31, %v766_v63 }
 0x261   :  { %v2383_v22 = vmul.f32 -1.442695, %v772_v26  ;;  %v730_v25 = vpop.f32.mrb[11].mxu0  ;;  %v2614_v1 = vpop.f32.mrb[11].mxu1  ;;  %v685_v26 = vunpack.c.l.bf16 %v683_v15 }
 0x262   :  { %v2384_v60 = vmul.f32 -1.442695, %v779_v23 }
 0x263   :  { %2977 = vpow2.f32 %v2383_v22  ;;  %v686_v22 = vunpack.c.h.bf16 %v683_v15 }
 0x264   :  { %2979 = vpow2.f32 %v2384_v60 }
 0x26d   :  { %v2978_v61 = vpop.eup %2977 }
 0x26e   :  { %v776_v58 = vadd.f32 1.0, %v2978_v61  ;;  %v2980_v49 = vpop.eup %2979 }
 0x26f   :  { %v783_v16 = vadd.f32 1.0, %v2980_v49 }
 0x270   :  { %2981 = vrcp.f32 %v776_v58 }
 0x271   :  { %2983 = vrcp.f32 %v783_v16 }
 0x27a   :  { %v2982_v51 = vpop.eup %2981 }
 0x27b   :  { %v787_v55 = vmul.f32 %v2982_v51, %v786_v62  ;;  %v2984_v63 = vpop.eup %2983 }
 0x27c   :  { %v790_v62 = vsub.f32 1.0, %v2984_v63  ;;  %v792_v51 = vmul.f32 %v2984_v63, %v3674_v59 }
 0x27d   :  { %v788_v25 = vadd.f32 %v787_v55, %v681_v21 }
 0x27e   :  { %v829_v1 = vpop.f32.mrb[12].mxu0  ;;  %v870_v28 = vpop.f32.mrb[12].mxu1 }
 0x27f   :  { %2985 = vtanh.f32 %v788_v25  ;;  %v876_v23 = vadd.f32 %v829_v1, %v685_v26  ;;  %v831_v60 = vpop.f32.mrb[13].mxu0  ;;  %v2633_v61 = vpop.f32.mrb[13].mxu1  ;;  %v890_v1 = vadd.f32 %v3685_v24, %v870_v28 }
 0x280   :  { %v833_v58 = vpop.f32.mrb[14].mxu0  ;;  %v873_v0 = vpop.f32.mrb[14].mxu1  ;;  %v883_v20 = vadd.f32 %v831_v60, %v686_v22 }
 0x281   :  { %v2385_v49 = vmul.f32 -1.442695, %v876_v23  ;;  %v834_v57 = vpop.f32.mrb[15].mxu0  ;;  %v2634_v13 = vpop.f32.mrb[15].mxu1 }
 0x282   :  { %v2386_v31 = vmul.f32 -1.442695, %v883_v20 }
 0x283   :  { %2987 = vpow2.f32 %v2385_v49 }
 0x284   :  { %2989 = vpow2.f32 %v2386_v31  ;;  %v687_v31 = vunpack.c.l.bf16 %v3689_v54 }
 0x289   :  { %v2986_v16 = vpop.eup %2985 }
 0x28a   :  { %v791_v21 = vmul.f32 %v2986_v16, %v790_v62 }
 0x28c   :  { %v3762_v15 = vadd.f32 %v792_v51, %v791_v21 }
 0x28d   :  { %v2988_v55 = vpop.eup %2987 }
 0x28e   :  { %v880_v26 = vadd.f32 1.0, %v2988_v55  ;;  %v900_v25 = vpack.c.bf16 %v3762_v15, %v3762_v15  ;;  %v2990_v13 = vpop.eup %2989 }
 0x28f   :  { %v887_v59 = vadd.f32 1.0, %v2990_v13 }
 0x290   :  { %2991 = vrcp.f32 %v880_v26  ;;  %902 = vst [vmem:[#allocation13 + $0x4] sm:$0xf] %v900_v25  ;;  %954 = vmatmul.mubr.bf16.vlgmr.msra.gmra.mrb[16].mxu0 %v900_v25  ;;  %2652 = vmatmul.mubr.bf16.vlgmr.msra.gmra.mrb[16].mxu1 %v900_v25 }
 0x291   :  { %1026 = vmatpush1.bf16.msra.mxu0 %v3536_v27  ;;  %2656 = vmatpush3.bf16.msra.mxu1 %v3560_v34  ;;  %2993 = vrcp.f32 %v887_v59 }
 0x292   :  { %1027 = vmatprep.subr.bf16.mxu0 %v3542_v29  ;;  %2657 = vmatprep.subr.bf16.mxu1 %v4447_v18 }
 0x293   :  { %1057 = vmatprep.mubr.bf16.mxu0 %v4448_v19  ;;  %2671 = vmatprep.mubr.msk.bf16.mxu1 %vm3347_vm0, %v4447_v18 }
 0x295   :  { %1028 = vmatpush1.bf16.msra.mxu0 %v3545_v30  ;;  %2658 = vmatpush3.bf16.msra.mxu1 %v3570_v37 }
 0x296   :  { %1029 = vmatprep.subr.bf16.mxu0 %v3552_v32  ;;  %2659 = vmatprep.subr.bf16.mxu1 %v4447_v18 }
 0x299   :  { %1030 = vmatpush1.bf16.msra.mxu0 %v3557_v33  ;;  %2660 = vmatpush3.bf16.msra.mxu1 %v3582_v40 }
 0x29a   :  { %v2992_v22 = vpop.eup %2991  ;;  %1031 = vmatprep.subr.bf16.mxu0 %v3563_v35  ;;  %2661 = vmatprep.subr.bf16.mxu1 %v4447_v18 }
 0x29b   :  { %v891_v23 = vmul.f32 %v2992_v22, %v890_v1  ;;  %v2994_v54 = vpop.eup %2993 }
 0x29c   :  { %v894_v28 = vsub.f32 1.0, %v2994_v54  ;;  %v896_v0 = vmul.f32 %v2994_v54, %v3716_v56  ;;  %v3843_v54 = vld [vmem:[#allocation4 + $0x20] ss:$12 sps:$4 sm:$0xff]  }
 0x29d   :  { %v892_v60 = vadd.f32 %v891_v23, %v687_v31  ;;  %1032 = vmatpush1.bf16.msra.mxu0 %v3567_v36  ;;  %2662 = vmatpush3.bf16.msra.mxu1 %v3592_v43 }
 0x29e   :  { %1033 = vmatprep.subr.bf16.mxu0 %v3573_v38  ;;  %2663 = vmatprep.subr.bf16.mxu1 %v4447_v18 }
 0x29f   :  { %2995 = vtanh.f32 %v892_v60 }
 0x2a1   :  { %1034 = vmatpush1.bf16.msra.mxu0 %v3579_v39  ;;  %2664 = vmatpush3.bf16.msra.mxu1 %v3602_v46 }
 0x2a2   :  { %1035 = vmatprep.subr.bf16.mxu0 %v3585_v41  ;;  %2665 = vmatprep.subr.bf16.mxu1 %v4447_v18 }
 0x2a5   :  { %1036 = vmatpush1.bf16.msra.mxu0 %v3589_v42  ;;  %2666 = vmatpush3.bf16.msra.mxu1 %v3614_v50 }
 0x2a6   :  { %1037 = vmatprep.subr.bf16.mxu0 %v3595_v44  ;;  %2667 = vmatprep.subr.bf16.mxu1 %v4447_v18 }
 0x2a9   :  { %v2996_v61 = vpop.eup %2995  ;;  %1038 = vmatpush1.bf16.msra.mxu0 %v3599_v45  ;;  %2668 = vmatpush3.bf16.msra.mxu1 %v3622_v52 }
 0x2aa   :  { %1039 = vmatprep.subr.bf16.mxu0 %v3605_v47  ;;  %2669 = vmatprep.subr.bf16.mxu1 %v4447_v18  ;;  %v895_v58 = vmul.f32 %v2996_v61, %v894_v28  ;;  %v913_v61 = vld [vmem:[#allocation7 + $0x3c] sm:$0xff] }
 0x2ac   :  { %v3800_v49 = vadd.f32 %v896_v0, %v895_v58  ;;  %v911_v58 = vunpack.c.l.bf16 %v3843_v54  ;;  %v4471_v0 = vld [vmem:[#allocation33_spill] sm:$0xff] }
 0x2ad   :  { %1040 = vmatpush1.bf16.msra.mxu0 %v3609_v48  ;;  %2670 = vmatpush3.bf16.msra.mxu1 %v3627_v53 }
 0x2ae   :  { %v903_v57 = vpack.c.bf16 %v3800_v49, %v3800_v49  ;;  %1151 = vmatprep.subr.bf16.mxu0 %v3460_v2  ;;  %2675 = vmatprep.subr.bf16.mxu1 %v4447_v18  ;;  %v4459_v2 = vld [vmem:[#allocation21_spill] sm:$0xff] }
 0x2b0   :  { %905 = vst [vmem:[#allocation14 + $0x18] sm:$0xf] %v903_v57  ;;  %1058 = vmatmul.mubr.bf16.vlgmr.msra.gmra.mrb[20].mxu0 %v903_v57  ;;  %2672 = vmatmul.mubr.bf16.vlgmr.msra.gmra.mrb[20].mxu1 %v903_v57 }
 0x2b1   :  { %1152 = vmatpush1.bf16.msra.mxu0 %v3462_v3  ;;  %2676 = vmatpush3.bf16.msra.mxu1 %v3479_v9  ;;  %v4460_v3 = vld [vmem:[#allocation26_spill] sm:$0xff]  ;;  %v4466_v9 = vld [vmem:[#allocation31_spill] sm:$0xff] }
 0x2b2   :  { %1153 = vmatprep.subr.bf16.mxu0 %v3465_v4  ;;  %2677 = vmatprep.subr.bf16.mxu1 %v4447_v18  ;;  %v4461_v4 = vld [vmem:[#allocation22_spill] sm:$0xff] }
 0x2b3   :  { %1183 = vmatprep.mubr.bf16.mxu0 %v4448_v19  ;;  %2691 = vmatprep.mubr.msk.bf16.mxu1 %vm3347_vm0, %v4447_v18 }
 0x2b5   :  { %1154 = vmatpush1.bf16.msra.mxu0 %v3468_v5  ;;  %2678 = vmatpush3.bf16.msra.mxu1 %v3489_v12  ;;  %v4462_v5 = vld [vmem:[#allocation23_spill] sm:$0xff]  ;;  %v4469_v12 = vld [vmem:[#allocation32_spill] sm:$0xff] }
 0x2b6   :  { %1155 = vmatprep.subr.bf16.mxu0 %v3471_v6  ;;  %2679 = vmatprep.subr.bf16.mxu1 %v4447_v18  ;;  %v4463_v6 = vld [vmem:[#allocation29_spill] sm:$0xff] }
 0x2b9   :  { %1156 = vmatpush1.bf16.msra.mxu0 %v3474_v7  ;;  %2680 = vmatpush3.bf16.msra.mxu1 %v3495_v14  ;;  %v4464_v7 = vld [vmem:[#allocation24_spill] sm:$0xff]  ;;  %v4470_v14 = vld [vmem:[#allocation30_spill] sm:$0xff] }
 0x2ba   :  { %1157 = vmatprep.subr.bf16.mxu0 %v3477_v8  ;;  %2681 = vmatprep.subr.bf16.mxu1 %v4447_v18  ;;  %v4465_v8 = vld [vmem:[#allocation25_spill] sm:$0xff] }
 0x2bd   :  { %1158 = vmatpush1.bf16.msra.mxu0 %v3482_v10  ;;  %2682 = vmatpush3.bf16.msra.mxu1 %v3505_v17  ;;  %v4467_v10 = vld [vmem:[#allocation27_spill] sm:$0xff]  ;;  %v907_v17 = vld [vmem:[#allocation4 + $0x18] sm:$0xff] }
 0x2be   :  { %1159 = vmatprep.subr.bf16.mxu0 %v3486_v11  ;;  %2683 = vmatprep.subr.bf16.mxu1 %v4447_v18  ;;  %v4468_v11 = vld [vmem:[#allocation28_spill] sm:$0xff]  ;;  %v909_v56 = vunpack.c.l.bf16 %v907_v17  ;;  %v910_v62 = vunpack.c.h.bf16 %v907_v17 }
 0x2c1   :  { %1160 = vmatpush1.bf16.msra.mxu0 %v4459_v2  ;;  %2684 = vmatpush3.bf16.msra.mxu1 %v4460_v3 }
 0x2c2   :  { %1161 = vmatprep.subr.bf16.mxu0 %v4461_v4  ;;  %2685 = vmatprep.subr.bf16.mxu1 %v4447_v18  ;;  %v915_v4 = vunpack.c.l.bf16 %v913_v61 }
 0x2c5   :  { %1162 = vmatpush1.bf16.msra.mxu0 %v4462_v5  ;;  %2686 = vmatpush3.bf16.msra.mxu1 %v4463_v6 }
 0x2c6   :  { %1163 = vmatprep.subr.bf16.mxu0 %v4464_v7  ;;  %2687 = vmatprep.subr.bf16.mxu1 %v4447_v18 }
 0x2c9   :  { %1164 = vmatpush1.bf16.msra.mxu0 %v4465_v8  ;;  %2688 = vmatpush3.bf16.msra.mxu1 %v4466_v9  ;;  %v916_v8 = vunpack.c.h.bf16 %v913_v61  ;;  %v3947_v61 = vld [vmem:[#allocation9 + $0x7c] ss:$12 sps:$4 sm:$0xff]  }
 0x2ca   :  { %1165 = vmatprep.subr.bf16.mxu0 %v4467_v10  ;;  %2689 = vmatprep.subr.bf16.mxu1 %v4447_v18  ;;  %4474 = vst [vmem:[#allocation26_spill] sm:$0xff] %v3947_v61 }
 0x2cd   :  { %1166 = vmatpush1.bf16.msra.mxu0 %v4468_v11  ;;  %2690 = vmatpush3.bf16.msra.mxu1 %v4469_v12 }
 0x2ce   :  { %1255 = vmatprep.subr.bf16.mxu0 %v4470_v14  ;;  %2695 = vmatprep.subr.bf16.mxu1 %v4447_v18 }
 0x363   :  { %v955_v20 = vpop.f32.mrb[16].mxu0  ;;  %v996_v63 = vpop.f32.mrb[16].mxu1 }
 0x364   :  { %v1002_v16 = vadd.f32 %v955_v20, %v909_v56  ;;  %v957_v21 = vpop.f32.mrb[17].mxu0  ;;  %v2653_v51 = vpop.f32.mrb[17].mxu1  ;;  %v1016_v57 = vadd.f32 %v4471_v0, %v996_v63 }
 0x365   :  { %v959_v55 = vpop.f32.mrb[18].mxu0  ;;  %v999_v26 = vpop.f32.mrb[18].mxu1  ;;  %v1009_v31 = vadd.f32 %v957_v21, %v910_v62 }
 0x366   :  { %v2387_v25 = vmul.f32 -1.442695, %v1002_v16  ;;  %v960_v13 = vpop.f32.mrb[19].mxu0  ;;  %v2654_v59 = vpop.f32.mrb[19].mxu1 }
 0x367   :  { %v2388_v1 = vmul.f32 -1.442695, %v1009_v31 }
 0x368   :  { %2997 = vpow2.f32 %v2387_v25 }
 0x369   :  { %2999 = vpow2.f32 %v2388_v1  ;;  %v3861_v1 = vld [vmem:[#allocation7 + $0x38] ss:$12 sps:$4 sm:$0xff]  }
 0x372   :  { %v2998_v22 = vpop.eup %2997 }
 0x373   :  { %v1006_v23 = vadd.f32 1.0, %v2998_v22  ;;  %v3000_v60 = vpop.eup %2999 }
 0x374   :  { %v1013_v28 = vadd.f32 1.0, %v3000_v60  ;;  %v3941_v60 = vld [vmem:[#allocation9 + $0x60] ss:$12 sps:$4 sm:$0xff]  }
 0x375   :  { %3001 = vrcp.f32 %v1006_v23  ;;  %v3937_v23 = vld [vmem:[#allocation9 + $0x64] ss:$12 sps:$4 sm:$0xff]   ;;  %4472 = vst [vmem:[#allocation34_spill] sm:$0xff] %v3941_v60 }
 0x376   :  { %3003 = vrcp.f32 %v1013_v28  ;;  %v3944_v28 = vld [vmem:[#allocation9 + $0x68] ss:$12 sps:$4 sm:$0xff]  }
 0x377   :  { %4473 = vst [vmem:[#allocation21_spill] sm:$0xff] %v3944_v28 }
 0x37f   :  { %v3002_v2 = vpop.eup %3001 }
 0x380   :  { %v1017_v3 = vmul.f32 %v3002_v2, %v1016_v57  ;;  %v3004_v63 = vpop.eup %3003  ;;  %v3954_v57 = vld [vmem:[#allocation9 + $0x80] ss:$12 sps:$4 sm:$0xff]  }
 0x381   :  { %v1020_v21 = vsub.f32 1.0, %v3004_v63  ;;  %v1022_v26 = vmul.f32 %v3004_v63, %v3762_v15  ;;  %4476 = vst [vmem:[#allocation23_spill] sm:$0xff] %v3954_v57  ;;  %v3957_v2 = vld [vmem:[#allocation9 + $0x94] ss:$12 sps:$4 sm:$0xff]  }
 0x382   :  { %v1018_v5 = vadd.f32 %v1017_v3, %v911_v58  ;;  %v3951_v58 = vld [vmem:[#allocation9 + $0x78] ss:$12 sps:$4 sm:$0xff]   ;;  %4477 = vst [vmem:[#allocation29_spill] sm:$0xff] %v3957_v2  ;;  %v3961_v3 = vld [vmem:[#allocation9 + $0x90] ss:$12 sps:$4 sm:$0xff]  }
 0x383   :  { %v1059_v6 = vpop.f32.mrb[20].mxu0  ;;  %v1100_v7 = vpop.f32.mrb[20].mxu1  ;;  %4475 = vst [vmem:[#allocation22_spill] sm:$0xff] %v3951_v58  ;;  %4478 = vst [vmem:[#allocation24_spill] sm:$0xff] %v3961_v3 }
 0x384   :  { %3005 = vtanh.f32 %v1018_v5  ;;  %v1106_v9 = vadd.f32 %v1059_v6, %v915_v4  ;;  %v1061_v10 = vpop.f32.mrb[21].mxu0  ;;  %v2673_v11 = vpop.f32.mrb[21].mxu1  ;;  %v3964_v4 = vld [vmem:[#allocation9 + $0x98] ss:$12 sps:$4 sm:$0xff]   ;;  %v3971_v6 = vld [vmem:[#allocation9 + $0xa8] ss:$12 sps:$4 sm:$0xff]  }
 0x385   :  { %v1063_v12 = vpop.f32.mrb[22].mxu0  ;;  %v1103_v14 = vpop.f32.mrb[22].mxu1  ;;  %v1113_v62 = vadd.f32 %v1061_v10, %v916_v8  ;;  %4479 = vst [vmem:[#allocation25_spill] sm:$0xff] %v3964_v4  ;;  %v3967_v5 = vld [vmem:[#allocation9 + $0xac] ss:$12 sps:$4 sm:$0xff]   ;;  %4481 = vst [vmem:[#allocation27_spill] sm:$0xff] %v3971_v6 }
 0x386   :  { %v2389_v17 = vmul.f32 -1.442695, %v1106_v9  ;;  %v1064_v56 = vpop.f32.mrb[23].mxu0  ;;  %v2674_v20 = vpop.f32.mrb[23].mxu1  ;;  %4480 = vst [vmem:[#allocation31_spill] sm:$0xff] %v3967_v5  ;;  %v1137_v9 = vld [vmem:[#allocation4 + $0x24] sm:$0xff] }
 0x387   :  { %v2390_v16 = vmul.f32 -1.442695, %v1113_v62  ;;  %v3977_v8 = vld [vmem:[#allocation9 + $0xc4] ss:$12 sps:$4 sm:$0xff]   ;;  %v1139_v10 = vunpack.c.l.bf16 %v1137_v9  ;;  %v1140_v14 = vunpack.c.h.bf16 %v1137_v9 }
 0x388   :  { %3007 = vpow2.f32 %v2389_v17  ;;  %4483 = vst [vmem:[#allocation32_spill] sm:$0xff] %v3977_v8 }
 0x389   :  { %3009 = vpow2.f32 %v2390_v16 }
 0x38e   :  { %v3006_v51 = vpop.eup %3005 }
 0x38f   :  { %v1021_v55 = vmul.f32 %v3006_v51, %v1020_v21 }
 0x391   :  { %v3848_v25 = vadd.f32 %v1022_v26, %v1021_v55 }
 0x392   :  { %v3008_v13 = vpop.eup %3007 }
 0x393   :  { %v1110_v59 = vadd.f32 1.0, %v3008_v13  ;;  %v1130_v31 = vpack.c.bf16 %v3848_v25, %v3848_v25  ;;  %v3010_v15 = vpop.eup %3009 }
 0x395   :  { %3011 = vrcp.f32 %v1110_v59  ;;  %1132 = vst [vmem:[#allocation13 + $0x8] sm:$0xf] %v1130_v31  ;;  %1184 = vmatmul.mubr.bf16.vlgmr.msra.gmra.mrb[24].mxu0 %v1130_v31  ;;  %2692 = vmatmul.mubr.bf16.vlgmr.msra.gmra.mrb[24].mxu1 %v1130_v31 }
 0x396   :  { %1256 = vmatpush1.bf16.msra.mxu0 %v3536_v27  ;;  %2696 = vmatpush3.bf16.msra.mxu1 %v3560_v34  ;;  %v1117_v27 = vadd.f32 1.0, %v3010_v15  ;;  %v1120_v34 = vadd.f32 %v3685_v24, %v1100_v7  ;;  %v3974_v7 = vld [vmem:[#allocation9 + $0xb0] ss:$12 sps:$4 sm:$0xff]  }
 0x397   :  { %1257 = vmatprep.subr.bf16.mxu0 %v3542_v29  ;;  %2697 = vmatprep.subr.bf16.mxu1 %v4447_v18  ;;  %v917_v29 = vunpack.c.h.bf16 %v3861_v1  ;;  %4482 = vst [vmem:[#allocation28_spill] sm:$0xff] %v3974_v7 }
 0x398   :  { %1287 = vmatprep.mubr.bf16.mxu0 %v4448_v19  ;;  %2711 = vmatprep.mubr.msk.bf16.mxu1 %vm3347_vm0, %v4447_v18  ;;  %3013 = vrcp.f32 %v1117_v27  ;;  %v1143_v27 = vld [vmem:[#allocation7 + $0x30] sm:$0xff] }
 0x39a   :  { %1258 = vmatpush1.bf16.msra.mxu0 %v3545_v30  ;;  %2698 = vmatpush3.bf16.msra.mxu1 %v3570_v37 }
 0x39b   :  { %1259 = vmatprep.subr.bf16.mxu0 %v3552_v32  ;;  %2699 = vmatprep.subr.bf16.mxu1 %v4447_v18 }
 0x39e   :  { %1260 = vmatpush1.bf16.msra.mxu0 %v3557_v33  ;;  %2700 = vmatpush3.bf16.msra.mxu1 %v3582_v40 }
 0x39f   :  { %v3012_v22 = vpop.eup %3011  ;;  %1261 = vmatprep.subr.bf16.mxu0 %v3563_v35  ;;  %2701 = vmatprep.subr.bf16.mxu1 %v4447_v18 }
 0x3a0   :  { %v1121_v30 = vmul.f32 %v3012_v22, %v1120_v34 }
 0x3a2   :  { %v1122_v37 = vadd.f32 %v1121_v30, %v917_v29  ;;  %1262 = vmatpush1.bf16.msra.mxu0 %v3567_v36  ;;  %2702 = vmatpush3.bf16.msra.mxu1 %v3592_v43  ;;  %v3014_v32 = vpop.eup %3013  ;;  %v3901_v43 = vld [vmem:[#allocation9 + $0x8] ss:$12 sps:$4 sm:$0xff]   ;;  %v1141_v29 = vunpack.c.h.bf16 %v3843_v54 }
 0x3a3   :  { %1263 = vmatprep.subr.bf16.mxu0 %v3573_v38  ;;  %2703 = vmatprep.subr.bf16.mxu1 %v4447_v18  ;;  %v1124_v33 = vsub.f32 1.0, %v3014_v32  ;;  %v1126_v38 = vmul.f32 %v3014_v32, %v3800_v49  ;;  %v3934_v49 = vld [vmem:[#allocation9 + $0x50] ss:$12 sps:$4 sm:$0xff]  }
 0x3a4   :  { %3015 = vtanh.f32 %v1122_v37  ;;  %v1145_v37 = vunpack.c.l.bf16 %v1143_v27 }
 0x3a6   :  { %1264 = vmatpush1.bf16.msra.mxu0 %v3579_v39  ;;  %2704 = vmatpush3.bf16.msra.mxu1 %v3602_v46  ;;  %v3914_v46 = vld [vmem:[#allocation9 + $0x20] ss:$12 sps:$4 sm:$0xff]  }
 0x3a7   :  { %1265 = vmatprep.subr.bf16.mxu0 %v3585_v41  ;;  %2705 = vmatprep.subr.bf16.mxu1 %v4447_v18  ;;  %v3894_v41 = vld [vmem:[#allocation9 + $0x4] ss:$12 sps:$4 sm:$0xff]  }
 0x3aa   :  { %1266 = vmatpush1.bf16.msra.mxu0 %v3589_v42  ;;  %2706 = vmatpush3.bf16.msra.mxu1 %v3614_v50  ;;  %v3898_v42 = vld [vmem:[#allocation9] ss:$12 sps:$4 sm:$0xff]   ;;  %v3924_v50 = vld [vmem:[#allocation9 + $0x38] ss:$12 sps:$4 sm:$0xff]  }
 0x3ab   :  { %1267 = vmatprep.subr.bf16.mxu0 %v3595_v44  ;;  %2707 = vmatprep.subr.bf16.mxu1 %v4447_v18  ;;  %v3904_v44 = vld [vmem:[#allocation9 + $0x1c] ss:$12 sps:$4 sm:$0xff]  }
 0x3ae   :  { %v3016_v35 = vpop.eup %3015  ;;  %1268 = vmatpush1.bf16.msra.mxu0 %v3599_v45  ;;  %2708 = vmatpush3.bf16.msra.mxu1 %v3622_v52  ;;  %v3911_v45 = vld [vmem:[#allocation9 + $0x18] ss:$12 sps:$4 sm:$0xff]  }
 0x3af   :  { %1269 = vmatprep.subr.bf16.mxu0 %v3605_v47  ;;  %2709 = vmatprep.subr.bf16.mxu1 %v4447_v18  ;;  %v1125_v36 = vmul.f32 %v3016_v35, %v1124_v33  ;;  %v3917_v47 = vld [vmem:[#allocation9 + $0x34] ss:$12 sps:$4 sm:$0xff]   ;;  %v3927_v52 = vld [vmem:[#allocation9 + $0x4c] ss:$12 sps:$4 sm:$0xff]  }
 0x3b1   :  { %v3888_v39 = vadd.f32 %v1126_v38, %v1125_v36  ;;  %v1146_v36 = vunpack.c.h.bf16 %v1143_v27  ;;  %v4004_v27 = vld [vmem:[#allocation9 + $0xe0] ss:$12 sps:$4 sm:$0xff]  }
 0x3b2   :  { %1270 = vmatpush1.bf16.msra.mxu0 %v3609_v48  ;;  %2710 = vmatpush3.bf16.msra.mxu1 %v3627_v53  ;;  %v3921_v48 = vld [vmem:[#allocation9 + $0x30] ss:$12 sps:$4 sm:$0xff]   ;;  %v3931_v53 = vld [vmem:[#allocation9 + $0x48] ss:$12 sps:$4 sm:$0xff]  }
 0x3b3   :  { %v1133_v40 = vpack.c.bf16 %v3888_v39, %v3888_v39  ;;  %1381 = vmatprep.subr.bf16.mxu0 %v3894_v41  ;;  %2715 = vmatprep.subr.bf16.mxu1 %v4447_v18 }
 0x3b5   :  { %1135 = vst [vmem:[#allocation14 + $0x14] sm:$0xf] %v1133_v40  ;;  %1288 = vmatmul.mubr.bf16.vlgmr.msra.gmra.mrb[28].mxu0 %v1133_v40  ;;  %2712 = vmatmul.mubr.bf16.vlgmr.msra.gmra.mrb[28].mxu1 %v1133_v40 }
 0x3b6   :  { %1382 = vmatpush1.bf16.msra.mxu0 %v3898_v42  ;;  %2716 = vmatpush3.bf16.msra.mxu1 %v3901_v43 }
 0x3b7   :  { %1383 = vmatprep.subr.bf16.mxu0 %v3904_v44  ;;  %2717 = vmatprep.subr.bf16.mxu1 %v4447_v18 }
 0x3b8   :  { %1413 = vmatprep.mubr.bf16.mxu0 %v4448_v19  ;;  %2731 = vmatprep.mubr.msk.bf16.mxu1 %vm3347_vm0, %v4447_v18 }
 0x3ba   :  { %1384 = vmatpush1.bf16.msra.mxu0 %v3911_v45  ;;  %2718 = vmatpush3.bf16.msra.mxu1 %v3914_v46 }
 0x3bb   :  { %1385 = vmatprep.subr.bf16.mxu0 %v3917_v47  ;;  %2719 = vmatprep.subr.bf16.mxu1 %v4447_v18 }
 0x3be   :  { %1386 = vmatpush1.bf16.msra.mxu0 %v3921_v48  ;;  %2720 = vmatpush3.bf16.msra.mxu1 %v3924_v50 }
 0x3bf   :  { %1387 = vmatprep.subr.bf16.mxu0 %v3927_v52  ;;  %2721 = vmatprep.subr.bf16.mxu1 %v4447_v18 }
 0x3c2   :  { %1388 = vmatpush1.bf16.msra.mxu0 %v3931_v53  ;;  %2722 = vmatpush3.bf16.msra.mxu1 %v3934_v49 }
 0x3c3   :  { %1389 = vmatprep.subr.bf16.mxu0 %v3937_v23  ;;  %2723 = vmatprep.subr.bf16.mxu1 %v4447_v18 }
 0x3c6   :  { %1390 = vmatpush1.bf16.msra.mxu0 %v3941_v60  ;;  %2724 = vmatpush3.bf16.msra.mxu1 %v3944_v28 }
 0x3c7   :  { %1391 = vmatprep.subr.bf16.mxu0 %v3947_v61  ;;  %2725 = vmatprep.subr.bf16.mxu1 %v4447_v18 }
 0x3ca   :  { %1392 = vmatpush1.bf16.msra.mxu0 %v3951_v58  ;;  %2726 = vmatpush3.bf16.msra.mxu1 %v3954_v57 }
 0x3cb   :  { %1393 = vmatprep.subr.bf16.mxu0 %v3957_v2  ;;  %2727 = vmatprep.subr.bf16.mxu1 %v4447_v18 }
 0x3ce   :  { %1394 = vmatpush1.bf16.msra.mxu0 %v3961_v3  ;;  %2728 = vmatpush3.bf16.msra.mxu1 %v3964_v4 }
 0x3cf   :  { %1395 = vmatprep.subr.bf16.mxu0 %v3967_v5  ;;  %2729 = vmatprep.subr.bf16.mxu1 %v4447_v18 }
 0x3d2   :  { %1396 = vmatpush1.bf16.msra.mxu0 %v3971_v6  ;;  %2730 = vmatpush3.bf16.msra.mxu1 %v3974_v7 }
 0x3d3   :  { %1485 = vmatprep.subr.bf16.mxu0 %v3977_v8  ;;  %2735 = vmatprep.subr.bf16.mxu1 %v4447_v18 }
 0x468   :  { %v1185_v11 = vpop.f32.mrb[24].mxu0  ;;  %v1226_v12 = vpop.f32.mrb[24].mxu1 }
 0x469   :  { %v1232_v17 = vadd.f32 %v1185_v11, %v1139_v10  ;;  %v1187_v56 = vpop.f32.mrb[25].mxu0  ;;  %v2693_v20 = vpop.f32.mrb[25].mxu1  ;;  %v1246_v34 = vadd.f32 %v4471_v0, %v1226_v12 }
 0x46a   :  { %v1189_v62 = vpop.f32.mrb[26].mxu0  ;;  %v1229_v63 = vpop.f32.mrb[26].mxu1  ;;  %v1239_v55 = vadd.f32 %v1187_v56, %v1140_v14 }
 0x46b   :  { %v2391_v16 = vmul.f32 -1.442695, %v1232_v17  ;;  %v1190_v21 = vpop.f32.mrb[27].mxu0  ;;  %v2694_v51 = vpop.f32.mrb[27].mxu1 }
 0x46c   :  { %v2392_v26 = vmul.f32 -1.442695, %v1239_v55 }
 0x46d   :  { %3017 = vpow2.f32 %v2391_v16 }
 0x46e   :  { %3019 = vpow2.f32 %v2392_v26 }
 0x477   :  { %v3018_v13 = vpop.eup %3017 }
 0x478   :  { %v1236_v59 = vadd.f32 1.0, %v3018_v13  ;;  %v3020_v31 = vpop.eup %3019  ;;  %v3988_v13 = vld [vmem:[#allocation9 + $0xc0] ss:$12 sps:$4 sm:$0xff]  }
 0x479   :  { %v1243_v15 = vadd.f32 1.0, %v3020_v31 }
 0x47a   :  { %3021 = vrcp.f32 %v1236_v59  ;;  %v3991_v59 = vld [vmem:[#allocation9 + $0xc8] ss:$12 sps:$4 sm:$0xff]  }
 0x47b   :  { %3023 = vrcp.f32 %v1243_v15  ;;  %v4001_v15 = vld [vmem:[#allocation9 + $0xd8] ss:$12 sps:$4 sm:$0xff]  }
 0x484   :  { %v3022_v22 = vpop.eup %3021 }
 0x485   :  { %v1247_v30 = vmul.f32 %v3022_v22, %v1246_v34  ;;  %v3024_v0 = vpop.eup %3023  ;;  %v1147_v22 = vunpack.c.l.bf16 %v3861_v1 }
 0x486   :  { %v1250_v20 = vsub.f32 1.0, %v3024_v0  ;;  %v1252_v16 = vmul.f32 %v3024_v0, %v3848_v25  ;;  %v3994_v25 = vld [vmem:[#allocation9 + $0xdc] ss:$12 sps:$4 sm:$0xff]  }
 0x487   :  { %v1248_v32 = vadd.f32 %v1247_v30, %v1141_v29  ;;  %v4007_v29 = vld [vmem:[#allocation9 + $0xf4] ss:$12 sps:$4 sm:$0xff]  }
 0x488   :  { %v1289_v33 = vpop.f32.mrb[28].mxu0  ;;  %v1330_v35 = vpop.f32.mrb[28].mxu1 }
 0x489   :  { %3025 = vtanh.f32 %v1248_v32  ;;  %v1336_v38 = vadd.f32 %v1289_v33, %v1145_v37  ;;  %v1291_v40 = vpop.f32.mrb[29].mxu0  ;;  %v2713_v9 = vpop.f32.mrb[29].mxu1  ;;  %v1350_v30 = vadd.f32 %v3685_v24, %v1330_v35  ;;  %v4013_v37 = vld [vmem:[#allocation9 + $0xf0] ss:$12 sps:$4 sm:$0xff]   ;;  %v4016_v32 = vld [vmem:[#allocation9 + $0xf8] ss:$12 sps:$4 sm:$0xff]  }
 0x48a   :  { %v1293_v10 = vpop.f32.mrb[30].mxu0  ;;  %v1333_v11 = vpop.f32.mrb[30].mxu1  ;;  %v1343_v54 = vadd.f32 %v1291_v40, %v1146_v36  ;;  %v4019_v36 = vld [vmem:[#allocation9 + $0x10c] ss:$12 sps:$4 sm:$0xff]   ;;  %v4023_v40 = vld [vmem:[#allocation9 + $0x108] ss:$12 sps:$4 sm:$0xff]  }
 0x48b   :  { %v2393_v14 = vmul.f32 -1.442695, %v1336_v38  ;;  %v1294_v17 = vpop.f32.mrb[31].mxu0  ;;  %v2714_v56 = vpop.f32.mrb[31].mxu1  ;;  %v4026_v24 = vld [vmem:[#allocation9 + $0x110] ss:$12 sps:$4 sm:$0xff]  }
 0x48c   :  { %v2394_v12 = vmul.f32 -1.442695, %v1343_v54  ;;  %v4029_v35 = vld [vmem:[#allocation9 + $0x124] ss:$12 sps:$4 sm:$0xff]   ;;  %v4033_v9 = vld [vmem:[#allocation9 + $0x120] ss:$12 sps:$4 sm:$0xff]  }
 0x48d   :  { %3027 = vpow2.f32 %v2393_v14  ;;  %v4036_v10 = vld [vmem:[#allocation9 + $0x128] ss:$12 sps:$4 sm:$0xff]   ;;  %v4043_v17 = vld [vmem:[#allocation9 + $0x138] ss:$12 sps:$4 sm:$0xff]   ;;  %v4046_v56 = vld [vmem:[#allocation9 + $0x140] ss:$12 sps:$4 sm:$0xff]  }
 0x48e   :  { %3029 = vpow2.f32 %v2394_v12  ;;  %v4039_v11 = vld [vmem:[#allocation9 + $0x13c] ss:$12 sps:$4 sm:$0xff]   ;;  %v4049_v54 = vld [vmem:[#allocation9 + $0x154] ss:$12 sps:$4 sm:$0xff]  }
 0x493   :  { %v3026_v62 = vpop.eup %3025 }
 0x494   :  { %v1251_v63 = vmul.f32 %v3026_v62, %v1250_v20  ;;  %v4053_v20 = vld [vmem:[#allocation9 + $0x150] ss:$12 sps:$4 sm:$0xff]   ;;  %v4056_v62 = vld [vmem:[#allocation9 + $0x158] ss:$12 sps:$4 sm:$0xff]  }
 0x496   :  { %v3984_v21 = vadd.f32 %v1252_v16, %v1251_v63  ;;  %v4059_v63 = vld [vmem:[#allocation9 + $0x16c] ss:$12 sps:$4 sm:$0xff]  }
 0x497   :  { %v3028_v51 = vpop.eup %3027 }
 0x498   :  { %v1340_v55 = vadd.f32 1.0, %v3028_v51  ;;  %v1360_v26 = vpack.c.bf16 %v3984_v21, %v3984_v21  ;;  %v3030_v31 = vpop.eup %3029 }
 0x499   :  { %v1347_v34 = vadd.f32 1.0, %v3030_v31  ;;  %v4069_v31 = vld [vmem:[#allocation9 + $0x170] ss:$12 sps:$4 sm:$0xff]  }
 0x49a   :  { %3031 = vrcp.f32 %v1340_v55  ;;  %1362 = vst [vmem:[#allocation13 + $0xc] sm:$0xf] %v1360_v26  ;;  %1414 = vmatmul.mubr.bf16.vlgmr.msra.gmra.mrb[32].mxu0 %v1360_v26  ;;  %2732 = vmatmul.mubr.bf16.vlgmr.msra.gmra.mrb[32].mxu1 %v1360_v26  ;;  %v4066_v26 = vld [vmem:[#allocation9 + $0x168] ss:$12 sps:$4 sm:$0xff]  }
 0x49b   :  { %1486 = vmatpush1.bf16.msra.mxu0 %v3988_v13  ;;  %2736 = vmatpush3.bf16.msra.mxu1 %v3991_v59  ;;  %3033 = vrcp.f32 %v1347_v34 }
 0x49c   :  { %1487 = vmatprep.subr.bf16.mxu0 %v3994_v25  ;;  %2737 = vmatprep.subr.bf16.mxu1 %v4447_v18 }
 0x49d   :  { %1517 = vmatprep.mubr.bf16.mxu0 %v4448_v19  ;;  %2751 = vmatprep.mubr.msk.bf16.mxu1 %vm3347_vm0, %v4447_v18 }
 0x49f   :  { %1488 = vmatpush1.bf16.msra.mxu0 %v4001_v15  ;;  %2738 = vmatpush3.bf16.msra.mxu1 %v4004_v27 }
 0x4a0   :  { %1489 = vmatprep.subr.bf16.mxu0 %v4007_v29  ;;  %2739 = vmatprep.subr.bf16.mxu1 %v4447_v18 }
 0x4a3   :  { %1490 = vmatpush1.bf16.msra.mxu0 %v4013_v37  ;;  %2740 = vmatpush3.bf16.msra.mxu1 %v4016_v32 }
 0x4a4   :  { %v3032_v33 = vpop.eup %3031  ;;  %1491 = vmatprep.subr.bf16.mxu0 %v4019_v36  ;;  %2741 = vmatprep.subr.bf16.mxu1 %v4447_v18 }
 0x4a5   :  { %v1351_v38 = vmul.f32 %v3032_v33, %v1350_v30  ;;  %v3034_v14 = vpop.eup %3033 }
 0x4a6   :  { %v1354_v0 = vsub.f32 1.0, %v3034_v14  ;;  %v1356_v51 = vmul.f32 %v3034_v14, %v3888_v39  ;;  %v1367_v39 = vld [vmem:[#allocation4 + $0x30] sm:$0xff] }
 0x4a7   :  { %v1352_v1 = vadd.f32 %v1351_v38, %v1147_v22  ;;  %1492 = vmatpush1.bf16.msra.mxu0 %v4023_v40  ;;  %2742 = vmatpush3.bf16.msra.mxu1 %v4026_v24  ;;  %v1369_v22 = vunpack.c.l.bf16 %v1367_v39  ;;  %v1370_v38 = vunpack.c.h.bf16 %v1367_v39  ;;  %v1373_v39 = vld [vmem:[#allocation7 + $0x24] sm:$0xff] }
 0x4a8   :  { %1493 = vmatprep.subr.bf16.mxu0 %v4029_v35  ;;  %2743 = vmatprep.subr.bf16.mxu1 %v4447_v18 }
 0x4a9   :  { %3035 = vtanh.f32 %v1352_v1 }
 0x4ab   :  { %1494 = vmatpush1.bf16.msra.mxu0 %v4033_v9  ;;  %2744 = vmatpush3.bf16.msra.mxu1 %v4036_v10 }
 0x4ac   :  { %1495 = vmatprep.subr.bf16.mxu0 %v4039_v11  ;;  %2745 = vmatprep.subr.bf16.mxu1 %v4447_v18 }
 0x4af   :  { %1496 = vmatpush1.bf16.msra.mxu0 %v4043_v17  ;;  %2746 = vmatpush3.bf16.msra.mxu1 %v4046_v56 }
 0x4b0   :  { %1497 = vmatprep.subr.bf16.mxu0 %v4049_v54  ;;  %2747 = vmatprep.subr.bf16.mxu1 %v4447_v18 }
 0x4b3   :  { %v3036_v12 = vpop.eup %3035  ;;  %1498 = vmatpush1.bf16.msra.mxu0 %v4053_v20  ;;  %2748 = vmatpush3.bf16.msra.mxu1 %v4056_v62 }
 0x4b4   :  { %1499 = vmatprep.subr.bf16.mxu0 %v4059_v63  ;;  %2749 = vmatprep.subr.bf16.mxu1 %v4447_v18  ;;  %v1355_v16 = vmul.f32 %v3036_v12, %v1354_v0 }
 0x4b6   :  { %v4064_v55 = vadd.f32 %v1356_v51, %v1355_v16 }
 0x4b7   :  { %1500 = vmatpush1.bf16.msra.mxu0 %v4066_v26  ;;  %2750 = vmatpush3.bf16.msra.mxu1 %v4069_v31 }
 0x4b8   :  { %v1363_v34 = vpack.c.bf16 %v4064_v55, %v4064_v55  ;;  %1611 = vmatprep.subr.bf16.mxu0 %v3894_v41  ;;  %2755 = vmatprep.subr.bf16.mxu1 %v4447_v18 }
 0x4ba   :  { %1365 = vst [vmem:[#allocation14 + $0x10] sm:$0xf] %v1363_v34  ;;  %1518 = vmatmul.mubr.bf16.vlgmr.msra.gmra.mrb[36].mxu0 %v1363_v34  ;;  %2752 = vmatmul.mubr.bf16.vlgmr.msra.gmra.mrb[36].mxu1 %v1363_v34 }
 0x4bb   :  { %1612 = vmatpush1.bf16.msra.mxu0 %v3898_v42  ;;  %2756 = vmatpush3.bf16.msra.mxu1 %v3901_v43 }
 0x4bc   :  { %1613 = vmatprep.subr.bf16.mxu0 %v3904_v44  ;;  %2757 = vmatprep.subr.bf16.mxu1 %v4447_v18 }
 0x4bd   :  { %1643 = vmatprep.mubr.bf16.mxu0 %v4448_v19  ;;  %2771 = vmatprep.mubr.msk.bf16.mxu1 %vm3347_vm0, %v4447_v18 }
 0x4bf   :  { %1614 = vmatpush1.bf16.msra.mxu0 %v3911_v45  ;;  %2758 = vmatpush3.bf16.msra.mxu1 %v3914_v46 }
 0x4c0   :  { %1615 = vmatprep.subr.bf16.mxu0 %v3917_v47  ;;  %2759 = vmatprep.subr.bf16.mxu1 %v4447_v18 }
 0x4c3   :  { %1616 = vmatpush1.bf16.msra.mxu0 %v3921_v48  ;;  %2760 = vmatpush3.bf16.msra.mxu1 %v3924_v50 }
 0x4c4   :  { %1617 = vmatprep.subr.bf16.mxu0 %v3927_v52  ;;  %2761 = vmatprep.subr.bf16.mxu1 %v4447_v18 }
 0x4c7   :  { %1618 = vmatpush1.bf16.msra.mxu0 %v3931_v53  ;;  %2762 = vmatpush3.bf16.msra.mxu1 %v3934_v49 }
 0x4c8   :  { %1619 = vmatprep.subr.bf16.mxu0 %v3937_v23  ;;  %2763 = vmatprep.subr.bf16.mxu1 %v4447_v18 }
 0x4cb   :  { %1620 = vmatpush1.bf16.msra.mxu0 %v3941_v60  ;;  %2764 = vmatpush3.bf16.msra.mxu1 %v3944_v28 }
 0x4cc   :  { %1621 = vmatprep.subr.bf16.mxu0 %v3947_v61  ;;  %2765 = vmatprep.subr.bf16.mxu1 %v4447_v18 }
 0x4cf   :  { %1622 = vmatpush1.bf16.msra.mxu0 %v3951_v58  ;;  %2766 = vmatpush3.bf16.msra.mxu1 %v3954_v57 }
 0x4d0   :  { %1623 = vmatprep.subr.bf16.mxu0 %v3957_v2  ;;  %2767 = vmatprep.subr.bf16.mxu1 %v4447_v18  ;;  %v4111_v2 = vld [vmem:[#allocation4 + $0x38] ss:$12 sps:$4 sm:$0xff]  }
 0x4d1   :  { %4484 = vst [vmem:[#allocation30_spill] sm:$0xff] %v4111_v2 }
 0x4d3   :  { %1624 = vmatpush1.bf16.msra.mxu0 %v3961_v3  ;;  %2768 = vmatpush3.bf16.msra.mxu1 %v3964_v4 }
 0x4d4   :  { %1625 = vmatprep.subr.bf16.mxu0 %v3967_v5  ;;  %2769 = vmatprep.subr.bf16.mxu1 %v4447_v18 }
 0x4d7   :  { %1626 = vmatpush1.bf16.msra.mxu0 %v3971_v6  ;;  %2770 = vmatpush3.bf16.msra.mxu1 %v3974_v7 }
 0x4d8   :  { %1715 = vmatprep.subr.bf16.mxu0 %v3977_v8  ;;  %2775 = vmatprep.subr.bf16.mxu1 %v4447_v18 }
 0x56d   :  { %v1415_v30 = vpop.f32.mrb[32].mxu0  ;;  %v1456_v33 = vpop.f32.mrb[32].mxu1 }
 0x56e   :  { %v1462_v1 = vadd.f32 %v1415_v30, %v1369_v22  ;;  %v1417_v14 = vpop.f32.mrb[33].mxu0  ;;  %v2733_v0 = vpop.f32.mrb[33].mxu1  ;;  %v1371_v22 = vunpack.c.l.bf16 %v4111_v2  ;;  %v4114_v30 = vld [vmem:[#allocation10] ss:$0 sm:$0xff] }
 0x56f   :  { %v1419_v12 = vpop.f32.mrb[34].mxu0  ;;  %v1459_v16 = vpop.f32.mrb[34].mxu1  ;;  %v1469_v6 = vadd.f32 %v1417_v14, %v1370_v38  ;;  %4485 = vst [vmem:[#allocation33_spill] sm:$0xff] %v4114_v30  ;;  %v1375_v38 = vunpack.c.l.bf16 %v1373_v39 }
 0x570   :  { %v2395_v51 = vmul.f32 -1.442695, %v1462_v1  ;;  %v1420_v34 = vpop.f32.mrb[35].mxu0  ;;  %v2734_v5 = vpop.f32.mrb[35].mxu1  ;;  %v1476_v1 = vadd.f32 %v4114_v30, %v1456_v33 }
 0x571   :  { %v2396_v7 = vmul.f32 -1.442695, %v1469_v6 }
 0x572   :  { %3037 = vpow2.f32 %v2395_v51 }
 0x573   :  { %3039 = vpow2.f32 %v2396_v7 }
 0x57c   :  { %v3038_v8 = vpop.eup %3037 }
 0x57d   :  { %v1466_v4 = vadd.f32 1.0, %v3038_v8  ;;  %v3040_v3 = vpop.eup %3039  ;;  %v1376_v8 = vunpack.c.h.bf16 %v1373_v39 }
 0x57e   :  { %v1473_v57 = vadd.f32 1.0, %v3040_v3 }
 0x57f   :  { %3041 = vrcp.f32 %v1466_v4 }
 0x580   :  { %3043 = vrcp.f32 %v1473_v57 }
 0x589   :  { %v3042_v0 = vpop.eup %3041 }
 0x58a   :  { %v1477_v5 = vmul.f32 %v3042_v0, %v1476_v1  ;;  %v3044_v33 = vpop.eup %3043 }
 0x58b   :  { %v1480_v1 = vsub.f32 1.0, %v3044_v33  ;;  %v1482_v0 = vmul.f32 %v3044_v33, %v3984_v21 }
 0x58c   :  { %v1478_v6 = vadd.f32 %v1477_v5, %v1371_v22 }
 0x58d   :  { %v1519_v7 = vpop.f32.mrb[36].mxu0  ;;  %v1560_v14 = vpop.f32.mrb[36].mxu1 }
 0x58e   :  { %3045 = vtanh.f32 %v1478_v6  ;;  %v1566_v4 = vadd.f32 %v1519_v7, %v1375_v38  ;;  %v1521_v12 = vpop.f32.mrb[37].mxu0  ;;  %v2753_v16 = vpop.f32.mrb[37].mxu1 }
 0x58f   :  { %v1523_v3 = vpop.f32.mrb[38].mxu0  ;;  %v1563_v51 = vpop.f32.mrb[38].mxu1  ;;  %v1573_v61 = vadd.f32 %v1521_v12, %v1376_v8 }
 0x590   :  { %v2397_v34 = vmul.f32 -1.442695, %v1566_v4  ;;  %v1524_v2 = vpop.f32.mrb[39].mxu0  ;;  %v2754_v58 = vpop.f32.mrb[39].mxu1 }
 0x591   :  { %v2398_v30 = vmul.f32 -1.442695, %v1573_v61  ;;  %v4131_v58 = vld [vmem:[#allocation7 + $0x20] ss:$12 sps:$4 sm:$0xff]  }
 0x592   :  { %3047 = vpow2.f32 %v2397_v34  ;;  %v1377_v21 = vunpack.c.h.bf16 %v4131_v58 }
 0x593   :  { %3049 = vpow2.f32 %v2398_v30  ;;  %v4136_v30 = vld [vmem:[#allocation10 + $0x1] ss:$0 sm:$0xff] }
 0x594   :  { %v1580_v7 = vadd.f32 %v4136_v30, %v1560_v14 }
 0x598   :  { %v3046_v57 = vpop.eup %3045 }
 0x599   :  { %v1481_v22 = vmul.f32 %v3046_v57, %v1480_v1  ;;  %v4487_v57 = vld [vmem:[#allocation22_spill] sm:$0xff] }
 0x59b   :  { %v4118_v39 = vadd.f32 %v1482_v0, %v1481_v22  ;;  %v4488_v22 = vld [vmem:[#allocation23_spill] sm:$0xff]  ;;  %v4489_v0 = vld [vmem:[#allocation29_spill] sm:$0xff] }
 0x59c   :  { %v3048_v5 = vpop.eup %3047 }
 0x59d   :  { %v1570_v38 = vadd.f32 1.0, %v3048_v5  ;;  %v1590_v6 = vpack.c.bf16 %v4118_v39, %v4118_v39  ;;  %v3050_v61 = vpop.eup %3049  ;;  %v4490_v5 = vld [vmem:[#allocation24_spill] sm:$0xff] }
 0x59e   :  { %v1577_v2 = vadd.f32 1.0, %v3050_v61  ;;  %v4493_v61 = vld [vmem:[#allocation27_spill] sm:$0xff] }
 0x59f   :  { %3051 = vrcp.f32 %v1570_v38  ;;  %1592 = vst [vmem:[#allocation13 + $0x10] sm:$0xf] %v1590_v6  ;;  %1644 = vmatmul.mubr.bf16.vlgmr.msra.gmra.mrb[40].mxu0 %v1590_v6  ;;  %2772 = vmatmul.mubr.bf16.vlgmr.msra.gmra.mrb[40].mxu1 %v1590_v6  ;;  %v4491_v38 = vld [vmem:[#allocation25_spill] sm:$0xff]  ;;  %v4492_v6 = vld [vmem:[#allocation31_spill] sm:$0xff] }
 0x5a0   :  { %1716 = vmatpush1.bf16.msra.mxu0 %v3988_v13  ;;  %2776 = vmatpush3.bf16.msra.mxu1 %v3991_v59  ;;  %3053 = vrcp.f32 %v1577_v2  ;;  %v4494_v2 = vld [vmem:[#allocation28_spill] sm:$0xff] }
 0x5a1   :  { %1717 = vmatprep.subr.bf16.mxu0 %v3994_v25  ;;  %2777 = vmatprep.subr.bf16.mxu1 %v4447_v18 }
 0x5a2   :  { %1747 = vmatprep.mubr.bf16.mxu0 %v4448_v19  ;;  %2791 = vmatprep.mubr.msk.bf16.mxu1 %vm3347_vm0, %v4447_v18 }
 0x5a4   :  { %1718 = vmatpush1.bf16.msra.mxu0 %v4001_v15  ;;  %2778 = vmatpush3.bf16.msra.mxu1 %v4004_v27 }
 0x5a5   :  { %1719 = vmatprep.subr.bf16.mxu0 %v4007_v29  ;;  %2779 = vmatprep.subr.bf16.mxu1 %v4447_v18 }
 0x5a8   :  { %1720 = vmatpush1.bf16.msra.mxu0 %v4013_v37  ;;  %2780 = vmatpush3.bf16.msra.mxu1 %v4016_v32 }
 0x5a9   :  { %v3052_v8 = vpop.eup %3051  ;;  %1721 = vmatprep.subr.bf16.mxu0 %v4019_v36  ;;  %2781 = vmatprep.subr.bf16.mxu1 %v4447_v18 }
 0x5aa   :  { %v1581_v4 = vmul.f32 %v3052_v8, %v1580_v7  ;;  %v3054_v14 = vpop.eup %3053  ;;  %v1597_v7 = vld [vmem:[#allocation4 + $0x3c] sm:$0xff] }
 0x5ab   :  { %v1584_v16 = vsub.f32 1.0, %v3054_v14  ;;  %v1586_v34 = vmul.f32 %v3054_v14, %v4064_v55  ;;  %v4486_v55 = vld [vmem:[#allocation26_spill] sm:$0xff]  ;;  %v1599_v8 = vunpack.c.l.bf16 %v1597_v7  ;;  %v1600_v14 = vunpack.c.h.bf16 %v1597_v7 }
 0x5ac   :  { %v1582_v12 = vadd.f32 %v1581_v4, %v1377_v21  ;;  %1722 = vmatpush1.bf16.msra.mxu0 %v4023_v40  ;;  %2782 = vmatpush3.bf16.msra.mxu1 %v4026_v24  ;;  %v4495_v21 = vld [vmem:[#allocation32_spill] sm:$0xff] }
 0x5ad   :  { %1723 = vmatprep.subr.bf16.mxu0 %v4029_v35  ;;  %2783 = vmatprep.subr.bf16.mxu1 %v4447_v18 }
 0x5ae   :  { %3055 = vtanh.f32 %v1582_v12 }
 0x5b0   :  { %1724 = vmatpush1.bf16.msra.mxu0 %v4033_v9  ;;  %2784 = vmatpush3.bf16.msra.mxu1 %v4036_v10 }
 0x5b1   :  { %1725 = vmatprep.subr.bf16.mxu0 %v4039_v11  ;;  %2785 = vmatprep.subr.bf16.mxu1 %v4447_v18 }
 0x5b4   :  { %1726 = vmatpush1.bf16.msra.mxu0 %v4043_v17  ;;  %2786 = vmatpush3.bf16.msra.mxu1 %v4046_v56 }
 0x5b5   :  { %1727 = vmatprep.subr.bf16.mxu0 %v4049_v54  ;;  %2787 = vmatprep.subr.bf16.mxu1 %v4447_v18 }
 0x5b8   :  { %v3056_v3 = vpop.eup %3055  ;;  %1728 = vmatpush1.bf16.msra.mxu0 %v4053_v20  ;;  %2788 = vmatpush3.bf16.msra.mxu1 %v4056_v62 }
 0x5b9   :  { %1729 = vmatprep.subr.bf16.mxu0 %v4059_v63  ;;  %2789 = vmatprep.subr.bf16.mxu1 %v4447_v18  ;;  %v1585_v51 = vmul.f32 %v3056_v3, %v1584_v16 }
 0x5bb   :  { %v4160_v33 = vadd.f32 %v1586_v34, %v1585_v51 }
 0x5bc   :  { %1730 = vmatpush1.bf16.msra.mxu0 %v4066_v26  ;;  %2790 = vmatpush3.bf16.msra.mxu1 %v4069_v31 }
 0x5bd   :  { %v1593_v1 = vpack.c.bf16 %v4160_v33, %v4160_v33  ;;  %1841 = vmatprep.subr.bf16.mxu0 %v3894_v41  ;;  %2795 = vmatprep.subr.bf16.mxu1 %v4447_v18 }
 0x5bf   :  { %1595 = vst [vmem:[#allocation14 + $0xc] sm:$0xf] %v1593_v1  ;;  %1748 = vmatmul.mubr.bf16.vlgmr.msra.gmra.mrb[44].mxu0 %v1593_v1  ;;  %2792 = vmatmul.mubr.bf16.vlgmr.msra.gmra.mrb[44].mxu1 %v1593_v1 }
 0x5c0   :  { %1842 = vmatpush1.bf16.msra.mxu0 %v3898_v42  ;;  %2796 = vmatpush3.bf16.msra.mxu1 %v3901_v43 }
 0x5c1   :  { %1843 = vmatprep.subr.bf16.mxu0 %v3904_v44  ;;  %2797 = vmatprep.subr.bf16.mxu1 %v4447_v18 }
 0x5c2   :  { %1873 = vmatprep.mubr.bf16.mxu0 %v4448_v19  ;;  %2811 = vmatprep.mubr.msk.bf16.mxu1 %vm3347_vm0, %v4447_v18 }
 0x5c4   :  { %1844 = vmatpush1.bf16.msra.mxu0 %v3911_v45  ;;  %2798 = vmatpush3.bf16.msra.mxu1 %v3914_v46 }
 0x5c5   :  { %1845 = vmatprep.subr.bf16.mxu0 %v3917_v47  ;;  %2799 = vmatprep.subr.bf16.mxu1 %v4447_v18 }
 0x5c8   :  { %1846 = vmatpush1.bf16.msra.mxu0 %v3921_v48  ;;  %2800 = vmatpush3.bf16.msra.mxu1 %v3924_v50 }
 0x5c9   :  { %1847 = vmatprep.subr.bf16.mxu0 %v3927_v52  ;;  %2801 = vmatprep.subr.bf16.mxu1 %v4447_v18 }
 0x5cc   :  { %1848 = vmatpush1.bf16.msra.mxu0 %v3931_v53  ;;  %2802 = vmatpush3.bf16.msra.mxu1 %v3934_v49 }
 0x5cd   :  { %1849 = vmatprep.subr.bf16.mxu0 %v3937_v23  ;;  %2803 = vmatprep.subr.bf16.mxu1 %v4447_v18 }
 0x5d0   :  { %1850 = vmatpush1.bf16.msra.mxu0 %v3941_v60  ;;  %2804 = vmatpush3.bf16.msra.mxu1 %v3944_v28  ;;  %v4496_v28 = vld [vmem:[#allocation30_spill] sm:$0xff] }
 0x5d1   :  { %1851 = vmatprep.subr.bf16.mxu0 %v4486_v55  ;;  %2805 = vmatprep.subr.bf16.mxu1 %v4447_v18  ;;  %v1603_v55 = vld [vmem:[#allocation7 + $0x18] sm:$0xff]  ;;  %v1601_v7 = vunpack.c.h.bf16 %v4496_v28 }
 0x5d4   :  { %1852 = vmatpush1.bf16.msra.mxu0 %v4487_v57  ;;  %2806 = vmatpush3.bf16.msra.mxu1 %v4488_v22 }
 0x5d5   :  { %1853 = vmatprep.subr.bf16.mxu0 %v4489_v0  ;;  %2807 = vmatprep.subr.bf16.mxu1 %v4447_v18 }
 0x5d8   :  { %1854 = vmatpush1.bf16.msra.mxu0 %v4490_v5  ;;  %2808 = vmatpush3.bf16.msra.mxu1 %v4491_v38 }
 0x5d9   :  { %1855 = vmatprep.subr.bf16.mxu0 %v4492_v6  ;;  %2809 = vmatprep.subr.bf16.mxu1 %v4447_v18 }
 0x5dc   :  { %1856 = vmatpush1.bf16.msra.mxu0 %v4493_v61  ;;  %2810 = vmatpush3.bf16.msra.mxu1 %v4494_v2 }
 0x5dd   :  { %1945 = vmatprep.subr.bf16.mxu0 %v4495_v21  ;;  %2815 = vmatprep.subr.bf16.mxu1 %v4447_v18 }
 0x672   :  { %v1645_v4 = vpop.f32.mrb[40].mxu0  ;;  %v1686_v12 = vpop.f32.mrb[40].mxu1 }
 0x673   :  { %v1692_v16 = vadd.f32 %v1645_v4, %v1599_v8  ;;  %v1647_v3 = vpop.f32.mrb[41].mxu0  ;;  %v2773_v51 = vpop.f32.mrb[41].mxu1  ;;  %v4497_v8 = vld [vmem:[#allocation33_spill] sm:$0xff] }
 0x674   :  { %v1649_v34 = vpop.f32.mrb[42].mxu0  ;;  %v1689_v1 = vpop.f32.mrb[42].mxu1  ;;  %v1699_v61 = vadd.f32 %v1647_v3, %v1600_v14  ;;  %v1706_v4 = vadd.f32 %v4497_v8, %v1686_v12 }
 0x675   :  { %v2399_v6 = vmul.f32 -1.442695, %v1692_v16  ;;  %v1650_v38 = vpop.f32.mrb[43].mxu0  ;;  %v2774_v5 = vpop.f32.mrb[43].mxu1  ;;  %v1605_v16 = vunpack.c.l.bf16 %v1603_v55 }
 0x676   :  { %v2400_v2 = vmul.f32 -1.442695, %v1699_v61 }
 0x677   :  { %3057 = vpow2.f32 %v2399_v6  ;;  %v1606_v6 = vunpack.c.h.bf16 %v1603_v55 }
 0x678   :  { %3059 = vpow2.f32 %v2400_v2 }
 0x681   :  { %v3058_v21 = vpop.eup %3057 }
 0x682   :  { %v1696_v0 = vadd.f32 1.0, %v3058_v21  ;;  %v3060_v22 = vpop.eup %3059 }
 0x683   :  { %v1703_v57 = vadd.f32 1.0, %v3060_v22 }
 0x684   :  { %3061 = vrcp.f32 %v1696_v0 }
 0x685   :  { %3063 = vrcp.f32 %v1703_v57 }
 0x68e   :  { %v3062_v51 = vpop.eup %3061 }
 0x68f   :  { %v1707_v34 = vmul.f32 %v3062_v51, %v1706_v4  ;;  %v3064_v12 = vpop.eup %3063 }
 0x690   :  { %v1710_v4 = vsub.f32 1.0, %v3064_v12  ;;  %v1712_v51 = vmul.f32 %v3064_v12, %v4118_v39 }
 0x691   :  { %v1708_v38 = vadd.f32 %v1707_v34, %v1601_v7 }
 0x692   :  { %v1749_v5 = vpop.f32.mrb[44].mxu0  ;;  %v1790_v14 = vpop.f32.mrb[44].mxu1 }
 0x693   :  { %3065 = vtanh.f32 %v1708_v38  ;;  %v1796_v61 = vadd.f32 %v1749_v5, %v1605_v16  ;;  %v1751_v2 = vpop.f32.mrb[45].mxu0  ;;  %v2793_v21 = vpop.f32.mrb[45].mxu1  ;;  %v1810_v5 = vadd.f32 %v4136_v30, %v1790_v14 }
 0x694   :  { %v1753_v0 = vpop.f32.mrb[46].mxu0  ;;  %v1793_v3 = vpop.f32.mrb[46].mxu1  ;;  %v1803_v28 = vadd.f32 %v1751_v2, %v1606_v6 }
 0x695   :  { %v2401_v22 = vmul.f32 -1.442695, %v1796_v61  ;;  %v1754_v1 = vpop.f32.mrb[47].mxu0  ;;  %v2794_v60 = vpop.f32.mrb[47].mxu1 }
 0x696   :  { %v2402_v8 = vmul.f32 -1.442695, %v1803_v28 }
 0x697   :  { %3067 = vpow2.f32 %v2401_v22 }
 0x698   :  { %3069 = vpow2.f32 %v2402_v8  ;;  %v1607_v8 = vunpack.c.l.bf16 %v4131_v58 }
 0x69d   :  { %v3066_v57 = vpop.eup %3065 }
 0x69e   :  { %v1711_v7 = vmul.f32 %v3066_v57, %v1710_v4 }
 0x6a0   :  { %v4206_v55 = vadd.f32 %v1712_v51, %v1711_v7 }
 0x6a1   :  { %v3068_v34 = vpop.eup %3067 }
 0x6a2   :  { %v1800_v16 = vadd.f32 1.0, %v3068_v34  ;;  %v1820_v38 = vpack.c.bf16 %v4206_v55, %v4206_v55  ;;  %v3070_v60 = vpop.eup %3069 }
 0x6a3   :  { %v1807_v39 = vadd.f32 1.0, %v3070_v60 }
 0x6a4   :  { %3071 = vrcp.f32 %v1800_v16  ;;  %1822 = vst [vmem:[#allocation13 + $0x14] sm:$0xf] %v1820_v38  ;;  %1874 = vmatmul.mubr.bf16.vlgmr.msra.gmra.mrb[48].mxu0 %v1820_v38  ;;  %2812 = vmatmul.mubr.bf16.vlgmr.msra.gmra.mrb[48].mxu1 %v1820_v38 }
 0x6a5   :  { %1946 = vmatpush1.bf16.msra.mxu0 %v3988_v13  ;;  %2816 = vmatpush3.bf16.msra.mxu1 %v3991_v59  ;;  %3073 = vrcp.f32 %v1807_v39 }
 0x6a6   :  { %1947 = vmatprep.subr.bf16.mxu0 %v3994_v25  ;;  %2817 = vmatprep.subr.bf16.mxu1 %v4447_v18 }
 0x6a7   :  { %1977 = vmatprep.mubr.bf16.mxu0 %v4448_v19  ;;  %2831 = vmatprep.mubr.msk.bf16.mxu1 %vm3347_vm0, %v4447_v18 }
 0x6a9   :  { %1948 = vmatpush1.bf16.msra.mxu0 %v4001_v15  ;;  %2818 = vmatpush3.bf16.msra.mxu1 %v4004_v27 }
 0x6aa   :  { %1949 = vmatprep.subr.bf16.mxu0 %v4007_v29  ;;  %2819 = vmatprep.subr.bf16.mxu1 %v4447_v18 }
 0x6ad   :  { %1950 = vmatpush1.bf16.msra.mxu0 %v4013_v37  ;;  %2820 = vmatpush3.bf16.msra.mxu1 %v4016_v32 }
 0x6ae   :  { %v3072_v6 = vpop.eup %3071  ;;  %1951 = vmatprep.subr.bf16.mxu0 %v4019_v36  ;;  %2821 = vmatprep.subr.bf16.mxu1 %v4447_v18 }
 0x6af   :  { %v1811_v61 = vmul.f32 %v3072_v6, %v1810_v5  ;;  %v3074_v58 = vpop.eup %3073 }
 0x6b0   :  { %v1814_v14 = vsub.f32 1.0, %v3074_v58  ;;  %v1816_v3 = vmul.f32 %v3074_v58, %v4160_v33  ;;  %v4287_v58 = vld [vmem:[#allocation4 + $0x50] ss:$12 sps:$4 sm:$0xff]  }
 0x6b1   :  { %v1812_v2 = vadd.f32 %v1811_v61, %v1607_v8  ;;  %1952 = vmatpush1.bf16.msra.mxu0 %v4023_v40  ;;  %2822 = vmatpush3.bf16.msra.mxu1 %v4026_v24 }
 0x6b2   :  { %1953 = vmatprep.subr.bf16.mxu0 %v4029_v35  ;;  %2823 = vmatprep.subr.bf16.mxu1 %v4447_v18 }
 0x6b3   :  { %3075 = vtanh.f32 %v1812_v2 }
 0x6b5   :  { %1954 = vmatpush1.bf16.msra.mxu0 %v4033_v9  ;;  %2824 = vmatpush3.bf16.msra.mxu1 %v4036_v10 }
 0x6b6   :  { %1955 = vmatprep.subr.bf16.mxu0 %v4039_v11  ;;  %2825 = vmatprep.subr.bf16.mxu1 %v4447_v18 }
 0x6b9   :  { %1956 = vmatpush1.bf16.msra.mxu0 %v4043_v17  ;;  %2826 = vmatpush3.bf16.msra.mxu1 %v4046_v56 }
 0x6ba   :  { %1957 = vmatprep.subr.bf16.mxu0 %v4049_v54  ;;  %2827 = vmatprep.subr.bf16.mxu1 %v4447_v18 }
 0x6bd   :  { %v3076_v21 = vpop.eup %3075  ;;  %1958 = vmatpush1.bf16.msra.mxu0 %v4053_v20  ;;  %2828 = vmatpush3.bf16.msra.mxu1 %v4056_v62 }
 0x6be   :  { %1959 = vmatprep.subr.bf16.mxu0 %v4059_v63  ;;  %2829 = vmatprep.subr.bf16.mxu1 %v4447_v18  ;;  %v1815_v0 = vmul.f32 %v3076_v21, %v1814_v14  ;;  %v1833_v21 = vld [vmem:[#allocation7 + $0xc] sm:$0xff] }
 0x6c0   :  { %v4244_v22 = vadd.f32 %v1816_v3, %v1815_v0  ;;  %v1831_v0 = vunpack.c.l.bf16 %v4287_v58  ;;  %v4510_v3 = vld [vmem:[#allocation33_spill] sm:$0xff] }
 0x6c1   :  { %1960 = vmatpush1.bf16.msra.mxu0 %v4066_v26  ;;  %2830 = vmatpush3.bf16.msra.mxu1 %v4069_v31 }
 0x6c2   :  { %v1823_v1 = vpack.c.bf16 %v4244_v22, %v4244_v22  ;;  %2070 = vmatprep.subr.bf16.mxu0 %v3894_v41  ;;  %2835 = vmatprep.subr.bf16.mxu1 %v4447_v18  ;;  %v4498_v41 = vld [vmem:[#allocation34_spill] sm:$0xff] }
 0x6c4   :  { %1825 = vst [vmem:[#allocation14 + $0x8] sm:$0xf] %v1823_v1  ;;  %1978 = vmatmul.mubr.bf16.vlgmr.msra.gmra.mrb[52].mxu0 %v1823_v1  ;;  %2832 = vmatmul.mubr.bf16.vlgmr.msra.gmra.mrb[52].mxu1 %v1823_v1 }
 0x6c5   :  { %2071 = vmatpush1.bf16.msra.mxu0 %v3898_v42  ;;  %2836 = vmatpush3.bf16.msra.mxu1 %v3901_v43  ;;  %v4499_v42 = vld [vmem:[#allocation21_spill] sm:$0xff]  ;;  %v4500_v43 = vld [vmem:[#allocation26_spill] sm:$0xff] }
 0x6c6   :  { %2072 = vmatprep.subr.bf16.mxu0 %v3904_v44  ;;  %2837 = vmatprep.subr.bf16.mxu1 %v4447_v18  ;;  %v4501_v44 = vld [vmem:[#allocation22_spill] sm:$0xff] }
 0x6c7   :  { %2102 = vmatprep.mubr.bf16.mxu0 %v4448_v19  ;;  %2851 = vmatprep.mubr.msk.bf16.mxu1 %vm3347_vm0, %v4447_v18 }
 0x6c9   :  { %2073 = vmatpush1.bf16.msra.mxu0 %v3911_v45  ;;  %2838 = vmatpush3.bf16.msra.mxu1 %v3914_v46  ;;  %v4502_v45 = vld [vmem:[#allocation23_spill] sm:$0xff]  ;;  %v4503_v46 = vld [vmem:[#allocation29_spill] sm:$0xff] }
 0x6ca   :  { %2074 = vmatprep.subr.bf16.mxu0 %v3917_v47  ;;  %2839 = vmatprep.subr.bf16.mxu1 %v4447_v18  ;;  %v4504_v47 = vld [vmem:[#allocation24_spill] sm:$0xff] }
 0x6cd   :  { %2075 = vmatpush1.bf16.msra.mxu0 %v3921_v48  ;;  %2840 = vmatpush3.bf16.msra.mxu1 %v3924_v50  ;;  %v4505_v48 = vld [vmem:[#allocation25_spill] sm:$0xff]  ;;  %v4506_v50 = vld [vmem:[#allocation31_spill] sm:$0xff] }
 0x6ce   :  { %2076 = vmatprep.subr.bf16.mxu0 %v3927_v52  ;;  %2841 = vmatprep.subr.bf16.mxu1 %v4447_v18  ;;  %v4507_v52 = vld [vmem:[#allocation27_spill] sm:$0xff] }
 0x6d1   :  { %2077 = vmatpush1.bf16.msra.mxu0 %v3931_v53  ;;  %2842 = vmatpush3.bf16.msra.mxu1 %v3934_v49  ;;  %v4508_v53 = vld [vmem:[#allocation28_spill] sm:$0xff] }
 0x6d2   :  { %2078 = vmatprep.subr.bf16.mxu0 %v3937_v23  ;;  %2843 = vmatprep.subr.bf16.mxu1 %v4447_v18  ;;  %v4509_v49 = vld [vmem:[#allocation32_spill] sm:$0xff] }
 0x6d3   :  { %v1827_v23 = vld [vmem:[#allocation4 + $0x48] sm:$0xff] }
 0x6d4   :  { %v1829_v33 = vunpack.c.l.bf16 %v1827_v23  ;;  %v1830_v4 = vunpack.c.h.bf16 %v1827_v23 }
 0x6d5   :  { %2079 = vmatpush1.bf16.msra.mxu0 %v4498_v41  ;;  %2844 = vmatpush3.bf16.msra.mxu1 %v4499_v42 }
 0x6d6   :  { %2080 = vmatprep.subr.bf16.mxu0 %v4500_v43  ;;  %2845 = vmatprep.subr.bf16.mxu1 %v4447_v18  ;;  %v1835_v43 = vunpack.c.l.bf16 %v1833_v21 }
 0x6d9   :  { %2081 = vmatpush1.bf16.msra.mxu0 %v4501_v44  ;;  %2846 = vmatpush3.bf16.msra.mxu1 %v4502_v45 }
 0x6da   :  { %2082 = vmatprep.subr.bf16.mxu0 %v4503_v46  ;;  %2847 = vmatprep.subr.bf16.mxu1 %v4447_v18 }
 0x6dd   :  { %2083 = vmatpush1.bf16.msra.mxu0 %v4504_v47  ;;  %2848 = vmatpush3.bf16.msra.mxu1 %v4505_v48  ;;  %v1836_v47 = vunpack.c.h.bf16 %v1833_v21 }
 0x6de   :  { %2084 = vmatprep.subr.bf16.mxu0 %v4506_v50  ;;  %2849 = vmatprep.subr.bf16.mxu1 %v4447_v18 }
 0x6e1   :  { %2085 = vmatpush1.bf16.msra.mxu0 %v4507_v52  ;;  %2850 = vmatpush3.bf16.msra.mxu1 %v4508_v53 }
 0x6e2   :  { %2174 = vmatprep.subr.bf16.mxu0 %v4509_v49  ;;  %2855 = vmatprep.subr.bf16.mxu1 %v4447_v18 }
 0x777   :  { %v1875_v28 = vpop.f32.mrb[48].mxu0  ;;  %v1916_v12 = vpop.f32.mrb[48].mxu1 }
 0x778   :  { %v1922_v57 = vadd.f32 %v1875_v28, %v1829_v33  ;;  %v1877_v7 = vpop.f32.mrb[49].mxu0  ;;  %v2813_v51 = vpop.f32.mrb[49].mxu1  ;;  %v1936_v1 = vadd.f32 %v4510_v3, %v1916_v12 }
 0x779   :  { %v1879_v34 = vpop.f32.mrb[50].mxu0  ;;  %v1919_v16 = vpop.f32.mrb[50].mxu1  ;;  %v1929_v8 = vadd.f32 %v1877_v7, %v1830_v4 }
 0x77a   :  { %v2403_v38 = vmul.f32 -1.442695, %v1922_v57  ;;  %v1880_v60 = vpop.f32.mrb[51].mxu0  ;;  %v2814_v39 = vpop.f32.mrb[51].mxu1 }
 0x77b   :  { %v2404_v5 = vmul.f32 -1.442695, %v1929_v8 }
 0x77c   :  { %3077 = vpow2.f32 %v2403_v38 }
 0x77d   :  { %3079 = vpow2.f32 %v2404_v5  ;;  %v4305_v5 = vld [vmem:[#allocation7 + $0x8] ss:$12 sps:$4 sm:$0xff]  }
 0x786   :  { %v3078_v6 = vpop.eup %3077 }
 0x787   :  { %v1926_v61 = vadd.f32 1.0, %v3078_v6  ;;  %v3080_v2 = vpop.eup %3079 }
 0x788   :  { %v1933_v14 = vadd.f32 1.0, %v3080_v2 }
 0x789   :  { %3081 = vrcp.f32 %v1926_v61 }
 0x78a   :  { %3083 = vrcp.f32 %v1933_v14 }
 0x793   :  { %v3082_v41 = vpop.eup %3081 }
 0x794   :  { %v1937_v42 = vmul.f32 %v3082_v41, %v1936_v1  ;;  %v3084_v12 = vpop.eup %3083  ;;  %v2062_v1 = vld [vmem:[#allocation7] sm:$0xff]  ;;  %v2061_v41 = vunpack.c.h.bf16 %v4287_v58 }
 0x795   :  { %v1940_v7 = vsub.f32 1.0, %v3084_v12  ;;  %v1942_v16 = vmul.f32 %v3084_v12, %v4206_v55 }
 0x796   :  { %v1938_v44 = vadd.f32 %v1937_v42, %v1831_v0 }
 0x797   :  { %v1979_v45 = vpop.f32.mrb[52].mxu0  ;;  %v2020_v46 = vpop.f32.mrb[52].mxu1 }
 0x798   :  { %3085 = vtanh.f32 %v1938_v44  ;;  %v2026_v48 = vadd.f32 %v1979_v45, %v1835_v43  ;;  %v1981_v50 = vpop.f32.mrb[53].mxu0  ;;  %v2833_v52 = vpop.f32.mrb[53].mxu1  ;;  %v2064_v45 = vunpack.c.l.bf16 %v2062_v1 }
 0x799   :  { %v1983_v53 = vpop.f32.mrb[54].mxu0  ;;  %v2023_v49 = vpop.f32.mrb[54].mxu1  ;;  %v2033_v4 = vadd.f32 %v1981_v50, %v1836_v47  ;;  %v2065_v50 = vunpack.c.h.bf16 %v2062_v1 }
 0x79a   :  { %v2405_v23 = vmul.f32 -1.442695, %v2026_v48  ;;  %v1984_v33 = vpop.f32.mrb[55].mxu0  ;;  %v2834_v28 = vpop.f32.mrb[55].mxu1 }
 0x79b   :  { %v2406_v57 = vmul.f32 -1.442695, %v2033_v4 }
 0x79c   :  { %3087 = vpow2.f32 %v2405_v23 }
 0x79d   :  { %3089 = vpow2.f32 %v2406_v57 }
 0x7a2   :  { %v3086_v51 = vpop.eup %3085 }
 0x7a3   :  { %v1941_v34 = vmul.f32 %v3086_v51, %v1940_v7 }
 0x7a5   :  { %v4292_v38 = vadd.f32 %v1942_v16, %v1941_v34 }
 0x7a6   :  { %v3088_v60 = vpop.eup %3087 }
 0x7a7   :  { %v2030_v39 = vadd.f32 1.0, %v3088_v60  ;;  %v2050_v8 = vpack.c.bf16 %v4292_v38, %v4292_v38  ;;  %v3090_v55 = vpop.eup %3089 }
 0x7a9   :  { %3091 = vrcp.f32 %v2030_v39  ;;  %2052 = vst [vmem:[#allocation13 + $0x18] sm:$0xf] %v2050_v8  ;;  %2103 = vmatmul.mubr.bf16.vlgmr.msra.gmra.mrb[56].mxu0 %v2050_v8  ;;  %2852 = vmatmul.mubr.bf16.vlgmr.msra.gmra.mrb[56].mxu1 %v2050_v8 }
 0x7aa   :  { %2175 = vmatpush1.bf16.msra.mxu0 %v3988_v13  ;;  %2856 = vmatpush3.bf16.msra.mxu1 %v3991_v59  ;;  %v2037_v13 = vadd.f32 1.0, %v3090_v55  ;;  %v1837_v59 = vunpack.c.h.bf16 %v4305_v5 }
 0x7ab   :  { %2176 = vmatprep.subr.bf16.mxu0 %v3994_v25  ;;  %2857 = vmatprep.subr.bf16.mxu1 %v4447_v18  ;;  %v2040_v25 = vadd.f32 %v4136_v30, %v2020_v46 }
 0x7ac   :  { %2206 = vmatprep.mubr.bf16.mxu0 %v4448_v19  ;;  %2871 = vmatprep.mubr.msk.bf16.mxu1 %vm3347_vm0, %v4447_v18  ;;  %3093 = vrcp.f32 %v2037_v13 }
 0x7ae   :  { %2177 = vmatpush1.bf16.msra.mxu0 %v4001_v15  ;;  %2858 = vmatpush3.bf16.msra.mxu1 %v4004_v27 }
 0x7af   :  { %2178 = vmatprep.subr.bf16.mxu0 %v4007_v29  ;;  %2859 = vmatprep.subr.bf16.mxu1 %v4447_v18 }
 0x7b2   :  { %2179 = vmatpush1.bf16.msra.mxu0 %v4013_v37  ;;  %2860 = vmatpush3.bf16.msra.mxu1 %v4016_v32 }
 0x7b3   :  { %v3092_v19 = vpop.eup %3091  ;;  %2180 = vmatprep.subr.bf16.mxu0 %v4019_v36  ;;  %2861 = vmatprep.subr.bf16.mxu1 %v4447_v18 }
 0x7b4   :  { %v2041_v15 = vmul.f32 %v3092_v19, %v2040_v25 }
 0x7b6   :  { %v2042_v27 = vadd.f32 %v2041_v15, %v1837_v59  ;;  %2181 = vmatpush1.bf16.msra.mxu0 %v4023_v40  ;;  %2862 = vmatpush3.bf16.msra.mxu1 %v4026_v24  ;;  %v3094_v29 = vpop.eup %3093 }
 0x7b7   :  { %2182 = vmatprep.subr.bf16.mxu0 %v4029_v35  ;;  %2863 = vmatprep.subr.bf16.mxu1 %v4447_v18  ;;  %v2044_v37 = vsub.f32 1.0, %v3094_v29  ;;  %v2046_v40 = vmul.f32 %v3094_v29, %v4244_v22 }
 0x7b8   :  { %3095 = vtanh.f32 %v2042_v27 }
 0x7ba   :  { %2183 = vmatpush1.bf16.msra.mxu0 %v4033_v9  ;;  %2864 = vmatpush3.bf16.msra.mxu1 %v4036_v10  ;;  %v2057_v9 = vld [vmem:[#allocation4 + $0x54] sm:$0xff] }
 0x7bb   :  { %2184 = vmatprep.subr.bf16.mxu0 %v4039_v11  ;;  %2865 = vmatprep.subr.bf16.mxu1 %v4447_v18  ;;  %v2059_v10 = vunpack.c.l.bf16 %v2057_v9 }
 0x7be   :  { %2185 = vmatpush1.bf16.msra.mxu0 %v4043_v17  ;;  %2866 = vmatpush3.bf16.msra.mxu1 %v4046_v56 }
 0x7bf   :  { %2186 = vmatprep.subr.bf16.mxu0 %v4049_v54  ;;  %2867 = vmatprep.subr.bf16.mxu1 %v4447_v18 }
 0x7c2   :  { %v3096_v32 = vpop.eup %3095  ;;  %2187 = vmatpush1.bf16.msra.mxu0 %v4053_v20  ;;  %2868 = vmatpush3.bf16.msra.mxu1 %v4056_v62 }
 0x7c3   :  { %2188 = vmatprep.subr.bf16.mxu0 %v4059_v63  ;;  %2869 = vmatprep.subr.bf16.mxu1 %v4447_v18  ;;  %v2045_v36 = vmul.f32 %v3096_v32, %v2044_v37  ;;  %v2060_v18 = vunpack.c.h.bf16 %v2057_v9 }
 0x7c5   :  { %v4332_v24 = vadd.f32 %v2046_v40, %v2045_v36 }
 0x7c6   :  { %2189 = vmatpush1.bf16.msra.mxu0 %v4066_v26  ;;  %2870 = vmatpush3.bf16.msra.mxu1 %v4069_v31 }
 0x7c7   :  { %v2053_v35 = vpack.c.bf16 %v4332_v24, %v4332_v24 }
 0x7c9   :  { %2055 = vst [vmem:[#allocation14 + $0x4] sm:$0xf] %v2053_v35  ;;  %2207 = vmatmul.mubr.bf16.vlgmr.msra.gmra.mrb[60].mxu0 %v2053_v35  ;;  %2872 = vmatmul.mubr.bf16.vlgmr.msra.gmra.mrb[60].mxu1 %v2053_v35 }
 0x87c   :  { %v2104_v11 = vpop.f32.mrb[56].mxu0  ;;  %v2145_v17 = vpop.f32.mrb[56].mxu1 }
 0x87d   :  { %v2151_v56 = vadd.f32 %v2104_v11, %v2059_v10  ;;  %v2106_v54 = vpop.f32.mrb[57].mxu0  ;;  %v2853_v20 = vpop.f32.mrb[57].mxu1  ;;  %v2165_v42 = vadd.f32 %v4510_v3, %v2145_v17 }
 0x87e   :  { %v2108_v62 = vpop.f32.mrb[58].mxu0  ;;  %v2148_v63 = vpop.f32.mrb[58].mxu1  ;;  %v2158_v31 = vadd.f32 %v2106_v54, %v2060_v18 }
 0x87f   :  { %v2407_v22 = vmul.f32 -1.442695, %v2151_v56  ;;  %v2109_v26 = vpop.f32.mrb[59].mxu0  ;;  %v2854_v6 = vpop.f32.mrb[59].mxu1 }
 0x880   :  { %v2408_v61 = vmul.f32 -1.442695, %v2158_v31 }
 0x881   :  { %3097 = vpow2.f32 %v2407_v22 }
 0x882   :  { %3099 = vpow2.f32 %v2408_v61 }
 0x88b   :  { %v3098_v2 = vpop.eup %3097 }
 0x88c   :  { %v2155_v14 = vadd.f32 1.0, %v3098_v2  ;;  %v3100_v21 = vpop.eup %3099 }
 0x88d   :  { %v2162_v0 = vadd.f32 1.0, %v3100_v21 }
 0x88e   :  { %3101 = vrcp.f32 %v2155_v14 }
 0x88f   :  { %3103 = vrcp.f32 %v2162_v0 }
 0x898   :  { %v3102_v43 = vpop.eup %3101 }
 0x899   :  { %v2166_v44 = vmul.f32 %v3102_v43, %v2165_v42  ;;  %v3104_v3 = vpop.eup %3103 }
 0x89a   :  { %v2169_v7 = vsub.f32 1.0, %v3104_v3  ;;  %v2171_v16 = vmul.f32 %v3104_v3, %v4292_v38 }
 0x89b   :  { %v2167_v46 = vadd.f32 %v2166_v44, %v2061_v41 }
 0x89c   :  { %v2208_v47 = vpop.f32.mrb[60].mxu0  ;;  %v2249_v48 = vpop.f32.mrb[60].mxu1 }
 0x89d   :  { %3105 = vtanh.f32 %v2167_v46  ;;  %v2255_v52 = vadd.f32 %v2208_v47, %v2064_v45  ;;  %v2210_v53 = vpop.f32.mrb[61].mxu0  ;;  %v2873_v49 = vpop.f32.mrb[61].mxu1 }
 0x89e   :  { %v2212_v23 = vpop.f32.mrb[62].mxu0  ;;  %v2252_v33 = vpop.f32.mrb[62].mxu1  ;;  %v2262_v58 = vadd.f32 %v2210_v53, %v2065_v50 }
 0x89f   :  { %v2409_v28 = vmul.f32 -1.442695, %v2255_v52  ;;  %v2213_v4 = vpop.f32.mrb[63].mxu0  ;;  %v2874_v12 = vpop.f32.mrb[63].mxu1 }
 0x8a0   :  { %v2410_v57 = vmul.f32 -1.442695, %v2262_v58 }
 0x8a1   :  { %3107 = vpow2.f32 %v2409_v28 }
 0x8a2   :  { %3109 = vpow2.f32 %v2410_v57 }
 0x8a7   :  { %v3106_v51 = vpop.eup %3105 }
 0x8a8   :  { %v2170_v34 = vmul.f32 %v3106_v51, %v2169_v7 }
 0x8aa   :  { %v2172_v60 = vadd.f32 %v2171_v16, %v2170_v34 }
 0x8ab   :  { %v3108_v39 = vpop.eup %3107 }
 0x8ac   :  { %v2279_v8 = vpack.c.bf16 %v2172_v60, %v2172_v60  ;;  %v2259_v55 = vadd.f32 1.0, %v3108_v39 }
 0x8ae   :  { %2281 = vst [vmem:[#allocation13 + $0x1c] sm:$0xf] %v2279_v8  ;;  %3111 = vrcp.f32 %v2259_v55 }
 0x8af   :  { %3291 = shalt.err (!%p3288_p8)
}
 0x8b0   :  { %s3292_s16 = scalar_lea.hbm %s4379_s5, 512 }
 0x8b1   :  { %p3293_p9 = scmp.ne.s32.totalorder %s4379_s5, %s3292_s16  ;;  %p3296_p10 = scmp.lt.u32.totalorder %s3292_s16, %s4379_s5 }
 0x8b3   :  { %p3298_p11 = pnand %p3296_p10, %p3293_p9 }
 0x8b5   :  { %3301 = shalt.err (!%p3298_p11)
}
 0x8b6   :  { %s3349_s21 = smov 64   ;;  %s3350_s22 = smov 4   ;;  %v3110_v38 = vpop.eup %3109  ;;  %v2066_v59 = vunpack.c.l.bf16 %v4305_v5  ;;  %v2269_v25 = vadd.f32 %v4136_v30, %v2249_v48 }
 0x8b7   :  { %2295 = dma.vmem_to_hbm [thread:$0]  %s2290_s3, 512, %s4379_s5, [#allocation6], %s3349_s21, %s3349_s21, %s3350_s22   ;;  %v2266_v13 = vadd.f32 1.0, %v3110_v38 }
 0x8b8   :  { %v3112_v19 = vpop.eup %3111  ;;  %s3351_s24 = smov [#allocation14]  }
 0x8b9   :  { %v2270_v15 = vmul.f32 %v3112_v19, %v2269_v25  ;;  %3113 = vrcp.f32 %v2266_v13  ;;  %s2305_s25 = sshll.u32 %s3351_s24, 4  ;;  %s2306_s25 = int_to_ptr.vmem [resolvable:$true] %s2305_s25 }
 0x8ba   :  { %s3302_s5 = scalar_lea.vmem %s2306_s25, 512  ;;  %p3307_p13 = scmp.lt.s32.totalorder %s2306_s25, %s2306_s25 }
 0x8bb   :  { %v2271_v27 = vadd.f32 %v2270_v15, %v2066_v59  ;;  %p3303_p12 = scmp.ne.s32.totalorder %s2306_s25, %s3302_s5  ;;  %p3308_p0 = scmp.lt.s32.totalorder %s3302_s5, %s3302_s5 }
 0x8bd   :  { %3115 = vtanh.f32 %v2271_v27  ;;  %p3309_p1 = por %p3308_p0, %p3307_p13 }
 0x8bf   :  { %p3310_p2 = pnand %p3309_p1, %p3303_p12 }
 0x8c3   :  { %v3114_v29 = vpop.eup %3113 }
 0x8c4   :  { %v2273_v37 = vsub.f32 1.0, %v3114_v29  ;;  %v2275_v40 = vmul.f32 %v3114_v29, %v4332_v24 }
 0x8c7   :  { %v3116_v32 = vpop.eup %3115 }
 0x8c8   :  { %v2274_v36 = vmul.f32 %v3116_v32, %v2273_v37 }
 0x8ca   :  { %v2276_v35 = vadd.f32 %v2275_v40, %v2274_v36 }
 0x8cc   :  { %v2282_v9 = vpack.c.bf16 %v2276_v35, %v2276_v35 }
 0x8ce   :  { %2283 = vst [vmem:[#allocation14] sm:$0xf] %v2282_v9 }
 0x8cf   :  { %3313 = shalt.err (!%p3310_p2)
}
 0x8d0   :  { %s3314_s30 = scalar_lea.hbm %s4380_s6, 512 }
 0x8d1   :  { %p3315_p3 = scmp.ne.s32.totalorder %s4380_s6, %s3314_s30  ;;  %p3318_p4 = scmp.lt.u32.totalorder %s3314_s30, %s4380_s6 }
 0x8d3   :  { %p3320_p5 = pnand %p3318_p4, %p3315_p3 }
 0x8d5   :  { %3323 = shalt.err (!%p3320_p5)
}
 0x8d6   :  { %2311 = dma.vmem_to_hbm [thread:$0]  %s2306_s25, 512, %s4380_s6, [#allocation15], %s3349_s21, %s3349_s21, %s3350_s22  }
 0x8d7   :  { %3330 = dma.done.wait [#allocation6], 512  }
 0x8d8   :  { %3331 = vsyncadd [#allocation6], 4294966784 }
 0x8d9   :  { %3332 = dma.done.wait [#allocation15], 512  }
 0x8da   :  { %3333 = vsyncadd [#allocation15], 4294966784 }
 0x8db   :  { %2318 = vsyncpa [#allocation5], 1 }
 0x8dc   :  { %2319 = vsyncpa [#allocation8], 1 }
 0x8dd   :  { %2320 = vsyncpa [#allocation11], 1 }
 0x8de   :  { %2321 = vsyncpa [#allocation6], 1 }
 0x8df   :  { %2322 = vsyncpa [#allocation15], 1 }

// kernel: encoder_bigru_forward.3
= control target key start
LH: loop header
LB: loop body
LE: loop exit
PB: predicated region body
PF: predicated region fallthrough
CT: control target
= control target key end

     0   :  { %12 = vsyncpa [#allocation5], 0  ;;  %s4371_s0 = inlined_call_operand.hbm [shape: bf16[2,8,8,384], index: 0, kind: input, shape index: {}, may-alias: {0,1}]   ;;  %s4372_s1 = inlined_call_operand.hbm [shape: bf16[2,8,8,384], index: 1, kind: input, shape index: {}, may-alias: {0,1}]   ;;  %s4373_s2 = inlined_call_operand.hbm [shape: bf16[2,128,384], index: 2, kind: input, shape index: {}]   ;;  %s4374_s3 = inlined_call_operand.hbm [shape: f32[2,1,128], index: 3, kind: input, shape index: {}]   ;;  %s4375_s4 = inlined_call_operand.hbm [shape: f32[2,8,128], index: 4, kind: input, shape index: {}]   ;;  %s4376_s5 = inlined_call_operand.hbm [shape: f32[8,8,128], index: 5, kind: output, shape index: {0}]   ;;  %s4377_s6 = inlined_call_operand.hbm [shape: f32[8,8,128], index: 6, kind: output, shape index: {1}]  }
   0x1   :  { %13 = vsyncpa [#allocation8], 0 }
   0x2   :  { %14 = vsyncpa [#allocation11], 0 }
   0x3   :  { %15 = vsyncpa [#allocation6], 0 }
   0x4   :  { %16 = vsyncpa [#allocation15], 0  ;;  %s2310_s23 = scalar_lea.hbm %s4372_s1, 1536  ;;  %s3316_s24 = smov [#allocation7]  }
   0x5   :  { %s40_s25 = sshll.u32 %s3316_s24, 4  ;;  %s3317_s26 = smov [#allocation10]   ;;  %s41_s25 = int_to_ptr.vmem [resolvable:$true] %s40_s25 }
   0x6   :  { %s64_s27 = sshll.u32 %s3317_s26, 4  ;;  %s3173_s30 = scalar_lea.hbm %s4372_s1, 3072  ;;  %s65_s27 = int_to_ptr.vmem [resolvable:$true] %s64_s27 }
   0x7   :  { %p3150_p0 = scmp.ne.s32.totalorder %s2310_s23, %s3173_s30  ;;  %p3152_p1 = scmp.lt.u32.totalorder %s2310_s23, %s4372_s1 }
   0x8   :  { %p3153_p2 = scmp.lt.u32.totalorder %s3173_s30, %s3173_s30  ;;  %p3155_p4 = scmp.lt.u32.totalorder %s3173_s30, %s2310_s23 }
   0xa   :  { %p3154_p3 = por %p3153_p2, %p3152_p1 }
   0xc   :  { %p3156_p5 = por %p3155_p4, %p3154_p3 }
   0xe   :  { %p3157_p6 = pnand %p3156_p5, %p3150_p0 }
  0x10   :  { %3160 = shalt.err (!%p3157_p6)
}
  0x11   :  { %s3161_s9 = scalar_lea.vmem %s41_s25, 1536  ;;  %p3166_p8 = scmp.lt.s32.totalorder %s41_s25, %s41_s25 }
  0x12   :  { %p3162_p7 = scmp.ne.s32.totalorder %s41_s25, %s3161_s9  ;;  %p3167_p9 = scmp.lt.s32.totalorder %s3161_s9, %s3161_s9 }
  0x14   :  { %p3168_p10 = por %p3167_p9, %p3166_p8 }
  0x16   :  { %p3169_p11 = pnand %p3168_p10, %p3162_p7 }
  0x18   :  { %3172 = shalt.err (!%p3169_p11)
}
  0x19   :  { %s3318_s10 = smov 192   ;;  %s3319_s11 = smov 12  }
  0x1a   :  { %46 = dma.hbm_to_vmem [thread:$0]  %s2310_s23, 1536, %s41_s25, [#allocation8], %s3318_s10, %s3318_s10, %s3319_s11  }
  0x1b   :  { %s3174_s13 = scalar_lea.hbm %s4374_s3, 32 }
  0x1c   :  { %p3175_p12 = scmp.ne.s32.totalorder %s4374_s3, %s3174_s13  ;;  %p3178_p13 = scmp.lt.u32.totalorder %s3174_s13, %s4374_s3 }
  0x1e   :  { %p3180_p0 = pnand %p3178_p13, %p3175_p12 }
  0x20   :  { %3183 = shalt.err (!%p3180_p0)
}
  0x21   :  { %s3184_s18 = scalar_lea.vmem %s65_s27, 32  ;;  %p3189_p2 = scmp.lt.s32.totalorder %s65_s27, %s65_s27 }
  0x22   :  { %p3185_p1 = scmp.ne.s32.totalorder %s65_s27, %s3184_s18  ;;  %p3190_p3 = scmp.lt.s32.totalorder %s3184_s18, %s3184_s18 }
  0x24   :  { %p3191_p4 = por %p3190_p3, %p3189_p2 }
  0x26   :  { %p3192_p5 = pnand %p3191_p4, %p3185_p1 }
  0x28   :  { %3195 = shalt.err (!%p3192_p5)
}
  0x29   :  { %s3320_s19 = smov 16   ;;  %s3321_s20 = smov 1  }
  0x2a   :  { %70 = dma.hbm_to_vmem [thread:$0]  %s4374_s3, 32, %s65_s27, [#allocation11], %s3320_s19, %s3320_s19, %s3321_s20  }
  0x2b   :  { %s3322_s23 = smov [#allocation4]   ;;  %s3323_s25 = smov [#allocation9]  }
  0x2c   :  { %s22_s24 = sshll.u32 %s3322_s23, 4  ;;  %s52_s26 = sshll.u32 %s3323_s25, 4  ;;  %s23_s24 = int_to_ptr.vmem [resolvable:$true] %s22_s24  ;;  %s53_s26 = int_to_ptr.vmem [resolvable:$true] %s52_s26 }
  0x2d   :  { %s3196_s30 = scalar_lea.hbm %s4371_s0, 1536  ;;  %s3198_s12 = scalar_lea.hbm %s4371_s0, 3072 }
  0x2e   :  { %p3197_p6 = scmp.ne.s32.totalorder %s4371_s0, %s3196_s30  ;;  %p3199_p7 = scmp.lt.u32.totalorder %s3198_s12, %s3196_s30 }
  0x2f   :  { %p3200_p8 = scmp.lt.u32.totalorder %s3196_s30, %s4371_s0 }
  0x31   :  { %p3201_p9 = por %p3200_p8, %p3199_p7 }
  0x33   :  { %p3202_p10 = pnand %p3201_p9, %p3197_p6 }
  0x35   :  { %3205 = shalt.err (!%p3202_p10)
}
  0x36   :  { %s3206_s27 = scalar_lea.vmem %s23_s24, 1536  ;;  %p3211_p12 = scmp.lt.s32.totalorder %s23_s24, %s23_s24 }
  0x37   :  { %p3207_p11 = scmp.ne.s32.totalorder %s23_s24, %s3206_s27  ;;  %p3212_p13 = scmp.lt.s32.totalorder %s3206_s27, %s3206_s27 }
  0x39   :  { %p3213_p0 = por %p3212_p13, %p3211_p12 }
  0x3b   :  { %p3214_p1 = pnand %p3213_p0, %p3207_p11 }
  0x3d   :  { %3217 = shalt.err (!%p3214_p1)
}
  0x3e   :  { %28 = dma.hbm_to_vmem [thread:$0]  %s4371_s0, 1536, %s23_s24, [#allocation5], %s3318_s10, %s3318_s10, %s3319_s11  }
  0x3f   :  { %s3218_s18 = scalar_lea.hbm %s4373_s2, 6144 }
  0x40   :  { %p3219_p2 = scmp.ne.s32.totalorder %s4373_s2, %s3218_s18  ;;  %p3222_p3 = scmp.lt.u32.totalorder %s3218_s18, %s4373_s2 }
  0x42   :  { %p3224_p4 = pnand %p3222_p3, %p3219_p2 }
  0x44   :  { %3227 = shalt.err (!%p3224_p4)
}
  0x45   :  { %s3228_s23 = scalar_lea.vmem %s53_s26, 6144  ;;  %p3233_p6 = scmp.lt.s32.totalorder %s53_s26, %s53_s26 }
  0x46   :  { %p3229_p5 = scmp.ne.s32.totalorder %s53_s26, %s3228_s23  ;;  %p3234_p7 = scmp.lt.s32.totalorder %s3228_s23, %s3228_s23 }
  0x48   :  { %p3235_p8 = por %p3234_p7, %p3233_p6 }
  0x4a   :  { %p3236_p9 = pnand %p3235_p8, %p3229_p5 }
  0x4c   :  { %3239 = shalt.err (!%p3236_p9)
}
  0x4d   :  { %58 = dma.hbm_to_vmem [thread:$0]  %s4373_s2, 6144, %s53_s26, [#allocation8], %s3318_s10, %s3318_s10, %s3319_s11  }
  0x4e   :  { %s3324_s25 = smov [#allocation12]   ;;  %s3240_s7 = scalar_lea.hbm %s4375_s4, 256 }
  0x4f   :  { %s76_s28 = sshll.u32 %s3324_s25, 4  ;;  %p3241_p10 = scmp.ne.s32.totalorder %s4375_s4, %s3240_s7  ;;  %s77_s28 = int_to_ptr.vmem [resolvable:$true] %s76_s28 }
  0x50   :  { %p3244_p11 = scmp.lt.u32.totalorder %s3240_s7, %s4375_s4 }
  0x52   :  { %p3246_p12 = pnand %p3244_p11, %p3241_p10 }
  0x54   :  { %3249 = shalt.err (!%p3246_p12)
}
  0x55   :  { %s3250_s13 = scalar_lea.vmem %s77_s28, 256  ;;  %p3255_p0 = scmp.lt.s32.totalorder %s77_s28, %s77_s28 }
  0x56   :  { %p3251_p13 = scmp.ne.s32.totalorder %s77_s28, %s3250_s13  ;;  %p3256_p1 = scmp.lt.s32.totalorder %s3250_s13, %s3250_s13 }
  0x58   :  { %p3257_p2 = por %p3256_p1, %p3255_p0 }
  0x5a   :  { %p3258_p3 = pnand %p3257_p2, %p3251_p13 }
  0x5c   :  { %3261 = shalt.err (!%p3258_p3)
}
  0x5d   :  { %s3325_s2 = smov 128   ;;  %s3326_s10 = smov 8  }
  0x5e   :  { %82 = dma.hbm_to_vmem [thread:$0]  %s4375_s4, 256, %s77_s28, [#allocation11], %s3325_s2, %s3325_s2, %s3326_s10  }
  0x5f   :  { %3306 = dma.done.wait [#allocation5], 1536  }
  0x60   :  { %3307 = vsyncadd [#allocation5], 4294965760 }
  0x61   :  { %3308 = dma.done.wait [#allocation8], 7680  }
  0x62   :  { %3309 = vsyncadd [#allocation8], 4294959616 }
  0x63   :  { %3310 = dma.done.wait [#allocation11], 288  }
  0x64   :  { %3311 = vsyncadd [#allocation11], 4294967008  ;;  %v4388_v0 = vmov 0.0   ;;  %v4378_v1 = vmov 0   ;;  %vm3329_vm0 = vmmov 0   ;;  %v3506_v23 = vld [vmem:[#allocation12] sm:$0xff] }
  0x65   :  { %2539 = vmatprep.subr.bf16.mxu1 %v4388_v0  ;;  %354 = vmatprep.mubr.bf16.mxu0 %v4378_v1  ;;  %v3443_v2 = vld [vmem:[#allocation9 + $0x4] ss:$12 sps:$4 sm:$0xff]   ;;  %v3445_v3 = vld [vmem:[#allocation9] ss:$12 sps:$4 sm:$0xff]   ;;  %v3448_v4 = vld [vmem:[#allocation9 + $0x1c] ss:$12 sps:$4 sm:$0xff]   ;;  %v193_v26 = vpack.c.bf16 %v3506_v23, %v3506_v23 }
  0x66   :  { %2555 = vmatprep.mubr.msk.bf16.mxu1 %vm3329_vm0, %v4388_v0  ;;  %322 = vmatprep.subr.bf16.mxu0 %v3443_v2  ;;  %v3451_v5 = vld [vmem:[#allocation9 + $0x18] ss:$12 sps:$4 sm:$0xff]   ;;  %v3454_v6 = vld [vmem:[#allocation9 + $0x34] ss:$12 sps:$4 sm:$0xff]   ;;  %v3457_v7 = vld [vmem:[#allocation9 + $0x30] ss:$12 sps:$4 sm:$0xff]  }
  0x67   :  { %323 = vmatpush1.bf16.msra.mxu0 %v3445_v3  ;;  %v3460_v8 = vld [vmem:[#allocation9 + $0x4c] ss:$12 sps:$4 sm:$0xff]   ;;  %v3462_v9 = vld [vmem:[#allocation9 + $0x8] ss:$12 sps:$4 sm:$0xff]   ;;  %v3469_v11 = vld [vmem:[#allocation9 + $0x64] ss:$12 sps:$4 sm:$0xff]  }
  0x68   :  { %324 = vmatprep.subr.bf16.mxu0 %v3448_v4  ;;  %v3465_v10 = vld [vmem:[#allocation9 + $0x48] ss:$12 sps:$4 sm:$0xff]   ;;  %2540 = vmatpush3.bf16.msra.mxu1 %v3462_v9  ;;  %v3472_v12 = vld [vmem:[#allocation9 + $0x20] ss:$12 sps:$4 sm:$0xff]   ;;  %v3478_v14 = vld [vmem:[#allocation9 + $0x38] ss:$12 sps:$4 sm:$0xff]  }
  0x69   :  { %2541 = vmatprep.subr.bf16.mxu1 %v4388_v0  ;;  %v3474_v13 = vld [vmem:[#allocation9 + $0x60] ss:$12 sps:$4 sm:$0xff]   ;;  %v3481_v15 = vld [vmem:[#allocation9 + $0x7c] ss:$12 sps:$4 sm:$0xff]   ;;  %v3485_v16 = vld [vmem:[#allocation9 + $0x78] ss:$12 sps:$4 sm:$0xff]  }
  0x6a   :  { %4430 = vst [vmem:[#allocation21_spill] sm:$0xff] %v3474_v13  ;;  %4431 = vst [vmem:[#allocation22_spill] sm:$0xff] %v3481_v15  ;;  %v3488_v17 = vld [vmem:[#allocation9 + $0x50] ss:$12 sps:$4 sm:$0xff]   ;;  %v3491_v18 = vld [vmem:[#allocation9 + $0x94] ss:$12 sps:$4 sm:$0xff]  }
  0x6b   :  { %325 = vmatpush1.bf16.msra.mxu0 %v3451_v5  ;;  %4432 = vst [vmem:[#allocation23_spill] sm:$0xff] %v3485_v16  ;;  %4433 = vst [vmem:[#allocation24_spill] sm:$0xff] %v3491_v18  ;;  %v3494_v19 = vld [vmem:[#allocation9 + $0x90] ss:$12 sps:$4 sm:$0xff]   ;;  %v3498_v20 = vld [vmem:[#allocation9 + $0x68] ss:$12 sps:$4 sm:$0xff]  }
  0x6c   :  { %326 = vmatprep.subr.bf16.mxu0 %v3454_v6  ;;  %2542 = vmatpush3.bf16.msra.mxu1 %v3472_v12  ;;  %4434 = vst [vmem:[#allocation25_spill] sm:$0xff] %v3494_v19  ;;  %4435 = vst [vmem:[#allocation26_spill] sm:$0xff] %v3498_v20  ;;  %v3501_v21 = vld [vmem:[#allocation9 + $0xac] ss:$12 sps:$4 sm:$0xff]   ;;  %v3504_v22 = vld [vmem:[#allocation9 + $0xa8] ss:$12 sps:$4 sm:$0xff]  }
  0x6d   :  { %2543 = vmatprep.subr.bf16.mxu1 %v4388_v0  ;;  %4436 = vst [vmem:[#allocation27_spill] sm:$0xff] %v3501_v21  ;;  %4437 = vst [vmem:[#allocation28_spill] sm:$0xff] %v3504_v22  ;;  %v3510_v24 = vld [vmem:[#allocation9 + $0x80] ss:$12 sps:$4 sm:$0xff]   ;;  %v3513_v25 = vld [vmem:[#allocation9 + $0xc4] ss:$12 sps:$4 sm:$0xff]  }
  0x6e   :  { %4438 = vst [vmem:[#allocation29_spill] sm:$0xff] %v3510_v24  ;;  %4439 = vst [vmem:[#allocation30_spill] sm:$0xff] %v3513_v25  ;;  %v3519_v27 = vld [vmem:[#allocation9 + $0xc0] ss:$12 sps:$4 sm:$0xff]   ;;  %v3522_v28 = vld [vmem:[#allocation9 + $0x98] ss:$12 sps:$4 sm:$0xff]  }
  0x6f   :  { %327 = vmatpush1.bf16.msra.mxu0 %v3457_v7  ;;  %4440 = vst [vmem:[#allocation31_spill] sm:$0xff] %v3522_v28  ;;  %v3525_v29 = vld [vmem:[#allocation9 + $0xdc] ss:$12 sps:$4 sm:$0xff]   ;;  %v3528_v30 = vld [vmem:[#allocation9 + $0xd8] ss:$12 sps:$4 sm:$0xff]   ;;  %s3330_s4 = smov [#allocation13]  }
  0x70   :  { %328 = vmatprep.subr.bf16.mxu0 %v3460_v8  ;;  %2544 = vmatpush3.bf16.msra.mxu1 %v3478_v14  ;;  %v3532_v31 = vld [vmem:[#allocation9 + $0xb0] ss:$12 sps:$4 sm:$0xff]   ;;  %v3535_v32 = vld [vmem:[#allocation9 + $0xf4] ss:$12 sps:$4 sm:$0xff]   ;;  %v3546_v35 = vld [vmem:[#allocation9 + $0x10c] ss:$12 sps:$4 sm:$0xff]  }
  0x71   :  { %2545 = vmatprep.subr.bf16.mxu1 %v4388_v0  ;;  %4441 = vst [vmem:[#allocation32_spill] sm:$0xff] %v3532_v31  ;;  %v3540_v33 = vld [vmem:[#allocation9 + $0xf0] ss:$12 sps:$4 sm:$0xff]   ;;  %v3543_v34 = vld [vmem:[#allocation9 + $0xc8] ss:$12 sps:$4 sm:$0xff]   ;;  %v180_v54 = vld [vmem:[#allocation4] sm:$0xff] }
  0x72   :  { %v3550_v36 = vld [vmem:[#allocation9 + $0x108] ss:$12 sps:$4 sm:$0xff]   ;;  %v3553_v37 = vld [vmem:[#allocation9 + $0xe0] ss:$12 sps:$4 sm:$0xff]   ;;  %v3556_v38 = vld [vmem:[#allocation9 + $0x124] ss:$12 sps:$4 sm:$0xff]   ;;  %v182_v55 = vunpack.c.l.bf16 %v180_v54  ;;  %v183_v57 = vunpack.c.h.bf16 %v180_v54 }
  0x73   :  { %329 = vmatpush1.bf16.msra.mxu0 %v3465_v10  ;;  %v3562_v39 = vld [vmem:[#allocation9 + $0x120] ss:$12 sps:$4 sm:$0xff]   ;;  %v3565_v40 = vld [vmem:[#allocation9 + $0xf8] ss:$12 sps:$4 sm:$0xff]   ;;  %v3568_v41 = vld [vmem:[#allocation9 + $0x13c] ss:$12 sps:$4 sm:$0xff]  }
  0x74   :  { %330 = vmatprep.subr.bf16.mxu0 %v3469_v11  ;;  %2546 = vmatpush3.bf16.msra.mxu1 %v3488_v17  ;;  %v3572_v42 = vld [vmem:[#allocation9 + $0x138] ss:$12 sps:$4 sm:$0xff]   ;;  %v3575_v43 = vld [vmem:[#allocation9 + $0x110] ss:$12 sps:$4 sm:$0xff]   ;;  %v3578_v44 = vld [vmem:[#allocation9 + $0x154] ss:$12 sps:$4 sm:$0xff]  }
  0x75   :  { %2547 = vmatprep.subr.bf16.mxu1 %v4388_v0  ;;  %v3582_v45 = vld [vmem:[#allocation9 + $0x150] ss:$12 sps:$4 sm:$0xff]   ;;  %v3585_v46 = vld [vmem:[#allocation9 + $0x128] ss:$12 sps:$4 sm:$0xff]   ;;  %v3588_v47 = vld [vmem:[#allocation9 + $0x16c] ss:$12 sps:$4 sm:$0xff]  }
  0x76   :  { %v3592_v48 = vld [vmem:[#allocation9 + $0x168] ss:$12 sps:$4 sm:$0xff]   ;;  %v3597_v50 = vld [vmem:[#allocation9 + $0x140] ss:$12 sps:$4 sm:$0xff]   ;;  %v3605_v52 = vld [vmem:[#allocation9 + $0x158] ss:$12 sps:$4 sm:$0xff]  }
  0x77   :  { %331 = vmatpush1.bf16.msra.mxu0 %v3474_v13  ;;  %v3594_v49 = vld [vmem:[#allocation12 + $0x8] sm:$0xff]  ;;  %s2273_s3 = sshll.u32 %s3330_s4, 4  ;;  %s2274_s3 = int_to_ptr.vmem [resolvable:$true] %s2273_s3 }
  0x78   :  { %332 = vmatprep.subr.bf16.mxu0 %v3481_v15  ;;  %2548 = vmatpush3.bf16.msra.mxu1 %v3498_v20  ;;  %v431_v51 = vpack.c.bf16 %v3594_v49, %v3594_v49  ;;  %v3610_v53 = vld [vmem:[#allocation9 + $0x170] ss:$12 sps:$4 sm:$0xff]   ;;  %v3652_v54 = vld [vmem:[#allocation4 + $0x8] ss:$12 sps:$4 sm:$0xff]   ;;  %s3262_s27 = scalar_lea.vmem %s2274_s3, 1024  ;;  %p3267_p5 = scmp.lt.s32.totalorder %s2274_s3, %s2274_s3 }
  0x79   :  { %2549 = vmatprep.subr.bf16.mxu1 %v4388_v0  ;;  %4443 = vst [vmem:[#allocation34_spill] sm:$0xff] %v3652_v54  ;;  %p3263_p4 = scmp.ne.s32.totalorder %s2274_s3, %s3262_s27  ;;  %p3268_p6 = scmp.lt.s32.totalorder %s3262_s27, %s3262_s27 }
  0x7b   :  { %333 = vmatpush1.bf16.msra.mxu0 %v3485_v16  ;;  %p3269_p7 = por %p3268_p6, %p3267_p5 }
  0x7c   :  { %334 = vmatprep.subr.bf16.mxu0 %v3491_v18  ;;  %2550 = vmatpush3.bf16.msra.mxu1 %v3510_v24 }
  0x7d   :  { %2551 = vmatprep.subr.bf16.mxu1 %v4388_v0  ;;  %p3270_p8 = pnand %p3269_p7, %p3263_p4 }
  0x7f   :  { %335 = vmatpush1.bf16.msra.mxu0 %v3494_v19 }
  0x80   :  { %336 = vmatprep.subr.bf16.mxu0 %v3501_v21  ;;  %2552 = vmatpush3.bf16.msra.mxu1 %v3522_v28 }
  0x81   :  { %2553 = vmatprep.subr.bf16.mxu1 %v4388_v0 }
  0x83   :  { %337 = vmatpush1.bf16.msra.mxu0 %v3504_v22 }
  0x84   :  { %560 = vmatprep.subr.bf16.mxu0 %v3513_v25  ;;  %2554 = vmatpush3.bf16.msra.mxu1 %v3532_v31 }
  0x85   :  { %2559 = vmatprep.subr.bf16.mxu1 %v4388_v0 }
  0x86   :  { %355 = vmatmul.mubr.bf16.vlgmr.msra.gmra.mrb[0].mxu0 %v193_v26 }
  0x87   :  { %561 = vmatpush1.bf16.msra.mxu0 %v3519_v27  ;;  %592 = vmatprep.mubr.bf16.mxu0 %v4378_v1 }
  0x88   :  { %562 = vmatprep.subr.bf16.mxu0 %v3525_v29  ;;  %2556 = vmatmul.mubr.bf16.vlgmr.msra.gmra.mrb[0].mxu1 %v193_v26 }
  0x89   :  { %2560 = vmatpush3.bf16.msra.mxu1 %v3543_v34  ;;  %2575 = vmatprep.mubr.msk.bf16.mxu1 %vm3329_vm0, %v4388_v0 }
  0x8a   :  { %2561 = vmatprep.subr.bf16.mxu1 %v4388_v0 }
  0x8b   :  { %563 = vmatpush1.bf16.msra.mxu0 %v3528_v30 }
  0x8c   :  { %564 = vmatprep.subr.bf16.mxu0 %v3535_v32 }
  0x8d   :  { %2562 = vmatpush3.bf16.msra.mxu1 %v3553_v37 }
  0x8e   :  { %2563 = vmatprep.subr.bf16.mxu1 %v4388_v0 }
  0x8f   :  { %565 = vmatpush1.bf16.msra.mxu0 %v3540_v33 }
  0x90   :  { %566 = vmatprep.subr.bf16.mxu0 %v3546_v35 }
  0x91   :  { %2564 = vmatpush3.bf16.msra.mxu1 %v3565_v40 }
  0x92   :  { %2565 = vmatprep.subr.bf16.mxu1 %v4388_v0 }
  0x93   :  { %567 = vmatpush1.bf16.msra.mxu0 %v3550_v36 }
  0x94   :  { %568 = vmatprep.subr.bf16.mxu0 %v3556_v38 }
  0x95   :  { %2566 = vmatpush3.bf16.msra.mxu1 %v3575_v43 }
  0x96   :  { %2567 = vmatprep.subr.bf16.mxu1 %v4388_v0 }
  0x97   :  { %569 = vmatpush1.bf16.msra.mxu0 %v3562_v39 }
  0x98   :  { %570 = vmatprep.subr.bf16.mxu0 %v3568_v41 }
  0x99   :  { %2568 = vmatpush3.bf16.msra.mxu1 %v3585_v46 }
  0x9a   :  { %2569 = vmatprep.subr.bf16.mxu1 %v4388_v0 }
  0x9b   :  { %571 = vmatpush1.bf16.msra.mxu0 %v3572_v42 }
  0x9c   :  { %572 = vmatprep.subr.bf16.mxu0 %v3578_v44 }
  0x9d   :  { %2570 = vmatpush3.bf16.msra.mxu1 %v3597_v50 }
  0x9e   :  { %2571 = vmatprep.subr.bf16.mxu1 %v4388_v0 }
  0x9f   :  { %573 = vmatpush1.bf16.msra.mxu0 %v3582_v45 }
  0xa0   :  { %574 = vmatprep.subr.bf16.mxu0 %v3588_v47 }
  0xa1   :  { %2572 = vmatpush3.bf16.msra.mxu1 %v3605_v52 }
  0xa2   :  { %2573 = vmatprep.subr.bf16.mxu1 %v4388_v0 }
  0xa3   :  { %575 = vmatpush1.bf16.msra.mxu0 %v3592_v48 }
  0xa4   :  { %689 = vmatprep.subr.bf16.mxu0 %v3443_v2 }
  0xa5   :  { %2574 = vmatpush3.bf16.msra.mxu1 %v3610_v53 }
  0xa6   :  { %593 = vmatmul.mubr.bf16.vlgmr.msra.gmra.mrb[4].mxu0 %v431_v51  ;;  %2579 = vmatprep.subr.bf16.mxu1 %v4388_v0 }
  0xa7   :  { %690 = vmatpush1.bf16.msra.mxu0 %v3445_v3  ;;  %721 = vmatprep.mubr.bf16.mxu0 %v4378_v1 }
  0xa8   :  { %691 = vmatprep.subr.bf16.mxu0 %v3448_v4  ;;  %2576 = vmatmul.mubr.bf16.vlgmr.msra.gmra.mrb[4].mxu1 %v431_v51 }
  0xa9   :  { %2580 = vmatpush3.bf16.msra.mxu1 %v3462_v9  ;;  %2595 = vmatprep.mubr.msk.bf16.mxu1 %vm3329_vm0, %v4388_v0 }
  0xaa   :  { %2581 = vmatprep.subr.bf16.mxu1 %v4388_v0 }
  0xab   :  { %692 = vmatpush1.bf16.msra.mxu0 %v3451_v5 }
  0xac   :  { %693 = vmatprep.subr.bf16.mxu0 %v3454_v6 }
  0xad   :  { %2582 = vmatpush3.bf16.msra.mxu1 %v3472_v12 }
  0xae   :  { %2583 = vmatprep.subr.bf16.mxu1 %v4388_v0 }
  0xaf   :  { %694 = vmatpush1.bf16.msra.mxu0 %v3457_v7 }
  0xb0   :  { %695 = vmatprep.subr.bf16.mxu0 %v3460_v8 }
  0xb1   :  { %2584 = vmatpush3.bf16.msra.mxu1 %v3478_v14 }
  0xb2   :  { %2585 = vmatprep.subr.bf16.mxu1 %v4388_v0 }
  0xb3   :  { %696 = vmatpush1.bf16.msra.mxu0 %v3465_v10 }
  0xb4   :  { %697 = vmatprep.subr.bf16.mxu0 %v3469_v11 }
  0xb5   :  { %2586 = vmatpush3.bf16.msra.mxu1 %v3488_v17 }
  0xb6   :  { %2587 = vmatprep.subr.bf16.mxu1 %v4388_v0 }
  0xb7   :  { %698 = vmatpush1.bf16.msra.mxu0 %v3474_v13 }
  0xb8   :  { %699 = vmatprep.subr.bf16.mxu0 %v3481_v15 }
  0xb9   :  { %2588 = vmatpush3.bf16.msra.mxu1 %v3498_v20 }
  0xba   :  { %2589 = vmatprep.subr.bf16.mxu1 %v4388_v0 }
  0xbb   :  { %700 = vmatpush1.bf16.msra.mxu0 %v3485_v16 }
  0xbc   :  { %701 = vmatprep.subr.bf16.mxu0 %v3491_v18 }
  0xbd   :  { %2590 = vmatpush3.bf16.msra.mxu1 %v3510_v24 }
  0xbe   :  { %2591 = vmatprep.subr.bf16.mxu1 %v4388_v0 }
  0xbf   :  { %702 = vmatpush1.bf16.msra.mxu0 %v3494_v19 }
  0xc0   :  { %703 = vmatprep.subr.bf16.mxu0 %v3501_v21 }
  0xc1   :  { %2592 = vmatpush3.bf16.msra.mxu1 %v3522_v28  ;;  %v3650_v28 = vld [vmem:[#allocation10] ss:$0 sm:$0xff] }
  0xc2   :  { %2593 = vmatprep.subr.bf16.mxu1 %v4388_v0  ;;  %4442 = vst [vmem:[#allocation33_spill] sm:$0xff] %v3650_v28 }
  0xc3   :  { %704 = vmatpush1.bf16.msra.mxu0 %v3504_v22 }
  0xc4   :  { %793 = vmatprep.subr.bf16.mxu0 %v3513_v25 }
  0xc5   :  { %2594 = vmatpush3.bf16.msra.mxu1 %v3532_v31 }
  0xc6   :  { %2599 = vmatprep.subr.bf16.mxu1 %v4388_v0 }
 0x159   :  { %v356_v56 = vpop.f32.mrb[0].mxu0 }
 0x15a   :  { %v403_v58 = vadd.f32 %v356_v56, %v182_v55  ;;  %v358_v59 = vpop.f32.mrb[1].mxu0 }
 0x15b   :  { %v360_v60 = vpop.f32.mrb[2].mxu0  ;;  %v410_v63 = vadd.f32 %v358_v59, %v183_v57  ;;  %v397_v51 = vpop.f32.mrb[0].mxu1  ;;  %v184_v57 = vunpack.c.l.bf16 %v3652_v54 }
 0x15c   :  { %v2337_v61 = vmul.f32 -1.442695, %v403_v58  ;;  %v361_v62 = vpop.f32.mrb[3].mxu0  ;;  %v2557_v1 = vpop.f32.mrb[1].mxu1  ;;  %v423_v56 = vadd.f32 %v3650_v28, %v397_v51  ;;  %v186_v58 = vld [vmem:[#allocation7 + $0x54] sm:$0xff] }
 0x15d   :  { %v2338_v26 = vmul.f32 -1.442695, %v410_v63  ;;  %v400_v25 = vpop.f32.mrb[2].mxu1 }
 0x15e   :  { %2939 = vpow2.f32 %v2337_v61  ;;  %v2558_v22 = vpop.f32.mrb[3].mxu1  ;;  %v188_v25 = vunpack.c.l.bf16 %v186_v58  ;;  %v189_v61 = vunpack.c.h.bf16 %v186_v58 }
 0x15f   :  { %2941 = vpow2.f32 %v2338_v26 }
 0x168   :  { %v2940_v31 = vpop.eup %2939 }
 0x169   :  { %v407_v21 = vadd.f32 1.0, %v2940_v31  ;;  %v2942_v0 = vpop.eup %2941 }
 0x16a   :  { %v414_v55 = vadd.f32 1.0, %v2942_v0 }
 0x16b   :  { %2943 = vrcp.f32 %v407_v21 }
 0x16c   :  { %2945 = vrcp.f32 %v414_v55 }
 0x175   :  { %v2944_v59 = vpop.eup %2943 }
 0x176   :  { %v424_v1 = vmul.f32 %v2944_v59, %v423_v56  ;;  %v2946_v0 = vpop.eup %2945 }
 0x177   :  { %v427_v54 = vsub.f32 1.0, %v2946_v0  ;;  %v429_v58 = vmul.f32 %v2946_v0, %v3506_v23 }
 0x178   :  { %v425_v22 = vadd.f32 %v424_v1, %v184_v57 }
 0x179   :  { %v594_v60 = vpop.f32.mrb[4].mxu0 }
 0x17a   :  { %2947 = vtanh.f32 %v425_v22  ;;  %v641_v21 = vadd.f32 %v594_v60, %v188_v25  ;;  %v596_v31 = vpop.f32.mrb[5].mxu0 }
 0x17b   :  { %v598_v62 = vpop.f32.mrb[6].mxu0  ;;  %v648_v19 = vadd.f32 %v596_v31, %v189_v61  ;;  %v635_v28 = vpop.f32.mrb[4].mxu1 }
 0x17c   :  { %v2364_v63 = vmul.f32 -1.442695, %v641_v21  ;;  %v599_v26 = vpop.f32.mrb[7].mxu0  ;;  %v2577_v18 = vpop.f32.mrb[5].mxu1 }
 0x17d   :  { %v2365_v51 = vmul.f32 -1.442695, %v648_v19  ;;  %v638_v24 = vpop.f32.mrb[6].mxu1  ;;  %v4444_v18 = vmov 0.0   ;;  %v4445_v19 = vmov 0  }
 0x17e   :  { %2949 = vpow2.f32 %v2364_v63  ;;  %v2578_v56 = vpop.f32.mrb[7].mxu1  ;;  %v3669_v24 = vld [vmem:[#allocation10 + $0x1] ss:$0 sm:$0xff] }
 0x17f   :  { %2951 = vpow2.f32 %v2365_v51  ;;  %v661_v61 = vadd.f32 %v3669_v24, %v635_v28 }
 0x184   :  { %v2948_v55 = vpop.eup %2947 }
 0x185   :  { %v428_v57 = vmul.f32 %v2948_v55, %v427_v54  ;;  %v3673_v54 = vld [vmem:[#allocation7 + $0x50] ss:$12 sps:$4 sm:$0xff]  }
 0x186   :  { %v190_v21 = vunpack.c.h.bf16 %v3673_v54 }
 0x187   :  { %v3657_v59 = vadd.f32 %v429_v58, %v428_v57  ;;  %v4447_v58 = vld [vmem:[#allocation24_spill] sm:$0xff] }
 0x188   :  { %v2950_v1 = vpop.eup %2949 }
 0x189   :  { %v645_v25 = vadd.f32 1.0, %v2950_v1  ;;  %671 = vst [vmem:[#allocation13] sm:$0xff] %v3657_v59  ;;  %v688_v22 = vpack.c.bf16 %v3657_v59, %v3657_v59  ;;  %v2952_v23 = vpop.eup %2951  ;;  %v4448_v1 = vld [vmem:[#allocation25_spill] sm:$0xff] }
 0x18a   :  { %v652_v60 = vadd.f32 1.0, %v2952_v23  ;;  %v4451_v23 = vld [vmem:[#allocation28_spill] sm:$0xff] }
 0x18b   :  { %2953 = vrcp.f32 %v645_v25  ;;  %722 = vmatmul.mubr.bf16.vlgmr.msra.gmra.mrb[8].mxu0 %v688_v22  ;;  %2596 = vmatmul.mubr.bf16.vlgmr.msra.gmra.mrb[8].mxu1 %v688_v22  ;;  %v4449_v25 = vld [vmem:[#allocation31_spill] sm:$0xff] }
 0x18c   :  { %794 = vmatpush1.bf16.msra.mxu0 %v3519_v27  ;;  %2600 = vmatpush3.bf16.msra.mxu1 %v3543_v34  ;;  %2955 = vrcp.f32 %v652_v60  ;;  %v4450_v22 = vld [vmem:[#allocation27_spill] sm:$0xff]  ;;  %v4452_v60 = vld [vmem:[#allocation32_spill] sm:$0xff] }
 0x18d   :  { %795 = vmatprep.subr.bf16.mxu0 %v3525_v29  ;;  %2601 = vmatprep.subr.bf16.mxu1 %v4444_v18 }
 0x18e   :  { %825 = vmatprep.mubr.bf16.mxu0 %v4445_v19  ;;  %2615 = vmatprep.mubr.msk.bf16.mxu1 %vm3329_vm0, %v4444_v18 }
 0x190   :  { %796 = vmatpush1.bf16.msra.mxu0 %v3528_v30  ;;  %2602 = vmatpush3.bf16.msra.mxu1 %v3553_v37 }
 0x191   :  { %797 = vmatprep.subr.bf16.mxu0 %v3535_v32  ;;  %2603 = vmatprep.subr.bf16.mxu1 %v4444_v18 }
 0x194   :  { %798 = vmatpush1.bf16.msra.mxu0 %v3540_v33  ;;  %2604 = vmatpush3.bf16.msra.mxu1 %v3565_v40 }
 0x195   :  { %v2954_v31 = vpop.eup %2953  ;;  %799 = vmatprep.subr.bf16.mxu0 %v3546_v35  ;;  %2605 = vmatprep.subr.bf16.mxu1 %v4444_v18 }
 0x196   :  { %v662_v62 = vmul.f32 %v2954_v31, %v661_v61  ;;  %v2956_v28 = vpop.eup %2955  ;;  %v4453_v61 = vld [vmem:[#allocation30_spill] sm:$0xff] }
 0x197   :  { %v665_v26 = vsub.f32 1.0, %v2956_v28  ;;  %v667_v55 = vmul.f32 %v2956_v28, %v3594_v49  ;;  %v4446_v49 = vld [vmem:[#allocation29_spill] sm:$0xff] }
 0x198   :  { %v663_v63 = vadd.f32 %v662_v62, %v190_v21  ;;  %800 = vmatpush1.bf16.msra.mxu0 %v3550_v36  ;;  %2606 = vmatpush3.bf16.msra.mxu1 %v3575_v43  ;;  %v675_v21 = vld [vmem:[#allocation4 + $0xc] sm:$0xff] }
 0x199   :  { %801 = vmatprep.subr.bf16.mxu0 %v3556_v38  ;;  %2607 = vmatprep.subr.bf16.mxu1 %v4444_v18  ;;  %v677_v31 = vunpack.c.l.bf16 %v675_v21  ;;  %v678_v28 = vunpack.c.h.bf16 %v675_v21 }
 0x19a   :  { %2957 = vtanh.f32 %v663_v63 }
 0x19c   :  { %802 = vmatpush1.bf16.msra.mxu0 %v3562_v39  ;;  %2608 = vmatpush3.bf16.msra.mxu1 %v3585_v46 }
 0x19d   :  { %803 = vmatprep.subr.bf16.mxu0 %v3568_v41  ;;  %2609 = vmatprep.subr.bf16.mxu1 %v4444_v18 }
 0x1a0   :  { %804 = vmatpush1.bf16.msra.mxu0 %v3572_v42  ;;  %2610 = vmatpush3.bf16.msra.mxu1 %v3597_v50 }
 0x1a1   :  { %805 = vmatprep.subr.bf16.mxu0 %v3578_v44  ;;  %2611 = vmatprep.subr.bf16.mxu1 %v4444_v18 }
 0x1a4   :  { %v2958_v0 = vpop.eup %2957  ;;  %806 = vmatpush1.bf16.msra.mxu0 %v3582_v45  ;;  %2612 = vmatpush3.bf16.msra.mxu1 %v3605_v52 }
 0x1a5   :  { %807 = vmatprep.subr.bf16.mxu0 %v3588_v47  ;;  %2613 = vmatprep.subr.bf16.mxu1 %v4444_v18  ;;  %v666_v51 = vmul.f32 %v2958_v0, %v665_v26 }
 0x1a7   :  { %v3700_v56 = vadd.f32 %v667_v55, %v666_v51 }
 0x1a8   :  { %808 = vmatpush1.bf16.msra.mxu0 %v3592_v48  ;;  %2614 = vmatpush3.bf16.msra.mxu1 %v3610_v53 }
 0x1a9   :  { %673 = vst [vmem:[#allocation14 + $0x38] sm:$0xff] %v3700_v56  ;;  %v792_v57 = vpack.c.bf16 %v3700_v56, %v3700_v56  ;;  %917 = vmatprep.subr.bf16.mxu0 %v3443_v2  ;;  %2619 = vmatprep.subr.bf16.mxu1 %v4444_v18 }
 0x1ab   :  { %826 = vmatmul.mubr.bf16.vlgmr.msra.gmra.mrb[12].mxu0 %v792_v57  ;;  %2616 = vmatmul.mubr.bf16.vlgmr.msra.gmra.mrb[12].mxu1 %v792_v57 }
 0x1ac   :  { %918 = vmatpush1.bf16.msra.mxu0 %v3445_v3  ;;  %2620 = vmatpush3.bf16.msra.mxu1 %v3462_v9 }
 0x1ad   :  { %919 = vmatprep.subr.bf16.mxu0 %v3448_v4  ;;  %2621 = vmatprep.subr.bf16.mxu1 %v4444_v18 }
 0x1ae   :  { %949 = vmatprep.mubr.bf16.mxu0 %v4445_v19  ;;  %2635 = vmatprep.mubr.msk.bf16.mxu1 %vm3329_vm0, %v4444_v18 }
 0x1b0   :  { %920 = vmatpush1.bf16.msra.mxu0 %v3451_v5  ;;  %2622 = vmatpush3.bf16.msra.mxu1 %v3472_v12 }
 0x1b1   :  { %921 = vmatprep.subr.bf16.mxu0 %v3454_v6  ;;  %2623 = vmatprep.subr.bf16.mxu1 %v4444_v18 }
 0x1b4   :  { %922 = vmatpush1.bf16.msra.mxu0 %v3457_v7  ;;  %2624 = vmatpush3.bf16.msra.mxu1 %v3478_v14 }
 0x1b5   :  { %923 = vmatprep.subr.bf16.mxu0 %v3460_v8  ;;  %2625 = vmatprep.subr.bf16.mxu1 %v4444_v18 }
 0x1b8   :  { %924 = vmatpush1.bf16.msra.mxu0 %v3465_v10  ;;  %2626 = vmatpush3.bf16.msra.mxu1 %v3488_v17 }
 0x1b9   :  { %925 = vmatprep.subr.bf16.mxu0 %v3469_v11  ;;  %2627 = vmatprep.subr.bf16.mxu1 %v4444_v18 }
 0x1bc   :  { %926 = vmatpush1.bf16.msra.mxu0 %v3474_v13  ;;  %2628 = vmatpush3.bf16.msra.mxu1 %v3498_v20  ;;  %v4454_v20 = vld [vmem:[#allocation34_spill] sm:$0xff] }
 0x1bd   :  { %927 = vmatprep.subr.bf16.mxu0 %v3481_v15  ;;  %2629 = vmatprep.subr.bf16.mxu1 %v4444_v18  ;;  %v681_v15 = vld [vmem:[#allocation7 + $0x48] sm:$0xff]  ;;  %v679_v21 = vunpack.c.h.bf16 %v4454_v20 }
 0x1c0   :  { %928 = vmatpush1.bf16.msra.mxu0 %v3485_v16  ;;  %2630 = vmatpush3.bf16.msra.mxu1 %v4446_v49 }
 0x1c1   :  { %929 = vmatprep.subr.bf16.mxu0 %v4447_v58  ;;  %2631 = vmatprep.subr.bf16.mxu1 %v4444_v18 }
 0x1c4   :  { %930 = vmatpush1.bf16.msra.mxu0 %v4448_v1  ;;  %2632 = vmatpush3.bf16.msra.mxu1 %v4449_v25 }
 0x1c5   :  { %931 = vmatprep.subr.bf16.mxu0 %v4450_v22  ;;  %2633 = vmatprep.subr.bf16.mxu1 %v4444_v18 }
 0x1c8   :  { %932 = vmatpush1.bf16.msra.mxu0 %v4451_v23  ;;  %2634 = vmatpush3.bf16.msra.mxu1 %v4452_v60 }
 0x1c9   :  { %1021 = vmatprep.subr.bf16.mxu0 %v4453_v61  ;;  %2639 = vmatprep.subr.bf16.mxu1 %v4444_v18 }
 0x25e   :  { %v723_v62 = vpop.f32.mrb[8].mxu0  ;;  %v764_v63 = vpop.f32.mrb[8].mxu1 }
 0x25f   :  { %v770_v26 = vadd.f32 %v723_v62, %v677_v31  ;;  %v725_v0 = vpop.f32.mrb[9].mxu0  ;;  %v2597_v51 = vpop.f32.mrb[9].mxu1  ;;  %v4455_v31 = vld [vmem:[#allocation33_spill] sm:$0xff] }
 0x260   :  { %v727_v55 = vpop.f32.mrb[10].mxu0  ;;  %v767_v57 = vpop.f32.mrb[10].mxu1  ;;  %v777_v23 = vadd.f32 %v725_v0, %v678_v28  ;;  %v784_v62 = vadd.f32 %v4455_v31, %v764_v63 }
 0x261   :  { %v2367_v22 = vmul.f32 -1.442695, %v770_v26  ;;  %v728_v25 = vpop.f32.mrb[11].mxu0  ;;  %v2598_v1 = vpop.f32.mrb[11].mxu1  ;;  %v683_v26 = vunpack.c.l.bf16 %v681_v15 }
 0x262   :  { %v2368_v60 = vmul.f32 -1.442695, %v777_v23 }
 0x263   :  { %2959 = vpow2.f32 %v2367_v22  ;;  %v684_v22 = vunpack.c.h.bf16 %v681_v15 }
 0x264   :  { %2961 = vpow2.f32 %v2368_v60 }
 0x26d   :  { %v2960_v61 = vpop.eup %2959 }
 0x26e   :  { %v774_v58 = vadd.f32 1.0, %v2960_v61  ;;  %v2962_v49 = vpop.eup %2961 }
 0x26f   :  { %v781_v16 = vadd.f32 1.0, %v2962_v49 }
 0x270   :  { %2963 = vrcp.f32 %v774_v58 }
 0x271   :  { %2965 = vrcp.f32 %v781_v16 }
 0x27a   :  { %v2964_v51 = vpop.eup %2963 }
 0x27b   :  { %v785_v55 = vmul.f32 %v2964_v51, %v784_v62  ;;  %v2966_v63 = vpop.eup %2965 }
 0x27c   :  { %v788_v62 = vsub.f32 1.0, %v2966_v63  ;;  %v790_v51 = vmul.f32 %v2966_v63, %v3657_v59 }
 0x27d   :  { %v786_v25 = vadd.f32 %v785_v55, %v679_v21 }
 0x27e   :  { %v827_v1 = vpop.f32.mrb[12].mxu0  ;;  %v868_v28 = vpop.f32.mrb[12].mxu1 }
 0x27f   :  { %2967 = vtanh.f32 %v786_v25  ;;  %v874_v23 = vadd.f32 %v827_v1, %v683_v26  ;;  %v829_v60 = vpop.f32.mrb[13].mxu0  ;;  %v2617_v61 = vpop.f32.mrb[13].mxu1  ;;  %v888_v1 = vadd.f32 %v3669_v24, %v868_v28 }
 0x280   :  { %v831_v58 = vpop.f32.mrb[14].mxu0  ;;  %v871_v0 = vpop.f32.mrb[14].mxu1  ;;  %v881_v20 = vadd.f32 %v829_v60, %v684_v22 }
 0x281   :  { %v2369_v49 = vmul.f32 -1.442695, %v874_v23  ;;  %v832_v57 = vpop.f32.mrb[15].mxu0  ;;  %v2618_v13 = vpop.f32.mrb[15].mxu1 }
 0x282   :  { %v2370_v31 = vmul.f32 -1.442695, %v881_v20 }
 0x283   :  { %2969 = vpow2.f32 %v2369_v49 }
 0x284   :  { %2971 = vpow2.f32 %v2370_v31  ;;  %v685_v31 = vunpack.c.l.bf16 %v3673_v54 }
 0x289   :  { %v2968_v16 = vpop.eup %2967 }
 0x28a   :  { %v789_v21 = vmul.f32 %v2968_v16, %v788_v62 }
 0x28c   :  { %v3747_v15 = vadd.f32 %v790_v51, %v789_v21 }
 0x28d   :  { %v2970_v55 = vpop.eup %2969 }
 0x28e   :  { %v878_v26 = vadd.f32 1.0, %v2970_v55  ;;  %899 = vst [vmem:[#allocation13 + $0x8] sm:$0xff] %v3747_v15  ;;  %v916_v25 = vpack.c.bf16 %v3747_v15, %v3747_v15  ;;  %v2972_v13 = vpop.eup %2971 }
 0x28f   :  { %v885_v59 = vadd.f32 1.0, %v2972_v13 }
 0x290   :  { %2973 = vrcp.f32 %v878_v26  ;;  %950 = vmatmul.mubr.bf16.vlgmr.msra.gmra.mrb[16].mxu0 %v916_v25  ;;  %2636 = vmatmul.mubr.bf16.vlgmr.msra.gmra.mrb[16].mxu1 %v916_v25 }
 0x291   :  { %1022 = vmatpush1.bf16.msra.mxu0 %v3519_v27  ;;  %2640 = vmatpush3.bf16.msra.mxu1 %v3543_v34  ;;  %2975 = vrcp.f32 %v885_v59 }
 0x292   :  { %1023 = vmatprep.subr.bf16.mxu0 %v3525_v29  ;;  %2641 = vmatprep.subr.bf16.mxu1 %v4444_v18 }
 0x293   :  { %1053 = vmatprep.mubr.bf16.mxu0 %v4445_v19  ;;  %2655 = vmatprep.mubr.msk.bf16.mxu1 %vm3329_vm0, %v4444_v18 }
 0x295   :  { %1024 = vmatpush1.bf16.msra.mxu0 %v3528_v30  ;;  %2642 = vmatpush3.bf16.msra.mxu1 %v3553_v37 }
 0x296   :  { %1025 = vmatprep.subr.bf16.mxu0 %v3535_v32  ;;  %2643 = vmatprep.subr.bf16.mxu1 %v4444_v18 }
 0x299   :  { %1026 = vmatpush1.bf16.msra.mxu0 %v3540_v33  ;;  %2644 = vmatpush3.bf16.msra.mxu1 %v3565_v40 }
 0x29a   :  { %v2974_v22 = vpop.eup %2973  ;;  %1027 = vmatprep.subr.bf16.mxu0 %v3546_v35  ;;  %2645 = vmatprep.subr.bf16.mxu1 %v4444_v18 }
 0x29b   :  { %v889_v23 = vmul.f32 %v2974_v22, %v888_v1  ;;  %v2976_v54 = vpop.eup %2975 }
 0x29c   :  { %v892_v28 = vsub.f32 1.0, %v2976_v54  ;;  %v894_v0 = vmul.f32 %v2976_v54, %v3700_v56  ;;  %v3830_v54 = vld [vmem:[#allocation4 + $0x20] ss:$12 sps:$4 sm:$0xff]  }
 0x29d   :  { %v890_v60 = vadd.f32 %v889_v23, %v685_v31  ;;  %1028 = vmatpush1.bf16.msra.mxu0 %v3550_v36  ;;  %2646 = vmatpush3.bf16.msra.mxu1 %v3575_v43 }
 0x29e   :  { %1029 = vmatprep.subr.bf16.mxu0 %v3556_v38  ;;  %2647 = vmatprep.subr.bf16.mxu1 %v4444_v18 }
 0x29f   :  { %2977 = vtanh.f32 %v890_v60 }
 0x2a1   :  { %1030 = vmatpush1.bf16.msra.mxu0 %v3562_v39  ;;  %2648 = vmatpush3.bf16.msra.mxu1 %v3585_v46 }
 0x2a2   :  { %1031 = vmatprep.subr.bf16.mxu0 %v3568_v41  ;;  %2649 = vmatprep.subr.bf16.mxu1 %v4444_v18 }
 0x2a5   :  { %1032 = vmatpush1.bf16.msra.mxu0 %v3572_v42  ;;  %2650 = vmatpush3.bf16.msra.mxu1 %v3597_v50 }
 0x2a6   :  { %1033 = vmatprep.subr.bf16.mxu0 %v3578_v44  ;;  %2651 = vmatprep.subr.bf16.mxu1 %v4444_v18 }
 0x2a9   :  { %v2978_v61 = vpop.eup %2977  ;;  %1034 = vmatpush1.bf16.msra.mxu0 %v3582_v45  ;;  %2652 = vmatpush3.bf16.msra.mxu1 %v3605_v52 }
 0x2aa   :  { %1035 = vmatprep.subr.bf16.mxu0 %v3588_v47  ;;  %2653 = vmatprep.subr.bf16.mxu1 %v4444_v18  ;;  %v893_v58 = vmul.f32 %v2978_v61, %v892_v28  ;;  %v909_v61 = vld [vmem:[#allocation7 + $0x3c] sm:$0xff] }
 0x2ac   :  { %v3786_v49 = vadd.f32 %v894_v0, %v893_v58  ;;  %v907_v58 = vunpack.c.l.bf16 %v3830_v54  ;;  %v4468_v0 = vld [vmem:[#allocation33_spill] sm:$0xff] }
 0x2ad   :  { %1036 = vmatpush1.bf16.msra.mxu0 %v3592_v48  ;;  %2654 = vmatpush3.bf16.msra.mxu1 %v3610_v53 }
 0x2ae   :  { %901 = vst [vmem:[#allocation14 + $0x30] sm:$0xff] %v3786_v49  ;;  %v1020_v57 = vpack.c.bf16 %v3786_v49, %v3786_v49  ;;  %1145 = vmatprep.subr.bf16.mxu0 %v3443_v2  ;;  %2659 = vmatprep.subr.bf16.mxu1 %v4444_v18  ;;  %v4456_v2 = vld [vmem:[#allocation21_spill] sm:$0xff] }
 0x2b0   :  { %1054 = vmatmul.mubr.bf16.vlgmr.msra.gmra.mrb[20].mxu0 %v1020_v57  ;;  %2656 = vmatmul.mubr.bf16.vlgmr.msra.gmra.mrb[20].mxu1 %v1020_v57 }
 0x2b1   :  { %1146 = vmatpush1.bf16.msra.mxu0 %v3445_v3  ;;  %2660 = vmatpush3.bf16.msra.mxu1 %v3462_v9  ;;  %v4457_v3 = vld [vmem:[#allocation26_spill] sm:$0xff]  ;;  %v4463_v9 = vld [vmem:[#allocation31_spill] sm:$0xff] }
 0x2b2   :  { %1147 = vmatprep.subr.bf16.mxu0 %v3448_v4  ;;  %2661 = vmatprep.subr.bf16.mxu1 %v4444_v18  ;;  %v4458_v4 = vld [vmem:[#allocation22_spill] sm:$0xff] }
 0x2b3   :  { %1177 = vmatprep.mubr.bf16.mxu0 %v4445_v19  ;;  %2675 = vmatprep.mubr.msk.bf16.mxu1 %vm3329_vm0, %v4444_v18 }
 0x2b5   :  { %1148 = vmatpush1.bf16.msra.mxu0 %v3451_v5  ;;  %2662 = vmatpush3.bf16.msra.mxu1 %v3472_v12  ;;  %v4459_v5 = vld [vmem:[#allocation23_spill] sm:$0xff]  ;;  %v4466_v12 = vld [vmem:[#allocation32_spill] sm:$0xff] }
 0x2b6   :  { %1149 = vmatprep.subr.bf16.mxu0 %v3454_v6  ;;  %2663 = vmatprep.subr.bf16.mxu1 %v4444_v18  ;;  %v4460_v6 = vld [vmem:[#allocation29_spill] sm:$0xff] }
 0x2b9   :  { %1150 = vmatpush1.bf16.msra.mxu0 %v3457_v7  ;;  %2664 = vmatpush3.bf16.msra.mxu1 %v3478_v14  ;;  %v4461_v7 = vld [vmem:[#allocation24_spill] sm:$0xff]  ;;  %v4467_v14 = vld [vmem:[#allocation30_spill] sm:$0xff] }
 0x2ba   :  { %1151 = vmatprep.subr.bf16.mxu0 %v3460_v8  ;;  %2665 = vmatprep.subr.bf16.mxu1 %v4444_v18  ;;  %v4462_v8 = vld [vmem:[#allocation25_spill] sm:$0xff] }
 0x2bd   :  { %1152 = vmatpush1.bf16.msra.mxu0 %v3465_v10  ;;  %2666 = vmatpush3.bf16.msra.mxu1 %v3488_v17  ;;  %v4464_v10 = vld [vmem:[#allocation27_spill] sm:$0xff]  ;;  %v903_v17 = vld [vmem:[#allocation4 + $0x18] sm:$0xff] }
 0x2be   :  { %1153 = vmatprep.subr.bf16.mxu0 %v3469_v11  ;;  %2667 = vmatprep.subr.bf16.mxu1 %v4444_v18  ;;  %v4465_v11 = vld [vmem:[#allocation28_spill] sm:$0xff]  ;;  %v905_v56 = vunpack.c.l.bf16 %v903_v17  ;;  %v906_v62 = vunpack.c.h.bf16 %v903_v17 }
 0x2c1   :  { %1154 = vmatpush1.bf16.msra.mxu0 %v4456_v2  ;;  %2668 = vmatpush3.bf16.msra.mxu1 %v4457_v3 }
 0x2c2   :  { %1155 = vmatprep.subr.bf16.mxu0 %v4458_v4  ;;  %2669 = vmatprep.subr.bf16.mxu1 %v4444_v18  ;;  %v911_v4 = vunpack.c.l.bf16 %v909_v61 }
 0x2c5   :  { %1156 = vmatpush1.bf16.msra.mxu0 %v4459_v5  ;;  %2670 = vmatpush3.bf16.msra.mxu1 %v4460_v6 }
 0x2c6   :  { %1157 = vmatprep.subr.bf16.mxu0 %v4461_v7  ;;  %2671 = vmatprep.subr.bf16.mxu1 %v4444_v18 }
 0x2c9   :  { %1158 = vmatpush1.bf16.msra.mxu0 %v4462_v8  ;;  %2672 = vmatpush3.bf16.msra.mxu1 %v4463_v9  ;;  %v912_v8 = vunpack.c.h.bf16 %v909_v61  ;;  %v3936_v61 = vld [vmem:[#allocation9 + $0x7c] ss:$12 sps:$4 sm:$0xff]  }
 0x2ca   :  { %1159 = vmatprep.subr.bf16.mxu0 %v4464_v10  ;;  %2673 = vmatprep.subr.bf16.mxu1 %v4444_v18  ;;  %4471 = vst [vmem:[#allocation26_spill] sm:$0xff] %v3936_v61 }
 0x2cd   :  { %1160 = vmatpush1.bf16.msra.mxu0 %v4465_v11  ;;  %2674 = vmatpush3.bf16.msra.mxu1 %v4466_v12 }
 0x2ce   :  { %1249 = vmatprep.subr.bf16.mxu0 %v4467_v14  ;;  %2679 = vmatprep.subr.bf16.mxu1 %v4444_v18 }
 0x363   :  { %v951_v20 = vpop.f32.mrb[16].mxu0  ;;  %v992_v63 = vpop.f32.mrb[16].mxu1 }
 0x364   :  { %v998_v16 = vadd.f32 %v951_v20, %v905_v56  ;;  %v953_v21 = vpop.f32.mrb[17].mxu0  ;;  %v2637_v51 = vpop.f32.mrb[17].mxu1  ;;  %v1012_v57 = vadd.f32 %v4468_v0, %v992_v63 }
 0x365   :  { %v955_v55 = vpop.f32.mrb[18].mxu0  ;;  %v995_v26 = vpop.f32.mrb[18].mxu1  ;;  %v1005_v31 = vadd.f32 %v953_v21, %v906_v62 }
 0x366   :  { %v2371_v25 = vmul.f32 -1.442695, %v998_v16  ;;  %v956_v13 = vpop.f32.mrb[19].mxu0  ;;  %v2638_v59 = vpop.f32.mrb[19].mxu1 }
 0x367   :  { %v2372_v1 = vmul.f32 -1.442695, %v1005_v31 }
 0x368   :  { %2979 = vpow2.f32 %v2371_v25 }
 0x369   :  { %2981 = vpow2.f32 %v2372_v1  ;;  %v3849_v1 = vld [vmem:[#allocation7 + $0x38] ss:$12 sps:$4 sm:$0xff]  }
 0x372   :  { %v2980_v22 = vpop.eup %2979 }
 0x373   :  { %v1002_v23 = vadd.f32 1.0, %v2980_v22  ;;  %v2982_v60 = vpop.eup %2981 }
 0x374   :  { %v1009_v28 = vadd.f32 1.0, %v2982_v60  ;;  %v3930_v60 = vld [vmem:[#allocation9 + $0x60] ss:$12 sps:$4 sm:$0xff]  }
 0x375   :  { %2983 = vrcp.f32 %v1002_v23  ;;  %v3926_v23 = vld [vmem:[#allocation9 + $0x64] ss:$12 sps:$4 sm:$0xff]   ;;  %4469 = vst [vmem:[#allocation34_spill] sm:$0xff] %v3930_v60 }
 0x376   :  { %2985 = vrcp.f32 %v1009_v28  ;;  %v3933_v28 = vld [vmem:[#allocation9 + $0x68] ss:$12 sps:$4 sm:$0xff]  }
 0x377   :  { %4470 = vst [vmem:[#allocation21_spill] sm:$0xff] %v3933_v28 }
 0x37f   :  { %v2984_v2 = vpop.eup %2983 }
 0x380   :  { %v1013_v3 = vmul.f32 %v2984_v2, %v1012_v57  ;;  %v2986_v63 = vpop.eup %2985  ;;  %v3943_v57 = vld [vmem:[#allocation9 + $0x80] ss:$12 sps:$4 sm:$0xff]  }
 0x381   :  { %v1016_v21 = vsub.f32 1.0, %v2986_v63  ;;  %v1018_v26 = vmul.f32 %v2986_v63, %v3747_v15  ;;  %4473 = vst [vmem:[#allocation23_spill] sm:$0xff] %v3943_v57  ;;  %v3946_v2 = vld [vmem:[#allocation9 + $0x94] ss:$12 sps:$4 sm:$0xff]  }
 0x382   :  { %v1014_v5 = vadd.f32 %v1013_v3, %v907_v58  ;;  %v3940_v58 = vld [vmem:[#allocation9 + $0x78] ss:$12 sps:$4 sm:$0xff]   ;;  %4474 = vst [vmem:[#allocation29_spill] sm:$0xff] %v3946_v2  ;;  %v3950_v3 = vld [vmem:[#allocation9 + $0x90] ss:$12 sps:$4 sm:$0xff]  }
 0x383   :  { %v1055_v6 = vpop.f32.mrb[20].mxu0  ;;  %v1096_v7 = vpop.f32.mrb[20].mxu1  ;;  %4472 = vst [vmem:[#allocation22_spill] sm:$0xff] %v3940_v58  ;;  %4475 = vst [vmem:[#allocation24_spill] sm:$0xff] %v3950_v3 }
 0x384   :  { %2987 = vtanh.f32 %v1014_v5  ;;  %v1102_v9 = vadd.f32 %v1055_v6, %v911_v4  ;;  %v1057_v10 = vpop.f32.mrb[21].mxu0  ;;  %v2657_v11 = vpop.f32.mrb[21].mxu1  ;;  %v3953_v4 = vld [vmem:[#allocation9 + $0x98] ss:$12 sps:$4 sm:$0xff]   ;;  %v3960_v6 = vld [vmem:[#allocation9 + $0xa8] ss:$12 sps:$4 sm:$0xff]  }
 0x385   :  { %v1059_v12 = vpop.f32.mrb[22].mxu0  ;;  %v1099_v14 = vpop.f32.mrb[22].mxu1  ;;  %v1109_v62 = vadd.f32 %v1057_v10, %v912_v8  ;;  %4476 = vst [vmem:[#allocation25_spill] sm:$0xff] %v3953_v4  ;;  %v3956_v5 = vld [vmem:[#allocation9 + $0xac] ss:$12 sps:$4 sm:$0xff]   ;;  %4478 = vst [vmem:[#allocation27_spill] sm:$0xff] %v3960_v6 }
 0x386   :  { %v2373_v17 = vmul.f32 -1.442695, %v1102_v9  ;;  %v1060_v56 = vpop.f32.mrb[23].mxu0  ;;  %v2658_v20 = vpop.f32.mrb[23].mxu1  ;;  %4477 = vst [vmem:[#allocation31_spill] sm:$0xff] %v3956_v5  ;;  %v1131_v9 = vld [vmem:[#allocation4 + $0x24] sm:$0xff] }
 0x387   :  { %v2374_v16 = vmul.f32 -1.442695, %v1109_v62  ;;  %v3966_v8 = vld [vmem:[#allocation9 + $0xc4] ss:$12 sps:$4 sm:$0xff]   ;;  %v1133_v10 = vunpack.c.l.bf16 %v1131_v9  ;;  %v1134_v14 = vunpack.c.h.bf16 %v1131_v9 }
 0x388   :  { %2989 = vpow2.f32 %v2373_v17  ;;  %4480 = vst [vmem:[#allocation32_spill] sm:$0xff] %v3966_v8 }
 0x389   :  { %2991 = vpow2.f32 %v2374_v16 }
 0x38e   :  { %v2988_v51 = vpop.eup %2987 }
 0x38f   :  { %v1017_v55 = vmul.f32 %v2988_v51, %v1016_v21 }
 0x391   :  { %v3835_v25 = vadd.f32 %v1018_v26, %v1017_v55 }
 0x392   :  { %v2990_v13 = vpop.eup %2989 }
 0x393   :  { %v1106_v59 = vadd.f32 1.0, %v2990_v13  ;;  %1127 = vst [vmem:[#allocation13 + $0x10] sm:$0xff] %v3835_v25  ;;  %v1144_v31 = vpack.c.bf16 %v3835_v25, %v3835_v25  ;;  %v2992_v15 = vpop.eup %2991 }
 0x395   :  { %2993 = vrcp.f32 %v1106_v59  ;;  %1178 = vmatmul.mubr.bf16.vlgmr.msra.gmra.mrb[24].mxu0 %v1144_v31  ;;  %2676 = vmatmul.mubr.bf16.vlgmr.msra.gmra.mrb[24].mxu1 %v1144_v31 }
 0x396   :  { %1250 = vmatpush1.bf16.msra.mxu0 %v3519_v27  ;;  %2680 = vmatpush3.bf16.msra.mxu1 %v3543_v34  ;;  %v1113_v27 = vadd.f32 1.0, %v2992_v15  ;;  %v1116_v34 = vadd.f32 %v3669_v24, %v1096_v7  ;;  %v3963_v7 = vld [vmem:[#allocation9 + $0xb0] ss:$12 sps:$4 sm:$0xff]  }
 0x397   :  { %1251 = vmatprep.subr.bf16.mxu0 %v3525_v29  ;;  %2681 = vmatprep.subr.bf16.mxu1 %v4444_v18  ;;  %v913_v29 = vunpack.c.h.bf16 %v3849_v1  ;;  %4479 = vst [vmem:[#allocation28_spill] sm:$0xff] %v3963_v7 }
 0x398   :  { %1281 = vmatprep.mubr.bf16.mxu0 %v4445_v19  ;;  %2695 = vmatprep.mubr.msk.bf16.mxu1 %vm3329_vm0, %v4444_v18  ;;  %2995 = vrcp.f32 %v1113_v27  ;;  %v1137_v27 = vld [vmem:[#allocation7 + $0x30] sm:$0xff] }
 0x39a   :  { %1252 = vmatpush1.bf16.msra.mxu0 %v3528_v30  ;;  %2682 = vmatpush3.bf16.msra.mxu1 %v3553_v37 }
 0x39b   :  { %1253 = vmatprep.subr.bf16.mxu0 %v3535_v32  ;;  %2683 = vmatprep.subr.bf16.mxu1 %v4444_v18 }
 0x39e   :  { %1254 = vmatpush1.bf16.msra.mxu0 %v3540_v33  ;;  %2684 = vmatpush3.bf16.msra.mxu1 %v3565_v40 }
 0x39f   :  { %v2994_v22 = vpop.eup %2993  ;;  %1255 = vmatprep.subr.bf16.mxu0 %v3546_v35  ;;  %2685 = vmatprep.subr.bf16.mxu1 %v4444_v18 }
 0x3a0   :  { %v1117_v30 = vmul.f32 %v2994_v22, %v1116_v34 }
 0x3a2   :  { %v1118_v37 = vadd.f32 %v1117_v30, %v913_v29  ;;  %1256 = vmatpush1.bf16.msra.mxu0 %v3550_v36  ;;  %2686 = vmatpush3.bf16.msra.mxu1 %v3575_v43  ;;  %v2996_v32 = vpop.eup %2995  ;;  %v3890_v43 = vld [vmem:[#allocation9 + $0x8] ss:$12 sps:$4 sm:$0xff]   ;;  %v1135_v29 = vunpack.c.h.bf16 %v3830_v54 }
 0x3a3   :  { %1257 = vmatprep.subr.bf16.mxu0 %v3556_v38  ;;  %2687 = vmatprep.subr.bf16.mxu1 %v4444_v18  ;;  %v1120_v33 = vsub.f32 1.0, %v2996_v32  ;;  %v1122_v38 = vmul.f32 %v2996_v32, %v3786_v49  ;;  %v3923_v49 = vld [vmem:[#allocation9 + $0x50] ss:$12 sps:$4 sm:$0xff]  }
 0x3a4   :  { %2997 = vtanh.f32 %v1118_v37  ;;  %v1139_v37 = vunpack.c.l.bf16 %v1137_v27 }
 0x3a6   :  { %1258 = vmatpush1.bf16.msra.mxu0 %v3562_v39  ;;  %2688 = vmatpush3.bf16.msra.mxu1 %v3585_v46  ;;  %v3903_v46 = vld [vmem:[#allocation9 + $0x20] ss:$12 sps:$4 sm:$0xff]  }
 0x3a7   :  { %1259 = vmatprep.subr.bf16.mxu0 %v3568_v41  ;;  %2689 = vmatprep.subr.bf16.mxu1 %v4444_v18  ;;  %v3883_v41 = vld [vmem:[#allocation9 + $0x4] ss:$12 sps:$4 sm:$0xff]  }
 0x3aa   :  { %1260 = vmatpush1.bf16.msra.mxu0 %v3572_v42  ;;  %2690 = vmatpush3.bf16.msra.mxu1 %v3597_v50  ;;  %v3887_v42 = vld [vmem:[#allocation9] ss:$12 sps:$4 sm:$0xff]   ;;  %v3913_v50 = vld [vmem:[#allocation9 + $0x38] ss:$12 sps:$4 sm:$0xff]  }
 0x3ab   :  { %1261 = vmatprep.subr.bf16.mxu0 %v3578_v44  ;;  %2691 = vmatprep.subr.bf16.mxu1 %v4444_v18  ;;  %v3893_v44 = vld [vmem:[#allocation9 + $0x1c] ss:$12 sps:$4 sm:$0xff]  }
 0x3ae   :  { %v2998_v35 = vpop.eup %2997  ;;  %1262 = vmatpush1.bf16.msra.mxu0 %v3582_v45  ;;  %2692 = vmatpush3.bf16.msra.mxu1 %v3605_v52  ;;  %v3900_v45 = vld [vmem:[#allocation9 + $0x18] ss:$12 sps:$4 sm:$0xff]  }
 0x3af   :  { %1263 = vmatprep.subr.bf16.mxu0 %v3588_v47  ;;  %2693 = vmatprep.subr.bf16.mxu1 %v4444_v18  ;;  %v1121_v36 = vmul.f32 %v2998_v35, %v1120_v33  ;;  %v3906_v47 = vld [vmem:[#allocation9 + $0x34] ss:$12 sps:$4 sm:$0xff]   ;;  %v3916_v52 = vld [vmem:[#allocation9 + $0x4c] ss:$12 sps:$4 sm:$0xff]  }
 0x3b1   :  { %v3876_v39 = vadd.f32 %v1122_v38, %v1121_v36  ;;  %v1140_v36 = vunpack.c.h.bf16 %v1137_v27  ;;  %v3994_v27 = vld [vmem:[#allocation9 + $0xe0] ss:$12 sps:$4 sm:$0xff]  }
 0x3b2   :  { %1264 = vmatpush1.bf16.msra.mxu0 %v3592_v48  ;;  %2694 = vmatpush3.bf16.msra.mxu1 %v3610_v53  ;;  %v3910_v48 = vld [vmem:[#allocation9 + $0x30] ss:$12 sps:$4 sm:$0xff]   ;;  %v3920_v53 = vld [vmem:[#allocation9 + $0x48] ss:$12 sps:$4 sm:$0xff]  }
 0x3b3   :  { %1129 = vst [vmem:[#allocation14 + $0x28] sm:$0xff] %v3876_v39  ;;  %v1248_v40 = vpack.c.bf16 %v3876_v39, %v3876_v39  ;;  %1373 = vmatprep.subr.bf16.mxu0 %v3883_v41  ;;  %2699 = vmatprep.subr.bf16.mxu1 %v4444_v18 }
 0x3b5   :  { %1282 = vmatmul.mubr.bf16.vlgmr.msra.gmra.mrb[28].mxu0 %v1248_v40  ;;  %2696 = vmatmul.mubr.bf16.vlgmr.msra.gmra.mrb[28].mxu1 %v1248_v40 }
 0x3b6   :  { %1374 = vmatpush1.bf16.msra.mxu0 %v3887_v42  ;;  %2700 = vmatpush3.bf16.msra.mxu1 %v3890_v43 }
 0x3b7   :  { %1375 = vmatprep.subr.bf16.mxu0 %v3893_v44  ;;  %2701 = vmatprep.subr.bf16.mxu1 %v4444_v18 }
 0x3b8   :  { %1405 = vmatprep.mubr.bf16.mxu0 %v4445_v19  ;;  %2715 = vmatprep.mubr.msk.bf16.mxu1 %vm3329_vm0, %v4444_v18 }
 0x3ba   :  { %1376 = vmatpush1.bf16.msra.mxu0 %v3900_v45  ;;  %2702 = vmatpush3.bf16.msra.mxu1 %v3903_v46 }
 0x3bb   :  { %1377 = vmatprep.subr.bf16.mxu0 %v3906_v47  ;;  %2703 = vmatprep.subr.bf16.mxu1 %v4444_v18 }
 0x3be   :  { %1378 = vmatpush1.bf16.msra.mxu0 %v3910_v48  ;;  %2704 = vmatpush3.bf16.msra.mxu1 %v3913_v50 }
 0x3bf   :  { %1379 = vmatprep.subr.bf16.mxu0 %v3916_v52  ;;  %2705 = vmatprep.subr.bf16.mxu1 %v4444_v18 }
 0x3c2   :  { %1380 = vmatpush1.bf16.msra.mxu0 %v3920_v53  ;;  %2706 = vmatpush3.bf16.msra.mxu1 %v3923_v49 }
 0x3c3   :  { %1381 = vmatprep.subr.bf16.mxu0 %v3926_v23  ;;  %2707 = vmatprep.subr.bf16.mxu1 %v4444_v18 }
 0x3c6   :  { %1382 = vmatpush1.bf16.msra.mxu0 %v3930_v60  ;;  %2708 = vmatpush3.bf16.msra.mxu1 %v3933_v28 }
 0x3c7   :  { %1383 = vmatprep.subr.bf16.mxu0 %v3936_v61  ;;  %2709 = vmatprep.subr.bf16.mxu1 %v4444_v18 }
 0x3ca   :  { %1384 = vmatpush1.bf16.msra.mxu0 %v3940_v58  ;;  %2710 = vmatpush3.bf16.msra.mxu1 %v3943_v57 }
 0x3cb   :  { %1385 = vmatprep.subr.bf16.mxu0 %v3946_v2  ;;  %2711 = vmatprep.subr.bf16.mxu1 %v4444_v18 }
 0x3ce   :  { %1386 = vmatpush1.bf16.msra.mxu0 %v3950_v3  ;;  %2712 = vmatpush3.bf16.msra.mxu1 %v3953_v4 }
 0x3cf   :  { %1387 = vmatprep.subr.bf16.mxu0 %v3956_v5  ;;  %2713 = vmatprep.subr.bf16.mxu1 %v4444_v18 }
 0x3d2   :  { %1388 = vmatpush1.bf16.msra.mxu0 %v3960_v6  ;;  %2714 = vmatpush3.bf16.msra.mxu1 %v3963_v7 }
 0x3d3   :  { %1477 = vmatprep.subr.bf16.mxu0 %v3966_v8  ;;  %2719 = vmatprep.subr.bf16.mxu1 %v4444_v18 }
 0x468   :  { %v1179_v11 = vpop.f32.mrb[24].mxu0  ;;  %v1220_v12 = vpop.f32.mrb[24].mxu1 }
 0x469   :  { %v1226_v17 = vadd.f32 %v1179_v11, %v1133_v10  ;;  %v1181_v56 = vpop.f32.mrb[25].mxu0  ;;  %v2677_v20 = vpop.f32.mrb[25].mxu1  ;;  %v1240_v34 = vadd.f32 %v4468_v0, %v1220_v12 }
 0x46a   :  { %v1183_v62 = vpop.f32.mrb[26].mxu0  ;;  %v1223_v63 = vpop.f32.mrb[26].mxu1  ;;  %v1233_v55 = vadd.f32 %v1181_v56, %v1134_v14 }
 0x46b   :  { %v2375_v16 = vmul.f32 -1.442695, %v1226_v17  ;;  %v1184_v21 = vpop.f32.mrb[27].mxu0  ;;  %v2678_v51 = vpop.f32.mrb[27].mxu1 }
 0x46c   :  { %v2376_v26 = vmul.f32 -1.442695, %v1233_v55 }
 0x46d   :  { %2999 = vpow2.f32 %v2375_v16 }
 0x46e   :  { %3001 = vpow2.f32 %v2376_v26 }
 0x477   :  { %v3000_v13 = vpop.eup %2999 }
 0x478   :  { %v1230_v59 = vadd.f32 1.0, %v3000_v13  ;;  %v3002_v31 = vpop.eup %3001  ;;  %v3978_v13 = vld [vmem:[#allocation9 + $0xc0] ss:$12 sps:$4 sm:$0xff]  }
 0x479   :  { %v1237_v15 = vadd.f32 1.0, %v3002_v31 }
 0x47a   :  { %3003 = vrcp.f32 %v1230_v59  ;;  %v3981_v59 = vld [vmem:[#allocation9 + $0xc8] ss:$12 sps:$4 sm:$0xff]  }
 0x47b   :  { %3005 = vrcp.f32 %v1237_v15  ;;  %v3991_v15 = vld [vmem:[#allocation9 + $0xd8] ss:$12 sps:$4 sm:$0xff]  }
 0x484   :  { %v3004_v22 = vpop.eup %3003 }
 0x485   :  { %v1241_v30 = vmul.f32 %v3004_v22, %v1240_v34  ;;  %v3006_v0 = vpop.eup %3005  ;;  %v1141_v22 = vunpack.c.l.bf16 %v3849_v1 }
 0x486   :  { %v1244_v20 = vsub.f32 1.0, %v3006_v0  ;;  %v1246_v16 = vmul.f32 %v3006_v0, %v3835_v25  ;;  %v3984_v25 = vld [vmem:[#allocation9 + $0xdc] ss:$12 sps:$4 sm:$0xff]  }
 0x487   :  { %v1242_v32 = vadd.f32 %v1241_v30, %v1135_v29  ;;  %v3997_v29 = vld [vmem:[#allocation9 + $0xf4] ss:$12 sps:$4 sm:$0xff]  }
 0x488   :  { %v1283_v33 = vpop.f32.mrb[28].mxu0  ;;  %v1324_v35 = vpop.f32.mrb[28].mxu1 }
 0x489   :  { %3007 = vtanh.f32 %v1242_v32  ;;  %v1330_v38 = vadd.f32 %v1283_v33, %v1139_v37  ;;  %v1285_v40 = vpop.f32.mrb[29].mxu0  ;;  %v2697_v9 = vpop.f32.mrb[29].mxu1  ;;  %v1344_v30 = vadd.f32 %v3669_v24, %v1324_v35  ;;  %v4003_v37 = vld [vmem:[#allocation9 + $0xf0] ss:$12 sps:$4 sm:$0xff]   ;;  %v4006_v32 = vld [vmem:[#allocation9 + $0xf8] ss:$12 sps:$4 sm:$0xff]  }
 0x48a   :  { %v1287_v10 = vpop.f32.mrb[30].mxu0  ;;  %v1327_v11 = vpop.f32.mrb[30].mxu1  ;;  %v1337_v54 = vadd.f32 %v1285_v40, %v1140_v36  ;;  %v4009_v36 = vld [vmem:[#allocation9 + $0x10c] ss:$12 sps:$4 sm:$0xff]   ;;  %v4013_v40 = vld [vmem:[#allocation9 + $0x108] ss:$12 sps:$4 sm:$0xff]  }
 0x48b   :  { %v2377_v14 = vmul.f32 -1.442695, %v1330_v38  ;;  %v1288_v17 = vpop.f32.mrb[31].mxu0  ;;  %v2698_v56 = vpop.f32.mrb[31].mxu1  ;;  %v4016_v24 = vld [vmem:[#allocation9 + $0x110] ss:$12 sps:$4 sm:$0xff]  }
 0x48c   :  { %v2378_v12 = vmul.f32 -1.442695, %v1337_v54  ;;  %v4019_v35 = vld [vmem:[#allocation9 + $0x124] ss:$12 sps:$4 sm:$0xff]   ;;  %v4023_v9 = vld [vmem:[#allocation9 + $0x120] ss:$12 sps:$4 sm:$0xff]  }
 0x48d   :  { %3009 = vpow2.f32 %v2377_v14  ;;  %v4026_v10 = vld [vmem:[#allocation9 + $0x128] ss:$12 sps:$4 sm:$0xff]   ;;  %v4033_v17 = vld [vmem:[#allocation9 + $0x138] ss:$12 sps:$4 sm:$0xff]   ;;  %v4036_v56 = vld [vmem:[#allocation9 + $0x140] ss:$12 sps:$4 sm:$0xff]  }
 0x48e   :  { %3011 = vpow2.f32 %v2378_v12  ;;  %v4029_v11 = vld [vmem:[#allocation9 + $0x13c] ss:$12 sps:$4 sm:$0xff]   ;;  %v4039_v54 = vld [vmem:[#allocation9 + $0x154] ss:$12 sps:$4 sm:$0xff]  }
 0x493   :  { %v3008_v62 = vpop.eup %3007 }
 0x494   :  { %v1245_v63 = vmul.f32 %v3008_v62, %v1244_v20  ;;  %v4043_v20 = vld [vmem:[#allocation9 + $0x150] ss:$12 sps:$4 sm:$0xff]   ;;  %v4046_v62 = vld [vmem:[#allocation9 + $0x158] ss:$12 sps:$4 sm:$0xff]  }
 0x496   :  { %v3973_v21 = vadd.f32 %v1246_v16, %v1245_v63  ;;  %v4049_v63 = vld [vmem:[#allocation9 + $0x16c] ss:$12 sps:$4 sm:$0xff]  }
 0x497   :  { %v3010_v51 = vpop.eup %3009 }
 0x498   :  { %v1334_v55 = vadd.f32 1.0, %v3010_v51  ;;  %1355 = vst [vmem:[#allocation13 + $0x18] sm:$0xff] %v3973_v21  ;;  %v1372_v26 = vpack.c.bf16 %v3973_v21, %v3973_v21  ;;  %v3012_v31 = vpop.eup %3011 }
 0x499   :  { %v1341_v34 = vadd.f32 1.0, %v3012_v31  ;;  %v4059_v31 = vld [vmem:[#allocation9 + $0x170] ss:$12 sps:$4 sm:$0xff]  }
 0x49a   :  { %3013 = vrcp.f32 %v1334_v55  ;;  %1406 = vmatmul.mubr.bf16.vlgmr.msra.gmra.mrb[32].mxu0 %v1372_v26  ;;  %2716 = vmatmul.mubr.bf16.vlgmr.msra.gmra.mrb[32].mxu1 %v1372_v26  ;;  %v4056_v26 = vld [vmem:[#allocation9 + $0x168] ss:$12 sps:$4 sm:$0xff]  }
 0x49b   :  { %1478 = vmatpush1.bf16.msra.mxu0 %v3978_v13  ;;  %2720 = vmatpush3.bf16.msra.mxu1 %v3981_v59  ;;  %3015 = vrcp.f32 %v1341_v34 }
 0x49c   :  { %1479 = vmatprep.subr.bf16.mxu0 %v3984_v25  ;;  %2721 = vmatprep.subr.bf16.mxu1 %v4444_v18 }
 0x49d   :  { %1509 = vmatprep.mubr.bf16.mxu0 %v4445_v19  ;;  %2735 = vmatprep.mubr.msk.bf16.mxu1 %vm3329_vm0, %v4444_v18 }
 0x49f   :  { %1480 = vmatpush1.bf16.msra.mxu0 %v3991_v15  ;;  %2722 = vmatpush3.bf16.msra.mxu1 %v3994_v27 }
 0x4a0   :  { %1481 = vmatprep.subr.bf16.mxu0 %v3997_v29  ;;  %2723 = vmatprep.subr.bf16.mxu1 %v4444_v18 }
 0x4a3   :  { %1482 = vmatpush1.bf16.msra.mxu0 %v4003_v37  ;;  %2724 = vmatpush3.bf16.msra.mxu1 %v4006_v32 }
 0x4a4   :  { %v3014_v33 = vpop.eup %3013  ;;  %1483 = vmatprep.subr.bf16.mxu0 %v4009_v36  ;;  %2725 = vmatprep.subr.bf16.mxu1 %v4444_v18 }
 0x4a5   :  { %v1345_v38 = vmul.f32 %v3014_v33, %v1344_v30  ;;  %v3016_v14 = vpop.eup %3015 }
 0x4a6   :  { %v1348_v0 = vsub.f32 1.0, %v3016_v14  ;;  %v1350_v51 = vmul.f32 %v3016_v14, %v3876_v39  ;;  %v1359_v39 = vld [vmem:[#allocation4 + $0x30] sm:$0xff] }
 0x4a7   :  { %v1346_v1 = vadd.f32 %v1345_v38, %v1141_v22  ;;  %1484 = vmatpush1.bf16.msra.mxu0 %v4013_v40  ;;  %2726 = vmatpush3.bf16.msra.mxu1 %v4016_v24  ;;  %v1361_v22 = vunpack.c.l.bf16 %v1359_v39  ;;  %v1362_v38 = vunpack.c.h.bf16 %v1359_v39  ;;  %v1365_v39 = vld [vmem:[#allocation7 + $0x24] sm:$0xff] }
 0x4a8   :  { %1485 = vmatprep.subr.bf16.mxu0 %v4019_v35  ;;  %2727 = vmatprep.subr.bf16.mxu1 %v4444_v18 }
 0x4a9   :  { %3017 = vtanh.f32 %v1346_v1 }
 0x4ab   :  { %1486 = vmatpush1.bf16.msra.mxu0 %v4023_v9  ;;  %2728 = vmatpush3.bf16.msra.mxu1 %v4026_v10 }
 0x4ac   :  { %1487 = vmatprep.subr.bf16.mxu0 %v4029_v11  ;;  %2729 = vmatprep.subr.bf16.mxu1 %v4444_v18 }
 0x4af   :  { %1488 = vmatpush1.bf16.msra.mxu0 %v4033_v17  ;;  %2730 = vmatpush3.bf16.msra.mxu1 %v4036_v56 }
 0x4b0   :  { %1489 = vmatprep.subr.bf16.mxu0 %v4039_v54  ;;  %2731 = vmatprep.subr.bf16.mxu1 %v4444_v18 }
 0x4b3   :  { %v3018_v12 = vpop.eup %3017  ;;  %1490 = vmatpush1.bf16.msra.mxu0 %v4043_v20  ;;  %2732 = vmatpush3.bf16.msra.mxu1 %v4046_v62 }
 0x4b4   :  { %1491 = vmatprep.subr.bf16.mxu0 %v4049_v63  ;;  %2733 = vmatprep.subr.bf16.mxu1 %v4444_v18  ;;  %v1349_v16 = vmul.f32 %v3018_v12, %v1348_v0 }
 0x4b6   :  { %v4054_v55 = vadd.f32 %v1350_v51, %v1349_v16 }
 0x4b7   :  { %1492 = vmatpush1.bf16.msra.mxu0 %v4056_v26  ;;  %2734 = vmatpush3.bf16.msra.mxu1 %v4059_v31 }
 0x4b8   :  { %1357 = vst [vmem:[#allocation14 + $0x20] sm:$0xff] %v4054_v55  ;;  %v1476_v34 = vpack.c.bf16 %v4054_v55, %v4054_v55  ;;  %1601 = vmatprep.subr.bf16.mxu0 %v3883_v41  ;;  %2739 = vmatprep.subr.bf16.mxu1 %v4444_v18 }
 0x4ba   :  { %1510 = vmatmul.mubr.bf16.vlgmr.msra.gmra.mrb[36].mxu0 %v1476_v34  ;;  %2736 = vmatmul.mubr.bf16.vlgmr.msra.gmra.mrb[36].mxu1 %v1476_v34 }
 0x4bb   :  { %1602 = vmatpush1.bf16.msra.mxu0 %v3887_v42  ;;  %2740 = vmatpush3.bf16.msra.mxu1 %v3890_v43 }
 0x4bc   :  { %1603 = vmatprep.subr.bf16.mxu0 %v3893_v44  ;;  %2741 = vmatprep.subr.bf16.mxu1 %v4444_v18 }
 0x4bd   :  { %1633 = vmatprep.mubr.bf16.mxu0 %v4445_v19  ;;  %2755 = vmatprep.mubr.msk.bf16.mxu1 %vm3329_vm0, %v4444_v18 }
 0x4bf   :  { %1604 = vmatpush1.bf16.msra.mxu0 %v3900_v45  ;;  %2742 = vmatpush3.bf16.msra.mxu1 %v3903_v46 }
 0x4c0   :  { %1605 = vmatprep.subr.bf16.mxu0 %v3906_v47  ;;  %2743 = vmatprep.subr.bf16.mxu1 %v4444_v18 }
 0x4c3   :  { %1606 = vmatpush1.bf16.msra.mxu0 %v3910_v48  ;;  %2744 = vmatpush3.bf16.msra.mxu1 %v3913_v50 }
 0x4c4   :  { %1607 = vmatprep.subr.bf16.mxu0 %v3916_v52  ;;  %2745 = vmatprep.subr.bf16.mxu1 %v4444_v18 }
 0x4c7   :  { %1608 = vmatpush1.bf16.msra.mxu0 %v3920_v53  ;;  %2746 = vmatpush3.bf16.msra.mxu1 %v3923_v49 }
 0x4c8   :  { %1609 = vmatprep.subr.bf16.mxu0 %v3926_v23  ;;  %2747 = vmatprep.subr.bf16.mxu1 %v4444_v18 }
 0x4cb   :  { %1610 = vmatpush1.bf16.msra.mxu0 %v3930_v60  ;;  %2748 = vmatpush3.bf16.msra.mxu1 %v3933_v28 }
 0x4cc   :  { %1611 = vmatprep.subr.bf16.mxu0 %v3936_v61  ;;  %2749 = vmatprep.subr.bf16.mxu1 %v4444_v18 }
 0x4cf   :  { %1612 = vmatpush1.bf16.msra.mxu0 %v3940_v58  ;;  %2750 = vmatpush3.bf16.msra.mxu1 %v3943_v57 }
 0x4d0   :  { %1613 = vmatprep.subr.bf16.mxu0 %v3946_v2  ;;  %2751 = vmatprep.subr.bf16.mxu1 %v4444_v18  ;;  %v4102_v2 = vld [vmem:[#allocation4 + $0x38] ss:$12 sps:$4 sm:$0xff]  }
 0x4d1   :  { %4481 = vst [vmem:[#allocation30_spill] sm:$0xff] %v4102_v2 }
 0x4d3   :  { %1614 = vmatpush1.bf16.msra.mxu0 %v3950_v3  ;;  %2752 = vmatpush3.bf16.msra.mxu1 %v3953_v4 }
 0x4d4   :  { %1615 = vmatprep.subr.bf16.mxu0 %v3956_v5  ;;  %2753 = vmatprep.subr.bf16.mxu1 %v4444_v18 }
 0x4d7   :  { %1616 = vmatpush1.bf16.msra.mxu0 %v3960_v6  ;;  %2754 = vmatpush3.bf16.msra.mxu1 %v3963_v7 }
 0x4d8   :  { %1705 = vmatprep.subr.bf16.mxu0 %v3966_v8  ;;  %2759 = vmatprep.subr.bf16.mxu1 %v4444_v18 }
 0x56d   :  { %v1407_v30 = vpop.f32.mrb[32].mxu0  ;;  %v1448_v33 = vpop.f32.mrb[32].mxu1 }
 0x56e   :  { %v1454_v1 = vadd.f32 %v1407_v30, %v1361_v22  ;;  %v1409_v14 = vpop.f32.mrb[33].mxu0  ;;  %v2717_v0 = vpop.f32.mrb[33].mxu1  ;;  %v1363_v22 = vunpack.c.l.bf16 %v4102_v2  ;;  %v4105_v30 = vld [vmem:[#allocation10] ss:$0 sm:$0xff] }
 0x56f   :  { %v1411_v12 = vpop.f32.mrb[34].mxu0  ;;  %v1451_v16 = vpop.f32.mrb[34].mxu1  ;;  %v1461_v6 = vadd.f32 %v1409_v14, %v1362_v38  ;;  %4482 = vst [vmem:[#allocation33_spill] sm:$0xff] %v4105_v30  ;;  %v1367_v38 = vunpack.c.l.bf16 %v1365_v39 }
 0x570   :  { %v2379_v51 = vmul.f32 -1.442695, %v1454_v1  ;;  %v1412_v34 = vpop.f32.mrb[35].mxu0  ;;  %v2718_v5 = vpop.f32.mrb[35].mxu1  ;;  %v1468_v1 = vadd.f32 %v4105_v30, %v1448_v33 }
 0x571   :  { %v2380_v7 = vmul.f32 -1.442695, %v1461_v6 }
 0x572   :  { %3019 = vpow2.f32 %v2379_v51 }
 0x573   :  { %3021 = vpow2.f32 %v2380_v7 }
 0x57c   :  { %v3020_v8 = vpop.eup %3019 }
 0x57d   :  { %v1458_v4 = vadd.f32 1.0, %v3020_v8  ;;  %v3022_v3 = vpop.eup %3021  ;;  %v1368_v8 = vunpack.c.h.bf16 %v1365_v39 }
 0x57e   :  { %v1465_v57 = vadd.f32 1.0, %v3022_v3 }
 0x57f   :  { %3023 = vrcp.f32 %v1458_v4 }
 0x580   :  { %3025 = vrcp.f32 %v1465_v57 }
 0x589   :  { %v3024_v0 = vpop.eup %3023 }
 0x58a   :  { %v1469_v5 = vmul.f32 %v3024_v0, %v1468_v1  ;;  %v3026_v33 = vpop.eup %3025 }
 0x58b   :  { %v1472_v1 = vsub.f32 1.0, %v3026_v33  ;;  %v1474_v0 = vmul.f32 %v3026_v33, %v3973_v21 }
 0x58c   :  { %v1470_v6 = vadd.f32 %v1469_v5, %v1363_v22 }
 0x58d   :  { %v1511_v7 = vpop.f32.mrb[36].mxu0  ;;  %v1552_v14 = vpop.f32.mrb[36].mxu1 }
 0x58e   :  { %3027 = vtanh.f32 %v1470_v6  ;;  %v1558_v4 = vadd.f32 %v1511_v7, %v1367_v38  ;;  %v1513_v12 = vpop.f32.mrb[37].mxu0  ;;  %v2737_v16 = vpop.f32.mrb[37].mxu1  ;;  %v4128_v6 = vld [vmem:[#allocation10 + $0x1] ss:$0 sm:$0xff] }
 0x58f   :  { %v1515_v3 = vpop.f32.mrb[38].mxu0  ;;  %v1555_v51 = vpop.f32.mrb[38].mxu1  ;;  %v1565_v61 = vadd.f32 %v1513_v12, %v1368_v8  ;;  %v1572_v7 = vadd.f32 %v4128_v6, %v1552_v14 }
 0x590   :  { %v2381_v34 = vmul.f32 -1.442695, %v1558_v4  ;;  %v1516_v2 = vpop.f32.mrb[39].mxu0  ;;  %v2738_v58 = vpop.f32.mrb[39].mxu1 }
 0x591   :  { %v2382_v30 = vmul.f32 -1.442695, %v1565_v61  ;;  %v4123_v58 = vld [vmem:[#allocation7 + $0x20] ss:$12 sps:$4 sm:$0xff]  }
 0x592   :  { %3029 = vpow2.f32 %v2381_v34 }
 0x593   :  { %3031 = vpow2.f32 %v2382_v30  ;;  %v1369_v30 = vunpack.c.h.bf16 %v4123_v58 }
 0x598   :  { %v3028_v57 = vpop.eup %3027 }
 0x599   :  { %v1473_v22 = vmul.f32 %v3028_v57, %v1472_v1  ;;  %v4484_v57 = vld [vmem:[#allocation22_spill] sm:$0xff] }
 0x59b   :  { %v4109_v39 = vadd.f32 %v1474_v0, %v1473_v22  ;;  %v4485_v22 = vld [vmem:[#allocation23_spill] sm:$0xff]  ;;  %v4486_v0 = vld [vmem:[#allocation29_spill] sm:$0xff] }
 0x59c   :  { %v3030_v5 = vpop.eup %3029 }
 0x59d   :  { %v1562_v38 = vadd.f32 1.0, %v3030_v5  ;;  %1583 = vst [vmem:[#allocation13 + $0x20] sm:$0xff] %v4109_v39  ;;  %v1600_v2 = vpack.c.bf16 %v4109_v39, %v4109_v39  ;;  %v3032_v61 = vpop.eup %3031  ;;  %v4487_v5 = vld [vmem:[#allocation24_spill] sm:$0xff] }
 0x59e   :  { %v1569_v21 = vadd.f32 1.0, %v3032_v61  ;;  %v4490_v61 = vld [vmem:[#allocation27_spill] sm:$0xff] }
 0x59f   :  { %3033 = vrcp.f32 %v1562_v38  ;;  %1634 = vmatmul.mubr.bf16.vlgmr.msra.gmra.mrb[40].mxu0 %v1600_v2  ;;  %2756 = vmatmul.mubr.bf16.vlgmr.msra.gmra.mrb[40].mxu1 %v1600_v2  ;;  %v4488_v38 = vld [vmem:[#allocation25_spill] sm:$0xff]  ;;  %v4489_v2 = vld [vmem:[#allocation31_spill] sm:$0xff] }
 0x5a0   :  { %1706 = vmatpush1.bf16.msra.mxu0 %v3978_v13  ;;  %2760 = vmatpush3.bf16.msra.mxu1 %v3981_v59  ;;  %3035 = vrcp.f32 %v1569_v21  ;;  %v4491_v21 = vld [vmem:[#allocation28_spill] sm:$0xff] }
 0x5a1   :  { %1707 = vmatprep.subr.bf16.mxu0 %v3984_v25  ;;  %2761 = vmatprep.subr.bf16.mxu1 %v4444_v18 }
 0x5a2   :  { %1737 = vmatprep.mubr.bf16.mxu0 %v4445_v19  ;;  %2775 = vmatprep.mubr.msk.bf16.mxu1 %vm3329_vm0, %v4444_v18 }
 0x5a4   :  { %1708 = vmatpush1.bf16.msra.mxu0 %v3991_v15  ;;  %2762 = vmatpush3.bf16.msra.mxu1 %v3994_v27 }
 0x5a5   :  { %1709 = vmatprep.subr.bf16.mxu0 %v3997_v29  ;;  %2763 = vmatprep.subr.bf16.mxu1 %v4444_v18 }
 0x5a8   :  { %1710 = vmatpush1.bf16.msra.mxu0 %v4003_v37  ;;  %2764 = vmatpush3.bf16.msra.mxu1 %v4006_v32 }
 0x5a9   :  { %v3034_v8 = vpop.eup %3033  ;;  %1711 = vmatprep.subr.bf16.mxu0 %v4009_v36  ;;  %2765 = vmatprep.subr.bf16.mxu1 %v4444_v18 }
 0x5aa   :  { %v1573_v4 = vmul.f32 %v3034_v8, %v1572_v7  ;;  %v3036_v14 = vpop.eup %3035  ;;  %v1587_v7 = vld [vmem:[#allocation4 + $0x3c] sm:$0xff] }
 0x5ab   :  { %v1576_v16 = vsub.f32 1.0, %v3036_v14  ;;  %v1578_v34 = vmul.f32 %v3036_v14, %v4054_v55  ;;  %v4483_v55 = vld [vmem:[#allocation26_spill] sm:$0xff]  ;;  %v1589_v8 = vunpack.c.l.bf16 %v1587_v7  ;;  %v1590_v14 = vunpack.c.h.bf16 %v1587_v7 }
 0x5ac   :  { %v1574_v12 = vadd.f32 %v1573_v4, %v1369_v30  ;;  %1712 = vmatpush1.bf16.msra.mxu0 %v4013_v40  ;;  %2766 = vmatpush3.bf16.msra.mxu1 %v4016_v24  ;;  %v4492_v30 = vld [vmem:[#allocation32_spill] sm:$0xff] }
 0x5ad   :  { %1713 = vmatprep.subr.bf16.mxu0 %v4019_v35  ;;  %2767 = vmatprep.subr.bf16.mxu1 %v4444_v18 }
 0x5ae   :  { %3037 = vtanh.f32 %v1574_v12 }
 0x5b0   :  { %1714 = vmatpush1.bf16.msra.mxu0 %v4023_v9  ;;  %2768 = vmatpush3.bf16.msra.mxu1 %v4026_v10 }
 0x5b1   :  { %1715 = vmatprep.subr.bf16.mxu0 %v4029_v11  ;;  %2769 = vmatprep.subr.bf16.mxu1 %v4444_v18 }
 0x5b4   :  { %1716 = vmatpush1.bf16.msra.mxu0 %v4033_v17  ;;  %2770 = vmatpush3.bf16.msra.mxu1 %v4036_v56 }
 0x5b5   :  { %1717 = vmatprep.subr.bf16.mxu0 %v4039_v54  ;;  %2771 = vmatprep.subr.bf16.mxu1 %v4444_v18 }
 0x5b8   :  { %v3038_v3 = vpop.eup %3037  ;;  %1718 = vmatpush1.bf16.msra.mxu0 %v4043_v20  ;;  %2772 = vmatpush3.bf16.msra.mxu1 %v4046_v62 }
 0x5b9   :  { %1719 = vmatprep.subr.bf16.mxu0 %v4049_v63  ;;  %2773 = vmatprep.subr.bf16.mxu1 %v4444_v18  ;;  %v1577_v51 = vmul.f32 %v3038_v3, %v1576_v16 }
 0x5bb   :  { %v4152_v33 = vadd.f32 %v1578_v34, %v1577_v51 }
 0x5bc   :  { %1720 = vmatpush1.bf16.msra.mxu0 %v4056_v26  ;;  %2774 = vmatpush3.bf16.msra.mxu1 %v4059_v31 }
 0x5bd   :  { %1585 = vst [vmem:[#allocation14 + $0x18] sm:$0xff] %v4152_v33  ;;  %v1704_v1 = vpack.c.bf16 %v4152_v33, %v4152_v33  ;;  %1829 = vmatprep.subr.bf16.mxu0 %v3883_v41  ;;  %2779 = vmatprep.subr.bf16.mxu1 %v4444_v18 }
 0x5bf   :  { %1738 = vmatmul.mubr.bf16.vlgmr.msra.gmra.mrb[44].mxu0 %v1704_v1  ;;  %2776 = vmatmul.mubr.bf16.vlgmr.msra.gmra.mrb[44].mxu1 %v1704_v1 }
 0x5c0   :  { %1830 = vmatpush1.bf16.msra.mxu0 %v3887_v42  ;;  %2780 = vmatpush3.bf16.msra.mxu1 %v3890_v43 }
 0x5c1   :  { %1831 = vmatprep.subr.bf16.mxu0 %v3893_v44  ;;  %2781 = vmatprep.subr.bf16.mxu1 %v4444_v18 }
 0x5c2   :  { %1861 = vmatprep.mubr.bf16.mxu0 %v4445_v19  ;;  %2795 = vmatprep.mubr.msk.bf16.mxu1 %vm3329_vm0, %v4444_v18 }
 0x5c4   :  { %1832 = vmatpush1.bf16.msra.mxu0 %v3900_v45  ;;  %2782 = vmatpush3.bf16.msra.mxu1 %v3903_v46 }
 0x5c5   :  { %1833 = vmatprep.subr.bf16.mxu0 %v3906_v47  ;;  %2783 = vmatprep.subr.bf16.mxu1 %v4444_v18 }
 0x5c8   :  { %1834 = vmatpush1.bf16.msra.mxu0 %v3910_v48  ;;  %2784 = vmatpush3.bf16.msra.mxu1 %v3913_v50 }
 0x5c9   :  { %1835 = vmatprep.subr.bf16.mxu0 %v3916_v52  ;;  %2785 = vmatprep.subr.bf16.mxu1 %v4444_v18 }
 0x5cc   :  { %1836 = vmatpush1.bf16.msra.mxu0 %v3920_v53  ;;  %2786 = vmatpush3.bf16.msra.mxu1 %v3923_v49 }
 0x5cd   :  { %1837 = vmatprep.subr.bf16.mxu0 %v3926_v23  ;;  %2787 = vmatprep.subr.bf16.mxu1 %v4444_v18 }
 0x5d0   :  { %1838 = vmatpush1.bf16.msra.mxu0 %v3930_v60  ;;  %2788 = vmatpush3.bf16.msra.mxu1 %v3933_v28  ;;  %v4493_v28 = vld [vmem:[#allocation30_spill] sm:$0xff] }
 0x5d1   :  { %1839 = vmatprep.subr.bf16.mxu0 %v4483_v55  ;;  %2789 = vmatprep.subr.bf16.mxu1 %v4444_v18  ;;  %v1593_v55 = vld [vmem:[#allocation7 + $0x18] sm:$0xff]  ;;  %v1591_v7 = vunpack.c.h.bf16 %v4493_v28 }
 0x5d4   :  { %1840 = vmatpush1.bf16.msra.mxu0 %v4484_v57  ;;  %2790 = vmatpush3.bf16.msra.mxu1 %v4485_v22 }
 0x5d5   :  { %1841 = vmatprep.subr.bf16.mxu0 %v4486_v0  ;;  %2791 = vmatprep.subr.bf16.mxu1 %v4444_v18 }
 0x5d8   :  { %1842 = vmatpush1.bf16.msra.mxu0 %v4487_v5  ;;  %2792 = vmatpush3.bf16.msra.mxu1 %v4488_v38 }
 0x5d9   :  { %1843 = vmatprep.subr.bf16.mxu0 %v4489_v2  ;;  %2793 = vmatprep.subr.bf16.mxu1 %v4444_v18 }
 0x5dc   :  { %1844 = vmatpush1.bf16.msra.mxu0 %v4490_v61  ;;  %2794 = vmatpush3.bf16.msra.mxu1 %v4491_v21 }
 0x5dd   :  { %1933 = vmatprep.subr.bf16.mxu0 %v4492_v30  ;;  %2799 = vmatprep.subr.bf16.mxu1 %v4444_v18 }
 0x672   :  { %v1635_v4 = vpop.f32.mrb[40].mxu0  ;;  %v1676_v12 = vpop.f32.mrb[40].mxu1 }
 0x673   :  { %v1682_v16 = vadd.f32 %v1635_v4, %v1589_v8  ;;  %v1637_v3 = vpop.f32.mrb[41].mxu0  ;;  %v2757_v51 = vpop.f32.mrb[41].mxu1  ;;  %v4494_v8 = vld [vmem:[#allocation33_spill] sm:$0xff] }
 0x674   :  { %v1639_v34 = vpop.f32.mrb[42].mxu0  ;;  %v1679_v1 = vpop.f32.mrb[42].mxu1  ;;  %v1689_v61 = vadd.f32 %v1637_v3, %v1590_v14  ;;  %v1696_v4 = vadd.f32 %v4494_v8, %v1676_v12 }
 0x675   :  { %v2383_v2 = vmul.f32 -1.442695, %v1682_v16  ;;  %v1640_v38 = vpop.f32.mrb[43].mxu0  ;;  %v2758_v5 = vpop.f32.mrb[43].mxu1  ;;  %v1595_v16 = vunpack.c.l.bf16 %v1593_v55 }
 0x676   :  { %v2384_v21 = vmul.f32 -1.442695, %v1689_v61 }
 0x677   :  { %3039 = vpow2.f32 %v2383_v2  ;;  %v1596_v2 = vunpack.c.h.bf16 %v1593_v55 }
 0x678   :  { %3041 = vpow2.f32 %v2384_v21 }
 0x681   :  { %v3040_v30 = vpop.eup %3039 }
 0x682   :  { %v1686_v0 = vadd.f32 1.0, %v3040_v30  ;;  %v3042_v22 = vpop.eup %3041 }
 0x683   :  { %v1693_v57 = vadd.f32 1.0, %v3042_v22 }
 0x684   :  { %3043 = vrcp.f32 %v1686_v0 }
 0x685   :  { %3045 = vrcp.f32 %v1693_v57 }
 0x68e   :  { %v3044_v51 = vpop.eup %3043 }
 0x68f   :  { %v1697_v34 = vmul.f32 %v3044_v51, %v1696_v4  ;;  %v3046_v12 = vpop.eup %3045 }
 0x690   :  { %v1700_v4 = vsub.f32 1.0, %v3046_v12  ;;  %v1702_v51 = vmul.f32 %v3046_v12, %v4109_v39 }
 0x691   :  { %v1698_v38 = vadd.f32 %v1697_v34, %v1591_v7 }
 0x692   :  { %v1739_v5 = vpop.f32.mrb[44].mxu0  ;;  %v1780_v14 = vpop.f32.mrb[44].mxu1 }
 0x693   :  { %3047 = vtanh.f32 %v1698_v38  ;;  %v1786_v61 = vadd.f32 %v1739_v5, %v1595_v16  ;;  %v1741_v21 = vpop.f32.mrb[45].mxu0  ;;  %v2777_v30 = vpop.f32.mrb[45].mxu1  ;;  %v1800_v5 = vadd.f32 %v4128_v6, %v1780_v14 }
 0x694   :  { %v1743_v0 = vpop.f32.mrb[46].mxu0  ;;  %v1783_v3 = vpop.f32.mrb[46].mxu1  ;;  %v1793_v28 = vadd.f32 %v1741_v21, %v1596_v2 }
 0x695   :  { %v2385_v22 = vmul.f32 -1.442695, %v1786_v61  ;;  %v1744_v1 = vpop.f32.mrb[47].mxu0  ;;  %v2778_v60 = vpop.f32.mrb[47].mxu1 }
 0x696   :  { %v2386_v8 = vmul.f32 -1.442695, %v1793_v28 }
 0x697   :  { %3049 = vpow2.f32 %v2385_v22 }
 0x698   :  { %3051 = vpow2.f32 %v2386_v8  ;;  %v1597_v8 = vunpack.c.l.bf16 %v4123_v58 }
 0x69d   :  { %v3048_v57 = vpop.eup %3047 }
 0x69e   :  { %v1701_v7 = vmul.f32 %v3048_v57, %v1700_v4 }
 0x6a0   :  { %v4199_v55 = vadd.f32 %v1702_v51, %v1701_v7 }
 0x6a1   :  { %v3050_v34 = vpop.eup %3049 }
 0x6a2   :  { %v1790_v16 = vadd.f32 1.0, %v3050_v34  ;;  %1811 = vst [vmem:[#allocation13 + $0x28] sm:$0xff] %v4199_v55  ;;  %v1828_v38 = vpack.c.bf16 %v4199_v55, %v4199_v55  ;;  %v3052_v60 = vpop.eup %3051 }
 0x6a3   :  { %v1797_v39 = vadd.f32 1.0, %v3052_v60 }
 0x6a4   :  { %3053 = vrcp.f32 %v1790_v16  ;;  %1862 = vmatmul.mubr.bf16.vlgmr.msra.gmra.mrb[48].mxu0 %v1828_v38  ;;  %2796 = vmatmul.mubr.bf16.vlgmr.msra.gmra.mrb[48].mxu1 %v1828_v38 }
 0x6a5   :  { %1934 = vmatpush1.bf16.msra.mxu0 %v3978_v13  ;;  %2800 = vmatpush3.bf16.msra.mxu1 %v3981_v59  ;;  %3055 = vrcp.f32 %v1797_v39 }
 0x6a6   :  { %1935 = vmatprep.subr.bf16.mxu0 %v3984_v25  ;;  %2801 = vmatprep.subr.bf16.mxu1 %v4444_v18 }
 0x6a7   :  { %1965 = vmatprep.mubr.bf16.mxu0 %v4445_v19  ;;  %2815 = vmatprep.mubr.msk.bf16.mxu1 %vm3329_vm0, %v4444_v18 }
 0x6a9   :  { %1936 = vmatpush1.bf16.msra.mxu0 %v3991_v15  ;;  %2802 = vmatpush3.bf16.msra.mxu1 %v3994_v27 }
 0x6aa   :  { %1937 = vmatprep.subr.bf16.mxu0 %v3997_v29  ;;  %2803 = vmatprep.subr.bf16.mxu1 %v4444_v18 }
 0x6ad   :  { %1938 = vmatpush1.bf16.msra.mxu0 %v4003_v37  ;;  %2804 = vmatpush3.bf16.msra.mxu1 %v4006_v32 }
 0x6ae   :  { %v3054_v2 = vpop.eup %3053  ;;  %1939 = vmatprep.subr.bf16.mxu0 %v4009_v36  ;;  %2805 = vmatprep.subr.bf16.mxu1 %v4444_v18 }
 0x6af   :  { %v1801_v61 = vmul.f32 %v3054_v2, %v1800_v5  ;;  %v3056_v58 = vpop.eup %3055 }
 0x6b0   :  { %v1804_v14 = vsub.f32 1.0, %v3056_v58  ;;  %v1806_v3 = vmul.f32 %v3056_v58, %v4152_v33  ;;  %v4282_v58 = vld [vmem:[#allocation4 + $0x50] ss:$12 sps:$4 sm:$0xff]  }
 0x6b1   :  { %v1802_v21 = vadd.f32 %v1801_v61, %v1597_v8  ;;  %1940 = vmatpush1.bf16.msra.mxu0 %v4013_v40  ;;  %2806 = vmatpush3.bf16.msra.mxu1 %v4016_v24 }
 0x6b2   :  { %1941 = vmatprep.subr.bf16.mxu0 %v4019_v35  ;;  %2807 = vmatprep.subr.bf16.mxu1 %v4444_v18 }
 0x6b3   :  { %3057 = vtanh.f32 %v1802_v21 }
 0x6b5   :  { %1942 = vmatpush1.bf16.msra.mxu0 %v4023_v9  ;;  %2808 = vmatpush3.bf16.msra.mxu1 %v4026_v10 }
 0x6b6   :  { %1943 = vmatprep.subr.bf16.mxu0 %v4029_v11  ;;  %2809 = vmatprep.subr.bf16.mxu1 %v4444_v18 }
 0x6b9   :  { %1944 = vmatpush1.bf16.msra.mxu0 %v4033_v17  ;;  %2810 = vmatpush3.bf16.msra.mxu1 %v4036_v56 }
 0x6ba   :  { %1945 = vmatprep.subr.bf16.mxu0 %v4039_v54  ;;  %2811 = vmatprep.subr.bf16.mxu1 %v4444_v18 }
 0x6bd   :  { %v3058_v30 = vpop.eup %3057  ;;  %1946 = vmatpush1.bf16.msra.mxu0 %v4043_v20  ;;  %2812 = vmatpush3.bf16.msra.mxu1 %v4046_v62 }
 0x6be   :  { %1947 = vmatprep.subr.bf16.mxu0 %v4049_v63  ;;  %2813 = vmatprep.subr.bf16.mxu1 %v4444_v18  ;;  %v1805_v0 = vmul.f32 %v3058_v30, %v1804_v14  ;;  %v1821_v30 = vld [vmem:[#allocation7 + $0xc] sm:$0xff] }
 0x6c0   :  { %v4238_v22 = vadd.f32 %v1806_v3, %v1805_v0  ;;  %v1819_v0 = vunpack.c.l.bf16 %v4282_v58  ;;  %v4507_v3 = vld [vmem:[#allocation33_spill] sm:$0xff] }
 0x6c1   :  { %1948 = vmatpush1.bf16.msra.mxu0 %v4056_v26  ;;  %2814 = vmatpush3.bf16.msra.mxu1 %v4059_v31 }
 0x6c2   :  { %1813 = vst [vmem:[#allocation14 + $0x10] sm:$0xff] %v4238_v22  ;;  %v1932_v1 = vpack.c.bf16 %v4238_v22, %v4238_v22  ;;  %2056 = vmatprep.subr.bf16.mxu0 %v3883_v41  ;;  %2819 = vmatprep.subr.bf16.mxu1 %v4444_v18  ;;  %v4495_v41 = vld [vmem:[#allocation34_spill] sm:$0xff] }
 0x6c4   :  { %1966 = vmatmul.mubr.bf16.vlgmr.msra.gmra.mrb[52].mxu0 %v1932_v1  ;;  %2816 = vmatmul.mubr.bf16.vlgmr.msra.gmra.mrb[52].mxu1 %v1932_v1 }
 0x6c5   :  { %2057 = vmatpush1.bf16.msra.mxu0 %v3887_v42  ;;  %2820 = vmatpush3.bf16.msra.mxu1 %v3890_v43  ;;  %v4496_v42 = vld [vmem:[#allocation21_spill] sm:$0xff]  ;;  %v4497_v43 = vld [vmem:[#allocation26_spill] sm:$0xff] }
 0x6c6   :  { %2058 = vmatprep.subr.bf16.mxu0 %v3893_v44  ;;  %2821 = vmatprep.subr.bf16.mxu1 %v4444_v18  ;;  %v4498_v44 = vld [vmem:[#allocation22_spill] sm:$0xff] }
 0x6c7   :  { %2088 = vmatprep.mubr.bf16.mxu0 %v4445_v19  ;;  %2835 = vmatprep.mubr.msk.bf16.mxu1 %vm3329_vm0, %v4444_v18 }
 0x6c9   :  { %2059 = vmatpush1.bf16.msra.mxu0 %v3900_v45  ;;  %2822 = vmatpush3.bf16.msra.mxu1 %v3903_v46  ;;  %v4499_v45 = vld [vmem:[#allocation23_spill] sm:$0xff]  ;;  %v4500_v46 = vld [vmem:[#allocation29_spill] sm:$0xff] }
 0x6ca   :  { %2060 = vmatprep.subr.bf16.mxu0 %v3906_v47  ;;  %2823 = vmatprep.subr.bf16.mxu1 %v4444_v18  ;;  %v4501_v47 = vld [vmem:[#allocation24_spill] sm:$0xff] }
 0x6cd   :  { %2061 = vmatpush1.bf16.msra.mxu0 %v3910_v48  ;;  %2824 = vmatpush3.bf16.msra.mxu1 %v3913_v50  ;;  %v4502_v48 = vld [vmem:[#allocation25_spill] sm:$0xff]  ;;  %v4503_v50 = vld [vmem:[#allocation31_spill] sm:$0xff] }
 0x6ce   :  { %2062 = vmatprep.subr.bf16.mxu0 %v3916_v52  ;;  %2825 = vmatprep.subr.bf16.mxu1 %v4444_v18  ;;  %v4504_v52 = vld [vmem:[#allocation27_spill] sm:$0xff] }
 0x6d1   :  { %2063 = vmatpush1.bf16.msra.mxu0 %v3920_v53  ;;  %2826 = vmatpush3.bf16.msra.mxu1 %v3923_v49  ;;  %v4505_v53 = vld [vmem:[#allocation28_spill] sm:$0xff] }
 0x6d2   :  { %2064 = vmatprep.subr.bf16.mxu0 %v3926_v23  ;;  %2827 = vmatprep.subr.bf16.mxu1 %v4444_v18  ;;  %v4506_v49 = vld [vmem:[#allocation32_spill] sm:$0xff] }
 0x6d3   :  { %v1815_v23 = vld [vmem:[#allocation4 + $0x48] sm:$0xff] }
 0x6d4   :  { %v1817_v33 = vunpack.c.l.bf16 %v1815_v23  ;;  %v1818_v4 = vunpack.c.h.bf16 %v1815_v23 }
 0x6d5   :  { %2065 = vmatpush1.bf16.msra.mxu0 %v4495_v41  ;;  %2828 = vmatpush3.bf16.msra.mxu1 %v4496_v42 }
 0x6d6   :  { %2066 = vmatprep.subr.bf16.mxu0 %v4497_v43  ;;  %2829 = vmatprep.subr.bf16.mxu1 %v4444_v18  ;;  %v1823_v43 = vunpack.c.l.bf16 %v1821_v30 }
 0x6d9   :  { %2067 = vmatpush1.bf16.msra.mxu0 %v4498_v44  ;;  %2830 = vmatpush3.bf16.msra.mxu1 %v4499_v45 }
 0x6da   :  { %2068 = vmatprep.subr.bf16.mxu0 %v4500_v46  ;;  %2831 = vmatprep.subr.bf16.mxu1 %v4444_v18 }
 0x6dd   :  { %2069 = vmatpush1.bf16.msra.mxu0 %v4501_v47  ;;  %2832 = vmatpush3.bf16.msra.mxu1 %v4502_v48  ;;  %v1824_v47 = vunpack.c.h.bf16 %v1821_v30 }
 0x6de   :  { %2070 = vmatprep.subr.bf16.mxu0 %v4503_v50  ;;  %2833 = vmatprep.subr.bf16.mxu1 %v4444_v18 }
 0x6e1   :  { %2071 = vmatpush1.bf16.msra.mxu0 %v4504_v52  ;;  %2834 = vmatpush3.bf16.msra.mxu1 %v4505_v53 }
 0x6e2   :  { %2160 = vmatprep.subr.bf16.mxu0 %v4506_v49  ;;  %2839 = vmatprep.subr.bf16.mxu1 %v4444_v18 }
 0x777   :  { %v1863_v28 = vpop.f32.mrb[48].mxu0  ;;  %v1904_v12 = vpop.f32.mrb[48].mxu1 }
 0x778   :  { %v1910_v57 = vadd.f32 %v1863_v28, %v1817_v33  ;;  %v1865_v7 = vpop.f32.mrb[49].mxu0  ;;  %v2797_v51 = vpop.f32.mrb[49].mxu1  ;;  %v1924_v1 = vadd.f32 %v4507_v3, %v1904_v12 }
 0x779   :  { %v1867_v34 = vpop.f32.mrb[50].mxu0  ;;  %v1907_v16 = vpop.f32.mrb[50].mxu1  ;;  %v1917_v8 = vadd.f32 %v1865_v7, %v1818_v4 }
 0x77a   :  { %v2387_v38 = vmul.f32 -1.442695, %v1910_v57  ;;  %v1868_v60 = vpop.f32.mrb[51].mxu0  ;;  %v2798_v39 = vpop.f32.mrb[51].mxu1 }
 0x77b   :  { %v2388_v5 = vmul.f32 -1.442695, %v1917_v8 }
 0x77c   :  { %3059 = vpow2.f32 %v2387_v38 }
 0x77d   :  { %3061 = vpow2.f32 %v2388_v5  ;;  %v4301_v5 = vld [vmem:[#allocation7 + $0x8] ss:$12 sps:$4 sm:$0xff]  }
 0x786   :  { %v3060_v2 = vpop.eup %3059 }
 0x787   :  { %v1914_v61 = vadd.f32 1.0, %v3060_v2  ;;  %v3062_v21 = vpop.eup %3061 }
 0x788   :  { %v1921_v14 = vadd.f32 1.0, %v3062_v21 }
 0x789   :  { %3063 = vrcp.f32 %v1914_v61 }
 0x78a   :  { %3065 = vrcp.f32 %v1921_v14 }
 0x793   :  { %v3064_v41 = vpop.eup %3063 }
 0x794   :  { %v1925_v42 = vmul.f32 %v3064_v41, %v1924_v1  ;;  %v3066_v12 = vpop.eup %3065  ;;  %v2048_v1 = vld [vmem:[#allocation7] sm:$0xff]  ;;  %v2047_v41 = vunpack.c.h.bf16 %v4282_v58 }
 0x795   :  { %v1928_v7 = vsub.f32 1.0, %v3066_v12  ;;  %v1930_v16 = vmul.f32 %v3066_v12, %v4199_v55 }
 0x796   :  { %v1926_v44 = vadd.f32 %v1925_v42, %v1819_v0 }
 0x797   :  { %v1967_v45 = vpop.f32.mrb[52].mxu0  ;;  %v2008_v46 = vpop.f32.mrb[52].mxu1 }
 0x798   :  { %3067 = vtanh.f32 %v1926_v44  ;;  %v2014_v48 = vadd.f32 %v1967_v45, %v1823_v43  ;;  %v1969_v50 = vpop.f32.mrb[53].mxu0  ;;  %v2817_v52 = vpop.f32.mrb[53].mxu1  ;;  %v2050_v45 = vunpack.c.l.bf16 %v2048_v1 }
 0x799   :  { %v1971_v53 = vpop.f32.mrb[54].mxu0  ;;  %v2011_v49 = vpop.f32.mrb[54].mxu1  ;;  %v2021_v4 = vadd.f32 %v1969_v50, %v1824_v47  ;;  %v2051_v50 = vunpack.c.h.bf16 %v2048_v1 }
 0x79a   :  { %v2389_v23 = vmul.f32 -1.442695, %v2014_v48  ;;  %v1972_v33 = vpop.f32.mrb[55].mxu0  ;;  %v2818_v28 = vpop.f32.mrb[55].mxu1 }
 0x79b   :  { %v2390_v57 = vmul.f32 -1.442695, %v2021_v4 }
 0x79c   :  { %3069 = vpow2.f32 %v2389_v23 }
 0x79d   :  { %3071 = vpow2.f32 %v2390_v57 }
 0x7a2   :  { %v3068_v51 = vpop.eup %3067 }
 0x7a3   :  { %v1929_v34 = vmul.f32 %v3068_v51, %v1928_v7 }
 0x7a5   :  { %v4287_v38 = vadd.f32 %v1930_v16, %v1929_v34 }
 0x7a6   :  { %v3070_v60 = vpop.eup %3069 }
 0x7a7   :  { %v2018_v39 = vadd.f32 1.0, %v3070_v60  ;;  %2039 = vst [vmem:[#allocation13 + $0x30] sm:$0xff] %v4287_v38  ;;  %v2055_v8 = vpack.c.bf16 %v4287_v38, %v4287_v38  ;;  %v3072_v55 = vpop.eup %3071 }
 0x7a9   :  { %3073 = vrcp.f32 %v2018_v39  ;;  %2089 = vmatmul.mubr.bf16.vlgmr.msra.gmra.mrb[56].mxu0 %v2055_v8  ;;  %2836 = vmatmul.mubr.bf16.vlgmr.msra.gmra.mrb[56].mxu1 %v2055_v8 }
 0x7aa   :  { %2161 = vmatpush1.bf16.msra.mxu0 %v3978_v13  ;;  %2840 = vmatpush3.bf16.msra.mxu1 %v3981_v59  ;;  %v2025_v13 = vadd.f32 1.0, %v3072_v55  ;;  %v1825_v59 = vunpack.c.h.bf16 %v4301_v5 }
 0x7ab   :  { %2162 = vmatprep.subr.bf16.mxu0 %v3984_v25  ;;  %2841 = vmatprep.subr.bf16.mxu1 %v4444_v18  ;;  %v2028_v25 = vadd.f32 %v4128_v6, %v2008_v46 }
 0x7ac   :  { %2192 = vmatprep.mubr.bf16.mxu0 %v4445_v19  ;;  %2855 = vmatprep.mubr.msk.bf16.mxu1 %vm3329_vm0, %v4444_v18  ;;  %3075 = vrcp.f32 %v2025_v13 }
 0x7ae   :  { %2163 = vmatpush1.bf16.msra.mxu0 %v3991_v15  ;;  %2842 = vmatpush3.bf16.msra.mxu1 %v3994_v27 }
 0x7af   :  { %2164 = vmatprep.subr.bf16.mxu0 %v3997_v29  ;;  %2843 = vmatprep.subr.bf16.mxu1 %v4444_v18 }
 0x7b2   :  { %2165 = vmatpush1.bf16.msra.mxu0 %v4003_v37  ;;  %2844 = vmatpush3.bf16.msra.mxu1 %v4006_v32 }
 0x7b3   :  { %v3074_v19 = vpop.eup %3073  ;;  %2166 = vmatprep.subr.bf16.mxu0 %v4009_v36  ;;  %2845 = vmatprep.subr.bf16.mxu1 %v4444_v18 }
 0x7b4   :  { %v2029_v15 = vmul.f32 %v3074_v19, %v2028_v25 }
 0x7b6   :  { %v2030_v27 = vadd.f32 %v2029_v15, %v1825_v59  ;;  %2167 = vmatpush1.bf16.msra.mxu0 %v4013_v40  ;;  %2846 = vmatpush3.bf16.msra.mxu1 %v4016_v24  ;;  %v3076_v29 = vpop.eup %3075 }
 0x7b7   :  { %2168 = vmatprep.subr.bf16.mxu0 %v4019_v35  ;;  %2847 = vmatprep.subr.bf16.mxu1 %v4444_v18  ;;  %v2032_v37 = vsub.f32 1.0, %v3076_v29  ;;  %v2034_v40 = vmul.f32 %v3076_v29, %v4238_v22 }
 0x7b8   :  { %3077 = vtanh.f32 %v2030_v27 }
 0x7ba   :  { %2169 = vmatpush1.bf16.msra.mxu0 %v4023_v9  ;;  %2848 = vmatpush3.bf16.msra.mxu1 %v4026_v10  ;;  %v2043_v9 = vld [vmem:[#allocation4 + $0x54] sm:$0xff] }
 0x7bb   :  { %2170 = vmatprep.subr.bf16.mxu0 %v4029_v11  ;;  %2849 = vmatprep.subr.bf16.mxu1 %v4444_v18  ;;  %v2045_v10 = vunpack.c.l.bf16 %v2043_v9 }
 0x7be   :  { %2171 = vmatpush1.bf16.msra.mxu0 %v4033_v17  ;;  %2850 = vmatpush3.bf16.msra.mxu1 %v4036_v56  ;;  %v2046_v17 = vunpack.c.h.bf16 %v2043_v9 }
 0x7bf   :  { %2172 = vmatprep.subr.bf16.mxu0 %v4039_v54  ;;  %2851 = vmatprep.subr.bf16.mxu1 %v4444_v18 }
 0x7c2   :  { %v3078_v32 = vpop.eup %3077  ;;  %2173 = vmatpush1.bf16.msra.mxu0 %v4043_v20  ;;  %2852 = vmatpush3.bf16.msra.mxu1 %v4046_v62 }
 0x7c3   :  { %2174 = vmatprep.subr.bf16.mxu0 %v4049_v63  ;;  %2853 = vmatprep.subr.bf16.mxu1 %v4444_v18  ;;  %v2033_v36 = vmul.f32 %v3078_v32, %v2032_v37 }
 0x7c5   :  { %v4328_v24 = vadd.f32 %v2034_v40, %v2033_v36 }
 0x7c6   :  { %2175 = vmatpush1.bf16.msra.mxu0 %v4056_v26  ;;  %2854 = vmatpush3.bf16.msra.mxu1 %v4059_v31 }
 0x7c7   :  { %2041 = vst [vmem:[#allocation14 + $0x8] sm:$0xff] %v4328_v24  ;;  %v2159_v35 = vpack.c.bf16 %v4328_v24, %v4328_v24 }
 0x7c9   :  { %2193 = vmatmul.mubr.bf16.vlgmr.msra.gmra.mrb[60].mxu0 %v2159_v35  ;;  %2856 = vmatmul.mubr.bf16.vlgmr.msra.gmra.mrb[60].mxu1 %v2159_v35 }
 0x87c   :  { %v2090_v11 = vpop.f32.mrb[56].mxu0  ;;  %v2131_v18 = vpop.f32.mrb[56].mxu1 }
 0x87d   :  { %v2137_v56 = vadd.f32 %v2090_v11, %v2045_v10  ;;  %v2092_v54 = vpop.f32.mrb[57].mxu0  ;;  %v2837_v20 = vpop.f32.mrb[57].mxu1  ;;  %v2151_v42 = vadd.f32 %v4507_v3, %v2131_v18 }
 0x87e   :  { %v2094_v62 = vpop.f32.mrb[58].mxu0  ;;  %v2134_v63 = vpop.f32.mrb[58].mxu1  ;;  %v2144_v2 = vadd.f32 %v2092_v54, %v2046_v17 }
 0x87f   :  { %v2391_v26 = vmul.f32 -1.442695, %v2137_v56  ;;  %v2095_v22 = vpop.f32.mrb[59].mxu0  ;;  %v2838_v31 = vpop.f32.mrb[59].mxu1 }
 0x880   :  { %v2392_v61 = vmul.f32 -1.442695, %v2144_v2 }
 0x881   :  { %3079 = vpow2.f32 %v2391_v26 }
 0x882   :  { %3081 = vpow2.f32 %v2392_v61 }
 0x88b   :  { %v3080_v21 = vpop.eup %3079 }
 0x88c   :  { %v2141_v14 = vadd.f32 1.0, %v3080_v21  ;;  %v3082_v30 = vpop.eup %3081 }
 0x88d   :  { %v2148_v0 = vadd.f32 1.0, %v3082_v30 }
 0x88e   :  { %3083 = vrcp.f32 %v2141_v14 }
 0x88f   :  { %3085 = vrcp.f32 %v2148_v0 }
 0x898   :  { %v3084_v43 = vpop.eup %3083 }
 0x899   :  { %v2152_v44 = vmul.f32 %v3084_v43, %v2151_v42  ;;  %v3086_v3 = vpop.eup %3085 }
 0x89a   :  { %v2155_v7 = vsub.f32 1.0, %v3086_v3  ;;  %v2157_v16 = vmul.f32 %v3086_v3, %v4287_v38 }
 0x89b   :  { %v2153_v46 = vadd.f32 %v2152_v44, %v2047_v41 }
 0x89c   :  { %v2194_v47 = vpop.f32.mrb[60].mxu0  ;;  %v2235_v48 = vpop.f32.mrb[60].mxu1 }
 0x89d   :  { %3087 = vtanh.f32 %v2153_v46  ;;  %v2241_v52 = vadd.f32 %v2194_v47, %v2050_v45  ;;  %v2196_v53 = vpop.f32.mrb[61].mxu0  ;;  %v2857_v49 = vpop.f32.mrb[61].mxu1 }
 0x89e   :  { %v2198_v23 = vpop.f32.mrb[62].mxu0  ;;  %v2238_v33 = vpop.f32.mrb[62].mxu1  ;;  %v2248_v58 = vadd.f32 %v2196_v53, %v2051_v50 }
 0x89f   :  { %v2393_v28 = vmul.f32 -1.442695, %v2241_v52  ;;  %v2199_v4 = vpop.f32.mrb[63].mxu0  ;;  %v2858_v12 = vpop.f32.mrb[63].mxu1 }
 0x8a0   :  { %v2394_v57 = vmul.f32 -1.442695, %v2248_v58 }
 0x8a1   :  { %3089 = vpow2.f32 %v2393_v28 }
 0x8a2   :  { %3091 = vpow2.f32 %v2394_v57 }
 0x8a7   :  { %v3088_v51 = vpop.eup %3087 }
 0x8a8   :  { %v2156_v34 = vmul.f32 %v3088_v51, %v2155_v7 }
 0x8aa   :  { %v2158_v60 = vadd.f32 %v2157_v16, %v2156_v34 }
 0x8ab   :  { %v3090_v39 = vpop.eup %3089 }
 0x8ac   :  { %2266 = vst [vmem:[#allocation13 + $0x38] sm:$0xff] %v2158_v60  ;;  %v2245_v8 = vadd.f32 1.0, %v3090_v39 }
 0x8ad   :  { %3273 = shalt.err (!%p3270_p8)
}
 0x8ae   :  { %s3274_s16 = scalar_lea.hbm %s4376_s5, 1024 }
 0x8af   :  { %p3275_p9 = scmp.ne.s32.totalorder %s4376_s5, %s3274_s16  ;;  %p3278_p10 = scmp.lt.u32.totalorder %s3274_s16, %s4376_s5 }
 0x8b1   :  { %p3280_p11 = pnand %p3278_p10, %p3275_p9 }
 0x8b3   :  { %3283 = shalt.err (!%p3280_p11)
}
 0x8b4   :  { %2279 = dma.vmem_to_hbm [thread:$0]  %s2274_s3, 1024, %s4376_s5, [#allocation6], %s3325_s2, %s3325_s2, %s3326_s10   ;;  %3093 = vrcp.f32 %v2245_v8  ;;  %v3092_v38 = vpop.eup %3091  ;;  %v2052_v13 = vunpack.c.l.bf16 %v4301_v5  ;;  %v2255_v59 = vadd.f32 %v4128_v6, %v2235_v48 }
 0x8b5   :  { %v2252_v55 = vadd.f32 1.0, %v3092_v38  ;;  %s3331_s23 = smov [#allocation14]  }
 0x8b6   :  { %s2289_s0 = sshll.u32 %s3331_s23, 4  ;;  %s2290_s0 = int_to_ptr.vmem [resolvable:$true] %s2289_s0 }
 0x8b7   :  { %3095 = vrcp.f32 %v2252_v55  ;;  %s3284_s5 = scalar_lea.vmem %s2290_s0, 1024  ;;  %p3289_p13 = scmp.lt.s32.totalorder %s2290_s0, %s2290_s0 }
 0x8b8   :  { %p3285_p12 = scmp.ne.s32.totalorder %s2290_s0, %s3284_s5  ;;  %p3290_p0 = scmp.lt.s32.totalorder %s3284_s5, %s3284_s5 }
 0x8ba   :  { %p3291_p1 = por %p3290_p0, %p3289_p13 }
 0x8bc   :  { %p3292_p2 = pnand %p3291_p1, %p3285_p12 }
 0x8be   :  { %v3094_v25 = vpop.eup %3093 }
 0x8bf   :  { %v2256_v19 = vmul.f32 %v3094_v25, %v2255_v59 }
 0x8c1   :  { %v2257_v15 = vadd.f32 %v2256_v19, %v2052_v13  ;;  %v3096_v27 = vpop.eup %3095 }
 0x8c2   :  { %v2259_v29 = vsub.f32 1.0, %v3096_v27  ;;  %v2261_v36 = vmul.f32 %v3096_v27, %v4328_v24 }
 0x8c3   :  { %3097 = vtanh.f32 %v2257_v15 }
 0x8cd   :  { %v3098_v37 = vpop.eup %3097 }
 0x8ce   :  { %v2260_v32 = vmul.f32 %v3098_v37, %v2259_v29 }
 0x8d0   :  { %v2262_v40 = vadd.f32 %v2261_v36, %v2260_v32 }
 0x8d2   :  { %2267 = vst [vmem:[#allocation14] sm:$0xff] %v2262_v40 }
 0x8d3   :  { %3295 = shalt.err (!%p3292_p2)
}
 0x8d4   :  { %s3296_s28 = scalar_lea.hbm %s4377_s6, 1024 }
 0x8d5   :  { %p3297_p3 = scmp.ne.s32.totalorder %s4377_s6, %s3296_s28  ;;  %p3300_p4 = scmp.lt.u32.totalorder %s3296_s28, %s4377_s6 }
 0x8d7   :  { %p3302_p5 = pnand %p3300_p4, %p3297_p3 }
 0x8d9   :  { %3305 = shalt.err (!%p3302_p5)
}
 0x8da   :  { %2295 = dma.vmem_to_hbm [thread:$0]  %s2290_s0, 1024, %s4377_s6, [#allocation15], %s3325_s2, %s3325_s2, %s3326_s10  }
 0x8db   :  { %3312 = dma.done.wait [#allocation6], 1024  }
 0x8dc   :  { %3313 = vsyncadd [#allocation6], 4294966272 }
 0x8dd   :  { %3314 = dma.done.wait [#allocation15], 1024  }
 0x8de   :  { %3315 = vsyncadd [#allocation15], 4294966272 }
 0x8df   :  { %2302 = vsyncpa [#allocation5], 1 }
 0x8e0   :  { %2303 = vsyncpa [#allocation8], 1 }
 0x8e1   :  { %2304 = vsyncpa [#allocation11], 1 }
 0x8e2   :  { %2305 = vsyncpa [#allocation6], 1 }
 0x8e3   :  { %2306 = vsyncpa [#allocation15], 1 }

</bundles_post_ra>
